<compile_context>
chip_gen: v7x
topology: tpu7x:2x2x1
jax: 0.10.0
libtpu: 0.0.40
codegen_flags: <defaults>
</compile_context>

<pallas_src>
import math

import jax
import jax.numpy as jnp
from jax.experimental import pallas as pl
from jax.experimental.pallas import tpu as pltpu

_VMEM = pl.BlockSpec(memory_space=pltpu.MemorySpace.VMEM)


# ----------------------------- parameters ---------------------------------

def make_positional_encoding(max_len, d_model):
    position = jnp.arange(max_len, dtype=jnp.float32)[:, None]
    div_term = jnp.exp(jnp.arange(0, d_model, 2, dtype=jnp.float32)
                       * (-math.log(10000.0) / d_model))
    pe = jnp.zeros((max_len, d_model), jnp.float32)
    pe = pe.at[:, 0::2].set(jnp.sin(position * div_term))
    pe = pe.at[:, 1::2].set(jnp.cos(position * div_term))
    return pe  # (max_len, d_model)


def init_params(key, input_dim, model_dim, num_heads, num_layers,
                max_len, horizon, dim_feedforward=2048):
    def dense(k, fan_in, fan_out):
        kw, kb = jax.random.split(k)
        lim = 1.0 / math.sqrt(fan_in)
        w = jax.random.uniform(kw, (fan_in, fan_out), jnp.float32, -lim, lim)
        b = jax.random.uniform(kb, (1, fan_out), jnp.float32, -lim, lim)
        return w, b

    keys = jax.random.split(key, 4 + num_layers)
    params = {"num_heads": num_heads}
    params["Wp"], params["bp"] = dense(keys[0], input_dim, model_dim)
    params["pe"] = make_positional_encoding(max_len, model_dim)

    layers = []
    for l in range(num_layers):
        lk = jax.random.split(keys[4 + l], 4)
        lp = {}
        lp["Win"], lp["bin"] = dense(lk[0], model_dim, 3 * model_dim)
        lp["Wo"], lp["bo"] = dense(lk[1], model_dim, model_dim)
        lp["W1"], lp["b1"] = dense(lk[2], model_dim, dim_feedforward)
        lp["W2"], lp["b2"] = dense(lk[3], dim_feedforward, model_dim)
        lp["g1"] = jnp.ones((1, model_dim), jnp.float32)
        lp["be1"] = jnp.zeros((1, model_dim), jnp.float32)
        lp["g2"] = jnp.ones((1, model_dim), jnp.float32)
        lp["be2"] = jnp.zeros((1, model_dim), jnp.float32)
        layers.append(lp)
    params["layers"] = layers

    params["Wd1"], params["bd1"] = dense(keys[1], model_dim, input_dim)
    params["Wd2a"], params["bd2a"] = dense(keys[2], max_len, max_len)
    params["Wd2b"], params["bd2b"] = dense(keys[3], max_len, horizon)
    return params


# ----------------------------- forward pass -------------------------------

def _layer_norm(h, gamma, beta, eps=1e-5):
    mu = jnp.mean(h, axis=-1, keepdims=True)
    var = jnp.mean(jnp.square(h - mu), axis=-1, keepdims=True)
    return (h - mu) * jax.lax.rsqrt(var + eps) * gamma + beta


def transformer_csi_forward(src, params):
    # src: (B, T, input_dim) with T == max_len
    B, T, Din = src.shape
    E = params["Wp"].shape[1]
    H = params["num_heads"]
    Dh = E // H
    num_layers = len(params["layers"])
    horizon = params["Wd2b"].shape[1]
    scale = 1.0 / math.sqrt(Dh)

    # Row order inside the kernel is (t, b): attention (batch_first=False
    # semantics) then simply batches over t with a sequence axis of length B.
    src_tb = src.transpose(1, 0, 2).reshape(T * B, Din)

    # Positional encoding pre-broadcast to the (t, b) row order.  Constant
    # folded under jit since params are closed over.
    pe = params["pe"][:T]                                              # (T, E)
    pe_tb = jnp.broadcast_to(pe[:, None, :], (T, B, E)).reshape(T * B, E)

    # Kernel operands: everything loaded into VMEM once per forward.  The two
    # large FFN matrices per layer are carried as bf16 (MXU-native); all other
    # tensors stay f32.
    args = [src_tb, pe_tb, params["Wp"], params["bp"]]
    for lp in params["layers"]:
        args += [lp["Win"], lp["bin"], lp["Wo"], lp["bo"],
                 lp["W1"].astype(jnp.bfloat16), lp["b1"],
                 lp["W2"].astype(jnp.bfloat16), lp["b2"],
                 lp["g1"], lp["be1"], lp["g2"], lp["be2"]]
    args += [params["Wd1"], params["bd1"],
             params["Wd2a"].T, params["bd2a"].reshape(-1, 1),
             params["Wd2b"].T, params["bd2b"].reshape(-1, 1)]
    n_in = len(args)

    def kernel(*refs):
        out_ref = refs[-1]
        it = iter(refs[:-1])
        src_r = next(it)
        pe_r = next(it)
        wp_r = next(it)
        bp_r = next(it)
        layer_r = [tuple(next(it) for _ in range(12)) for _ in range(num_layers)]
        wd1_r = next(it)
        bd1_r = next(it)
        w2aT_r = next(it)
        b2a_r = next(it)
        w2bT_r = next(it)
        b2b_r = next(it)

        # ---- input projection with fused positional-encoding epilogue ----
        x = (jnp.dot(src_r[...], wp_r[...],
                     preferred_element_type=jnp.float32)
             + bp_r[...] + pe_r[...])                         # (T*B, E), (t, b) rows

        # ---- encoder layers (post-norm, ReLU FFN; eval mode -> dropout = id)
        # TODO(synk): train-mode dropout omitted (identity in eval mode)
        for (win_r, bin_r, wo_r, bo_r, w1_r, b1_r, w2_r, b2_r,
             g1_r, be1_r, g2_r, be2_r) in layer_r:
            qkv = (jnp.dot(x, win_r[...],
                           preferred_element_type=jnp.float32)
                   + bin_r[...])                              # (T*B, 3E)
            q = qkv[:, :E].reshape(T, B, E)
            k = qkv[:, E:2 * E].reshape(T, B, E)
            v = qkv[:, 2 * E:].reshape(T, B, E)

            wo = wo_r[...]
            a = bo_r[...]                                     # out-proj bias
            for h in range(H):                                # static lane slices
                sl = slice(h * Dh, (h + 1) * Dh)
                qh = q[:, :, sl] * scale                      # (T, B, Dh)
                kh = k[:, :, sl]
                vh = v[:, :, sl]
                s = jnp.einsum("tqd,tkd->tqk", qh, kh,
                               preferred_element_type=jnp.float32)  # (T, B, B)
                s = s - jnp.max(s, axis=-1, keepdims=True)
                p = jnp.exp(s)
                p = p * pl.reciprocal(jnp.sum(p, axis=-1, keepdims=True),
                                      approx=True)
                oh = jnp.einsum("tqk,tkd->tqd", p, vh,
                                preferred_element_type=jnp.float32)  # (T, B, Dh)
                # concat-over-heads + out_proj == sum of per-head matmuls
                # against the corresponding row slice of Wo.
                a = a + jnp.dot(oh.reshape(T * B, Dh), wo[sl, :],
                                preferred_element_type=jnp.float32)

            h1 = _layer_norm(x + a, g1_r[...], be1_r[...])    # norm1(x + sa)

            # FFN: bf16 operands on the MXU, f32 accumulation, f32 elementwise.
            ff = (jnp.dot(h1.astype(jnp.bfloat16), w1_r[...],
                          preferred_element_type=jnp.float32) + b1_r[...])
            ff = jnp.maximum(ff, 0.0)
            ff = (jnp.dot(ff.astype(jnp.bfloat16), w2_r[...],
                          preferred_element_type=jnp.float32) + b2_r[...])

            x = _layer_norm(h1 + ff, g2_r[...], be2_r[...])   # norm2(x + ff)

        # ---- decoder1: (T*B, E) -> (T*B, Din) ----
        d = (jnp.dot(x, wd1_r[...],
                     preferred_element_type=jnp.float32) + bd1_r[...])
        d3 = d.reshape(T, B, Din)                             # d3[t, b, i]

        # ---- decoder2 over the time axis (permute(0,2,1) folded in) ----
        w2aT = w2aT_r[...]                                    # (T, T)  = Wd2a.T
        b2a = b2a_r[...]                                      # (T, 1)
        w2bT = w2bT_r[...]                                    # (horizon, T)
        b2b = b2b_r[...]                                      # (horizon, 1)
        for b in range(B):
            db = d3[:, b, :]                                  # (T, Din)
            z = jnp.dot(w2aT, db, preferred_element_type=jnp.float32) + b2a
            z = jnp.where(z > 0, z, 0.01 * z)                 # LeakyReLU(0.01)
            ob = jnp.dot(w2bT, z, preferred_element_type=jnp.float32) + b2b
            out_ref[b] = ob                                   # (horizon, Din)

    return pl.pallas_call(
        kernel,
        out_shape=jax.ShapeDtypeStruct((B, horizon, Din), jnp.float32),
        in_specs=[_VMEM] * n_in,
        out_specs=_VMEM,
    )(*args)


if __name__ == "__main__":
    # small, module-consistent shapes
    B, input_dim, model_dim, num_heads, num_layers = 4, 6, 32, 4, 2
    dropout, max_len, horizon = 0.1, 8, 5   # dropout unused (eval semantics)

    key = jax.random.PRNGKey(0)
    pkey, xkey = jax.random.split(key)
    params = init_params(pkey, input_dim, model_dim, num_heads, num_layers,
                         max_len, horizon)
    src = jax.random.normal(xkey, (B, max_len, input_dim), jnp.float32)

    fwd = jax.jit(lambda s: transformer_csi_forward(s, params))
    out = fwd(src)
    jax.block_until_ready(out)
    assert out.shape == (B, horizon, input_dim), out.shape
    assert bool(jnp.all(jnp.isfinite(out)))
    print("KERNEL_OK")
</pallas_src>

<mosaic_0001>
module attributes {stable_mosaic.version = 11 : i64} {
  func.func @kernel(%arg0: memref<32x6xf32, #tpu.memory_space<vmem>>, %arg1: memref<32x32xf32, #tpu.memory_space<vmem>>, %arg2: memref<6x32xf32, #tpu.memory_space<vmem>>, %arg3: memref<1x32xf32, #tpu.memory_space<vmem>>, %arg4: memref<32x96xf32, #tpu.memory_space<vmem>>, %arg5: memref<1x96xf32, #tpu.memory_space<vmem>>, %arg6: memref<32x32xf32, #tpu.memory_space<vmem>>, %arg7: memref<1x32xf32, #tpu.memory_space<vmem>>, %arg8: memref<32x2048xbf16, #tpu.memory_space<vmem>>, %arg9: memref<1x2048xf32, #tpu.memory_space<vmem>>, %arg10: memref<2048x32xbf16, #tpu.memory_space<vmem>>, %arg11: memref<1x32xf32, #tpu.memory_space<vmem>>, %arg12: memref<1x32xf32, #tpu.memory_space<vmem>>, %arg13: memref<1x32xf32, #tpu.memory_space<vmem>>, %arg14: memref<1x32xf32, #tpu.memory_space<vmem>>, %arg15: memref<1x32xf32, #tpu.memory_space<vmem>>, %arg16: memref<32x96xf32, #tpu.memory_space<vmem>>, %arg17: memref<1x96xf32, #tpu.memory_space<vmem>>, %arg18: memref<32x32xf32, #tpu.memory_space<vmem>>, %arg19: memref<1x32xf32, #tpu.memory_space<vmem>>, %arg20: memref<32x2048xbf16, #tpu.memory_space<vmem>>, %arg21: memref<1x2048xf32, #tpu.memory_space<vmem>>, %arg22: memref<2048x32xbf16, #tpu.memory_space<vmem>>, %arg23: memref<1x32xf32, #tpu.memory_space<vmem>>, %arg24: memref<1x32xf32, #tpu.memory_space<vmem>>, %arg25: memref<1x32xf32, #tpu.memory_space<vmem>>, %arg26: memref<1x32xf32, #tpu.memory_space<vmem>>, %arg27: memref<1x32xf32, #tpu.memory_space<vmem>>, %arg28: memref<32x6xf32, #tpu.memory_space<vmem>>, %arg29: memref<1x6xf32, #tpu.memory_space<vmem>>, %arg30: memref<8x8xf32, #tpu.memory_space<vmem>>, %arg31: memref<8x1xf32, #tpu.memory_space<vmem>>, %arg32: memref<5x8xf32, #tpu.memory_space<vmem>>, %arg33: memref<5x1xf32, #tpu.memory_space<vmem>>, %arg34: memref<4x5x6xf32, #tpu.memory_space<vmem>>) attributes {dimension_semantics = [], scalar_prefetch = 0 : i64, scratch_operands = 0 : i64, tpu.core_type = #tpu.core_type<tc>} {
    %c0 = arith.constant 0 : index
    %c0_0 = arith.constant 0 : index
    %0 = vector.load %arg0[%c0, %c0_0] : memref<32x6xf32, #tpu.memory_space<vmem>>, vector<32x6xf32>
    %c0_1 = arith.constant 0 : index
    %c0_2 = arith.constant 0 : index
    %1 = vector.load %arg2[%c0_1, %c0_2] : memref<6x32xf32, #tpu.memory_space<vmem>>, vector<6x32xf32>
    %cst = arith.constant dense<0.000000e+00> : vector<32x32xf32>
    %2 = tpu.matmul %0, %1, %cst {dimension_numbers = #tpu.dot_dimension_numbers<[1], [0], [0], [1], [0, 0, 1, 1], [], []>} : vector<32x6xf32>, vector<6x32xf32>, vector<32x32xf32> -> vector<32x32xf32>
    %c0_3 = arith.constant 0 : index
    %c0_4 = arith.constant 0 : index
    %3 = vector.load %arg3[%c0_3, %c0_4] : memref<1x32xf32, #tpu.memory_space<vmem>>, vector<1x32xf32>
    %4 = vector.broadcast %3 : vector<1x32xf32> to vector<32x32xf32>
    %5 = arith.addf %2, %4 : vector<32x32xf32>
    %c0_5 = arith.constant 0 : index
    %c0_6 = arith.constant 0 : index
    %6 = vector.load %arg1[%c0_5, %c0_6] : memref<32x32xf32, #tpu.memory_space<vmem>>, vector<32x32xf32>
    %7 = arith.addf %5, %6 : vector<32x32xf32>
    %c0_7 = arith.constant 0 : index
    %c0_8 = arith.constant 0 : index
    %8 = vector.load %arg4[%c0_7, %c0_8] : memref<32x96xf32, #tpu.memory_space<vmem>>, vector<32x96xf32>
    %cst_9 = arith.constant dense<0.000000e+00> : vector<32x96xf32>
    %9 = tpu.matmul %7, %8, %cst_9 {dimension_numbers = #tpu.dot_dimension_numbers<[1], [0], [0], [1], [0, 0, 1, 1], [], []>} : vector<32x32xf32>, vector<32x96xf32>, vector<32x96xf32> -> vector<32x96xf32>
    %c0_10 = arith.constant 0 : index
    %c0_11 = arith.constant 0 : index
    %10 = vector.load %arg5[%c0_10, %c0_11] : memref<1x96xf32, #tpu.memory_space<vmem>>, vector<1x96xf32>
    %11 = vector.broadcast %10 : vector<1x96xf32> to vector<32x96xf32>
    %12 = arith.addf %9, %11 : vector<32x96xf32>
    %13 = vector.extract_strided_slice %12 {offsets = [0, 0], sizes = [32, 32], strides = [1, 1]} : vector<32x96xf32> to vector<32x32xf32>
    %14 = vector.shape_cast %13 : vector<32x32xf32> to vector<8x4x32xf32>
    %15 = vector.extract_strided_slice %12 {offsets = [0, 32], sizes = [32, 32], strides = [1, 1]} : vector<32x96xf32> to vector<32x32xf32>
    %16 = vector.shape_cast %15 : vector<32x32xf32> to vector<8x4x32xf32>
    %17 = vector.extract_strided_slice %12 {offsets = [0, 64], sizes = [32, 32], strides = [1, 1]} : vector<32x96xf32> to vector<32x32xf32>
    %18 = vector.shape_cast %17 : vector<32x32xf32> to vector<8x4x32xf32>
    %c0_12 = arith.constant 0 : index
    %c0_13 = arith.constant 0 : index
    %19 = vector.load %arg6[%c0_12, %c0_13] : memref<32x32xf32, #tpu.memory_space<vmem>>, vector<32x32xf32>
    %c0_14 = arith.constant 0 : index
    %c0_15 = arith.constant 0 : index
    %20 = vector.load %arg7[%c0_14, %c0_15] : memref<1x32xf32, #tpu.memory_space<vmem>>, vector<1x32xf32>
    %21 = vector.extract_strided_slice %14 {offsets = [0, 0, 0], sizes = [8, 4, 8], strides = [1, 1, 1]} : vector<8x4x32xf32> to vector<8x4x8xf32>
    %cst_16 = arith.constant 0.353553385 : f32
    %22 = vector.broadcast %cst_16 : f32 to vector<8x4x8xf32>
    %23 = arith.mulf %21, %22 : vector<8x4x8xf32>
    %24 = vector.extract_strided_slice %16 {offsets = [0, 0, 0], sizes = [8, 4, 8], strides = [1, 1, 1]} : vector<8x4x32xf32> to vector<8x4x8xf32>
    %25 = vector.extract_strided_slice %18 {offsets = [0, 0, 0], sizes = [8, 4, 8], strides = [1, 1, 1]} : vector<8x4x32xf32> to vector<8x4x8xf32>
    "tpu.trace_start"() <{level = 10 : i32, message = "tqd,tkd->tqk"}> : () -> ()
    %cst_17 = arith.constant dense<0.000000e+00> : vector<8x4x4xf32>
    %26 = tpu.matmul %23, %24, %cst_17 {dimension_numbers = #tpu.dot_dimension_numbers<[2], [2], [1], [1], [0, 0, 0, 1, 1, 1], [0], [0]>} : vector<8x4x8xf32>, vector<8x4x8xf32>, vector<8x4x4xf32> -> vector<8x4x4xf32>
    "tpu.trace_stop"() : () -> ()
    %cst_18 = arith.constant dense<0xFF800000> : vector<8x4xf32>
    %27 = vector.multi_reduction <maximumf>, %26, %cst_18 [2] : vector<8x4x4xf32> to vector<8x4xf32>
    %28 = vector.shape_cast %27 : vector<8x4xf32> to vector<8x4x1xf32>
    %29 = vector.broadcast %28 : vector<8x4x1xf32> to vector<8x4x4xf32>
    %30 = arith.subf %26, %29 : vector<8x4x4xf32>
    %31 = math.exp %30 : vector<8x4x4xf32>
    %cst_19 = arith.constant dense<0.000000e+00> : vector<8x4xf32>
    %32 = vector.multi_reduction <add>, %31, %cst_19 [2] : vector<8x4x4xf32> to vector<8x4xf32>
    %33 = vector.shape_cast %32 : vector<8x4xf32> to vector<8x4x1xf32>
    %34 = tpu.reciprocal %33 {approx = true} : vector<8x4x1xf32> -> vector<8x4x1xf32>
    %35 = vector.broadcast %34 : vector<8x4x1xf32> to vector<8x4x4xf32>
    %36 = arith.mulf %31, %35 : vector<8x4x4xf32>
    "tpu.trace_start"() <{level = 10 : i32, message = "tqk,tkd->tqd"}> : () -> ()
    %cst_20 = arith.constant dense<0.000000e+00> : vector<8x4x8xf32>
    %37 = tpu.matmul %36, %25, %cst_20 {dimension_numbers = #tpu.dot_dimension_numbers<[2], [1], [1], [2], [0, 0, 0, 1, 1, 2], [0], [0]>} : vector<8x4x4xf32>, vector<8x4x8xf32>, vector<8x4x8xf32> -> vector<8x4x8xf32>
    "tpu.trace_stop"() : () -> ()
    %38 = vector.shape_cast %37 : vector<8x4x8xf32> to vector<32x8xf32>
    %39 = vector.extract_strided_slice %19 {offsets = [0, 0], sizes = [8, 32], strides = [1, 1]} : vector<32x32xf32> to vector<8x32xf32>
    %cst_21 = arith.constant dense<0.000000e+00> : vector<32x32xf32>
    %40 = tpu.matmul %38, %39, %cst_21 {dimension_numbers = #tpu.dot_dimension_numbers<[1], [0], [0], [1], [0, 0, 1, 1], [], []>} : vector<32x8xf32>, vector<8x32xf32>, vector<32x32xf32> -> vector<32x32xf32>
    %41 = vector.broadcast %20 : vector<1x32xf32> to vector<32x32xf32>
    %42 = arith.addf %41, %40 : vector<32x32xf32>
    %43 = vector.extract_strided_slice %14 {offsets = [0, 0, 8], sizes = [8, 4, 8], strides = [1, 1, 1]} : vector<8x4x32xf32> to vector<8x4x8xf32>
    %cst_22 = arith.constant 0.353553385 : f32
    %44 = vector.broadcast %cst_22 : f32 to vector<8x4x8xf32>
    %45 = arith.mulf %43, %44 : vector<8x4x8xf32>
    %46 = vector.extract_strided_slice %16 {offsets = [0, 0, 8], sizes = [8, 4, 8], strides = [1, 1, 1]} : vector<8x4x32xf32> to vector<8x4x8xf32>
    %47 = vector.extract_strided_slice %18 {offsets = [0, 0, 8], sizes = [8, 4, 8], strides = [1, 1, 1]} : vector<8x4x32xf32> to vector<8x4x8xf32>
    "tpu.trace_start"() <{level = 10 : i32, message = "tqd,tkd->tqk"}> : () -> ()
    %cst_23 = arith.constant dense<0.000000e+00> : vector<8x4x4xf32>
    %48 = tpu.matmul %45, %46, %cst_23 {dimension_numbers = #tpu.dot_dimension_numbers<[2], [2], [1], [1], [0, 0, 0, 1, 1, 1], [0], [0]>} : vector<8x4x8xf32>, vector<8x4x8xf32>, vector<8x4x4xf32> -> vector<8x4x4xf32>
    "tpu.trace_stop"() : () -> ()
    %cst_24 = arith.constant dense<0xFF800000> : vector<8x4xf32>
    %49 = vector.multi_reduction <maximumf>, %48, %cst_24 [2] : vector<8x4x4xf32> to vector<8x4xf32>
    %50 = vector.shape_cast %49 : vector<8x4xf32> to vector<8x4x1xf32>
    %51 = vector.broadcast %50 : vector<8x4x1xf32> to vector<8x4x4xf32>
    %52 = arith.subf %48, %51 : vector<8x4x4xf32>
    %53 = math.exp %52 : vector<8x4x4xf32>
    %cst_25 = arith.constant dense<0.000000e+00> : vector<8x4xf32>
    %54 = vector.multi_reduction <add>, %53, %cst_25 [2] : vector<8x4x4xf32> to vector<8x4xf32>
    %55 = vector.shape_cast %54 : vector<8x4xf32> to vector<8x4x1xf32>
    %56 = tpu.reciprocal %55 {approx = true} : vector<8x4x1xf32> -> vector<8x4x1xf32>
    %57 = vector.broadcast %56 : vector<8x4x1xf32> to vector<8x4x4xf32>
    %58 = arith.mulf %53, %57 : vector<8x4x4xf32>
    "tpu.trace_start"() <{level = 10 : i32, message = "tqk,tkd->tqd"}> : () -> ()
    %cst_26 = arith.constant dense<0.000000e+00> : vector<8x4x8xf32>
    %59 = tpu.matmul %58, %47, %cst_26 {dimension_numbers = #tpu.dot_dimension_numbers<[2], [1], [1], [2], [0, 0, 0, 1, 1, 2], [0], [0]>} : vector<8x4x4xf32>, vector<8x4x8xf32>, vector<8x4x8xf32> -> vector<8x4x8xf32>
    "tpu.trace_stop"() : () -> ()
    %60 = vector.shape_cast %59 : vector<8x4x8xf32> to vector<32x8xf32>
    %61 = vector.extract_strided_slice %19 {offsets = [8, 0], sizes = [8, 32], strides = [1, 1]} : vector<32x32xf32> to vector<8x32xf32>
    %cst_27 = arith.constant dense<0.000000e+00> : vector<32x32xf32>
    %62 = tpu.matmul %60, %61, %cst_27 {dimension_numbers = #tpu.dot_dimension_numbers<[1], [0], [0], [1], [0, 0, 1, 1], [], []>} : vector<32x8xf32>, vector<8x32xf32>, vector<32x32xf32> -> vector<32x32xf32>
    %63 = arith.addf %42, %62 : vector<32x32xf32>
    %64 = vector.extract_strided_slice %14 {offsets = [0, 0, 16], sizes = [8, 4, 8], strides = [1, 1, 1]} : vector<8x4x32xf32> to vector<8x4x8xf32>
    %cst_28 = arith.constant 0.353553385 : f32
    %65 = vector.broadcast %cst_28 : f32 to vector<8x4x8xf32>
    %66 = arith.mulf %64, %65 : vector<8x4x8xf32>
    %67 = vector.extract_strided_slice %16 {offsets = [0, 0, 16], sizes = [8, 4, 8], strides = [1, 1, 1]} : vector<8x4x32xf32> to vector<8x4x8xf32>
    %68 = vector.extract_strided_slice %18 {offsets = [0, 0, 16], sizes = [8, 4, 8], strides = [1, 1, 1]} : vector<8x4x32xf32> to vector<8x4x8xf32>
    "tpu.trace_start"() <{level = 10 : i32, message = "tqd,tkd->tqk"}> : () -> ()
    %cst_29 = arith.constant dense<0.000000e+00> : vector<8x4x4xf32>
    %69 = tpu.matmul %66, %67, %cst_29 {dimension_numbers = #tpu.dot_dimension_numbers<[2], [2], [1], [1], [0, 0, 0, 1, 1, 1], [0], [0]>} : vector<8x4x8xf32>, vector<8x4x8xf32>, vector<8x4x4xf32> -> vector<8x4x4xf32>
    "tpu.trace_stop"() : () -> ()
    %cst_30 = arith.constant dense<0xFF800000> : vector<8x4xf32>
    %70 = vector.multi_reduction <maximumf>, %69, %cst_30 [2] : vector<8x4x4xf32> to vector<8x4xf32>
    %71 = vector.shape_cast %70 : vector<8x4xf32> to vector<8x4x1xf32>
    %72 = vector.broadcast %71 : vector<8x4x1xf32> to vector<8x4x4xf32>
    %73 = arith.subf %69, %72 : vector<8x4x4xf32>
    %74 = math.exp %73 : vector<8x4x4xf32>
    %cst_31 = arith.constant dense<0.000000e+00> : vector<8x4xf32>
    %75 = vector.multi_reduction <add>, %74, %cst_31 [2] : vector<8x4x4xf32> to vector<8x4xf32>
    %76 = vector.shape_cast %75 : vector<8x4xf32> to vector<8x4x1xf32>
    %77 = tpu.reciprocal %76 {approx = true} : vector<8x4x1xf32> -> vector<8x4x1xf32>
    %78 = vector.broadcast %77 : vector<8x4x1xf32> to vector<8x4x4xf32>
    %79 = arith.mulf %74, %78 : vector<8x4x4xf32>
    "tpu.trace_start"() <{level = 10 : i32, message = "tqk,tkd->tqd"}> : () -> ()
    %cst_32 = arith.constant dense<0.000000e+00> : vector<8x4x8xf32>
    %80 = tpu.matmul %79, %68, %cst_32 {dimension_numbers = #tpu.dot_dimension_numbers<[2], [1], [1], [2], [0, 0, 0, 1, 1, 2], [0], [0]>} : vector<8x4x4xf32>, vector<8x4x8xf32>, vector<8x4x8xf32> -> vector<8x4x8xf32>
    "tpu.trace_stop"() : () -> ()
    %81 = vector.shape_cast %80 : vector<8x4x8xf32> to vector<32x8xf32>
    %82 = vector.extract_strided_slice %19 {offsets = [16, 0], sizes = [8, 32], strides = [1, 1]} : vector<32x32xf32> to vector<8x32xf32>
    %cst_33 = arith.constant dense<0.000000e+00> : vector<32x32xf32>
    %83 = tpu.matmul %81, %82, %cst_33 {dimension_numbers = #tpu.dot_dimension_numbers<[1], [0], [0], [1], [0, 0, 1, 1], [], []>} : vector<32x8xf32>, vector<8x32xf32>, vector<32x32xf32> -> vector<32x32xf32>
    %84 = arith.addf %63, %83 : vector<32x32xf32>
    %85 = vector.extract_strided_slice %14 {offsets = [0, 0, 24], sizes = [8, 4, 8], strides = [1, 1, 1]} : vector<8x4x32xf32> to vector<8x4x8xf32>
    %cst_34 = arith.constant 0.353553385 : f32
    %86 = vector.broadcast %cst_34 : f32 to vector<8x4x8xf32>
    %87 = arith.mulf %85, %86 : vector<8x4x8xf32>
    %88 = vector.extract_strided_slice %16 {offsets = [0, 0, 24], sizes = [8, 4, 8], strides = [1, 1, 1]} : vector<8x4x32xf32> to vector<8x4x8xf32>
    %89 = vector.extract_strided_slice %18 {offsets = [0, 0, 24], sizes = [8, 4, 8], strides = [1, 1, 1]} : vector<8x4x32xf32> to vector<8x4x8xf32>
    "tpu.trace_start"() <{level = 10 : i32, message = "tqd,tkd->tqk"}> : () -> ()
    %cst_35 = arith.constant dense<0.000000e+00> : vector<8x4x4xf32>
    %90 = tpu.matmul %87, %88, %cst_35 {dimension_numbers = #tpu.dot_dimension_numbers<[2], [2], [1], [1], [0, 0, 0, 1, 1, 1], [0], [0]>} : vector<8x4x8xf32>, vector<8x4x8xf32>, vector<8x4x4xf32> -> vector<8x4x4xf32>
    "tpu.trace_stop"() : () -> ()
    %cst_36 = arith.constant dense<0xFF800000> : vector<8x4xf32>
    %91 = vector.multi_reduction <maximumf>, %90, %cst_36 [2] : vector<8x4x4xf32> to vector<8x4xf32>
    %92 = vector.shape_cast %91 : vector<8x4xf32> to vector<8x4x1xf32>
    %93 = vector.broadcast %92 : vector<8x4x1xf32> to vector<8x4x4xf32>
    %94 = arith.subf %90, %93 : vector<8x4x4xf32>
    %95 = math.exp %94 : vector<8x4x4xf32>
    %cst_37 = arith.constant dense<0.000000e+00> : vector<8x4xf32>
    %96 = vector.multi_reduction <add>, %95, %cst_37 [2] : vector<8x4x4xf32> to vector<8x4xf32>
    %97 = vector.shape_cast %96 : vector<8x4xf32> to vector<8x4x1xf32>
    %98 = tpu.reciprocal %97 {approx = true} : vector<8x4x1xf32> -> vector<8x4x1xf32>
    %99 = vector.broadcast %98 : vector<8x4x1xf32> to vector<8x4x4xf32>
    %100 = arith.mulf %95, %99 : vector<8x4x4xf32>
    "tpu.trace_start"() <{level = 10 : i32, message = "tqk,tkd->tqd"}> : () -> ()
    %cst_38 = arith.constant dense<0.000000e+00> : vector<8x4x8xf32>
    %101 = tpu.matmul %100, %89, %cst_38 {dimension_numbers = #tpu.dot_dimension_numbers<[2], [1], [1], [2], [0, 0, 0, 1, 1, 2], [0], [0]>} : vector<8x4x4xf32>, vector<8x4x8xf32>, vector<8x4x8xf32> -> vector<8x4x8xf32>
    "tpu.trace_stop"() : () -> ()
    %102 = vector.shape_cast %101 : vector<8x4x8xf32> to vector<32x8xf32>
    %103 = vector.extract_strided_slice %19 {offsets = [24, 0], sizes = [8, 32], strides = [1, 1]} : vector<32x32xf32> to vector<8x32xf32>
    %cst_39 = arith.constant dense<0.000000e+00> : vector<32x32xf32>
    %104 = tpu.matmul %102, %103, %cst_39 {dimension_numbers = #tpu.dot_dimension_numbers<[1], [0], [0], [1], [0, 0, 1, 1], [], []>} : vector<32x8xf32>, vector<8x32xf32>, vector<32x32xf32> -> vector<32x32xf32>
    %105 = arith.addf %84, %104 : vector<32x32xf32>
    %106 = arith.addf %7, %105 : vector<32x32xf32>
    %c0_40 = arith.constant 0 : index
    %c0_41 = arith.constant 0 : index
    %107 = vector.load %arg12[%c0_40, %c0_41] : memref<1x32xf32, #tpu.memory_space<vmem>>, vector<1x32xf32>
    %c0_42 = arith.constant 0 : index
    %c0_43 = arith.constant 0 : index
    %108 = vector.load %arg13[%c0_42, %c0_43] : memref<1x32xf32, #tpu.memory_space<vmem>>, vector<1x32xf32>
    %cst_44 = arith.constant dense<0.000000e+00> : vector<32xf32>
    %109 = vector.multi_reduction <add>, %106, %cst_44 [1] : vector<32x32xf32> to vector<32xf32>
    %110 = vector.shape_cast %109 : vector<32xf32> to vector<32x1xf32>
    %cst_45 = arith.constant 3.200000e+01 : f32
    %111 = vector.broadcast %cst_45 : f32 to vector<32x1xf32>
    %112 = arith.divf %110, %111 : vector<32x1xf32>
    %113 = vector.broadcast %112 : vector<32x1xf32> to vector<32x32xf32>
    %114 = arith.subf %106, %113 : vector<32x32xf32>
    %115 = arith.mulf %114, %114 : vector<32x32xf32>
    %cst_46 = arith.constant dense<0.000000e+00> : vector<32xf32>
    %116 = vector.multi_reduction <add>, %115, %cst_46 [1] : vector<32x32xf32> to vector<32xf32>
    %117 = vector.shape_cast %116 : vector<32xf32> to vector<32x1xf32>
    %cst_47 = arith.constant 3.200000e+01 : f32
    %118 = vector.broadcast %cst_47 : f32 to vector<32x1xf32>
    %119 = arith.divf %117, %118 : vector<32x1xf32>
    %120 = vector.broadcast %112 : vector<32x1xf32> to vector<32x32xf32>
    %121 = arith.subf %106, %120 : vector<32x32xf32>
    %cst_48 = arith.constant 9.99999974E-6 : f32
    %122 = vector.broadcast %cst_48 : f32 to vector<32x1xf32>
    %123 = arith.addf %119, %122 : vector<32x1xf32>
    %124 = math.rsqrt %123 : vector<32x1xf32>
    %125 = vector.broadcast %124 : vector<32x1xf32> to vector<32x32xf32>
    %126 = arith.mulf %121, %125 : vector<32x32xf32>
    %127 = vector.broadcast %107 : vector<1x32xf32> to vector<32x32xf32>
    %128 = arith.mulf %126, %127 : vector<32x32xf32>
    %129 = vector.broadcast %108 : vector<1x32xf32> to vector<32x32xf32>
    %130 = arith.addf %128, %129 : vector<32x32xf32>
    %131 = arith.truncf %130 : vector<32x32xf32> to vector<32x32xbf16>
    %c0_49 = arith.constant 0 : index
    %c0_50 = arith.constant 0 : index
    %132 = vector.load %arg8[%c0_49, %c0_50] : memref<32x2048xbf16, #tpu.memory_space<vmem>>, vector<32x2048xbf16>
    %cst_51 = arith.constant dense<0.000000e+00> : vector<32x2048xf32>
    %133 = tpu.matmul %131, %132, %cst_51 {dimension_numbers = #tpu.dot_dimension_numbers<[1], [0], [0], [1], [0, 0, 1, 1], [], []>} : vector<32x32xbf16>, vector<32x2048xbf16>, vector<32x2048xf32> -> vector<32x2048xf32>
    %c0_52 = arith.constant 0 : index
    %c0_53 = arith.constant 0 : index
    %134 = vector.load %arg9[%c0_52, %c0_53] : memref<1x2048xf32, #tpu.memory_space<vmem>>, vector<1x2048xf32>
    %135 = vector.broadcast %134 : vector<1x2048xf32> to vector<32x2048xf32>
    %136 = arith.addf %133, %135 : vector<32x2048xf32>
    %cst_54 = arith.constant 0.000000e+00 : f32
    %137 = vector.broadcast %cst_54 : f32 to vector<32x2048xf32>
    %138 = arith.maximumf %136, %137 : vector<32x2048xf32>
    %139 = arith.truncf %138 : vector<32x2048xf32> to vector<32x2048xbf16>
    %c0_55 = arith.constant 0 : index
    %c0_56 = arith.constant 0 : index
    %140 = vector.load %arg10[%c0_55, %c0_56] : memref<2048x32xbf16, #tpu.memory_space<vmem>>, vector<2048x32xbf16>
    %cst_57 = arith.constant dense<0.000000e+00> : vector<32x32xf32>
    %141 = tpu.matmul %139, %140, %cst_57 {dimension_numbers = #tpu.dot_dimension_numbers<[1], [0], [0], [1], [0, 0, 1, 1], [], []>} : vector<32x2048xbf16>, vector<2048x32xbf16>, vector<32x32xf32> -> vector<32x32xf32>
    %c0_58 = arith.constant 0 : index
    %c0_59 = arith.constant 0 : index
    %142 = vector.load %arg11[%c0_58, %c0_59] : memref<1x32xf32, #tpu.memory_space<vmem>>, vector<1x32xf32>
    %143 = vector.broadcast %142 : vector<1x32xf32> to vector<32x32xf32>
    %144 = arith.addf %141, %143 : vector<32x32xf32>
    %145 = arith.addf %130, %144 : vector<32x32xf32>
    %c0_60 = arith.constant 0 : index
    %c0_61 = arith.constant 0 : index
    %146 = vector.load %arg14[%c0_60, %c0_61] : memref<1x32xf32, #tpu.memory_space<vmem>>, vector<1x32xf32>
    %c0_62 = arith.constant 0 : index
    %c0_63 = arith.constant 0 : index
    %147 = vector.load %arg15[%c0_62, %c0_63] : memref<1x32xf32, #tpu.memory_space<vmem>>, vector<1x32xf32>
    %cst_64 = arith.constant dense<0.000000e+00> : vector<32xf32>
    %148 = vector.multi_reduction <add>, %145, %cst_64 [1] : vector<32x32xf32> to vector<32xf32>
    %149 = vector.shape_cast %148 : vector<32xf32> to vector<32x1xf32>
    %cst_65 = arith.constant 3.200000e+01 : f32
    %150 = vector.broadcast %cst_65 : f32 to vector<32x1xf32>
    %151 = arith.divf %149, %150 : vector<32x1xf32>
    %152 = vector.broadcast %151 : vector<32x1xf32> to vector<32x32xf32>
    %153 = arith.subf %145, %152 : vector<32x32xf32>
    %154 = arith.mulf %153, %153 : vector<32x32xf32>
    %cst_66 = arith.constant dense<0.000000e+00> : vector<32xf32>
    %155 = vector.multi_reduction <add>, %154, %cst_66 [1] : vector<32x32xf32> to vector<32xf32>
    %156 = vector.shape_cast %155 : vector<32xf32> to vector<32x1xf32>
    %cst_67 = arith.constant 3.200000e+01 : f32
    %157 = vector.broadcast %cst_67 : f32 to vector<32x1xf32>
    %158 = arith.divf %156, %157 : vector<32x1xf32>
    %159 = vector.broadcast %151 : vector<32x1xf32> to vector<32x32xf32>
    %160 = arith.subf %145, %159 : vector<32x32xf32>
    %cst_68 = arith.constant 9.99999974E-6 : f32
    %161 = vector.broadcast %cst_68 : f32 to vector<32x1xf32>
    %162 = arith.addf %158, %161 : vector<32x1xf32>
    %163 = math.rsqrt %162 : vector<32x1xf32>
    %164 = vector.broadcast %163 : vector<32x1xf32> to vector<32x32xf32>
    %165 = arith.mulf %160, %164 : vector<32x32xf32>
    %166 = vector.broadcast %146 : vector<1x32xf32> to vector<32x32xf32>
    %167 = arith.mulf %165, %166 : vector<32x32xf32>
    %168 = vector.broadcast %147 : vector<1x32xf32> to vector<32x32xf32>
    %169 = arith.addf %167, %168 : vector<32x32xf32>
    %c0_69 = arith.constant 0 : index
    %c0_70 = arith.constant 0 : index
    %170 = vector.load %arg16[%c0_69, %c0_70] : memref<32x96xf32, #tpu.memory_space<vmem>>, vector<32x96xf32>
    %cst_71 = arith.constant dense<0.000000e+00> : vector<32x96xf32>
    %171 = tpu.matmul %169, %170, %cst_71 {dimension_numbers = #tpu.dot_dimension_numbers<[1], [0], [0], [1], [0, 0, 1, 1], [], []>} : vector<32x32xf32>, vector<32x96xf32>, vector<32x96xf32> -> vector<32x96xf32>
    %c0_72 = arith.constant 0 : index
    %c0_73 = arith.constant 0 : index
    %172 = vector.load %arg17[%c0_72, %c0_73] : memref<1x96xf32, #tpu.memory_space<vmem>>, vector<1x96xf32>
    %173 = vector.broadcast %172 : vector<1x96xf32> to vector<32x96xf32>
    %174 = arith.addf %171, %173 : vector<32x96xf32>
    %175 = vector.extract_strided_slice %174 {offsets = [0, 0], sizes = [32, 32], strides = [1, 1]} : vector<32x96xf32> to vector<32x32xf32>
    %176 = vector.shape_cast %175 : vector<32x32xf32> to vector<8x4x32xf32>
    %177 = vector.extract_strided_slice %174 {offsets = [0, 32], sizes = [32, 32], strides = [1, 1]} : vector<32x96xf32> to vector<32x32xf32>
    %178 = vector.shape_cast %177 : vector<32x32xf32> to vector<8x4x32xf32>
    %179 = vector.extract_strided_slice %174 {offsets = [0, 64], sizes = [32, 32], strides = [1, 1]} : vector<32x96xf32> to vector<32x32xf32>
    %180 = vector.shape_cast %179 : vector<32x32xf32> to vector<8x4x32xf32>
    %c0_74 = arith.constant 0 : index
    %c0_75 = arith.constant 0 : index
    %181 = vector.load %arg18[%c0_74, %c0_75] : memref<32x32xf32, #tpu.memory_space<vmem>>, vector<32x32xf32>
    %c0_76 = arith.constant 0 : index
    %c0_77 = arith.constant 0 : index
    %182 = vector.load %arg19[%c0_76, %c0_77] : memref<1x32xf32, #tpu.memory_space<vmem>>, vector<1x32xf32>
    %183 = vector.extract_strided_slice %176 {offsets = [0, 0, 0], sizes = [8, 4, 8], strides = [1, 1, 1]} : vector<8x4x32xf32> to vector<8x4x8xf32>
    %cst_78 = arith.constant 0.353553385 : f32
    %184 = vector.broadcast %cst_78 : f32 to vector<8x4x8xf32>
    %185 = arith.mulf %183, %184 : vector<8x4x8xf32>
    %186 = vector.extract_strided_slice %178 {offsets = [0, 0, 0], sizes = [8, 4, 8], strides = [1, 1, 1]} : vector<8x4x32xf32> to vector<8x4x8xf32>
    %187 = vector.extract_strided_slice %180 {offsets = [0, 0, 0], sizes = [8, 4, 8], strides = [1, 1, 1]} : vector<8x4x32xf32> to vector<8x4x8xf32>
    "tpu.trace_start"() <{level = 10 : i32, message = "tqd,tkd->tqk"}> : () -> ()
    %cst_79 = arith.constant dense<0.000000e+00> : vector<8x4x4xf32>
    %188 = tpu.matmul %185, %186, %cst_79 {dimension_numbers = #tpu.dot_dimension_numbers<[2], [2], [1], [1], [0, 0, 0, 1, 1, 1], [0], [0]>} : vector<8x4x8xf32>, vector<8x4x8xf32>, vector<8x4x4xf32> -> vector<8x4x4xf32>
    "tpu.trace_stop"() : () -> ()
    %cst_80 = arith.constant dense<0xFF800000> : vector<8x4xf32>
    %189 = vector.multi_reduction <maximumf>, %188, %cst_80 [2] : vector<8x4x4xf32> to vector<8x4xf32>
    %190 = vector.shape_cast %189 : vector<8x4xf32> to vector<8x4x1xf32>
    %191 = vector.broadcast %190 : vector<8x4x1xf32> to vector<8x4x4xf32>
    %192 = arith.subf %188, %191 : vector<8x4x4xf32>
    %193 = math.exp %192 : vector<8x4x4xf32>
    %cst_81 = arith.constant dense<0.000000e+00> : vector<8x4xf32>
    %194 = vector.multi_reduction <add>, %193, %cst_81 [2] : vector<8x4x4xf32> to vector<8x4xf32>
    %195 = vector.shape_cast %194 : vector<8x4xf32> to vector<8x4x1xf32>
    %196 = tpu.reciprocal %195 {approx = true} : vector<8x4x1xf32> -> vector<8x4x1xf32>
    %197 = vector.broadcast %196 : vector<8x4x1xf32> to vector<8x4x4xf32>
    %198 = arith.mulf %193, %197 : vector<8x4x4xf32>
    "tpu.trace_start"() <{level = 10 : i32, message = "tqk,tkd->tqd"}> : () -> ()
    %cst_82 = arith.constant dense<0.000000e+00> : vector<8x4x8xf32>
    %199 = tpu.matmul %198, %187, %cst_82 {dimension_numbers = #tpu.dot_dimension_numbers<[2], [1], [1], [2], [0, 0, 0, 1, 1, 2], [0], [0]>} : vector<8x4x4xf32>, vector<8x4x8xf32>, vector<8x4x8xf32> -> vector<8x4x8xf32>
    "tpu.trace_stop"() : () -> ()
    %200 = vector.shape_cast %199 : vector<8x4x8xf32> to vector<32x8xf32>
    %201 = vector.extract_strided_slice %181 {offsets = [0, 0], sizes = [8, 32], strides = [1, 1]} : vector<32x32xf32> to vector<8x32xf32>
    %cst_83 = arith.constant dense<0.000000e+00> : vector<32x32xf32>
    %202 = tpu.matmul %200, %201, %cst_83 {dimension_numbers = #tpu.dot_dimension_numbers<[1], [0], [0], [1], [0, 0, 1, 1], [], []>} : vector<32x8xf32>, vector<8x32xf32>, vector<32x32xf32> -> vector<32x32xf32>
    %203 = vector.broadcast %182 : vector<1x32xf32> to vector<32x32xf32>
    %204 = arith.addf %203, %202 : vector<32x32xf32>
    %205 = vector.extract_strided_slice %176 {offsets = [0, 0, 8], sizes = [8, 4, 8], strides = [1, 1, 1]} : vector<8x4x32xf32> to vector<8x4x8xf32>
    %cst_84 = arith.constant 0.353553385 : f32
    %206 = vector.broadcast %cst_84 : f32 to vector<8x4x8xf32>
    %207 = arith.mulf %205, %206 : vector<8x4x8xf32>
    %208 = vector.extract_strided_slice %178 {offsets = [0, 0, 8], sizes = [8, 4, 8], strides = [1, 1, 1]} : vector<8x4x32xf32> to vector<8x4x8xf32>
    %209 = vector.extract_strided_slice %180 {offsets = [0, 0, 8], sizes = [8, 4, 8], strides = [1, 1, 1]} : vector<8x4x32xf32> to vector<8x4x8xf32>
    "tpu.trace_start"() <{level = 10 : i32, message = "tqd,tkd->tqk"}> : () -> ()
    %cst_85 = arith.constant dense<0.000000e+00> : vector<8x4x4xf32>
    %210 = tpu.matmul %207, %208, %cst_85 {dimension_numbers = #tpu.dot_dimension_numbers<[2], [2], [1], [1], [0, 0, 0, 1, 1, 1], [0], [0]>} : vector<8x4x8xf32>, vector<8x4x8xf32>, vector<8x4x4xf32> -> vector<8x4x4xf32>
    "tpu.trace_stop"() : () -> ()
    %cst_86 = arith.constant dense<0xFF800000> : vector<8x4xf32>
    %211 = vector.multi_reduction <maximumf>, %210, %cst_86 [2] : vector<8x4x4xf32> to vector<8x4xf32>
    %212 = vector.shape_cast %211 : vector<8x4xf32> to vector<8x4x1xf32>
    %213 = vector.broadcast %212 : vector<8x4x1xf32> to vector<8x4x4xf32>
    %214 = arith.subf %210, %213 : vector<8x4x4xf32>
    %215 = math.exp %214 : vector<8x4x4xf32>
    %cst_87 = arith.constant dense<0.000000e+00> : vector<8x4xf32>
    %216 = vector.multi_reduction <add>, %215, %cst_87 [2] : vector<8x4x4xf32> to vector<8x4xf32>
    %217 = vector.shape_cast %216 : vector<8x4xf32> to vector<8x4x1xf32>
    %218 = tpu.reciprocal %217 {approx = true} : vector<8x4x1xf32> -> vector<8x4x1xf32>
    %219 = vector.broadcast %218 : vector<8x4x1xf32> to vector<8x4x4xf32>
    %220 = arith.mulf %215, %219 : vector<8x4x4xf32>
    "tpu.trace_start"() <{level = 10 : i32, message = "tqk,tkd->tqd"}> : () -> ()
    %cst_88 = arith.constant dense<0.000000e+00> : vector<8x4x8xf32>
    %221 = tpu.matmul %220, %209, %cst_88 {dimension_numbers = #tpu.dot_dimension_numbers<[2], [1], [1], [2], [0, 0, 0, 1, 1, 2], [0], [0]>} : vector<8x4x4xf32>, vector<8x4x8xf32>, vector<8x4x8xf32> -> vector<8x4x8xf32>
    "tpu.trace_stop"() : () -> ()
    %222 = vector.shape_cast %221 : vector<8x4x8xf32> to vector<32x8xf32>
    %223 = vector.extract_strided_slice %181 {offsets = [8, 0], sizes = [8, 32], strides = [1, 1]} : vector<32x32xf32> to vector<8x32xf32>
    %cst_89 = arith.constant dense<0.000000e+00> : vector<32x32xf32>
    %224 = tpu.matmul %222, %223, %cst_89 {dimension_numbers = #tpu.dot_dimension_numbers<[1], [0], [0], [1], [0, 0, 1, 1], [], []>} : vector<32x8xf32>, vector<8x32xf32>, vector<32x32xf32> -> vector<32x32xf32>
    %225 = arith.addf %204, %224 : vector<32x32xf32>
    %226 = vector.extract_strided_slice %176 {offsets = [0, 0, 16], sizes = [8, 4, 8], strides = [1, 1, 1]} : vector<8x4x32xf32> to vector<8x4x8xf32>
    %cst_90 = arith.constant 0.353553385 : f32
    %227 = vector.broadcast %cst_90 : f32 to vector<8x4x8xf32>
    %228 = arith.mulf %226, %227 : vector<8x4x8xf32>
    %229 = vector.extract_strided_slice %178 {offsets = [0, 0, 16], sizes = [8, 4, 8], strides = [1, 1, 1]} : vector<8x4x32xf32> to vector<8x4x8xf32>
    %230 = vector.extract_strided_slice %180 {offsets = [0, 0, 16], sizes = [8, 4, 8], strides = [1, 1, 1]} : vector<8x4x32xf32> to vector<8x4x8xf32>
    "tpu.trace_start"() <{level = 10 : i32, message = "tqd,tkd->tqk"}> : () -> ()
    %cst_91 = arith.constant dense<0.000000e+00> : vector<8x4x4xf32>
    %231 = tpu.matmul %228, %229, %cst_91 {dimension_numbers = #tpu.dot_dimension_numbers<[2], [2], [1], [1], [0, 0, 0, 1, 1, 1], [0], [0]>} : vector<8x4x8xf32>, vector<8x4x8xf32>, vector<8x4x4xf32> -> vector<8x4x4xf32>
    "tpu.trace_stop"() : () -> ()
    %cst_92 = arith.constant dense<0xFF800000> : vector<8x4xf32>
    %232 = vector.multi_reduction <maximumf>, %231, %cst_92 [2] : vector<8x4x4xf32> to vector<8x4xf32>
    %233 = vector.shape_cast %232 : vector<8x4xf32> to vector<8x4x1xf32>
    %234 = vector.broadcast %233 : vector<8x4x1xf32> to vector<8x4x4xf32>
    %235 = arith.subf %231, %234 : vector<8x4x4xf32>
    %236 = math.exp %235 : vector<8x4x4xf32>
    %cst_93 = arith.constant dense<0.000000e+00> : vector<8x4xf32>
    %237 = vector.multi_reduction <add>, %236, %cst_93 [2] : vector<8x4x4xf32> to vector<8x4xf32>
    %238 = vector.shape_cast %237 : vector<8x4xf32> to vector<8x4x1xf32>
    %239 = tpu.reciprocal %238 {approx = true} : vector<8x4x1xf32> -> vector<8x4x1xf32>
    %240 = vector.broadcast %239 : vector<8x4x1xf32> to vector<8x4x4xf32>
    %241 = arith.mulf %236, %240 : vector<8x4x4xf32>
    "tpu.trace_start"() <{level = 10 : i32, message = "tqk,tkd->tqd"}> : () -> ()
    %cst_94 = arith.constant dense<0.000000e+00> : vector<8x4x8xf32>
    %242 = tpu.matmul %241, %230, %cst_94 {dimension_numbers = #tpu.dot_dimension_numbers<[2], [1], [1], [2], [0, 0, 0, 1, 1, 2], [0], [0]>} : vector<8x4x4xf32>, vector<8x4x8xf32>, vector<8x4x8xf32> -> vector<8x4x8xf32>
    "tpu.trace_stop"() : () -> ()
    %243 = vector.shape_cast %242 : vector<8x4x8xf32> to vector<32x8xf32>
    %244 = vector.extract_strided_slice %181 {offsets = [16, 0], sizes = [8, 32], strides = [1, 1]} : vector<32x32xf32> to vector<8x32xf32>
    %cst_95 = arith.constant dense<0.000000e+00> : vector<32x32xf32>
    %245 = tpu.matmul %243, %244, %cst_95 {dimension_numbers = #tpu.dot_dimension_numbers<[1], [0], [0], [1], [0, 0, 1, 1], [], []>} : vector<32x8xf32>, vector<8x32xf32>, vector<32x32xf32> -> vector<32x32xf32>
    %246 = arith.addf %225, %245 : vector<32x32xf32>
    %247 = vector.extract_strided_slice %176 {offsets = [0, 0, 24], sizes = [8, 4, 8], strides = [1, 1, 1]} : vector<8x4x32xf32> to vector<8x4x8xf32>
    %cst_96 = arith.constant 0.353553385 : f32
    %248 = vector.broadcast %cst_96 : f32 to vector<8x4x8xf32>
    %249 = arith.mulf %247, %248 : vector<8x4x8xf32>
    %250 = vector.extract_strided_slice %178 {offsets = [0, 0, 24], sizes = [8, 4, 8], strides = [1, 1, 1]} : vector<8x4x32xf32> to vector<8x4x8xf32>
    %251 = vector.extract_strided_slice %180 {offsets = [0, 0, 24], sizes = [8, 4, 8], strides = [1, 1, 1]} : vector<8x4x32xf32> to vector<8x4x8xf32>
    "tpu.trace_start"() <{level = 10 : i32, message = "tqd,tkd->tqk"}> : () -> ()
    %cst_97 = arith.constant dense<0.000000e+00> : vector<8x4x4xf32>
    %252 = tpu.matmul %249, %250, %cst_97 {dimension_numbers = #tpu.dot_dimension_numbers<[2], [2], [1], [1], [0, 0, 0, 1, 1, 1], [0], [0]>} : vector<8x4x8xf32>, vector<8x4x8xf32>, vector<8x4x4xf32> -> vector<8x4x4xf32>
    "tpu.trace_stop"() : () -> ()
    %cst_98 = arith.constant dense<0xFF800000> : vector<8x4xf32>
    %253 = vector.multi_reduction <maximumf>, %252, %cst_98 [2] : vector<8x4x4xf32> to vector<8x4xf32>
    %254 = vector.shape_cast %253 : vector<8x4xf32> to vector<8x4x1xf32>
    %255 = vector.broadcast %254 : vector<8x4x1xf32> to vector<8x4x4xf32>
    %256 = arith.subf %252, %255 : vector<8x4x4xf32>
    %257 = math.exp %256 : vector<8x4x4xf32>
    %cst_99 = arith.constant dense<0.000000e+00> : vector<8x4xf32>
    %258 = vector.multi_reduction <add>, %257, %cst_99 [2] : vector<8x4x4xf32> to vector<8x4xf32>
    %259 = vector.shape_cast %258 : vector<8x4xf32> to vector<8x4x1xf32>
    %260 = tpu.reciprocal %259 {approx = true} : vector<8x4x1xf32> -> vector<8x4x1xf32>
    %261 = vector.broadcast %260 : vector<8x4x1xf32> to vector<8x4x4xf32>
    %262 = arith.mulf %257, %261 : vector<8x4x4xf32>
    "tpu.trace_start"() <{level = 10 : i32, message = "tqk,tkd->tqd"}> : () -> ()
    %cst_100 = arith.constant dense<0.000000e+00> : vector<8x4x8xf32>
    %263 = tpu.matmul %262, %251, %cst_100 {dimension_numbers = #tpu.dot_dimension_numbers<[2], [1], [1], [2], [0, 0, 0, 1, 1, 2], [0], [0]>} : vector<8x4x4xf32>, vector<8x4x8xf32>, vector<8x4x8xf32> -> vector<8x4x8xf32>
    "tpu.trace_stop"() : () -> ()
    %264 = vector.shape_cast %263 : vector<8x4x8xf32> to vector<32x8xf32>
    %265 = vector.extract_strided_slice %181 {offsets = [24, 0], sizes = [8, 32], strides = [1, 1]} : vector<32x32xf32> to vector<8x32xf32>
    %cst_101 = arith.constant dense<0.000000e+00> : vector<32x32xf32>
    %266 = tpu.matmul %264, %265, %cst_101 {dimension_numbers = #tpu.dot_dimension_numbers<[1], [0], [0], [1], [0, 0, 1, 1], [], []>} : vector<32x8xf32>, vector<8x32xf32>, vector<32x32xf32> -> vector<32x32xf32>
    %267 = arith.addf %246, %266 : vector<32x32xf32>
    %268 = arith.addf %169, %267 : vector<32x32xf32>
    %c0_102 = arith.constant 0 : index
    %c0_103 = arith.constant 0 : index
    %269 = vector.load %arg24[%c0_102, %c0_103] : memref<1x32xf32, #tpu.memory_space<vmem>>, vector<1x32xf32>
    %c0_104 = arith.constant 0 : index
    %c0_105 = arith.constant 0 : index
    %270 = vector.load %arg25[%c0_104, %c0_105] : memref<1x32xf32, #tpu.memory_space<vmem>>, vector<1x32xf32>
    %cst_106 = arith.constant dense<0.000000e+00> : vector<32xf32>
    %271 = vector.multi_reduction <add>, %268, %cst_106 [1] : vector<32x32xf32> to vector<32xf32>
    %272 = vector.shape_cast %271 : vector<32xf32> to vector<32x1xf32>
    %cst_107 = arith.constant 3.200000e+01 : f32
    %273 = vector.broadcast %cst_107 : f32 to vector<32x1xf32>
    %274 = arith.divf %272, %273 : vector<32x1xf32>
    %275 = vector.broadcast %274 : vector<32x1xf32> to vector<32x32xf32>
    %276 = arith.subf %268, %275 : vector<32x32xf32>
    %277 = arith.mulf %276, %276 : vector<32x32xf32>
    %cst_108 = arith.constant dense<0.000000e+00> : vector<32xf32>
    %278 = vector.multi_reduction <add>, %277, %cst_108 [1] : vector<32x32xf32> to vector<32xf32>
    %279 = vector.shape_cast %278 : vector<32xf32> to vector<32x1xf32>
    %cst_109 = arith.constant 3.200000e+01 : f32
    %280 = vector.broadcast %cst_109 : f32 to vector<32x1xf32>
    %281 = arith.divf %279, %280 : vector<32x1xf32>
    %282 = vector.broadcast %274 : vector<32x1xf32> to vector<32x32xf32>
    %283 = arith.subf %268, %282 : vector<32x32xf32>
    %cst_110 = arith.constant 9.99999974E-6 : f32
    %284 = vector.broadcast %cst_110 : f32 to vector<32x1xf32>
    %285 = arith.addf %281, %284 : vector<32x1xf32>
    %286 = math.rsqrt %285 : vector<32x1xf32>
    %287 = vector.broadcast %286 : vector<32x1xf32> to vector<32x32xf32>
    %288 = arith.mulf %283, %287 : vector<32x32xf32>
    %289 = vector.broadcast %269 : vector<1x32xf32> to vector<32x32xf32>
    %290 = arith.mulf %288, %289 : vector<32x32xf32>
    %291 = vector.broadcast %270 : vector<1x32xf32> to vector<32x32xf32>
    %292 = arith.addf %290, %291 : vector<32x32xf32>
    %293 = arith.truncf %292 : vector<32x32xf32> to vector<32x32xbf16>
    %c0_111 = arith.constant 0 : index
    %c0_112 = arith.constant 0 : index
    %294 = vector.load %arg20[%c0_111, %c0_112] : memref<32x2048xbf16, #tpu.memory_space<vmem>>, vector<32x2048xbf16>
    %cst_113 = arith.constant dense<0.000000e+00> : vector<32x2048xf32>
    %295 = tpu.matmul %293, %294, %cst_113 {dimension_numbers = #tpu.dot_dimension_numbers<[1], [0], [0], [1], [0, 0, 1, 1], [], []>} : vector<32x32xbf16>, vector<32x2048xbf16>, vector<32x2048xf32> -> vector<32x2048xf32>
    %c0_114 = arith.constant 0 : index
    %c0_115 = arith.constant 0 : index
    %296 = vector.load %arg21[%c0_114, %c0_115] : memref<1x2048xf32, #tpu.memory_space<vmem>>, vector<1x2048xf32>
    %297 = vector.broadcast %296 : vector<1x2048xf32> to vector<32x2048xf32>
    %298 = arith.addf %295, %297 : vector<32x2048xf32>
    %cst_116 = arith.constant 0.000000e+00 : f32
    %299 = vector.broadcast %cst_116 : f32 to vector<32x2048xf32>
    %300 = arith.maximumf %298, %299 : vector<32x2048xf32>
    %301 = arith.truncf %300 : vector<32x2048xf32> to vector<32x2048xbf16>
    %c0_117 = arith.constant 0 : index
    %c0_118 = arith.constant 0 : index
    %302 = vector.load %arg22[%c0_117, %c0_118] : memref<2048x32xbf16, #tpu.memory_space<vmem>>, vector<2048x32xbf16>
    %cst_119 = arith.constant dense<0.000000e+00> : vector<32x32xf32>
    %303 = tpu.matmul %301, %302, %cst_119 {dimension_numbers = #tpu.dot_dimension_numbers<[1], [0], [0], [1], [0, 0, 1, 1], [], []>} : vector<32x2048xbf16>, vector<2048x32xbf16>, vector<32x32xf32> -> vector<32x32xf32>
    %c0_120 = arith.constant 0 : index
    %c0_121 = arith.constant 0 : index
    %304 = vector.load %arg23[%c0_120, %c0_121] : memref<1x32xf32, #tpu.memory_space<vmem>>, vector<1x32xf32>
    %305 = vector.broadcast %304 : vector<1x32xf32> to vector<32x32xf32>
    %306 = arith.addf %303, %305 : vector<32x32xf32>
    %307 = arith.addf %292, %306 : vector<32x32xf32>
    %c0_122 = arith.constant 0 : index
    %c0_123 = arith.constant 0 : index
    %308 = vector.load %arg26[%c0_122, %c0_123] : memref<1x32xf32, #tpu.memory_space<vmem>>, vector<1x32xf32>
    %c0_124 = arith.constant 0 : index
    %c0_125 = arith.constant 0 : index
    %309 = vector.load %arg27[%c0_124, %c0_125] : memref<1x32xf32, #tpu.memory_space<vmem>>, vector<1x32xf32>
    %cst_126 = arith.constant dense<0.000000e+00> : vector<32xf32>
    %310 = vector.multi_reduction <add>, %307, %cst_126 [1] : vector<32x32xf32> to vector<32xf32>
    %311 = vector.shape_cast %310 : vector<32xf32> to vector<32x1xf32>
    %cst_127 = arith.constant 3.200000e+01 : f32
    %312 = vector.broadcast %cst_127 : f32 to vector<32x1xf32>
    %313 = arith.divf %311, %312 : vector<32x1xf32>
    %314 = vector.broadcast %313 : vector<32x1xf32> to vector<32x32xf32>
    %315 = arith.subf %307, %314 : vector<32x32xf32>
    %316 = arith.mulf %315, %315 : vector<32x32xf32>
    %cst_128 = arith.constant dense<0.000000e+00> : vector<32xf32>
    %317 = vector.multi_reduction <add>, %316, %cst_128 [1] : vector<32x32xf32> to vector<32xf32>
    %318 = vector.shape_cast %317 : vector<32xf32> to vector<32x1xf32>
    %cst_129 = arith.constant 3.200000e+01 : f32
    %319 = vector.broadcast %cst_129 : f32 to vector<32x1xf32>
    %320 = arith.divf %318, %319 : vector<32x1xf32>
    %321 = vector.broadcast %313 : vector<32x1xf32> to vector<32x32xf32>
    %322 = arith.subf %307, %321 : vector<32x32xf32>
    %cst_130 = arith.constant 9.99999974E-6 : f32
    %323 = vector.broadcast %cst_130 : f32 to vector<32x1xf32>
    %324 = arith.addf %320, %323 : vector<32x1xf32>
    %325 = math.rsqrt %324 : vector<32x1xf32>
    %326 = vector.broadcast %325 : vector<32x1xf32> to vector<32x32xf32>
    %327 = arith.mulf %322, %326 : vector<32x32xf32>
    %328 = vector.broadcast %308 : vector<1x32xf32> to vector<32x32xf32>
    %329 = arith.mulf %327, %328 : vector<32x32xf32>
    %330 = vector.broadcast %309 : vector<1x32xf32> to vector<32x32xf32>
    %331 = arith.addf %329, %330 : vector<32x32xf32>
    %c0_131 = arith.constant 0 : index
    %c0_132 = arith.constant 0 : index
    %332 = vector.load %arg28[%c0_131, %c0_132] : memref<32x6xf32, #tpu.memory_space<vmem>>, vector<32x6xf32>
    %cst_133 = arith.constant dense<0.000000e+00> : vector<32x6xf32>
    %333 = tpu.matmul %331, %332, %cst_133 {dimension_numbers = #tpu.dot_dimension_numbers<[1], [0], [0], [1], [0, 0, 1, 1], [], []>} : vector<32x32xf32>, vector<32x6xf32>, vector<32x6xf32> -> vector<32x6xf32>
    %c0_134 = arith.constant 0 : index
    %c0_135 = arith.constant 0 : index
    %334 = vector.load %arg29[%c0_134, %c0_135] : memref<1x6xf32, #tpu.memory_space<vmem>>, vector<1x6xf32>
    %335 = vector.broadcast %334 : vector<1x6xf32> to vector<32x6xf32>
    %336 = arith.addf %333, %335 : vector<32x6xf32>
    %337 = vector.shape_cast %336 : vector<32x6xf32> to vector<8x4x6xf32>
    %c0_136 = arith.constant 0 : index
    %c0_137 = arith.constant 0 : index
    %338 = vector.load %arg30[%c0_136, %c0_137] : memref<8x8xf32, #tpu.memory_space<vmem>>, vector<8x8xf32>
    %c0_138 = arith.constant 0 : index
    %c0_139 = arith.constant 0 : index
    %339 = vector.load %arg31[%c0_138, %c0_139] : memref<8x1xf32, #tpu.memory_space<vmem>>, vector<8x1xf32>
    %c0_140 = arith.constant 0 : index
    %c0_141 = arith.constant 0 : index
    %340 = vector.load %arg32[%c0_140, %c0_141] : memref<5x8xf32, #tpu.memory_space<vmem>>, vector<5x8xf32>
    %c0_142 = arith.constant 0 : index
    %c0_143 = arith.constant 0 : index
    %341 = vector.load %arg33[%c0_142, %c0_143] : memref<5x1xf32, #tpu.memory_space<vmem>>, vector<5x1xf32>
    %342 = vector.extract_strided_slice %337 {offsets = [0, 0, 0], sizes = [8, 1, 6], strides = [1, 1, 1]} : vector<8x4x6xf32> to vector<8x1x6xf32>
    %343 = vector.shape_cast %342 : vector<8x1x6xf32> to vector<8x6xf32>
    %cst_144 = arith.constant dense<0.000000e+00> : vector<8x6xf32>
    %344 = tpu.matmul %338, %343, %cst_144 {dimension_numbers = #tpu.dot_dimension_numbers<[1], [0], [0], [1], [0, 0, 1, 1], [], []>} : vector<8x8xf32>, vector<8x6xf32>, vector<8x6xf32> -> vector<8x6xf32>
    %345 = vector.broadcast %339 : vector<8x1xf32> to vector<8x6xf32>
    %346 = arith.addf %344, %345 : vector<8x6xf32>
    %cst_145 = arith.constant 0.000000e+00 : f32
    %347 = vector.broadcast %cst_145 : f32 to vector<8x6xf32>
    %348 = arith.cmpf ogt, %346, %347 : vector<8x6xf32>
    %cst_146 = arith.constant 0.00999999977 : f32
    %349 = vector.broadcast %cst_146 : f32 to vector<8x6xf32>
    %350 = arith.mulf %349, %346 : vector<8x6xf32>
    %351 = arith.select %348, %346, %350 : vector<8x6xi1>, vector<8x6xf32>
    %cst_147 = arith.constant dense<0.000000e+00> : vector<5x6xf32>
    %352 = tpu.matmul %340, %351, %cst_147 {dimension_numbers = #tpu.dot_dimension_numbers<[1], [0], [0], [1], [0, 0, 1, 1], [], []>} : vector<5x8xf32>, vector<8x6xf32>, vector<5x6xf32> -> vector<5x6xf32>
    %353 = vector.broadcast %341 : vector<5x1xf32> to vector<5x6xf32>
    %354 = arith.addf %352, %353 : vector<5x6xf32>
    %c0_148 = arith.constant 0 : index
    %c0_149 = arith.constant 0 : index
    %c0_150 = arith.constant 0 : index
    %355 = vector.load %arg34[%c0_148, %c0_149, %c0_150] : memref<4x5x6xf32, #tpu.memory_space<vmem>>, vector<1x5x6xf32>
    %356 = vector.shape_cast %355 : vector<1x5x6xf32> to vector<5x6xf32>
    %357 = vector.shape_cast %354 : vector<5x6xf32> to vector<1x5x6xf32>
    tpu.vector_store %arg34[%c0_148, %c0_149, %c0_150], %357 {strides = array<i32>} : memref<4x5x6xf32, #tpu.memory_space<vmem>>, vector<1x5x6xf32>,
    %358 = vector.extract_strided_slice %337 {offsets = [0, 1, 0], sizes = [8, 1, 6], strides = [1, 1, 1]} : vector<8x4x6xf32> to vector<8x1x6xf32>
    %359 = vector.shape_cast %358 : vector<8x1x6xf32> to vector<8x6xf32>
    %cst_151 = arith.constant dense<0.000000e+00> : vector<8x6xf32>
    %360 = tpu.matmul %338, %359, %cst_151 {dimension_numbers = #tpu.dot_dimension_numbers<[1], [0], [0], [1], [0, 0, 1, 1], [], []>} : vector<8x8xf32>, vector<8x6xf32>, vector<8x6xf32> -> vector<8x6xf32>
    %361 = vector.broadcast %339 : vector<8x1xf32> to vector<8x6xf32>
    %362 = arith.addf %360, %361 : vector<8x6xf32>
    %cst_152 = arith.constant 0.000000e+00 : f32
    %363 = vector.broadcast %cst_152 : f32 to vector<8x6xf32>
    %364 = arith.cmpf ogt, %362, %363 : vector<8x6xf32>
    %cst_153 = arith.constant 0.00999999977 : f32
    %365 = vector.broadcast %cst_153 : f32 to vector<8x6xf32>
    %366 = arith.mulf %365, %362 : vector<8x6xf32>
    %367 = arith.select %364, %362, %366 : vector<8x6xi1>, vector<8x6xf32>
    %cst_154 = arith.constant dense<0.000000e+00> : vector<5x6xf32>
    %368 = tpu.matmul %340, %367, %cst_154 {dimension_numbers = #tpu.dot_dimension_numbers<[1], [0], [0], [1], [0, 0, 1, 1], [], []>} : vector<5x8xf32>, vector<8x6xf32>, vector<5x6xf32> -> vector<5x6xf32>
    %369 = vector.broadcast %341 : vector<5x1xf32> to vector<5x6xf32>
    %370 = arith.addf %368, %369 : vector<5x6xf32>
    %c1 = arith.constant 1 : index
    %c0_155 = arith.constant 0 : index
    %c0_156 = arith.constant 0 : index
    %371 = vector.load %arg34[%c1, %c0_155, %c0_156] : memref<4x5x6xf32, #tpu.memory_space<vmem>>, vector<1x5x6xf32>
    %372 = vector.shape_cast %371 : vector<1x5x6xf32> to vector<5x6xf32>
    %373 = vector.shape_cast %370 : vector<5x6xf32> to vector<1x5x6xf32>
    tpu.vector_store %arg34[%c1, %c0_155, %c0_156], %373 {strides = array<i32>} : memref<4x5x6xf32, #tpu.memory_space<vmem>>, vector<1x5x6xf32>,
    %374 = vector.extract_strided_slice %337 {offsets = [0, 2, 0], sizes = [8, 1, 6], strides = [1, 1, 1]} : vector<8x4x6xf32> to vector<8x1x6xf32>
    %375 = vector.shape_cast %374 : vector<8x1x6xf32> to vector<8x6xf32>
    %cst_157 = arith.constant dense<0.000000e+00> : vector<8x6xf32>
    %376 = tpu.matmul %338, %375, %cst_157 {dimension_numbers = #tpu.dot_dimension_numbers<[1], [0], [0], [1], [0, 0, 1, 1], [], []>} : vector<8x8xf32>, vector<8x6xf32>, vector<8x6xf32> -> vector<8x6xf32>
    %377 = vector.broadcast %339 : vector<8x1xf32> to vector<8x6xf32>
    %378 = arith.addf %376, %377 : vector<8x6xf32>
    %cst_158 = arith.constant 0.000000e+00 : f32
    %379 = vector.broadcast %cst_158 : f32 to vector<8x6xf32>
    %380 = arith.cmpf ogt, %378, %379 : vector<8x6xf32>
    %cst_159 = arith.constant 0.00999999977 : f32
    %381 = vector.broadcast %cst_159 : f32 to vector<8x6xf32>
    %382 = arith.mulf %381, %378 : vector<8x6xf32>
    %383 = arith.select %380, %378, %382 : vector<8x6xi1>, vector<8x6xf32>
    %cst_160 = arith.constant dense<0.000000e+00> : vector<5x6xf32>
    %384 = tpu.matmul %340, %383, %cst_160 {dimension_numbers = #tpu.dot_dimension_numbers<[1], [0], [0], [1], [0, 0, 1, 1], [], []>} : vector<5x8xf32>, vector<8x6xf32>, vector<5x6xf32> -> vector<5x6xf32>
    %385 = vector.broadcast %341 : vector<5x1xf32> to vector<5x6xf32>
    %386 = arith.addf %384, %385 : vector<5x6xf32>
    %c2 = arith.constant 2 : index
    %c0_161 = arith.constant 0 : index
    %c0_162 = arith.constant 0 : index
    %387 = vector.load %arg34[%c2, %c0_161, %c0_162] : memref<4x5x6xf32, #tpu.memory_space<vmem>>, vector<1x5x6xf32>
    %388 = vector.shape_cast %387 : vector<1x5x6xf32> to vector<5x6xf32>
    %389 = vector.shape_cast %386 : vector<5x6xf32> to vector<1x5x6xf32>
    tpu.vector_store %arg34[%c2, %c0_161, %c0_162], %389 {strides = array<i32>} : memref<4x5x6xf32, #tpu.memory_space<vmem>>, vector<1x5x6xf32>,
    %390 = vector.extract_strided_slice %337 {offsets = [0, 3, 0], sizes = [8, 1, 6], strides = [1, 1, 1]} : vector<8x4x6xf32> to vector<8x1x6xf32>
    %391 = vector.shape_cast %390 : vector<8x1x6xf32> to vector<8x6xf32>
    %cst_163 = arith.constant dense<0.000000e+00> : vector<8x6xf32>
    %392 = tpu.matmul %338, %391, %cst_163 {dimension_numbers = #tpu.dot_dimension_numbers<[1], [0], [0], [1], [0, 0, 1, 1], [], []>} : vector<8x8xf32>, vector<8x6xf32>, vector<8x6xf32> -> vector<8x6xf32>
    %393 = vector.broadcast %339 : vector<8x1xf32> to vector<8x6xf32>
    %394 = arith.addf %392, %393 : vector<8x6xf32>
    %cst_164 = arith.constant 0.000000e+00 : f32
    %395 = vector.broadcast %cst_164 : f32 to vector<8x6xf32>
    %396 = arith.cmpf ogt, %394, %395 : vector<8x6xf32>
    %cst_165 = arith.constant 0.00999999977 : f32
    %397 = vector.broadcast %cst_165 : f32 to vector<8x6xf32>
    %398 = arith.mulf %397, %394 : vector<8x6xf32>
    %399 = arith.select %396, %394, %398 : vector<8x6xi1>, vector<8x6xf32>
    %cst_166 = arith.constant dense<0.000000e+00> : vector<5x6xf32>
    %400 = tpu.matmul %340, %399, %cst_166 {dimension_numbers = #tpu.dot_dimension_numbers<[1], [0], [0], [1], [0, 0, 1, 1], [], []>} : vector<5x8xf32>, vector<8x6xf32>, vector<5x6xf32> -> vector<5x6xf32>
    %401 = vector.broadcast %341 : vector<5x1xf32> to vector<5x6xf32>
    %402 = arith.addf %400, %401 : vector<5x6xf32>
    %c3 = arith.constant 3 : index
    %c0_167 = arith.constant 0 : index
    %c0_168 = arith.constant 0 : index
    %403 = vector.load %arg34[%c3, %c0_167, %c0_168] : memref<4x5x6xf32, #tpu.memory_space<vmem>>, vector<1x5x6xf32>
    %404 = vector.shape_cast %403 : vector<1x5x6xf32> to vector<5x6xf32>
    %405 = vector.shape_cast %402 : vector<5x6xf32> to vector<1x5x6xf32>
    tpu.vector_store %arg34[%c3, %c0_167, %c0_168], %405 {strides = array<i32>} : memref<4x5x6xf32, #tpu.memory_space<vmem>>, vector<1x5x6xf32>,
    return
  }
}

</mosaic_0001>

<bundles_post_ra>
// kernel: _lambda_.1
= control target key start
LH: loop header
LB: loop body
LE: loop exit
PB: predicated region body
PF: predicated region fallthrough
CT: control target
= control target key end

     0   :  { %s21000_s6 = smov 1   ;;  %s21001_s10 = smov 2   ;;  %s23744_s0 = inlined_call_operand.smem [shape: u32[35], index: -1, kind: input, shape index: {}] }
   0x1   :  { %s21067_s5 = sld [smem:[%s23744_s0]]   ;;  %s21002_s14 = smov 3  }
   0x2   :  { %s21072_s9 = sld [smem:[%s23744_s0 + %s21000_s6]]   ;;  %s21003_s18 = smov 4  }
   0x3   :  { %s21077_s13 = sld [smem:[%s23744_s0 + %s21001_s10]]   ;;  %s21004_s22 = smov 5  }
   0x4   :  { %s21082_s17 = sld [smem:[%s23744_s0 + %s21002_s14]]   ;;  %s21005_s26 = smov 6  }
   0x5   :  { %s21087_s21 = sld [smem:[%s23744_s0 + %s21003_s18]]   ;;  %s21006_s30 = smov 7  }
   0x6   :  { %s21092_s25 = sld [smem:[%s23744_s0 + %s21004_s22]]   ;;  %s21007_s4 = smov 8  }
   0x7   :  { %s21097_s29 = sld [smem:[%s23744_s0 + %s21005_s26]]   ;;  %s21008_s10 = smov 9  }
   0x8   :  { %s21102_s3 = sld [smem:[%s23744_s0 + %s21006_s30]]   ;;  %s21009_s15 = smov 10  }
   0x9   :  { %s21107_s8 = sld [smem:[%s23744_s0 + %s21007_s4]]   ;;  %s21010_s20 = smov 11  }
   0xa   :  { %s21112_s14 = sld [smem:[%s23744_s0 + %s21008_s10]]   ;;  %s21011_s26 = smov 12  }
   0xb   :  { %s21117_s19 = sld [smem:[%s23744_s0 + %s21009_s15]]   ;;  %s21012_s1 = smov 13  }
   0xc   :  { %s21122_s24 = sld [smem:[%s23744_s0 + %s21010_s20]]   ;;  %s21013_s7 = smov 14  }
   0xd   :  { %s21127_s30 = sld [smem:[%s23744_s0 + %s21011_s26]]   ;;  %s21014_s15 = smov 15  }
   0xe   :  { %s21132_s6 = sld [smem:[%s23744_s0 + %s21012_s1]]   ;;  %s21015_s22 = smov 16  }
   0xf   :  { %23753 = sst [smem:[#allocation24_spill]] %s21107_s8  ;;  %s21016_s28 = smov 17  }
  0x10   :  { %23754 = sst [smem:[#allocation25_spill]] %s21112_s14 }
  0x11   :  { %23755 = sst [smem:[#allocation26_spill]] %s21117_s19 }
  0x12   :  { %s21137_s12 = sld [smem:[%s23744_s0 + %s21013_s7]]   ;;  %s21017_s7 = smov 18  }
  0x13   :  { %23756 = sst [smem:[#allocation27_spill]] %s21127_s30 }
  0x14   :  { %23757 = sst [smem:[#allocation28_spill]] %s21132_s6 }
  0x15   :  { %s21142_s20 = sld [smem:[%s23744_s0 + %s21014_s15]]   ;;  %s21018_s15 = smov 19  }
  0x16   :  { %s21147_s27 = sld [smem:[%s23744_s0 + %s21015_s22]]   ;;  %s21019_s22 = smov 20  }
  0x17   :  { %s21152_s4 = sld [smem:[%s23744_s0 + %s21016_s28]]   ;;  %s21020_s28 = smov 21  }
  0x18   :  { %23758 = sst [smem:[#allocation29_spill]] %s21137_s12 }
  0x19   :  { %s21157_s12 = sld [smem:[%s23744_s0 + %s21017_s7]]   ;;  %s21021_s7 = smov 22  }
  0x1a   :  { %s21172_s14 = sld [smem:[%s23744_s0 + %s21020_s28]]   ;;  %s21024_s28 = smov 25  }
  0x1b   :  { %23759 = sst [smem:[#allocation30_spill]] %s21142_s20 }
  0x1c   :  { %23760 = sst [smem:[#allocation31_spill]] %s21147_s27 }
  0x1d   :  { %s21162_s20 = sld [smem:[%s23744_s0 + %s21018_s15]]   ;;  %s21022_s15 = smov 23  }
  0x1e   :  { %s21167_s27 = sld [smem:[%s23744_s0 + %s21019_s22]]   ;;  %s21023_s22 = smov 24  }
  0x1f   :  { %23761 = sst [smem:[#allocation32_spill]] %s21157_s12 }
  0x20   :  { %23763 = sst [smem:[#allocation34_spill]] %s21172_s14 }
  0x21   :  { %s21177_s12 = sld [smem:[%s23744_s0 + %s21021_s7]]   ;;  %s21025_s7 = smov 26  }
  0x22   :  { %s21182_s19 = sld [smem:[%s23744_s0 + %s21022_s15]]   ;;  %s21026_s15 = smov 27  }
  0x23   :  { %s21192_s14 = sld [smem:[%s23744_s0 + %s21024_s28]]   ;;  %s21028_s28 = smov 29  }
  0x24   :  { %23762 = sst [smem:[#allocation33_spill]] %s21167_s27 }
  0x25   :  { %s21187_s27 = sld [smem:[%s23744_s0 + %s21023_s22]]   ;;  %s21027_s22 = smov 28  }
  0x26   :  { %s21197_s6 = sld [smem:[%s23744_s0 + %s21025_s7]]   ;;  %s21029_s7 = smov 30  }
  0x27   :  { %s21202_s30 = sld [smem:[%s23744_s0 + %s21026_s15]]   ;;  %s21030_s15 = smov 31  }
  0x29   :  { %23765 = sst [smem:[#allocation36_spill]] %s21192_s14 }
  0x2a   :  { %s21212_s14 = sld [smem:[%s23744_s0 + %s21028_s28]]   ;;  %s21032_s28 = smov 33  }
  0x2b   :  { %23764 = sst [smem:[#allocation35_spill]] %s21187_s27 }
  0x2c   :  { %23766 = sst [smem:[#allocation37_spill]] %s21197_s6 }
  0x2d   :  { %23767 = sst [smem:[#allocation38_spill]] %s21202_s30 }
  0x2e   :  { %s21207_s27 = sld [smem:[%s23744_s0 + %s21027_s22]]   ;;  %s21031_s22 = smov 32  }
  0x2f   :  { %s21217_s6 = sld [smem:[%s23744_s0 + %s21029_s7]]   ;;  %s21033_s7 = smov 34  }
  0x30   :  { %s21222_s30 = sld [smem:[%s23744_s0 + %s21030_s15]]  }
  0x31   :  { %s21232_s8 = sld [smem:[%s23744_s0 + %s21032_s28]]  }
  0x34   :  { %23768 = sst [smem:[#allocation39_spill]] %s21207_s27 }
  0x35   :  { %23769 = sst [smem:[#allocation40_spill]] %s21217_s6 }
  0x36   :  { %s21227_s27 = sld [smem:[%s23744_s0 + %s21031_s22]]  }
  0x37   :  { %s21237_s6 = sld [smem:[%s23744_s0 + %s21033_s7]]  }
  0x38   :  { %74 = vsyncpa [#allocation3], 0 }
  0x39   :  { %75 = vsyncpa [#allocation5], 0 }
  0x3a   :  { %76 = vsyncpa [#allocation8], 0 }
  0x3b   :  { %77 = vsyncpa [#allocation11], 0 }
  0x3c   :  { %78 = vsyncpa [#allocation14], 0 }
  0x3d   :  { %79 = vsyncpa [#allocation17], 0  ;;  %s21034_s15 = smov [#allocation4]   ;;  %s21035_s18 = smov [#allocation7]  }
  0x3e   :  { %s104_s16 = sshll.u32 %s21034_s15, 4  ;;  %s132_s22 = sshll.u32 %s21035_s18, 4  ;;  %s105_s16 = int_to_ptr.vmem [resolvable:$true] %s104_s16  ;;  %s133_s22 = int_to_ptr.vmem [resolvable:$true] %s132_s22 }
  0x3f   :  { %s20768_s23 = scalar_lea.hbm %s21092_s25, 16 }
  0x40   :  { %p20769_p0 = scmp.ne.s32.totalorder %s21092_s25, %s20768_s23  ;;  %p20772_p1 = scmp.lt.u32.totalorder %s20768_s23, %s21092_s25 }
  0x42   :  { %p20774_p2 = pnand %p20772_p1, %p20769_p0 }
  0x44   :  { %20777 = shalt.err (!%p20774_p2)
}
  0x45   :  { %s20778_s0 = scalar_lea.vmem %s105_s16, 16  ;;  %s20782_s26 = scalar_lea.vmem %s105_s16, 32 }
  0x46   :  { %p20779_p3 = scmp.ne.s32.totalorder %s105_s16, %s20778_s0  ;;  %p20783_p4 = scmp.lt.s32.totalorder %s105_s16, %s105_s16 }
  0x47   :  { %p20784_p5 = scmp.lt.s32.totalorder %s20782_s26, %s20778_s0 }
  0x49   :  { %p20785_p6 = por %p20784_p5, %p20783_p4 }
  0x4b   :  { %p20786_p7 = pnand %p20785_p6, %p20779_p3 }
  0x4d   :  { %20789 = shalt.err (!%p20786_p7)
}
  0x4e   :  { %107 = dma.hbm_to_vmem [thread:$0]  %s21092_s25, 16, %s105_s16, [#allocation5]  }
  0x4f   :  { %s20790_s28 = scalar_lea.hbm %s21122_s24, 16 }
  0x50   :  { %p20791_p8 = scmp.ne.s32.totalorder %s21122_s24, %s20790_s28  ;;  %p20794_p9 = scmp.lt.u32.totalorder %s20790_s28, %s21122_s24 }
  0x52   :  { %p20796_p10 = pnand %p20794_p9, %p20791_p8 }
  0x54   :  { %20799 = shalt.err (!%p20796_p10)
}
  0x55   :  { %s20800_s1 = scalar_lea.vmem %s133_s22, 16  ;;  %s20804_s2 = scalar_lea.vmem %s133_s22, 32 }
  0x56   :  { %p20801_p11 = scmp.ne.s32.totalorder %s133_s22, %s20800_s1  ;;  %p20805_p12 = scmp.lt.s32.totalorder %s133_s22, %s133_s22 }
  0x57   :  { %p20806_p13 = scmp.lt.s32.totalorder %s20804_s2, %s20800_s1 }
  0x59   :  { %p20807_p0 = por %p20806_p13, %p20805_p12 }
  0x5b   :  { %p20808_p1 = pnand %p20807_p0, %p20801_p11 }
  0x5d   :  { %20811 = shalt.err (!%p20808_p1)
}
  0x5e   :  { %135 = dma.hbm_to_vmem [thread:$0]  %s21122_s24, 16, %s133_s22, [#allocation8]  }
  0x5f   :  { %s21036_s7 = smov [#allocation10]   ;;  %s21037_s10 = smov [#allocation13]  }
  0x60   :  { %s164_s25 = sshll.u32 %s21036_s7, 4  ;;  %s190_s11 = sshll.u32 %s21037_s10, 4  ;;  %s165_s25 = int_to_ptr.vmem [resolvable:$true] %s164_s25  ;;  %s191_s11 = int_to_ptr.vmem [resolvable:$true] %s190_s11 }
  0x61   :  { %s20812_s15 = scalar_lea.hbm %s21162_s20, 16 }
  0x62   :  { %p20813_p2 = scmp.ne.s32.totalorder %s21162_s20, %s20812_s15  ;;  %p20816_p3 = scmp.lt.u32.totalorder %s20812_s15, %s21162_s20 }
  0x64   :  { %p20818_p4 = pnand %p20816_p3, %p20813_p2 }
  0x66   :  { %20821 = shalt.err (!%p20818_p4)
}
  0x67   :  { %s20822_s16 = scalar_lea.vmem %s165_s25, 16  ;;  %s20826_s18 = scalar_lea.vmem %s165_s25, 32 }
  0x68   :  { %p20823_p5 = scmp.ne.s32.totalorder %s165_s25, %s20822_s16  ;;  %p20827_p6 = scmp.lt.s32.totalorder %s165_s25, %s165_s25 }
  0x69   :  { %p20828_p7 = scmp.lt.s32.totalorder %s20826_s18, %s20822_s16 }
  0x6b   :  { %p20829_p8 = por %p20828_p7, %p20827_p6 }
  0x6d   :  { %p20830_p9 = pnand %p20829_p8, %p20823_p5 }
  0x6f   :  { %20833 = shalt.err (!%p20830_p9)
}
  0x70   :  { %167 = dma.hbm_to_vmem [thread:$0]  %s21162_s20, 16, %s165_s25, [#allocation11]  }
  0x71   :  { %s20834_s24 = scalar_lea.hbm %s21182_s19, 16 }
  0x72   :  { %p20835_p10 = scmp.ne.s32.totalorder %s21182_s19, %s20834_s24  ;;  %p20838_p11 = scmp.lt.u32.totalorder %s20834_s24, %s21182_s19 }
  0x74   :  { %p20840_p12 = pnand %p20838_p11, %p20835_p10 }
  0x76   :  { %20843 = shalt.err (!%p20840_p12)
}
  0x77   :  { %s20844_s22 = scalar_lea.vmem %s191_s11, 16  ;;  %s20848_s23 = scalar_lea.vmem %s191_s11, 32 }
  0x78   :  { %p20845_p13 = scmp.ne.s32.totalorder %s191_s11, %s20844_s22  ;;  %p20849_p0 = scmp.lt.s32.totalorder %s191_s11, %s191_s11 }
  0x79   :  { %p20850_p1 = scmp.lt.s32.totalorder %s20848_s23, %s20844_s22 }
  0x7b   :  { %p20851_p2 = por %p20850_p1, %p20849_p0 }
  0x7d   :  { %p20852_p3 = pnand %p20851_p2, %p20845_p13 }
  0x7f   :  { %20855 = shalt.err (!%p20852_p3)
}
  0x80   :  { %193 = dma.hbm_to_vmem [thread:$0]  %s21182_s19, 16, %s191_s11, [#allocation14]  }
  0x81   :  { %s21038_s0 = smov [#allocation2]   ;;  %s21039_s26 = smov [#allocation6]  }
  0x82   :  { %s92_s20 = sshll.u32 %s21038_s0, 4  ;;  %s116_s28 = sshll.u32 %s21039_s26, 4  ;;  %s93_s20 = int_to_ptr.vmem [resolvable:$true] %s92_s20  ;;  %s117_s28 = int_to_ptr.vmem [resolvable:$true] %s116_s28 }
  0x83   :  { %s20856_s1 = scalar_lea.hbm %s21082_s17, 16 }
  0x84   :  { %p20857_p4 = scmp.ne.s32.totalorder %s21082_s17, %s20856_s1  ;;  %p20860_p5 = scmp.lt.u32.totalorder %s20856_s1, %s21082_s17 }
  0x86   :  { %p20862_p6 = pnand %p20860_p5, %p20857_p4 }
  0x88   :  { %20865 = shalt.err (!%p20862_p6)
}
  0x89   :  { %s20866_s2 = scalar_lea.vmem %s93_s20, 16  ;;  %s20870_s7 = scalar_lea.vmem %s93_s20, 32 }
  0x8a   :  { %p20867_p7 = scmp.ne.s32.totalorder %s93_s20, %s20866_s2  ;;  %p20871_p8 = scmp.lt.s32.totalorder %s93_s20, %s93_s20 }
  0x8b   :  { %p20872_p9 = scmp.lt.s32.totalorder %s20870_s7, %s20866_s2 }
  0x8d   :  { %p20873_p10 = por %p20872_p9, %p20871_p8 }
  0x8f   :  { %p20874_p11 = pnand %p20873_p10, %p20867_p7 }
  0x91   :  { %20877 = shalt.err (!%p20874_p11)
}
  0x92   :  { %95 = dma.hbm_to_vmem [thread:$0]  %s21082_s17, 16, %s93_s20, [#allocation3]  }
  0x93   :  { %s20878_s19 = scalar_lea.hbm %s21102_s3, 16 }
  0x94   :  { %p20879_p12 = scmp.ne.s32.totalorder %s21102_s3, %s20878_s19  ;;  %p20882_p13 = scmp.lt.u32.totalorder %s20878_s19, %s21102_s3 }
  0x96   :  { %p20884_p0 = pnand %p20882_p13, %p20879_p12 }
  0x98   :  { %20887 = shalt.err (!%p20884_p0)
}
  0x99   :  { %s20888_s25 = scalar_lea.vmem %s117_s28, 16  ;;  %s20892_s10 = scalar_lea.vmem %s117_s28, 32 }
  0x9a   :  { %p20889_p1 = scmp.ne.s32.totalorder %s117_s28, %s20888_s25  ;;  %p20893_p2 = scmp.lt.s32.totalorder %s117_s28, %s117_s28 }
  0x9b   :  { %p20894_p3 = scmp.lt.s32.totalorder %s20892_s10, %s20888_s25 }
  0x9d   :  { %p20895_p4 = por %p20894_p3, %p20893_p2 }
  0x9f   :  { %p20896_p5 = pnand %p20895_p4, %p20889_p1 }
  0xa1   :  { %20899 = shalt.err (!%p20896_p5)
}
  0xa2   :  { %119 = dma.hbm_to_vmem [thread:$0]  %s21102_s3, 16, %s117_s28, [#allocation5]  }
  0xa3   :  { %s21040_s11 = smov [#allocation9]   ;;  %s21041_s15 = smov [#allocation12]  }
  0xa4   :  { %s152_s17 = sshll.u32 %s21040_s11, 4  ;;  %s177_s16 = sshll.u32 %s21041_s15, 4  ;;  %s153_s17 = int_to_ptr.vmem [resolvable:$true] %s152_s17  ;;  %s21263_s16 = int_to_ptr.vmem [resolvable:$true] %s177_s16 }
  0xa5   :  { %s20900_s18 = scalar_lea.hbm %s21152_s4, 16 }
  0xa6   :  { %p20901_p6 = scmp.ne.s32.totalorder %s21152_s4, %s20900_s18  ;;  %p20904_p7 = scmp.lt.u32.totalorder %s20900_s18, %s21152_s4 }
  0xa8   :  { %p20906_p8 = pnand %p20904_p7, %p20901_p6 }
  0xaa   :  { %20909 = shalt.err (!%p20906_p8)
}
  0xab   :  { %s20910_s24 = scalar_lea.vmem %s153_s17, 16  ;;  %s20914_s22 = scalar_lea.vmem %s153_s17, 32 }
  0xac   :  { %p20911_p9 = scmp.ne.s32.totalorder %s153_s17, %s20910_s24  ;;  %p20915_p10 = scmp.lt.s32.totalorder %s153_s17, %s153_s17 }
  0xad   :  { %p20916_p11 = scmp.lt.s32.totalorder %s20914_s22, %s20910_s24 }
  0xaf   :  { %p20917_p12 = por %p20916_p11, %p20915_p10 }
  0xb1   :  { %p20918_p13 = pnand %p20917_p12, %p20911_p9 }
  0xb3   :  { %20921 = shalt.err (!%p20918_p13)
}
  0xb4   :  { %155 = dma.hbm_to_vmem [thread:$0]  %s21152_s4, 16, %s153_s17, [#allocation8]  }
  0xb5   :  { %s20922_s3 = scalar_lea.hbm %s21177_s12, 16384 }
  0xb6   :  { %p20923_p0 = scmp.ne.s32.totalorder %s21177_s12, %s20922_s3  ;;  %p20926_p1 = scmp.lt.u32.totalorder %s20922_s3, %s21177_s12 }
  0xb8   :  { %p20928_p2 = pnand %p20926_p1, %p20923_p0 }
  0xba   :  { %20931 = shalt.err (!%p20928_p2)
}
  0xbb   :  { %s20932_s23 = scalar_lea.vmem %s21263_s16, 16384  ;;  %p20937_p4 = scmp.lt.s32.totalorder %s21263_s16, %s21263_s16 }
  0xbc   :  { %p20933_p3 = scmp.ne.s32.totalorder %s21263_s16, %s20932_s23  ;;  %p20938_p5 = scmp.lt.s32.totalorder %s20932_s23, %s20932_s23 }
  0xbe   :  { %p20939_p6 = por %p20938_p5, %p20937_p4 }
  0xc0   :  { %p20940_p7 = pnand %p20939_p6, %p20933_p3 }
  0xc2   :  { %20943 = shalt.err (!%p20940_p7)
}
  0xc3   :  { %s21042_s0 = smov 64   ;;  %s21043_s4 = smov 4  }
  0xc4   :  { %183 = dma.hbm_to_vmem [thread:$0]  %s21177_s12, 16384, %s21263_s16, [#allocation11], %s21042_s0, %s21042_s0, %s21043_s4  }
  0xc5   :  { %s21044_s20 = smov [#allocation15]   ;;  %s21045_s28 = smov [#allocation16]  }
  0xc6   :  { %s210_s26 = sshll.u32 %s21044_s20, 4  ;;  %s226_s1 = sshll.u32 %s21045_s28, 4  ;;  %s211_s26 = int_to_ptr.vmem [resolvable:$true] %s210_s26  ;;  %s227_s1 = int_to_ptr.vmem [resolvable:$true] %s226_s1 }
  0xc7   :  { %s20944_s2 = scalar_lea.hbm %s21212_s14, 16 }
  0xc8   :  { %p20945_p8 = scmp.ne.s32.totalorder %s21212_s14, %s20944_s2  ;;  %p20948_p9 = scmp.lt.u32.totalorder %s20944_s2, %s21212_s14 }
  0xca   :  { %p20950_p10 = pnand %p20948_p9, %p20945_p8 }
  0xcc   :  { %20953 = shalt.err (!%p20950_p10)
}
  0xcd   :  { %s20954_s7 = scalar_lea.vmem %s211_s26, 16  ;;  %s20958_s19 = scalar_lea.vmem %s211_s26, 32 }
  0xce   :  { %p20955_p11 = scmp.ne.s32.totalorder %s211_s26, %s20954_s7  ;;  %p20959_p12 = scmp.lt.s32.totalorder %s211_s26, %s211_s26 }
  0xcf   :  { %p20960_p13 = scmp.lt.s32.totalorder %s20958_s19, %s20954_s7 }
  0xd1   :  { %p20961_p0 = por %p20960_p13, %p20959_p12 }
  0xd3   :  { %p20962_p1 = pnand %p20961_p0, %p20955_p11 }
  0xd5   :  { %20965 = shalt.err (!%p20962_p1)
}
  0xd6   :  { %213 = dma.hbm_to_vmem [thread:$0]  %s21212_s14, 16, %s211_s26, [#allocation14]  }
  0xd7   :  { %s20966_s12 = scalar_lea.hbm %s21232_s8, 128 }
  0xd8   :  { %p20967_p2 = scmp.ne.s32.totalorder %s21232_s8, %s20966_s12  ;;  %p20970_p3 = scmp.lt.u32.totalorder %s20966_s12, %s21232_s8 }
  0xda   :  { %p20972_p4 = pnand %p20970_p3, %p20967_p2 }
  0xdc   :  { %20975 = shalt.err (!%p20972_p4)
}
  0xdd   :  { %s20976_s25 = scalar_lea.vmem %s227_s1, 128  ;;  %p20981_p6 = scmp.lt.s32.totalorder %s227_s1, %s227_s1 }
  0xde   :  { %p20977_p5 = scmp.ne.s32.totalorder %s227_s1, %s20976_s25  ;;  %p20982_p7 = scmp.lt.s32.totalorder %s20976_s25, %s20976_s25 }
  0xe0   :  { %p20983_p8 = por %p20982_p7, %p20981_p6 }
  0xe2   :  { %p20984_p9 = pnand %p20983_p8, %p20977_p5 }
  0xe4   :  { %20987 = shalt.err (!%p20984_p9)
}
  0xe5   :  { %229 = dma.hbm_to_vmem [thread:$0]  %s21232_s8, 128, %s227_s1, [#allocation17]  }
  0xe6   :  { %20988 = dma.done.wait [#allocation3], 16  }
  0xe7   :  { %20989 = vsyncadd [#allocation3], 4294967280 }
  0xe8   :  { %20990 = dma.done.wait [#allocation5], 32  }
  0xe9   :  { %20991 = vsyncadd [#allocation5], 4294967264 }
  0xea   :  { %20992 = dma.done.wait [#allocation8], 32  }
  0xeb   :  { %20993 = vsyncadd [#allocation8], 4294967264 }
  0xec   :  { %20994 = dma.done.wait [#allocation11], 16400  }
  0xed   :  { %20995 = vsyncadd [#allocation11], 4294950896 }
  0xee   :  { %20996 = dma.done.wait [#allocation14], 32  }
  0xef   :  { %20997 = vsyncadd [#allocation14], 4294967264 }
  0xf0   :  { %20998 = dma.done.wait [#allocation17], 128  }
  0xf1   :  { %20999 = vsyncadd [#allocation17], 4294967168  ;;  %vm286_vm0 = vcmask 1045504   ;;  %vm273_vm1 = vcmask 48128   ;;  %v265_v0 = vld [vmem:[%s21077_s13] sm:$0x3f] }
  0xf2   :  { %v261_v1 = vld [vmem:[%s21067_s5] sm:$0xff]  ;;  %v262_v2 = vld [vmem:[%s21067_s5 + $0x8] sm:$0xff]  ;;  %19313 = vmatprep.subr.msk.mxu0 %vm286_vm0, %v265_v0  ;;  %v263_v3 = vld [vmem:[%s21067_s5 + $0x10] sm:$0xff]  ;;  %vm394_vm2 = vcmask 261120   ;;  %v21046_v28 = vmov 0.0   ;;  %vm21047_vm3 = vmmov 0  }
  0xf3   :  { %19315 = vmatprep.mubr.msk.f32.mxu0 %vm273_vm1, %v261_v1  ;;  %v383_v4 = vld [vmem:[%s21087_s21] sm:$0xff]  ;;  %19314 = vmatpush3.msk.msra.mxu0 %vm286_vm0, %v265_v0  ;;  %v264_v5 = vld [vmem:[%s21067_s5 + $0x18] sm:$0xff]  ;;  %v384_v6 = vld [vmem:[%s21087_s21 + $0x8] sm:$0xff]  ;;  %s21048_s5 = smov 96   ;;  %vm519_vm4 = vcmask 64512   ;;  %vm1134_vm5 = vcmask 27648  }
  0xf4   :  { %19316 = vmatmul.mubr.msk.f32.vlgmr.msra.gmra.mrb[0].mxu0 %vm273_vm1, %v262_v2  ;;  %v20107_v7 = vpack.c.bf16 %v384_v6, %v383_v4  ;;  %v385_v8 = vld [vmem:[%s21087_s21 + $0x10] sm:$0xff]  ;;  %v386_v9 = vld [vmem:[%s21087_s21 + $0x18] sm:$0xff]  ;;  %v17840_v11 = vld [vmem:[#allocation2] ss:$0 sm:$0xff]  ;;  %19335 = vmatprep.subr.mxu0 %v21046_v28  ;;  %vm1229_vm6 = vcmask 1043456   ;;  %s21050_s13 = smov 88  }
  0xf5   :  { %19318 = vmatprep.mubr.msk.f32.mxu0 %vm273_vm1, %v263_v3  ;;  %v20111_v10 = vpack.c.bf16 %v386_v9, %v385_v8  ;;  %v375_v15 = vld [vmem:[%s21072_s9] sm:$0xff]  ;;  %v376_v16 = vld [vmem:[%s21072_s9 + $0x8] sm:$0xff]  ;;  %v378_v20 = vld [vmem:[%s21072_s9 + $0x18] sm:$0xff]  ;;  %vm1225_vm7 = vcmask 31744   ;;  %s21051_s21 = smov 56   ;;  %s21052_s8 = smov 112  }
  0xf6   :  { %20108 = vmatprep.subr.bf16.mxu1 %v20107_v7  ;;  %v377_v24 = vld [vmem:[%s21072_s9 + $0x10] sm:$0xff]  ;;  %v17846_v29 = vld [vmem:[#allocation4] ss:$0 sm:$0xff]  ;;  %s21049_s9 = smov 120   ;;  %s21053_s14 = smov 80   ;;  %vm17070_vm8 = vcmask 1041409  }
  0xf7   :  { %20110 = vmatpush3.bf16.msra.mxu1 %v20107_v7  ;;  %s21054_s10 = smov 48   ;;  %s21055_s11 = smov 104   ;;  %vm17072_vm9 = vcmask 1042434   ;;  %vm17074_vm10 = vcmask 1043459   ;;  %vm17076_vm11 = vcmask 1044484   ;;  %vm17078_vm12 = vcmask 1045509  }
  0xf8   :  { %19319 = vmatmul.mubr.msk.f32.gmra.mrb[2].mxu0 %vm273_vm1, %v264_v5  ;;  %20112 = vmatprep.subr.bf16.mxu1 %v20111_v10  ;;  %s21056_s17 = smov 72   ;;  %s21057_s15 = smov 40   ;;  %vm17080_vm13 = vcmask 1046534   ;;  %vm17082_vm14 = vcmask 1047559  }
  0xf9   :  { %19337 = vmatprep.mubr.msk.f32.mxu0 %vm21047_vm3, %v21046_v28  ;;  %s23771_s16 = sld [smem:[#allocation27_spill]]  ;;  %s23772_s18 = sld [smem:[#allocation28_spill]] }
  0xfa   :  { %s23773_s24 = sld [smem:[#allocation26_spill]]  ;;  %s23774_s22 = sld [smem:[#allocation25_spill]] }
  0xfb   :  { %20114 = vmatpush3.bf16.msra.mxu1 %v20111_v10  ;;  %s23775_s3 = sld [smem:[#allocation31_spill]]  ;;  %s23776_s23 = sld [smem:[#allocation29_spill]] }
  0xfc   :  { %19345 = vmatprep.subr.mxu1 %v21046_v28  ;;  %s23777_s4 = sld [smem:[#allocation30_spill]]  ;;  %s23779_s20 = sld [smem:[#allocation33_spill]] }
  0xfd   :  { %s23780_s26 = sld [smem:[#allocation35_spill]]  ;;  %s23781_s28 = sld [smem:[#allocation36_spill]] }
  0xfe   :  { %s23782_s1 = sld [smem:[#allocation34_spill]]  ;;  %s23783_s2 = sld [smem:[#allocation39_spill]] }
  0xff   :  { %s23784_s7 = sld [smem:[#allocation37_spill]]  ;;  %s23785_s19 = sld [smem:[#allocation38_spill]] }
 0x1c7   :  { %v19317_v12 = vpop.f32.mrb[0].mxu0 }
 0x1c8   :  { %v362_v13 = vadd.f32 %v19317_v12, %v17840_v11  ;;  %v356_v14 = vpop.f32.mrb[1].mxu0 }
 0x1c9   :  { %v357_v17 = vadd.f32 %v17840_v11, %v356_v14 }
 0x1ca   :  { %v21306_v21 = vadd.f32 %v376_v16, %v362_v13 }
 0x1cb   :  { %v21303_v18 = vadd.f32 %v375_v15, %v357_v17  ;;  %v19320_v19 = vpop.f32.mrb[2].mxu0 }
 0x1cc   :  { %v372_v22 = vadd.f32 %v19320_v19, %v17840_v11  ;;  %v366_v23 = vpop.f32.mrb[3].mxu0 }
 0x1cd   :  { %19329 = vmatprep.mubr.msk.f32.mxu1 %vm394_vm2, %v21303_v18  ;;  %v367_v25 = vadd.f32 %v17840_v11, %v366_v23 }
 0x1ce   :  { %v21311_v26 = vadd.f32 %v378_v20, %v372_v22  ;;  %19330 = vmatmul.mubr.msk.f32.vlgmr.msra.gmra.mrb[0].mxu1 %vm394_vm2, %v21306_v21 }
 0x1cf   :  { %v21315_v27 = vadd.f32 %v377_v24, %v367_v25 }
 0x1d1   :  { %19332 = vmatprep.mubr.msk.f32.mxu1 %vm394_vm2, %v21315_v27 }
 0x1d2   :  { %19333 = vmatmul.mubr.msk.f32.gmra.mrb[2].mxu1 %vm394_vm2, %v21311_v26 }
 0x1d3   :  { %19347 = vmatprep.mubr.msk.f32.mxu1 %vm21047_vm3, %v21046_v28 }
 0x2a1   :  { %v19331_v30 = vpop.f32.mrb[0].mxu1 }
 0x2a2   :  { %v21327_v31 = vadd.f32 %v19331_v30, %v17846_v29  ;;  %v473_v32 = vpop.f32.mrb[1].mxu1 }
 0x2a3   :  { %v21329_v33 = vadd.f32 %v17846_v29, %v473_v32 }
 0x2a4   :  { %672 = vrot.lane.b32.xlu1 %v21327_v31, %s21048_s5  ;;  %v21337_v35 = vcombine.high %v21327_v31, %v21327_v31  ;;  %v21370_v44 = vmul.f32 0.35355338, %v21327_v31 }
 0x2a5   :  { %517 = vrot.lane.b32.xlu0 %v21329_v33, %s21048_s5  ;;  %v19334_v34 = vpop.f32.mrb[2].mxu1  ;;  %v21343_v38 = vcombine.high %v21329_v33, %v21329_v33  ;;  %v21374_v45 = vmul.f32 0.35355338, %v21329_v33 }
 0x2a6   :  { %v483_v36 = vpop.f32.mrb[3].mxu1  ;;  %v21347_v39 = vadd.f32 %v19334_v34, %v17846_v29  ;;  %v21401_v52 = vmul.f32 0.35355338, %v21337_v35 }
 0x2a7   :  { %v21339_v37 = vadd.f32 %v17846_v29, %v483_v36  ;;  %v21388_v48 = vmul.f32 0.35355338, %v21343_v38 }
 0x2a8   :  { %749 = vrot.lane.b32.xlu1 %v21337_v35, %s21048_s5  ;;  %v21359_v41 = vcombine.high %v21347_v39, %v21347_v39  ;;  %v21418_v55 = vmul.f32 0.35355338, %v21347_v39 }
 0x2a9   :  { %595 = vrot.lane.b32.xlu0 %v21343_v38, %s21048_s5  ;;  %v21353_v40 = vcombine.high %v21339_v37, %v21339_v37  ;;  %v21397_v51 = vmul.f32 0.35355338, %v21339_v37 }
 0x2aa   :  { %v21430_v57 = vmul.f32 0.35355338, %v21359_v41 }
 0x2ab   :  { %v21415_v54 = vmul.f32 0.35355338, %v21353_v40 }
 0x2ac   :  { %903 = vrot.lane.b32.xlu1 %v21353_v40, %s21048_s5 }
 0x2ad   :  { %826 = vrot.lane.b32.xlu0 %v21339_v37, %s21048_s5 }
 0x2b0   :  { %1057 = vrot.lane.b32.xlu1 %v21359_v41, %s21048_s5 }
 0x2b1   :  { %980 = vrot.lane.b32.xlu0 %v21347_v39, %s21048_s5 }
 0x316   :  { %v673_v42 = vpop.permute.xlu1 %672 }
 0x317   :  { %19346 = vmatpush3.xpose.msk.msra.mxu1 %vm519_vm4, %v673_v42  ;;  %v518_v43 = vpop.permute.xlu0 %517 }
 0x318   :  { %19336 = vmatpush3.xpose.msk.msra.mxu0 %vm519_vm4, %v518_v43  ;;  %19355 = vmatprep.subr.mxu1 %v21046_v28 }
 0x319   :  { %19340 = vmatprep.subr.mxu0 %v21046_v28 }
 0x31a   :  { %19348 = vmatmul.mubr.msk.f32.vlgmr.msra.gmra.mrb[4].mxu1 %vm519_vm4, %v21370_v44  ;;  %v750_v47 = vpop.permute.xlu1 %749 }
 0x31b   :  { %19338 = vmatmul.mubr.msk.f32.vlgmr.msra.gmra.mrb[4].mxu0 %vm519_vm4, %v21374_v45  ;;  %v596_v46 = vpop.permute.xlu0 %595  ;;  %19357 = vmatprep.mubr.msk.f32.mxu1 %vm21047_vm3, %v21046_v28 }
 0x31c   :  { %19341 = vmatpush3.xpose.msk.msra.mxu0 %vm519_vm4, %v596_v46  ;;  %19342 = vmatprep.mubr.msk.f32.mxu0 %vm21047_vm3, %v21046_v28 }
 0x31d   :  { %19350 = vmatprep.subr.mxu0 %v21046_v28 }
 0x31e   :  { %v904_v50 = vpop.permute.xlu1 %903 }
 0x31f   :  { %v827_v49 = vpop.permute.xlu0 %826  ;;  %19343 = vmatmul.mubr.msk.f32.vlgmr.msra.gmra.mrb[6].mxu0 %vm519_vm4, %v21388_v48 }
 0x320   :  { %19351 = vmatpush3.xpose.msk.msra.mxu0 %vm519_vm4, %v750_v47  ;;  %19356 = vmatpush3.xpose.msk.msra.mxu1 %vm519_vm4, %v827_v49 }
 0x321   :  { %19352 = vmatprep.mubr.msk.f32.mxu0 %vm21047_vm3, %v21046_v28  ;;  %19365 = vmatprep.subr.mxu1 %v21046_v28 }
 0x322   :  { %19360 = vmatprep.subr.mxu0 %v21046_v28  ;;  %v1058_v56 = vpop.permute.xlu1 %1057 }
 0x323   :  { %19358 = vmatmul.mubr.msk.f32.vlgmr.msra.gmra.mrb[6].mxu1 %vm519_vm4, %v21397_v51  ;;  %v981_v53 = vpop.permute.xlu0 %980  ;;  %19353 = vmatmul.mubr.msk.f32.vlgmr.msra.gmra.mrb[8].mxu0 %vm519_vm4, %v21401_v52 }
 0x324   :  { %19361 = vmatpush3.xpose.msk.msra.mxu0 %vm519_vm4, %v904_v50  ;;  %19366 = vmatpush3.xpose.msk.msra.mxu1 %vm519_vm4, %v981_v53 }
 0x325   :  { %19362 = vmatprep.mubr.msk.f32.mxu0 %vm21047_vm3, %v21046_v28  ;;  %19367 = vmatprep.mubr.msk.f32.mxu1 %vm21047_vm3, %v21046_v28 }
 0x326   :  { %19370 = vmatprep.subr.mxu0 %v21046_v28  ;;  %19375 = vmatprep.subr.mxu1 %v21046_v28 }
 0x327   :  { %19363 = vmatmul.mubr.msk.f32.vlgmr.msra.gmra.mrb[10].mxu0 %vm519_vm4, %v21415_v54  ;;  %19368 = vmatmul.mubr.msk.f32.vlgmr.msra.gmra.mrb[8].mxu1 %vm519_vm4, %v21418_v55 }
 0x328   :  { %19371 = vmatpush3.xpose.msk.msra.mxu0 %vm519_vm4, %v1058_v56  ;;  %19372 = vmatprep.mubr.msk.f32.mxu0 %vm21047_vm3, %v21046_v28 }
 0x329   :  { %19380 = vmatprep.subr.mxu0 %v21046_v28  ;;  %19377 = vmatprep.mubr.msk.f32.mxu1 %vm21047_vm3, %v21046_v28 }
 0x32b   :  { %19373 = vmatmul.mubr.msk.f32.vlgmr.msra.gmra.mrb[12].mxu0 %vm519_vm4, %v21430_v57 }
 0x32c   :  { %19382 = vmatprep.mubr.msk.f32.mxu0 %vm21047_vm3, %v21046_v28 }
 0x3ed   :  { %v745_v58 = vpop.f32.mrb[4].mxu1 }
 0x3ee   :  { %v591_v59 = vpop.f32.mrb[4].mxu0  ;;  %v19349_v60 = vpop.f32.mrb[5].mxu1  ;;  %v1141_v1 = vsel %vm1134_vm5, %v745_v58, -inf }
 0x3ef   :  { %v19339_v61 = vpop.f32.mrb[5].mxu0  ;;  %v1135_v62 = vsel %vm1134_vm5, %v591_v59, -inf }
 0x3f0   :  { %1136 = vmax.xlane.f32.xlu0 %v1135_v62 }
 0x3f2   :  { %v668_v63 = vpop.f32.mrb[6].mxu0 }
 0x3f3   :  { %v19344_v0 = vpop.f32.mrb[7].mxu0  ;;  %v1138_v2 = vsel %vm1134_vm5, %v668_v63, -inf }
 0x3f4   :  { %1142 = vmax.xlane.f32.xlu0 %v1141_v1  ;;  %1139 = vmax.xlane.f32.xlu1 %v1138_v2 }
 0x3f6   :  { %v822_v3 = vpop.f32.mrb[8].mxu0  ;;  %v899_v4 = vpop.f32.mrb[6].mxu1 }
 0x3f7   :  { %v19354_v5 = vpop.f32.mrb[9].mxu0  ;;  %v19359_v6 = vpop.f32.mrb[7].mxu1  ;;  %v1147_v7 = vsel %vm1134_vm5, %v899_v4, -inf  ;;  %v1144_v8 = vsel %vm1134_vm5, %v822_v3, -inf }
 0x3f8   :  { %1148 = vmax.xlane.f32.xlu1 %v1147_v7  ;;  %1145 = vmax.xlane.f32.xlu0 %v1144_v8 }
 0x3fa   :  { %v976_v9 = vpop.f32.mrb[10].mxu0  ;;  %v1053_v10 = vpop.f32.mrb[8].mxu1 }
 0x3fb   :  { %v19364_v11 = vpop.f32.mrb[11].mxu0  ;;  %v19369_v12 = vpop.f32.mrb[9].mxu1  ;;  %v1153_v13 = vsel %vm1134_vm5, %v1053_v10, -inf  ;;  %v1150_v14 = vsel %vm1134_vm5, %v976_v9, -inf }
 0x3fc   :  { %1154 = vmax.xlane.f32.xlu1 %v1153_v13  ;;  %1151 = vmax.xlane.f32.xlu0 %v1150_v14 }
 0x3fe   :  { %v1130_v15 = vpop.f32.mrb[12].mxu0 }
 0x3ff   :  { %v19374_v16 = vpop.f32.mrb[13].mxu0  ;;  %v1156_v17 = vsel %vm1134_vm5, %v1130_v15, -inf }
 0x400   :  { %1157 = vmax.xlane.f32.xlu0 %v1156_v17 }
 0x40d   :  { %1223 = vrot.lane.b32.xlu1 %v21329_v33, %s21042_s0 }
 0x411   :  { %1379 = vrot.lane.b32.xlu1 %v21327_v31, %s21042_s0 }
 0x415   :  { %1456 = vrot.lane.b32.xlu1 %v21337_v35, %s21042_s0 }
 0x416   :  { %1302 = vrot.lane.b32.xlu0 %v21343_v38, %s21042_s0 }
 0x419   :  { %1610 = vrot.lane.b32.xlu1 %v21353_v40, %s21042_s0 }
 0x41a   :  { %1533 = vrot.lane.b32.xlu0 %v21339_v37, %s21042_s0 }
 0x47d   :  { %v1137_v19 = vpop.xlane.xlu0 %1136 }
 0x47e   :  { %v1159_v20 = vsub.f32 %v591_v59, %v1137_v19 }
 0x480   :  { %v1167_v29 = vmul.f32 1.442695, %v1159_v20 }
 0x481   :  { %v1143_v22 = vpop.xlane.xlu0 %1142  ;;  %v1140_v23 = vpop.xlane.xlu1 %1139 }
 0x482   :  { %v1161_v24 = vsub.f32 %v745_v58, %v1143_v22  ;;  %v1160_v25 = vsub.f32 %v668_v63, %v1140_v23 }
 0x484   :  { %v1171_v30 = vmul.f32 1.442695, %v1161_v24  ;;  %v1169_v32 = vmul.f32 1.442695, %v1160_v25 }
 0x485   :  { %v1149_v34 = vpop.xlane.xlu1 %1148  ;;  %v1146_v36 = vpop.xlane.xlu0 %1145 }
 0x486   :  { %20480 = vpow2.f32 %v1171_v30  ;;  %v1163_v42 = vsub.f32 %v899_v4, %v1149_v34  ;;  %v1162_v43 = vsub.f32 %v822_v3, %v1146_v36 }
 0x487   :  { %20482 = vpow2.f32 %v1169_v32 }
 0x488   :  { %20484 = vpow2.f32 %v1167_v29  ;;  %v1175_v46 = vmul.f32 1.442695, %v1163_v42  ;;  %v1173_v47 = vmul.f32 1.442695, %v1162_v43 }
 0x489   :  { %v1155_v49 = vpop.xlane.xlu1 %1154  ;;  %v1152_v50 = vpop.xlane.xlu0 %1151 }
 0x48a   :  { %v1165_v53 = vsub.f32 %v1053_v10, %v1155_v49  ;;  %v1164_v56 = vsub.f32 %v976_v9, %v1152_v50  ;;  %20486 = vpow2.f32 %v1173_v47 }
 0x48b   :  { %20488 = vpow2.f32 %v1175_v46 }
 0x48c   :  { %v1179_v58 = vmul.f32 1.442695, %v1165_v53  ;;  %v1177_v59 = vmul.f32 1.442695, %v1164_v56 }
 0x48d   :  { %v1224_v60 = vpop.permute.xlu1 %1223  ;;  %v1158_v61 = vpop.xlane.xlu0 %1157 }
 0x48e   :  { %v1166_v62 = vsub.f32 %v1130_v15, %v1158_v61  ;;  %19376 = vmatpush3.msk.msra.mxu1 %vm1229_vm6, %v1224_v60  ;;  %20490 = vpow2.f32 %v1177_v59 }
 0x48f   :  { %19385 = vmatprep.subr.mxu1 %v21046_v28  ;;  %20492 = vpow2.f32 %v1179_v58 }
 0x490   :  { %v21461_v63 = vpop.eup %20480  ;;  %v1181_v0 = vmul.f32 1.442695, %v1166_v62 }
 0x491   :  { %v21463_v1 = vpop.eup %20482  ;;  %v1303_v2 = vpop.permute.xlu0 %1302  ;;  %v1189_v3 = vsel %vm1134_vm5, %v21461_v63, 0.0 }
 0x492   :  { %v21467_v4 = vpop.eup %20484  ;;  %20494 = vpow2.f32 %v1181_v0  ;;  %1190 = vadd.xlane.f32.xlu1 %v1189_v3  ;;  %v1186_v5 = vsel %vm1134_vm5, %v21463_v1, 0.0  ;;  %19381 = vmatpush3.msk.msra.mxu0 %vm1229_vm6, %v1303_v2  ;;  %v1380_v17 = vpop.permute.xlu1 %1379 }
 0x493   :  { %1187 = vadd.xlane.f32.xlu0 %v1186_v5  ;;  %19390 = vmatprep.subr.mxu0 %v21046_v28  ;;  %v1183_v7 = vsel %vm1134_vm5, %v21467_v4, 0.0 }
 0x494   :  { %v21473_v6 = vpop.eup %20486 }
 0x495   :  { %v21477_v8 = vpop.eup %20488  ;;  %v1192_v9 = vsel %vm1134_vm5, %v21473_v6, 0.0  ;;  %v1534_v22 = vpop.permute.xlu0 %1533 }
 0x496   :  { %1184 = vadd.xlane.f32.xlu1 %v1183_v7  ;;  %v1195_v11 = vsel %vm1134_vm5, %v21477_v8, 0.0  ;;  %v1457_v19 = vpop.permute.xlu1 %1456 }
 0x497   :  { %1193 = vadd.xlane.f32.xlu0 %v1192_v9 }
 0x498   :  { %v21481_v10 = vpop.eup %20490 }
 0x499   :  { %v21485_v12 = vpop.eup %20492  ;;  %v1198_v13 = vsel %vm1134_vm5, %v21481_v10, 0.0 }
 0x49a   :  { %1196 = vadd.xlane.f32.xlu1 %v1195_v11  ;;  %v1201_v15 = vsel %vm1134_vm5, %v21485_v12, 0.0  ;;  %v1611_v20 = vpop.permute.xlu1 %1610 }
 0x49b   :  { %1199 = vadd.xlane.f32.xlu0 %v1198_v13 }
 0x49c   :  { %v21489_v14 = vpop.eup %20494 }
 0x49d   :  { %v1204_v16 = vsel %vm1134_vm5, %v21489_v14, 0.0 }
 0x49e   :  { %1202 = vadd.xlane.f32.xlu1 %v1201_v15 }
 0x49f   :  { %1205 = vadd.xlane.f32.xlu0 %v1204_v16 }
 0x4af   :  { %1764 = vrot.lane.b32.xlu1 %v21359_v41, %s21042_s0 }
 0x4b3   :  { %1956 = vrot.lane.b32.xlu1 %v21374_v45, %s21049_s9 }
 0x4b5   :  { %1687 = vrot.lane.b32.xlu0 %v21347_v39, %s21042_s0 }
 0x4b7   :  { %2034 = vrot.lane.b32.xlu1 %v21388_v48, %s21049_s9 }
 0x4b9   :  { %1958 = vrot.lane.b32.xlu0 %v21329_v33, %s21050_s13 }
 0x4bb   :  { %2192 = vrot.lane.b32.xlu1 %v21337_v35, %s21050_s13 }
 0x4bd   :  { %2036 = vrot.lane.b32.xlu0 %v21343_v38, %s21050_s13 }
 0x4bf   :  { %2190 = vrot.lane.b32.xlu1 %v21401_v52, %s21049_s9 }
 0x4c1   :  { %2114 = vrot.lane.b32.xlu0 %v21327_v31, %s21050_s13 }
 0x4c3   :  { %2348 = vrot.lane.b32.xlu1 %v21353_v40, %s21050_s13 }
 0x4c5   :  { %2112 = vrot.lane.b32.xlu0 %v21370_v44, %s21049_s9 }
 0x4c7   :  { %2346 = vrot.lane.b32.xlu1 %v21415_v54, %s21049_s9 }
 0x4c9   :  { %2270 = vrot.lane.b32.xlu0 %v21339_v37, %s21050_s13 }
 0x4cb   :  { %2504 = vrot.lane.b32.xlu1 %v21359_v41, %s21050_s13 }
 0x4cd   :  { %2268 = vrot.lane.b32.xlu0 %v21397_v51, %s21049_s9 }
 0x4cf   :  { %2502 = vrot.lane.b32.xlu1 %v21430_v57, %s21049_s9 }
 0x4d1   :  { %2426 = vrot.lane.b32.xlu0 %v21347_v39, %s21050_s13 }
 0x4d5   :  { %2424 = vrot.lane.b32.xlu0 %v21418_v55, %s21049_s9 }
 0x51f   :  { %v1191_v23 = vpop.xlane.xlu1 %1190 }
 0x520   :  { %v1188_v24 = vpop.xlane.xlu0 %1187 }
 0x521   :  { %20496 = vrcp.f32 %v1188_v24 }
 0x523   :  { %v1185_v25 = vpop.xlane.xlu1 %1184 }
 0x524   :  { %20498 = vrcp.f32 %v1185_v25  ;;  %v1194_v29 = vpop.xlane.xlu0 %1193 }
 0x525   :  { %20500 = vrcp.f32 %v1194_v29 }
 0x526   :  { %20502 = vrcp.f32 %v1191_v23 }
 0x527   :  { %v1197_v30 = vpop.xlane.xlu1 %1196 }
 0x528   :  { %v1200_v32 = vpop.xlane.xlu0 %1199 }
 0x529   :  { %20504 = vrcp.f32 %v1200_v32 }
 0x52a   :  { %20506 = vrcp.f32 %v1197_v30 }
 0x52b   :  { %v20497_v34 = vpop.eup %20496  ;;  %v1203_v36 = vpop.xlane.xlu1 %1202 }
 0x52c   :  { %v1206_v42 = vpop.xlane.xlu0 %1205  ;;  %v1216_v43 = vmul.f32 %v20497_v34, %v21463_v1 }
 0x52d   :  { %20508 = vrcp.f32 %v1206_v42 }
 0x52e   :  { %v20499_v46 = vpop.eup %20498  ;;  %20510 = vrcp.f32 %v1203_v36  ;;  %19383 = vmatmul.mubr.msk.f32.vlgmr.msra.gmra.mrb[14].mxu0 %vm1225_vm7, %v1216_v43 }
 0x52f   :  { %v20501_v47 = vpop.eup %20500  ;;  %19391 = vmatpush3.msk.msra.mxu0 %vm1229_vm6, %v1457_v19  ;;  %v1765_v49 = vpop.permute.xlu1 %1764  ;;  %19392 = vmatprep.mubr.msk.f32.mxu0 %vm21047_vm3, %v21046_v28  ;;  %v1215_v50 = vmul.f32 %v20499_v46, %v21467_v4 }
 0x530   :  { %v20503_v53 = vpop.eup %20502  ;;  %19400 = vmatprep.subr.mxu0 %v21046_v28  ;;  %v1218_v56 = vmul.f32 %v20501_v47, %v21473_v6  ;;  %v1688_v0 = vpop.permute.xlu0 %1687 }
 0x531   :  { %19378 = vmatmul.mubr.msk.f32.vlgmr.msra.gmra.mrb[10].mxu1 %vm1225_vm7, %v1215_v50  ;;  %v1217_v60 = vmul.f32 %v20503_v53, %v21461_v63 }
 0x532   :  { %19386 = vmatpush3.msk.msra.mxu1 %vm1229_vm6, %v1380_v17  ;;  %19393 = vmatmul.mubr.msk.f32.vlgmr.msra.gmra.mrb[16].mxu0 %vm1225_vm7, %v1218_v56 }
 0x533   :  { %v20505_v58 = vpop.eup %20504  ;;  %19401 = vmatpush3.msk.msra.mxu0 %vm1229_vm6, %v1611_v20  ;;  %v1957_v59 = vpop.permute.xlu1 %1956  ;;  %19387 = vmatprep.mubr.msk.f32.mxu1 %vm21047_vm3, %v21046_v28 }
 0x534   :  { %v20507_v61 = vpop.eup %20506  ;;  %19395 = vmatprep.subr.mxu1 %v21046_v28  ;;  %19402 = vmatprep.mubr.msk.f32.mxu0 %vm21047_vm3, %v21046_v28  ;;  %v1220_v62 = vmul.f32 %v20505_v58, %v21481_v10  ;;  %v1959_v5 = vpop.permute.xlu0 %1958 }
 0x535   :  { %19410 = vmatprep.subr.mxu0 %v21046_v28  ;;  %19388 = vmatmul.mubr.msk.f32.vlgmr.msra.gmra.mrb[12].mxu1 %vm1225_vm7, %v1217_v60  ;;  %v1219_v2 = vmul.f32 %v20507_v61, %v21477_v8 }
 0x536   :  { %19396 = vmatpush3.msk.msra.mxu1 %vm1229_vm6, %v1534_v22  ;;  %19403 = vmatmul.mubr.msk.f32.vlgmr.msra.gmra.mrb[18].mxu0 %vm1225_vm7, %v1220_v62 }
 0x537   :  { %v20509_v1 = vpop.eup %20508  ;;  %19411 = vmatpush3.msk.msra.mxu0 %vm1229_vm6, %v1765_v49  ;;  %v2035_v63 = vpop.permute.xlu1 %2034  ;;  %19397 = vmatprep.mubr.msk.f32.mxu1 %vm21047_vm3, %v21046_v28 }
 0x538   :  { %v20511_v3 = vpop.eup %20510  ;;  %19405 = vmatprep.subr.mxu1 %v21046_v28  ;;  %19412 = vmatprep.mubr.msk.f32.mxu0 %vm21047_vm3, %v21046_v28  ;;  %v1222_v4 = vmul.f32 %v20509_v1, %v21489_v14  ;;  %v2037_v9 = vpop.permute.xlu0 %2036  ;;  %v504_v14 = vld [vmem:[%s21097_s29] sm:$0xff] }
 0x539   :  { %19398 = vmatmul.mubr.msk.f32.vlgmr.msra.gmra.mrb[14].mxu1 %vm1225_vm7, %v1219_v2  ;;  %19423 = vmatprep.subr.mxu0 %v21046_v28  ;;  %v1221_v7 = vmul.f32 %v20511_v3, %v21485_v12 }
 0x53a   :  { %19406 = vmatpush3.msk.msra.mxu1 %vm1229_vm6, %v1688_v0  ;;  %19413 = vmatmul.mubr.msk.f32.vlgmr.msra.gmra.mrb[20].mxu0 %vm1225_vm7, %v1222_v4 }
 0x53b   :  { %v2193_v6 = vpop.permute.xlu1 %2192  ;;  %19407 = vmatprep.mubr.msk.f32.mxu1 %vm21047_vm3, %v21046_v28  ;;  %19425 = vmatprep.mubr.msk.f32.mxu0 %vm21047_vm3, %v21046_v28 }
 0x53c   :  { %19415 = vmatprep.subr.mxu1 %v504_v14  ;;  %v2115_v15 = vpop.permute.xlu0 %2114 }
 0x53d   :  { %19408 = vmatmul.mubr.msk.f32.vlgmr.msra.gmra.mrb[16].mxu1 %vm1225_vm7, %v1221_v7 }
 0x53e   :  { %19424 = vmatpush3.xpose.msk.msra.mxu0 %vm519_vm4, %v1959_v5  ;;  %19416 = vmatpush3.msra.mxu1 %v504_v14 }
 0x53f   :  { %v2191_v8 = vpop.permute.xlu1 %2190  ;;  %19428 = vmatprep.subr.mxu0 %v21046_v28  ;;  %19433 = vmatprep.subr.mxu1 %v21046_v28 }
 0x540   :  { %v2113_v24 = vpop.permute.xlu0 %2112 }
 0x541   :  { %19426 = vmatmul.mubr.msk.f32.vlgmr.msra.gmra.mrb[22].mxu0 %vm519_vm4, %v1957_v59 }
 0x542   :  { %19429 = vmatpush3.xpose.msk.msra.mxu0 %vm519_vm4, %v2037_v9  ;;  %19430 = vmatprep.mubr.msk.f32.mxu0 %vm21047_vm3, %v21046_v28 }
 0x543   :  { %v2349_v10 = vpop.permute.xlu1 %2348  ;;  %19438 = vmatprep.subr.mxu0 %v21046_v28 }
 0x544   :  { %v2271_v42 = vpop.permute.xlu0 %2270 }
 0x545   :  { %19431 = vmatmul.mubr.msk.f32.vlgmr.msra.gmra.mrb[24].mxu0 %vm519_vm4, %v2035_v63 }
 0x546   :  { %19439 = vmatpush3.xpose.msk.msra.mxu0 %vm519_vm4, %v2193_v6  ;;  %19440 = vmatprep.mubr.msk.f32.mxu0 %vm21047_vm3, %v21046_v28 }
 0x547   :  { %v2347_v11 = vpop.permute.xlu1 %2346  ;;  %19448 = vmatprep.subr.mxu0 %v21046_v28 }
 0x548   :  { %v2269_v59 = vpop.permute.xlu0 %2268 }
 0x549   :  { %19441 = vmatmul.mubr.msk.f32.vlgmr.msra.gmra.mrb[26].mxu0 %vm519_vm4, %v2191_v8 }
 0x54a   :  { %19449 = vmatpush3.xpose.msk.msra.mxu0 %vm519_vm4, %v2349_v10  ;;  %19450 = vmatprep.mubr.msk.f32.mxu0 %vm21047_vm3, %v21046_v28 }
 0x54b   :  { %v2505_v12 = vpop.permute.xlu1 %2504  ;;  %19458 = vmatprep.subr.mxu0 %v21046_v28 }
 0x54c   :  { %v2427_v0 = vpop.permute.xlu0 %2426 }
 0x54d   :  { %19451 = vmatmul.mubr.msk.f32.vlgmr.msra.gmra.mrb[28].mxu0 %vm519_vm4, %v2347_v11 }
 0x54e   :  { %19459 = vmatpush3.xpose.msk.msra.mxu0 %vm519_vm4, %v2505_v12  ;;  %19460 = vmatprep.mubr.msk.f32.mxu0 %vm21047_vm3, %v21046_v28 }
 0x54f   :  { %v2503_v13 = vpop.permute.xlu1 %2502  ;;  %19468 = vmatprep.subr.mxu0 %v21046_v28 }
 0x550   :  { %v2425_v6 = vpop.permute.xlu0 %2424 }
 0x551   :  { %19461 = vmatmul.mubr.msk.f32.vlgmr.msra.gmra.mrb[30].mxu0 %vm519_vm4, %v2503_v13 }
 0x552   :  { %19470 = vmatprep.mubr.msk.f32.mxu0 %vm21047_vm3, %v21046_v28 }
 0x601   :  { %v1375_v16 = vpop.f32.mrb[14].mxu0 }
 0x602   :  { %v19384_v17 = vpop.f32.mrb[15].mxu0 }
 0x604   :  { %v1298_v19 = vpop.f32.mrb[10].mxu1 }
 0x605   :  { %v1849_v20 = vcombine.low %v1298_v19, %v1375_v16  ;;  %v1529_v22 = vpop.f32.mrb[16].mxu0  ;;  %v19379_v23 = vpop.f32.mrb[11].mxu1 }
 0x606   :  { %v19394_v25 = vpop.f32.mrb[17].mxu0 }
 0x607   :  { %19417 = vmatprep.mubr.msk.f32.mxu1 %vm519_vm4, %v1849_v20 }
 0x608   :  { %v1452_v29 = vpop.f32.mrb[12].mxu1 }
 0x609   :  { %v1850_v30 = vcombine.low %v1452_v29, %v1529_v22  ;;  %v1683_v32 = vpop.f32.mrb[18].mxu0  ;;  %v19389_v34 = vpop.f32.mrb[13].mxu1 }
 0x60a   :  { %v19404_v36 = vpop.f32.mrb[19].mxu0 }
 0x60b   :  { %19418 = vmatmul.mubr.msk.f32.vlgmr.msra.gmra.mrb[18].mxu1 %vm519_vm4, %v1850_v30 }
 0x60c   :  { %19434 = vmatpush3.xpose.msk.msra.mxu1 %vm519_vm4, %v2115_v15  ;;  %v1606_v43 = vpop.f32.mrb[14].mxu1 }
 0x60d   :  { %v1851_v46 = vcombine.low %v1606_v43, %v1683_v32  ;;  %v1837_v47 = vpop.f32.mrb[20].mxu0  ;;  %v19399_v49 = vpop.f32.mrb[15].mxu1  ;;  %19443 = vmatprep.subr.mxu1 %v21046_v28 }
 0x60e   :  { %v19414_v50 = vpop.f32.mrb[21].mxu0 }
 0x60f   :  { %19420 = vmatprep.mubr.msk.f32.mxu1 %vm519_vm4, %v1851_v46 }
 0x610   :  { %v1760_v53 = vpop.f32.mrb[16].mxu1 }
 0x611   :  { %v1852_v56 = vcombine.low %v1760_v53, %v1837_v47  ;;  %v19409_v58 = vpop.f32.mrb[17].mxu1 }
 0x613   :  { %19421 = vmatmul.mubr.msk.f32.gmra.mrb[20].mxu1 %vm519_vm4, %v1852_v56 }
 0x614   :  { %v2030_v60 = vpop.f32.mrb[22].mxu0  ;;  %19435 = vmatprep.mubr.msk.f32.mxu1 %vm21047_vm3, %v21046_v28 }
 0x615   :  { %v19427_v61 = vpop.f32.mrb[23].mxu0  ;;  %v2580_v62 = vsel %vm1134_vm5, %v2030_v60, -inf }
 0x616   :  { %2581 = vmax.xlane.f32.xlu0 %v2580_v62 }
 0x617   :  { %19436 = vmatmul.mubr.msk.f32.vlgmr.msra.gmra.mrb[22].mxu1 %vm519_vm4, %v2113_v24 }
 0x618   :  { %v2108_v1 = vpop.f32.mrb[24].mxu0  ;;  %19444 = vmatpush3.xpose.msk.msra.mxu1 %vm519_vm4, %v2271_v42  ;;  %19445 = vmatprep.mubr.msk.f32.mxu1 %vm21047_vm3, %v21046_v28 }
 0x619   :  { %v19432_v63 = vpop.f32.mrb[25].mxu0  ;;  %v2583_v2 = vsel %vm1134_vm5, %v2108_v1, -inf  ;;  %19453 = vmatprep.subr.mxu1 %v21046_v28 }
 0x61a   :  { %2584 = vmax.xlane.f32.xlu1 %v2583_v2 }
 0x61b   :  { %19446 = vmatmul.mubr.msk.f32.vlgmr.msra.gmra.mrb[24].mxu1 %vm519_vm4, %v2269_v59 }
 0x61c   :  { %v2264_v3 = vpop.f32.mrb[26].mxu0  ;;  %19454 = vmatpush3.xpose.msk.msra.mxu1 %vm519_vm4, %v2427_v0  ;;  %19455 = vmatprep.mubr.msk.f32.mxu1 %vm21047_vm3, %v21046_v28 }
 0x61d   :  { %v19442_v4 = vpop.f32.mrb[27].mxu0  ;;  %v2589_v5 = vsel %vm1134_vm5, %v2264_v3, -inf  ;;  %19463 = vmatprep.subr.mxu1 %v21046_v28 }
 0x61e   :  { %2590 = vmax.xlane.f32.xlu0 %v2589_v5 }
 0x61f   :  { %19456 = vmatmul.mubr.msk.f32.vlgmr.msra.gmra.mrb[26].mxu1 %vm519_vm4, %v2425_v6 }
 0x620   :  { %v2420_v7 = vpop.f32.mrb[28].mxu0  ;;  %19465 = vmatprep.mubr.msk.f32.mxu1 %vm21047_vm3, %v21046_v28 }
 0x621   :  { %v19452_v8 = vpop.f32.mrb[29].mxu0  ;;  %v2595_v32 = vsel %vm1134_vm5, %v2420_v7, -inf }
 0x624   :  { %v2576_v9 = vpop.f32.mrb[30].mxu0 }
 0x625   :  { %v19462_v10 = vpop.f32.mrb[31].mxu0  ;;  %v2601_v46 = vsel %vm1134_vm5, %v2576_v9, -inf }
 0x6a3   :  { %v2582_v11 = vpop.xlane.xlu0 %2581 }
 0x6a4   :  { %v2604_v13 = vsub.f32 %v2030_v60, %v2582_v11 }
 0x6a6   :  { %v2612_v16 = vmul.f32 1.442695, %v2604_v13 }
 0x6a7   :  { %v2585_v12 = vpop.xlane.xlu1 %2584 }
 0x6a8   :  { %v2605_v14 = vsub.f32 %v2108_v1, %v2585_v12  ;;  %20512 = vpow2.f32 %v2612_v16 }
 0x6aa   :  { %v2614_v17 = vmul.f32 1.442695, %v2605_v14 }
 0x6ab   :  { %v2591_v15 = vpop.xlane.xlu0 %2590 }
 0x6ac   :  { %v2607_v19 = vsub.f32 %v2264_v3, %v2591_v15  ;;  %20514 = vpow2.f32 %v2614_v17 }
 0x6ae   :  { %v2618_v20 = vmul.f32 1.442695, %v2607_v19 }
 0x6b0   :  { %20516 = vpow2.f32 %v2618_v20 }
 0x6b2   :  { %v20513_v36 = vpop.eup %20512 }
 0x6b3   :  { %v2628_v49 = vsel %vm1134_vm5, %v20513_v36, 0.0 }
 0x6b6   :  { %v21628_v47 = vpop.eup %20514 }
 0x6b7   :  { %v2631_v50 = vsel %vm1134_vm5, %v21628_v47, 0.0 }
 0x6ba   :  { %v21633_v53 = vpop.eup %20516 }
 0x6bb   :  { %v2637_v56 = vsel %vm1134_vm5, %v21633_v53, 0.0 }
 0x6ea   :  { %v2186_v22 = vpop.f32.mrb[22].mxu1 }
 0x6eb   :  { %v19437_v23 = vpop.f32.mrb[23].mxu1  ;;  %v2586_v24 = vsel %vm1134_vm5, %v2186_v22, -inf }
 0x6ec   :  { %2587 = vmax.xlane.f32.xlu0 %v2586_v24 }
 0x6ee   :  { %v2342_v25 = vpop.f32.mrb[24].mxu1 }
 0x6ef   :  { %v19447_v29 = vpop.f32.mrb[25].mxu1  ;;  %v2592_v30 = vsel %vm1134_vm5, %v2342_v25, -inf }
 0x6f0   :  { %2593 = vmax.xlane.f32.xlu1 %v2592_v30  ;;  %2596 = vmax.xlane.f32.xlu0 %v2595_v32 }
 0x6f2   :  { %v2498_v34 = vpop.f32.mrb[26].mxu1 }
 0x6f3   :  { %v19457_v42 = vpop.f32.mrb[27].mxu1  ;;  %v2598_v43 = vsel %vm1134_vm5, %v2498_v34, -inf }
 0x6f4   :  { %2599 = vmax.xlane.f32.xlu1 %v2598_v43  ;;  %2602 = vmax.xlane.f32.xlu0 %v2601_v46 }
 0x6f8   :  { %2629 = vadd.xlane.f32.xlu1 %v2628_v49  ;;  %2632 = vadd.xlane.f32.xlu0 %v2631_v50 }
 0x6fc   :  { %2638 = vadd.xlane.f32.xlu0 %v2637_v56 }
 0x709   :  { %2668 = vrot.lane.b32.xlu1 %v21329_v33, %s21051_s21 }
 0x70d   :  { %2822 = vrot.lane.b32.xlu1 %v21327_v31, %s21051_s21 }
 0x711   :  { %2899 = vrot.lane.b32.xlu1 %v21337_v35, %s21051_s21 }
 0x715   :  { %3053 = vrot.lane.b32.xlu1 %v21353_v40, %s21051_s21 }
 0x779   :  { %v2588_v58 = vpop.xlane.xlu0 %2587 }
 0x77a   :  { %v2606_v59 = vsub.f32 %v2186_v22, %v2588_v58 }
 0x77c   :  { %v2616_v60 = vmul.f32 1.442695, %v2606_v59 }
 0x77d   :  { %v2594_v61 = vpop.xlane.xlu1 %2593  ;;  %v2597_v62 = vpop.xlane.xlu0 %2596 }
 0x77e   :  { %20518 = vpow2.f32 %v2616_v60  ;;  %v2608_v0 = vsub.f32 %v2342_v25, %v2594_v61  ;;  %v2609_v1 = vsub.f32 %v2420_v7, %v2597_v62 }
 0x780   :  { %v2620_v63 = vmul.f32 1.442695, %v2608_v0  ;;  %v2622_v2 = vmul.f32 1.442695, %v2609_v1 }
 0x781   :  { %v2600_v3 = vpop.xlane.xlu1 %2599  ;;  %v2603_v4 = vpop.xlane.xlu0 %2602 }
 0x782   :  { %20520 = vpow2.f32 %v2620_v63  ;;  %v2610_v5 = vsub.f32 %v2498_v34, %v2600_v3  ;;  %v2611_v6 = vsub.f32 %v2576_v9, %v2603_v4 }
 0x783   :  { %20522 = vpow2.f32 %v2622_v2 }
 0x784   :  { %v2624_v8 = vmul.f32 1.442695, %v2610_v5  ;;  %v2626_v10 = vmul.f32 1.442695, %v2611_v6 }
 0x785   :  { %v2630_v11 = vpop.xlane.xlu1 %2629  ;;  %v2633_v30 = vpop.xlane.xlu0 %2632 }
 0x786   :  { %20524 = vpow2.f32 %v2624_v8 }
 0x787   :  { %20526 = vpow2.f32 %v2626_v10 }
 0x788   :  { %v21645_v12 = vpop.eup %20518  ;;  %20528 = vrcp.f32 %v2630_v11  ;;  %v505_v11 = vld [vmem:[%s21097_s29 + $0x8] sm:$0xff] }
 0x789   :  { %v2669_v13 = vpop.permute.xlu1 %2668  ;;  %v2634_v7 = vsel %vm1134_vm5, %v21645_v12, 0.0  ;;  %20530 = vrcp.f32 %v2633_v30 }
 0x78a   :  { %19464 = vmatpush3.msk.msra.mxu1 %vm1229_vm6, %v2669_v13  ;;  %2635 = vadd.xlane.f32.xlu1 %v2634_v7 }
 0x78b   :  { %19473 = vmatprep.subr.mxu1 %v21046_v28 }
 0x78c   :  { %v21651_v14 = vpop.eup %20520 }
 0x78d   :  { %v21653_v9 = vpop.eup %20522  ;;  %v2640_v15 = vsel %vm1134_vm5, %v21651_v14, 0.0  ;;  %v2823_v25 = vpop.permute.xlu1 %2822 }
 0x78e   :  { %2641 = vadd.xlane.f32.xlu1 %v2640_v15  ;;  %v2643_v16 = vsel %vm1134_vm5, %v21653_v9, 0.0 }
 0x78f   :  { %2644 = vadd.xlane.f32.xlu0 %v2643_v16 }
 0x790   :  { %v21659_v17 = vpop.eup %20524 }
 0x791   :  { %v21661_v19 = vpop.eup %20526  ;;  %v2646_v20 = vsel %vm1134_vm5, %v21659_v17, 0.0  ;;  %v2900_v29 = vpop.permute.xlu1 %2899 }
 0x792   :  { %v20529_v22 = vpop.eup %20528  ;;  %2647 = vadd.xlane.f32.xlu1 %v2646_v20  ;;  %v2649_v23 = vsel %vm1134_vm5, %v21661_v19, 0.0 }
 0x793   :  { %2650 = vadd.xlane.f32.xlu0 %v2649_v23  ;;  %v2660_v24 = vmul.f32 %v20529_v22, %v20513_v36  ;;  %v2639_v36 = vpop.xlane.xlu0 %2638  ;;  %v20531_v50 = vpop.eup %20530 }
 0x794   :  { %v2661_v61 = vmul.f32 %v20531_v50, %v21628_v47 }
 0x795   :  { %19466 = vmatmul.mubr.msk.f32.vlgmr.msra.gmra.mrb[28].mxu1 %vm1225_vm7, %v2660_v24  ;;  %v3054_v32 = vpop.permute.xlu1 %3053 }
 0x796   :  { %19474 = vmatpush3.msk.msra.mxu1 %vm1229_vm6, %v2823_v25  ;;  %19475 = vmatprep.mubr.msk.f32.mxu1 %vm21047_vm3, %v21046_v28 }
 0x797   :  { %19483 = vmatprep.subr.mxu1 %v21046_v28 }
 0x7a3   :  { %3207 = vrot.lane.b32.xlu1 %v21359_v41, %s21051_s21 }
 0x7a7   :  { %3393 = vrot.lane.b32.xlu1 %v21374_v45, %s21052_s8 }
 0x7a9   :  { %2745 = vrot.lane.b32.xlu0 %v21343_v38, %s21051_s21 }
 0x7ab   :  { %3471 = vrot.lane.b32.xlu1 %v21388_v48, %s21052_s8 }
 0x7ad   :  { %2976 = vrot.lane.b32.xlu0 %v21339_v37, %s21051_s21 }
 0x7af   :  { %3629 = vrot.lane.b32.xlu1 %v21337_v35, %s21053_s14 }
 0x7b1   :  { %3130 = vrot.lane.b32.xlu0 %v21347_v39, %s21051_s21 }
 0x7b3   :  { %3627 = vrot.lane.b32.xlu1 %v21401_v52, %s21052_s8 }
 0x7b5   :  { %3395 = vrot.lane.b32.xlu0 %v21329_v33, %s21053_s14 }
 0x7b7   :  { %3785 = vrot.lane.b32.xlu1 %v21353_v40, %s21053_s14 }
 0x7b9   :  { %3473 = vrot.lane.b32.xlu0 %v21343_v38, %s21053_s14 }
 0x7bb   :  { %3783 = vrot.lane.b32.xlu1 %v21415_v54, %s21052_s8 }
 0x7bd   :  { %3551 = vrot.lane.b32.xlu0 %v21327_v31, %s21053_s14 }
 0x7bf   :  { %3941 = vrot.lane.b32.xlu1 %v21359_v41, %s21053_s14 }
 0x7c1   :  { %3549 = vrot.lane.b32.xlu0 %v21370_v44, %s21052_s8 }
 0x7c3   :  { %3939 = vrot.lane.b32.xlu1 %v21430_v57, %s21052_s8 }
 0x7c5   :  { %3707 = vrot.lane.b32.xlu0 %v21339_v37, %s21053_s14 }
 0x7c9   :  { %3705 = vrot.lane.b32.xlu0 %v21397_v51, %s21052_s8 }
 0x7cd   :  { %3863 = vrot.lane.b32.xlu0 %v21347_v39, %s21053_s14 }
 0x7d1   :  { %3861 = vrot.lane.b32.xlu0 %v21418_v55, %s21052_s8 }
 0x817   :  { %v2636_v34 = vpop.xlane.xlu1 %2635 }
 0x818   :  { %20532 = vrcp.f32 %v2636_v34 }
 0x819   :  { %20534 = vrcp.f32 %v2639_v36 }
 0x81b   :  { %v2642_v42 = vpop.xlane.xlu1 %2641 }
 0x81c   :  { %20536 = vrcp.f32 %v2642_v42  ;;  %v2645_v43 = vpop.xlane.xlu0 %2644 }
 0x81d   :  { %20538 = vrcp.f32 %v2645_v43 }
 0x81f   :  { %v2648_v46 = vpop.xlane.xlu1 %2647 }
 0x820   :  { %20540 = vrcp.f32 %v2648_v46  ;;  %v2651_v49 = vpop.xlane.xlu0 %2650 }
 0x821   :  { %20542 = vrcp.f32 %v2651_v49 }
 0x822   :  { %v20533_v56 = vpop.eup %20532 }
 0x823   :  { %v3208_v58 = vpop.permute.xlu1 %3207  ;;  %v2662_v59 = vmul.f32 %v20533_v56, %v21645_v12  ;;  %v20535_v62 = vpop.eup %20534 }
 0x824   :  { %v2746_v60 = vpop.permute.xlu0 %2745  ;;  %v2663_v47 = vmul.f32 %v20535_v62, %v21633_v53 }
 0x825   :  { %19469 = vmatpush3.msk.msra.mxu0 %vm1229_vm6, %v2746_v60  ;;  %19476 = vmatmul.mubr.msk.f32.vlgmr.msra.gmra.mrb[30].mxu1 %vm1225_vm7, %v2662_v59 }
 0x826   :  { %v20537_v0 = vpop.eup %20536  ;;  %19471 = vmatmul.mubr.msk.f32.vlgmr.msra.gmra.mrb[32].mxu0 %vm1225_vm7, %v2661_v61  ;;  %19478 = vmatprep.subr.mxu0 %v21046_v28 }
 0x827   :  { %19479 = vmatpush3.msk.msra.mxu0 %vm1229_vm6, %v2900_v29  ;;  %v3394_v1 = vpop.permute.xlu1 %3393  ;;  %19480 = vmatprep.mubr.msk.f32.mxu0 %vm21047_vm3, %v21046_v28  ;;  %v2664_v63 = vmul.f32 %v20537_v0, %v21651_v14  ;;  %v20539_v3 = vpop.eup %20538 }
 0x828   :  { %v2977_v2 = vpop.permute.xlu0 %2976  ;;  %19485 = vmatprep.mubr.msk.f32.mxu1 %vm21047_vm3, %v21046_v28  ;;  %19488 = vmatprep.subr.mxu0 %v21046_v28  ;;  %v2665_v53 = vmul.f32 %v20539_v3, %v21653_v9 }
 0x829   :  { %19484 = vmatpush3.msk.msra.mxu1 %vm1229_vm6, %v2977_v2 }
 0x82a   :  { %v20541_v4 = vpop.eup %20540  ;;  %19481 = vmatmul.mubr.msk.f32.vlgmr.msra.gmra.mrb[34].mxu0 %vm1225_vm7, %v2663_v47  ;;  %19486 = vmatmul.mubr.msk.f32.vlgmr.msra.gmra.mrb[32].mxu1 %vm1225_vm7, %v2664_v63 }
 0x82b   :  { %19489 = vmatpush3.msk.msra.mxu0 %vm1229_vm6, %v3054_v32  ;;  %v3472_v5 = vpop.permute.xlu1 %3471  ;;  %19493 = vmatprep.subr.mxu1 %v21046_v28  ;;  %v2666_v6 = vmul.f32 %v20541_v4, %v21659_v17  ;;  %v20543_v10 = vpop.eup %20542 }
 0x82c   :  { %v3131_v8 = vpop.permute.xlu0 %3130  ;;  %19490 = vmatprep.mubr.msk.f32.mxu0 %vm21047_vm3, %v21046_v28  ;;  %19495 = vmatprep.mubr.msk.f32.mxu1 %vm21047_vm3, %v21046_v28  ;;  %v2667_v13 = vmul.f32 %v20543_v10, %v21661_v19 }
 0x82d   :  { %19494 = vmatpush3.msk.msra.mxu1 %vm1229_vm6, %v3131_v8  ;;  %19498 = vmatprep.subr.mxu0 %v21046_v28 }
 0x82e   :  { %19491 = vmatmul.mubr.msk.f32.vlgmr.msra.gmra.mrb[36].mxu0 %vm1225_vm7, %v2665_v53  ;;  %19496 = vmatmul.mubr.msk.f32.vlgmr.msra.gmra.mrb[34].mxu1 %vm1225_vm7, %v2666_v6 }
 0x82f   :  { %19499 = vmatpush3.msk.msra.mxu0 %vm1229_vm6, %v3208_v58  ;;  %v3630_v12 = vpop.permute.xlu1 %3629  ;;  %19500 = vmatprep.mubr.msk.f32.mxu0 %vm21047_vm3, %v21046_v28 }
 0x830   :  { %19511 = vmatprep.subr.mxu0 %v21046_v28  ;;  %19503 = vmatprep.subr.mxu1 %v505_v11  ;;  %v3396_v7 = vpop.permute.xlu0 %3395 }
 0x831   :  { %19504 = vmatpush3.msra.mxu1 %v505_v11 }
 0x832   :  { %19501 = vmatmul.mubr.msk.f32.vlgmr.msra.gmra.mrb[38].mxu0 %vm1225_vm7, %v2667_v13  ;;  %19521 = vmatprep.subr.mxu1 %v21046_v28 }
 0x833   :  { %v3628_v14 = vpop.permute.xlu1 %3627  ;;  %19513 = vmatprep.mubr.msk.f32.mxu0 %vm21047_vm3, %v21046_v28 }
 0x834   :  { %v3474_v15 = vpop.permute.xlu0 %3473 }
 0x836   :  { %19512 = vmatpush3.xpose.msk.msra.mxu0 %vm519_vm4, %v3396_v7 }
 0x837   :  { %v3786_v9 = vpop.permute.xlu1 %3785  ;;  %19516 = vmatprep.subr.mxu0 %v21046_v28 }
 0x838   :  { %v3552_v23 = vpop.permute.xlu0 %3551 }
 0x839   :  { %19514 = vmatmul.mubr.msk.f32.vlgmr.msra.gmra.mrb[40].mxu0 %vm519_vm4, %v3394_v1 }
 0x83a   :  { %19517 = vmatpush3.xpose.msk.msra.mxu0 %vm519_vm4, %v3474_v15  ;;  %19518 = vmatprep.mubr.msk.f32.mxu0 %vm21047_vm3, %v21046_v28 }
 0x83b   :  { %19526 = vmatprep.subr.mxu0 %v21046_v28  ;;  %v3784_v16 = vpop.permute.xlu1 %3783 }
 0x83c   :  { %v3550_v30 = vpop.permute.xlu0 %3549 }
 0x83d   :  { %19519 = vmatmul.mubr.msk.f32.vlgmr.msra.gmra.mrb[42].mxu0 %vm519_vm4, %v3472_v5 }
 0x83e   :  { %19527 = vmatpush3.xpose.msk.msra.mxu0 %vm519_vm4, %v3630_v12  ;;  %19528 = vmatprep.mubr.msk.f32.mxu0 %vm21047_vm3, %v21046_v28 }
 0x83f   :  { %19536 = vmatprep.subr.mxu0 %v21046_v28  ;;  %v3942_v17 = vpop.permute.xlu1 %3941 }
 0x840   :  { %v3708_v50 = vpop.permute.xlu0 %3707 }
 0x841   :  { %19529 = vmatmul.mubr.msk.f32.vlgmr.msra.gmra.mrb[44].mxu0 %vm519_vm4, %v3628_v14 }
 0x842   :  { %19537 = vmatpush3.xpose.msk.msra.mxu0 %vm519_vm4, %v3786_v9  ;;  %19538 = vmatprep.mubr.msk.f32.mxu0 %vm21047_vm3, %v21046_v28 }
 0x843   :  { %19546 = vmatprep.subr.mxu0 %v21046_v28  ;;  %v3940_v19 = vpop.permute.xlu1 %3939 }
 0x844   :  { %v3706_v63 = vpop.permute.xlu0 %3705 }
 0x845   :  { %19539 = vmatmul.mubr.msk.f32.vlgmr.msra.gmra.mrb[46].mxu0 %vm519_vm4, %v3784_v16 }
 0x846   :  { %19547 = vmatpush3.xpose.msk.msra.mxu0 %vm519_vm4, %v3942_v17  ;;  %19548 = vmatprep.mubr.msk.f32.mxu0 %vm21047_vm3, %v21046_v28 }
 0x847   :  { %19556 = vmatprep.subr.mxu0 %v21046_v28 }
 0x848   :  { %v3864_v47 = vpop.permute.xlu0 %3863 }
 0x849   :  { %19549 = vmatmul.mubr.msk.f32.vlgmr.msra.gmra.mrb[48].mxu0 %vm519_vm4, %v3940_v19 }
 0x84a   :  { %19558 = vmatprep.mubr.msk.f32.mxu0 %vm21047_vm3, %v21046_v28 }
 0x84c   :  { %v3862_v53 = vpop.permute.xlu0 %3861 }
 0x868   :  { %v2741_v20 = vpop.f32.mrb[28].mxu1 }
 0x869   :  { %v19467_v22 = vpop.f32.mrb[29].mxu1 }
 0x8f8   :  { %v2895_v24 = vpop.f32.mrb[30].mxu1 }
 0x8f9   :  { %v2818_v25 = vpop.f32.mrb[32].mxu0  ;;  %v19477_v29 = vpop.f32.mrb[31].mxu1 }
 0x8fa   :  { %v3292_v32 = vcombine.low %v2741_v20, %v2818_v25  ;;  %v19472_v34 = vpop.f32.mrb[33].mxu0 }
 0x8fc   :  { %19505 = vmatprep.mubr.msk.f32.mxu1 %vm519_vm4, %v3292_v32 }
 0x8fd   :  { %v2972_v36 = vpop.f32.mrb[34].mxu0  ;;  %v3049_v42 = vpop.f32.mrb[32].mxu1 }
 0x8fe   :  { %v3293_v43 = vcombine.low %v2895_v24, %v2972_v36  ;;  %v19482_v46 = vpop.f32.mrb[35].mxu0  ;;  %v19487_v49 = vpop.f32.mrb[33].mxu1 }
 0x900   :  { %19506 = vmatmul.mubr.msk.f32.vlgmr.msra.gmra.mrb[18].mxu1 %vm519_vm4, %v3293_v43 }
 0x901   :  { %19522 = vmatpush3.xpose.msk.msra.mxu1 %vm519_vm4, %v3552_v23  ;;  %v3126_v56 = vpop.f32.mrb[36].mxu0  ;;  %v3203_v58 = vpop.f32.mrb[34].mxu1 }
 0x902   :  { %v3294_v59 = vcombine.low %v3049_v42, %v3126_v56  ;;  %v19492_v60 = vpop.f32.mrb[37].mxu0  ;;  %v19497_v61 = vpop.f32.mrb[35].mxu1  ;;  %19531 = vmatprep.subr.mxu1 %v21046_v28 }
 0x904   :  { %19508 = vmatprep.mubr.msk.f32.mxu1 %vm519_vm4, %v3294_v59 }
 0x905   :  { %v3280_v62 = vpop.f32.mrb[38].mxu0 }
 0x906   :  { %v3295_v0 = vcombine.low %v3203_v58, %v3280_v62  ;;  %v19502_v1 = vpop.f32.mrb[39].mxu0 }
 0x908   :  { %19509 = vmatmul.mubr.msk.f32.gmra.mrb[20].mxu1 %vm519_vm4, %v3295_v0 }
 0x909   :  { %19523 = vmatprep.mubr.msk.f32.mxu1 %vm21047_vm3, %v21046_v28 }
 0x90c   :  { %v3467_v2 = vpop.f32.mrb[40].mxu0  ;;  %19524 = vmatmul.mubr.msk.f32.vlgmr.msra.gmra.mrb[36].mxu1 %vm519_vm4, %v3550_v30 }
 0x90d   :  { %v19515_v3 = vpop.f32.mrb[41].mxu0  ;;  %19532 = vmatpush3.xpose.msk.msra.mxu1 %vm519_vm4, %v3708_v50  ;;  %v4017_v4 = vsel %vm1134_vm5, %v3467_v2, -inf  ;;  %19533 = vmatprep.mubr.msk.f32.mxu1 %vm21047_vm3, %v21046_v28 }
 0x90e   :  { %4018 = vmax.xlane.f32.xlu0 %v4017_v4  ;;  %19541 = vmatprep.subr.mxu1 %v21046_v28 }
 0x910   :  { %v3545_v5 = vpop.f32.mrb[42].mxu0  ;;  %19534 = vmatmul.mubr.msk.f32.vlgmr.msra.gmra.mrb[38].mxu1 %vm519_vm4, %v3706_v63 }
 0x911   :  { %v19520_v6 = vpop.f32.mrb[43].mxu0  ;;  %19542 = vmatpush3.xpose.msk.msra.mxu1 %vm519_vm4, %v3864_v47  ;;  %v4020_v8 = vsel %vm1134_vm5, %v3545_v5, -inf  ;;  %19543 = vmatprep.mubr.msk.f32.mxu1 %vm21047_vm3, %v21046_v28 }
 0x912   :  { %4021 = vmax.xlane.f32.xlu1 %v4020_v8  ;;  %19551 = vmatprep.subr.mxu1 %v21046_v28 }
 0x914   :  { %v3701_v10 = vpop.f32.mrb[44].mxu0  ;;  %19544 = vmatmul.mubr.msk.f32.vlgmr.msra.gmra.mrb[40].mxu1 %vm519_vm4, %v3862_v53 }
 0x915   :  { %v19530_v11 = vpop.f32.mrb[45].mxu0  ;;  %v4026_v12 = vsel %vm1134_vm5, %v3701_v10, -inf  ;;  %19553 = vmatprep.mubr.msk.f32.mxu1 %vm21047_vm3, %v21046_v28 }
 0x916   :  { %4027 = vmax.xlane.f32.xlu0 %v4026_v12 }
 0x918   :  { %v3857_v13 = vpop.f32.mrb[46].mxu0 }
 0x919   :  { %v19540_v7 = vpop.f32.mrb[47].mxu0  ;;  %v4032_v43 = vsel %vm1134_vm5, %v3857_v13, -inf }
 0x91c   :  { %v4013_v14 = vpop.f32.mrb[48].mxu0 }
 0x91d   :  { %v19550_v9 = vpop.f32.mrb[49].mxu0  ;;  %v4038_v58 = vsel %vm1134_vm5, %v4013_v14, -inf }
 0x99b   :  { %v4019_v15 = vpop.xlane.xlu0 %4018 }
 0x99c   :  { %v4041_v17 = vsub.f32 %v3467_v2, %v4019_v15 }
 0x99e   :  { %v4049_v22 = vmul.f32 1.442695, %v4041_v17 }
 0x99f   :  { %v4022_v16 = vpop.xlane.xlu1 %4021 }
 0x9a0   :  { %v4042_v19 = vsub.f32 %v3545_v5, %v4022_v16  ;;  %20544 = vpow2.f32 %v4049_v22 }
 0x9a2   :  { %v4051_v23 = vmul.f32 1.442695, %v4042_v19 }
 0x9a3   :  { %v4028_v20 = vpop.xlane.xlu0 %4027 }
 0x9a4   :  { %v4044_v24 = vsub.f32 %v3701_v10, %v4028_v20  ;;  %20546 = vpow2.f32 %v4051_v23 }
 0x9a6   :  { %v4055_v25 = vmul.f32 1.442695, %v4044_v24 }
 0x9a8   :  { %20548 = vpow2.f32 %v4055_v25 }
 0x9aa   :  { %v20545_v49 = vpop.eup %20544 }
 0x9ab   :  { %v4065_v60 = vsel %vm1134_vm5, %v20545_v49, 0.0 }
 0x9ae   :  { %v21805_v59 = vpop.eup %20546 }
 0x9af   :  { %v4068_v61 = vsel %vm1134_vm5, %v21805_v59, 0.0 }
 0x9b2   :  { %v21810_v62 = vpop.eup %20548 }
 0x9b3   :  { %v4074_v0 = vsel %vm1134_vm5, %v21810_v62, 0.0 }
 0x9df   :  { %v3623_v29 = vpop.f32.mrb[36].mxu1 }
 0x9e0   :  { %v19525_v30 = vpop.f32.mrb[37].mxu1  ;;  %v4023_v32 = vsel %vm1134_vm5, %v3623_v29, -inf }
 0x9e1   :  { %4024 = vmax.xlane.f32.xlu0 %v4023_v32 }
 0x9e3   :  { %v3779_v34 = vpop.f32.mrb[38].mxu1 }
 0x9e4   :  { %v19535_v36 = vpop.f32.mrb[39].mxu1  ;;  %v4029_v42 = vsel %vm1134_vm5, %v3779_v34, -inf }
 0x9e5   :  { %4030 = vmax.xlane.f32.xlu1 %v4029_v42  ;;  %4033 = vmax.xlane.f32.xlu0 %v4032_v43 }
 0x9e7   :  { %v3935_v46 = vpop.f32.mrb[40].mxu1 }
 0x9e8   :  { %v19545_v50 = vpop.f32.mrb[41].mxu1  ;;  %v4035_v56 = vsel %vm1134_vm5, %v3935_v46, -inf }
 0x9e9   :  { %4036 = vmax.xlane.f32.xlu1 %v4035_v56  ;;  %4039 = vmax.xlane.f32.xlu0 %v4038_v58 }
 0x9ed   :  { %4066 = vadd.xlane.f32.xlu1 %v4065_v60  ;;  %4069 = vadd.xlane.f32.xlu0 %v4068_v61 }
 0x9f1   :  { %4075 = vadd.xlane.f32.xlu0 %v4074_v0 }
 0x9fe   :  { %4105 = vrot.lane.b32.xlu1 %v21329_v33, %s21054_s10 }
 0xa02   :  { %4259 = vrot.lane.b32.xlu1 %v21327_v31, %s21054_s10 }
 0xa06   :  { %4336 = vrot.lane.b32.xlu1 %v21337_v35, %s21054_s10 }
 0xa0a   :  { %4490 = vrot.lane.b32.xlu1 %v21353_v40, %s21054_s10 }
 0xa6e   :  { %v4025_v1 = vpop.xlane.xlu0 %4024 }
 0xa6f   :  { %v4043_v63 = vsub.f32 %v3623_v29, %v4025_v1 }
 0xa71   :  { %v4053_v2 = vmul.f32 1.442695, %v4043_v63 }
 0xa72   :  { %v4031_v47 = vpop.xlane.xlu1 %4030  ;;  %v4034_v3 = vpop.xlane.xlu0 %4033 }
 0xa73   :  { %20550 = vpow2.f32 %v4053_v2  ;;  %v4045_v4 = vsub.f32 %v3779_v34, %v4031_v47  ;;  %v4046_v5 = vsub.f32 %v3857_v13, %v4034_v3 }
 0xa75   :  { %v4057_v6 = vmul.f32 1.442695, %v4045_v4  ;;  %v4059_v8 = vmul.f32 1.442695, %v4046_v5 }
 0xa76   :  { %v4037_v53 = vpop.xlane.xlu1 %4036  ;;  %v4040_v10 = vpop.xlane.xlu0 %4039 }
 0xa77   :  { %20552 = vpow2.f32 %v4057_v6  ;;  %v4047_v11 = vsub.f32 %v3935_v46, %v4037_v53  ;;  %v4048_v12 = vsub.f32 %v4013_v14, %v4040_v10  ;;  %v506_v6 = vld [vmem:[%s21097_s29 + $0x10] sm:$0xff] }
 0xa78   :  { %20554 = vpow2.f32 %v4059_v8 }
 0xa79   :  { %v4061_v7 = vmul.f32 1.442695, %v4047_v11  ;;  %v4063_v9 = vmul.f32 1.442695, %v4048_v12 }
 0xa7a   :  { %v4067_v15 = vpop.xlane.xlu1 %4066 }
 0xa7b   :  { %20556 = vpow2.f32 %v4061_v7 }
 0xa7c   :  { %20558 = vpow2.f32 %v4063_v9 }
 0xa7d   :  { %v21822_v16 = vpop.eup %20550  ;;  %20560 = vrcp.f32 %v4067_v15 }
 0xa7e   :  { %v4106_v17 = vpop.permute.xlu1 %4105  ;;  %v4071_v13 = vsel %vm1134_vm5, %v21822_v16, 0.0 }
 0xa7f   :  { %19552 = vmatpush3.msk.msra.mxu1 %vm1229_vm6, %v4106_v17  ;;  %4072 = vadd.xlane.f32.xlu1 %v4071_v13 }
 0xa80   :  { %19561 = vmatprep.subr.mxu1 %v21046_v28 }
 0xa81   :  { %v21828_v19 = vpop.eup %20552 }
 0xa82   :  { %v21830_v14 = vpop.eup %20554  ;;  %v4077_v20 = vsel %vm1134_vm5, %v21828_v19, 0.0  ;;  %v4260_v34 = vpop.permute.xlu1 %4259 }
 0xa83   :  { %4078 = vadd.xlane.f32.xlu1 %v4077_v20  ;;  %v4080_v22 = vsel %vm1134_vm5, %v21830_v14, 0.0 }
 0xa84   :  { %4081 = vadd.xlane.f32.xlu0 %v4080_v22 }
 0xa85   :  { %v21836_v23 = vpop.eup %20556 }
 0xa86   :  { %v21838_v24 = vpop.eup %20558  ;;  %v4083_v25 = vsel %vm1134_vm5, %v21836_v23, 0.0 }
 0xa87   :  { %v20561_v29 = vpop.eup %20560  ;;  %4084 = vadd.xlane.f32.xlu1 %v4083_v25  ;;  %v4086_v30 = vsel %vm1134_vm5, %v21838_v24, 0.0 }
 0xa88   :  { %4087 = vadd.xlane.f32.xlu0 %v4086_v30  ;;  %v4097_v32 = vmul.f32 %v20561_v29, %v20545_v49 }
 0xa8a   :  { %19554 = vmatmul.mubr.msk.f32.vlgmr.msra.gmra.mrb[42].mxu1 %vm1225_vm7, %v4097_v32 }
 0xa8b   :  { %19562 = vmatpush3.msk.msra.mxu1 %vm1229_vm6, %v4260_v34  ;;  %19563 = vmatprep.mubr.msk.f32.mxu1 %vm21047_vm3, %v21046_v28 }
 0xa8c   :  { %19571 = vmatprep.subr.mxu1 %v21046_v28 }
 0xa98   :  { %4644 = vrot.lane.b32.xlu1 %v21359_v41, %s21054_s10 }
 0xa9c   :  { %4830 = vrot.lane.b32.xlu1 %v21374_v45, %s21055_s11  ;;  %v4337_v45 = vpop.permute.xlu1 %4336 }
 0xa9e   :  { %4182 = vrot.lane.b32.xlu0 %v21343_v38, %s21054_s10 }
 0xaa0   :  { %4908 = vrot.lane.b32.xlu1 %v21388_v48, %s21055_s11  ;;  %v4070_v48 = vpop.xlane.xlu0 %4069 }
 0xaa1   :  { %20562 = vrcp.f32 %v4070_v48 }
 0xaa2   :  { %4413 = vrot.lane.b32.xlu0 %v21339_v37, %s21054_s10 }
 0xaa4   :  { %5066 = vrot.lane.b32.xlu1 %v21337_v35, %s21056_s17 }
 0xaa6   :  { %4567 = vrot.lane.b32.xlu0 %v21347_v39, %s21054_s10 }
 0xaa8   :  { %5064 = vrot.lane.b32.xlu1 %v21401_v52, %s21055_s11  ;;  %v4491_v52 = vpop.permute.xlu1 %4490 }
 0xaaa   :  { %4832 = vrot.lane.b32.xlu0 %v21329_v33, %s21056_s17 }
 0xaab   :  { %v20563_v43 = vpop.eup %20562 }
 0xaac   :  { %5222 = vrot.lane.b32.xlu1 %v21353_v40, %s21056_s17  ;;  %v4098_v56 = vmul.f32 %v20563_v43, %v21805_v59 }
 0xaae   :  { %4910 = vrot.lane.b32.xlu0 %v21343_v38, %s21056_s17 }
 0xab0   :  { %5220 = vrot.lane.b32.xlu1 %v21415_v54, %s21055_s11  ;;  %v4076_v54 = vpop.xlane.xlu0 %4075 }
 0xab2   :  { %4988 = vrot.lane.b32.xlu0 %v21327_v31, %s21056_s17 }
 0xab4   :  { %5378 = vrot.lane.b32.xlu1 %v21359_v41, %s21056_s17 }
 0xab6   :  { %4986 = vrot.lane.b32.xlu0 %v21370_v44, %s21055_s11 }
 0xab8   :  { %5376 = vrot.lane.b32.xlu1 %v21430_v57, %s21055_s11 }
 0xaba   :  { %5144 = vrot.lane.b32.xlu0 %v21339_v37, %s21056_s17 }
 0xabe   :  { %5142 = vrot.lane.b32.xlu0 %v21397_v51, %s21055_s11 }
 0xac2   :  { %5300 = vrot.lane.b32.xlu0 %v21347_v39, %s21056_s17 }
 0xac6   :  { %5298 = vrot.lane.b32.xlu0 %v21418_v55, %s21055_s11 }
 0xb0c   :  { %v4073_v44 = vpop.xlane.xlu1 %4072 }
 0xb0d   :  { %20564 = vrcp.f32 %v4073_v44 }
 0xb0e   :  { %20566 = vrcp.f32 %v4076_v54 }
 0xb10   :  { %v4079_v57 = vpop.xlane.xlu1 %4078 }
 0xb11   :  { %20568 = vrcp.f32 %v4079_v57  ;;  %v4082_v36 = vpop.xlane.xlu0 %4081 }
 0xb12   :  { %20570 = vrcp.f32 %v4082_v36 }
 0xb14   :  { %v4085_v42 = vpop.xlane.xlu1 %4084 }
 0xb15   :  { %20572 = vrcp.f32 %v4085_v42  ;;  %v4088_v51 = vpop.xlane.xlu0 %4087 }
 0xb16   :  { %20574 = vrcp.f32 %v4088_v51 }
 0xb17   :  { %v20565_v46 = vpop.eup %20564 }
 0xb18   :  { %v4645_v49 = vpop.permute.xlu1 %4644  ;;  %v4099_v55 = vmul.f32 %v20565_v46, %v21822_v16  ;;  %v20567_v58 = vpop.eup %20566 }
 0xb19   :  { %v4183_v50 = vpop.permute.xlu0 %4182  ;;  %v4100_v59 = vmul.f32 %v20567_v58, %v21810_v62 }
 0xb1a   :  { %19557 = vmatpush3.msk.msra.mxu0 %vm1229_vm6, %v4183_v50  ;;  %19564 = vmatmul.mubr.msk.f32.vlgmr.msra.gmra.mrb[44].mxu1 %vm1225_vm7, %v4099_v55 }
 0xb1b   :  { %v20569_v60 = vpop.eup %20568  ;;  %19559 = vmatmul.mubr.msk.f32.vlgmr.msra.gmra.mrb[50].mxu0 %vm1225_vm7, %v4098_v56  ;;  %19566 = vmatprep.subr.mxu0 %v21046_v28 }
 0xb1c   :  { %19567 = vmatpush3.msk.msra.mxu0 %vm1229_vm6, %v4337_v45  ;;  %v4831_v61 = vpop.permute.xlu1 %4830  ;;  %19568 = vmatprep.mubr.msk.f32.mxu0 %vm21047_vm3, %v21046_v28  ;;  %v4101_v0 = vmul.f32 %v20569_v60, %v21828_v19  ;;  %v20571_v63 = vpop.eup %20570 }
 0xb1d   :  { %v4414_v1 = vpop.permute.xlu0 %4413  ;;  %19573 = vmatprep.mubr.msk.f32.mxu1 %vm21047_vm3, %v21046_v28  ;;  %19576 = vmatprep.subr.mxu0 %v21046_v28  ;;  %v4102_v62 = vmul.f32 %v20571_v63, %v21830_v14 }
 0xb1e   :  { %19572 = vmatpush3.msk.msra.mxu1 %vm1229_vm6, %v4414_v1 }
 0xb1f   :  { %v20573_v2 = vpop.eup %20572  ;;  %19569 = vmatmul.mubr.msk.f32.vlgmr.msra.gmra.mrb[52].mxu0 %vm1225_vm7, %v4100_v59  ;;  %19574 = vmatmul.mubr.msk.f32.vlgmr.msra.gmra.mrb[46].mxu1 %vm1225_vm7, %v4101_v0 }
 0xb20   :  { %19577 = vmatpush3.msk.msra.mxu0 %vm1229_vm6, %v4491_v52  ;;  %v4909_v47 = vpop.permute.xlu1 %4908  ;;  %19581 = vmatprep.subr.mxu1 %v21046_v28  ;;  %v4103_v3 = vmul.f32 %v20573_v2, %v21836_v23  ;;  %v20575_v5 = vpop.eup %20574 }
 0xb21   :  { %v4568_v4 = vpop.permute.xlu0 %4567  ;;  %19578 = vmatprep.mubr.msk.f32.mxu0 %vm21047_vm3, %v21046_v28  ;;  %19583 = vmatprep.mubr.msk.f32.mxu1 %vm21047_vm3, %v21046_v28  ;;  %v4104_v53 = vmul.f32 %v20575_v5, %v21838_v24 }
 0xb22   :  { %19582 = vmatpush3.msk.msra.mxu1 %vm1229_vm6, %v4568_v4  ;;  %19586 = vmatprep.subr.mxu0 %v21046_v28 }
 0xb23   :  { %19579 = vmatmul.mubr.msk.f32.vlgmr.msra.gmra.mrb[54].mxu0 %vm1225_vm7, %v4102_v62  ;;  %19584 = vmatmul.mubr.msk.f32.vlgmr.msra.gmra.mrb[48].mxu1 %vm1225_vm7, %v4103_v3 }
 0xb24   :  { %19587 = vmatpush3.msk.msra.mxu0 %vm1229_vm6, %v4645_v49  ;;  %v5067_v8 = vpop.permute.xlu1 %5066  ;;  %19588 = vmatprep.mubr.msk.f32.mxu0 %vm21047_vm3, %v21046_v28 }
 0xb25   :  { %19599 = vmatprep.subr.mxu0 %v21046_v28  ;;  %19591 = vmatprep.subr.mxu1 %v506_v6  ;;  %v4833_v10 = vpop.permute.xlu0 %4832 }
 0xb26   :  { %19592 = vmatpush3.msra.mxu1 %v506_v6 }
 0xb27   :  { %19589 = vmatmul.mubr.msk.f32.vlgmr.msra.gmra.mrb[56].mxu0 %vm1225_vm7, %v4104_v53  ;;  %19609 = vmatprep.subr.mxu1 %v21046_v28 }
 0xb28   :  { %v5065_v11 = vpop.permute.xlu1 %5064  ;;  %19601 = vmatprep.mubr.msk.f32.mxu0 %vm21047_vm3, %v21046_v28 }
 0xb29   :  { %v4911_v7 = vpop.permute.xlu0 %4910 }
 0xb2b   :  { %19600 = vmatpush3.xpose.msk.msra.mxu0 %vm519_vm4, %v4833_v10 }
 0xb2c   :  { %v5223_v12 = vpop.permute.xlu1 %5222  ;;  %19604 = vmatprep.subr.mxu0 %v21046_v28 }
 0xb2d   :  { %v4989_v19 = vpop.permute.xlu0 %4988 }
 0xb2e   :  { %19602 = vmatmul.mubr.msk.f32.vlgmr.msra.gmra.mrb[58].mxu0 %vm519_vm4, %v4831_v61 }
 0xb2f   :  { %19605 = vmatpush3.xpose.msk.msra.mxu0 %vm519_vm4, %v4911_v7  ;;  %19606 = vmatprep.mubr.msk.f32.mxu0 %vm21047_vm3, %v21046_v28 }
 0xb30   :  { %19614 = vmatprep.subr.mxu0 %v21046_v28  ;;  %v5221_v9 = vpop.permute.xlu1 %5220 }
 0xb31   :  { %v4987_v23 = vpop.permute.xlu0 %4986 }
 0xb32   :  { %19607 = vmatmul.mubr.msk.f32.vlgmr.msra.gmra.mrb[60].mxu0 %vm519_vm4, %v4909_v47 }
 0xb33   :  { %19615 = vmatpush3.xpose.msk.msra.mxu0 %vm519_vm4, %v5067_v8  ;;  %19616 = vmatprep.mubr.msk.f32.mxu0 %vm21047_vm3, %v21046_v28 }
 0xb34   :  { %19624 = vmatprep.subr.mxu0 %v21046_v28  ;;  %v5379_v15 = vpop.permute.xlu1 %5378 }
 0xb35   :  { %v5145_v48 = vpop.permute.xlu0 %5144 }
 0xb36   :  { %19617 = vmatmul.mubr.msk.f32.vlgmr.msra.gmra.mrb[62].mxu0 %vm519_vm4, %v5065_v11 }
 0xb37   :  { %19625 = vmatpush3.xpose.msk.msra.mxu0 %vm519_vm4, %v5223_v12  ;;  %19626 = vmatprep.mubr.msk.f32.mxu0 %vm21047_vm3, %v21046_v28 }
 0xb38   :  { %19634 = vmatprep.subr.mxu0 %v21046_v28  ;;  %v5377_v16 = vpop.permute.xlu1 %5376 }
 0xb39   :  { %v5143_v46 = vpop.permute.xlu0 %5142 }
 0xb3a   :  { %19627 = vmatmul.mubr.msk.f32.vlgmr.msra.gmra.mrb[64].mxu0 %vm519_vm4, %v5221_v9 }
 0xb3b   :  { %19635 = vmatpush3.xpose.msk.msra.mxu0 %vm519_vm4, %v5379_v15  ;;  %19636 = vmatprep.mubr.msk.f32.mxu0 %vm21047_vm3, %v21046_v28 }
 0xb3c   :  { %19644 = vmatprep.subr.mxu0 %v21046_v28 }
 0xb3d   :  { %v5301_v55 = vpop.permute.xlu0 %5300 }
 0xb3e   :  { %19637 = vmatmul.mubr.msk.f32.vlgmr.msra.gmra.mrb[66].mxu0 %vm519_vm4, %v5377_v16 }
 0xb3f   :  { %19646 = vmatprep.mubr.msk.f32.mxu0 %vm21047_vm3, %v21046_v28 }
 0xb41   :  { %v5299_v0 = vpop.permute.xlu0 %5298 }
 0xb5d   :  { %v4178_v17 = vpop.f32.mrb[42].mxu1 }
 0xb5e   :  { %v19555_v13 = vpop.f32.mrb[43].mxu1 }
 0xbed   :  { %v4332_v14 = vpop.f32.mrb[44].mxu1 }
 0xbee   :  { %v4255_v20 = vpop.f32.mrb[50].mxu0  ;;  %v19565_v22 = vpop.f32.mrb[45].mxu1 }
 0xbef   :  { %v4729_v24 = vcombine.low %v4178_v17, %v4255_v20  ;;  %v19560_v25 = vpop.f32.mrb[51].mxu0 }
 0xbf1   :  { %19593 = vmatprep.mubr.msk.f32.mxu1 %vm519_vm4, %v4729_v24 }
 0xbf2   :  { %v4409_v29 = vpop.f32.mrb[52].mxu0  ;;  %v4486_v30 = vpop.f32.mrb[46].mxu1 }
 0xbf3   :  { %v4730_v32 = vcombine.low %v4332_v14, %v4409_v29  ;;  %v19570_v34 = vpop.f32.mrb[53].mxu0  ;;  %v19575_v45 = vpop.f32.mrb[47].mxu1 }
 0xbf5   :  { %19594 = vmatmul.mubr.msk.f32.vlgmr.msra.gmra.mrb[18].mxu1 %vm519_vm4, %v4730_v32 }
 0xbf6   :  { %19610 = vmatpush3.xpose.msk.msra.mxu1 %vm519_vm4, %v4989_v19  ;;  %v4563_v52 = vpop.f32.mrb[54].mxu0  ;;  %v4640_v44 = vpop.f32.mrb[48].mxu1 }
 0xbf7   :  { %v4731_v54 = vcombine.low %v4486_v30, %v4563_v52  ;;  %v19580_v57 = vpop.f32.mrb[55].mxu0  ;;  %v19585_v36 = vpop.f32.mrb[49].mxu1  ;;  %19619 = vmatprep.subr.mxu1 %v21046_v28 }
 0xbf9   :  { %19596 = vmatprep.mubr.msk.f32.mxu1 %vm519_vm4, %v4731_v54 }
 0xbfa   :  { %v4717_v42 = vpop.f32.mrb[56].mxu0 }
 0xbfb   :  { %v4732_v51 = vcombine.low %v4640_v44, %v4717_v42  ;;  %v19590_v43 = vpop.f32.mrb[57].mxu0 }
 0xbfd   :  { %19597 = vmatmul.mubr.msk.f32.gmra.mrb[20].mxu1 %vm519_vm4, %v4732_v51 }
 0xbfe   :  { %19611 = vmatprep.mubr.msk.f32.mxu1 %vm21047_vm3, %v21046_v28 }
 0xc01   :  { %v4904_v49 = vpop.f32.mrb[58].mxu0  ;;  %19612 = vmatmul.mubr.msk.f32.vlgmr.msra.gmra.mrb[50].mxu1 %vm519_vm4, %v4987_v23 }
 0xc02   :  { %v19603_v50 = vpop.f32.mrb[59].mxu0  ;;  %19620 = vmatpush3.xpose.msk.msra.mxu1 %vm519_vm4, %v5145_v48  ;;  %v5454_v56 = vsel %vm1134_vm5, %v4904_v49, -inf  ;;  %19621 = vmatprep.mubr.msk.f32.mxu1 %vm21047_vm3, %v21046_v28 }
 0xc03   :  { %5455 = vmax.xlane.f32.xlu0 %v5454_v56  ;;  %19629 = vmatprep.subr.mxu1 %v21046_v28 }
 0xc05   :  { %v4982_v58 = vpop.f32.mrb[60].mxu0  ;;  %19622 = vmatmul.mubr.msk.f32.vlgmr.msra.gmra.mrb[52].mxu1 %vm519_vm4, %v5143_v46 }
 0xc06   :  { %v19608_v60 = vpop.f32.mrb[61].mxu0  ;;  %19630 = vmatpush3.xpose.msk.msra.mxu1 %vm519_vm4, %v5301_v55  ;;  %v5457_v61 = vsel %vm1134_vm5, %v4982_v58, -inf  ;;  %19631 = vmatprep.mubr.msk.f32.mxu1 %vm21047_vm3, %v21046_v28 }
 0xc07   :  { %5458 = vmax.xlane.f32.xlu1 %v5457_v61  ;;  %19639 = vmatprep.subr.mxu1 %v21046_v28 }
 0xc09   :  { %v5138_v1 = vpop.f32.mrb[62].mxu0  ;;  %19632 = vmatmul.mubr.msk.f32.vlgmr.msra.gmra.mrb[54].mxu1 %vm519_vm4, %v5299_v0 }
 0xc0a   :  { %v19618_v59 = vpop.f32.mrb[63].mxu0  ;;  %19641 = vmatprep.mubr.msk.f32.mxu1 %vm21047_vm3, %v21046_v28  ;;  %v5463_v13 = vsel %vm1134_vm5, %v5138_v1, -inf }
 0xc0d   :  { %v5294_v63 = vpop.f32.mrb[64].mxu0 }
 0xc0e   :  { %v19628_v2 = vpop.f32.mrb[65].mxu0  ;;  %v5469_v14 = vsel %vm1134_vm5, %v5294_v63, -inf }
 0xc11   :  { %v21976_v47 = vpop.f32.mrb[66].mxu0 }
 0xc12   :  { %v19638_v3 = vpop.f32.mrb[67].mxu0  ;;  %v5475_v20 = vsel %vm1134_vm5, %v21976_v47, -inf }
 0xc90   :  { %v5456_v4 = vpop.xlane.xlu0 %5455 }
 0xc91   :  { %v5478_v62 = vsub.f32 %v4904_v49, %v5456_v4 }
 0xc93   :  { %v5486_v5 = vmul.f32 1.442695, %v5478_v62 }
 0xc94   :  { %v5459_v53 = vpop.xlane.xlu1 %5458 }
 0xc95   :  { %20576 = vpow2.f32 %v5486_v5  ;;  %v5479_v10 = vsub.f32 %v4982_v58, %v5459_v53 }
 0xc97   :  { %v5488_v11 = vmul.f32 1.442695, %v5479_v10 }
 0xc99   :  { %20578 = vpow2.f32 %v5488_v11 }
 0xc9f   :  { %v20577_v6 = vpop.eup %20576 }
 0xca0   :  { %v5502_v8 = vsel %vm1134_vm5, %v20577_v6, 0.0 }
 0xca1   :  { %5503 = vadd.xlane.f32.xlu1 %v5502_v8 }
 0xca3   :  { %v21990_v22 = vpop.eup %20578 }
 0xca4   :  { %v5505_v23 = vsel %vm1134_vm5, %v21990_v22, 0.0 }
 0xcb2   :  { %5542 = vrot.lane.b32.xlu1 %v21329_v33, %s21057_s15 }
 0xcb6   :  { %5696 = vrot.lane.b32.xlu1 %v21327_v31, %s21057_s15 }
 0xcd4   :  { %v5060_v12 = vpop.f32.mrb[50].mxu1 }
 0xcd5   :  { %v19613_v7 = vpop.f32.mrb[51].mxu1  ;;  %v5460_v9 = vsel %vm1134_vm5, %v5060_v12, -inf }
 0xcd6   :  { %5461 = vmax.xlane.f32.xlu0 %v5460_v9 }
 0xcd8   :  { %v5216_v15 = vpop.f32.mrb[52].mxu1 }
 0xcd9   :  { %v19623_v16 = vpop.f32.mrb[53].mxu1  ;;  %v5466_v17 = vsel %vm1134_vm5, %v5216_v15, -inf }
 0xcda   :  { %5467 = vmax.xlane.f32.xlu1 %v5466_v17  ;;  %5464 = vmax.xlane.f32.xlu0 %v5463_v13 }
 0xcdc   :  { %v5372_v33 = vpop.f32.mrb[54].mxu1 }
 0xcdd   :  { %v19633_v19 = vpop.f32.mrb[55].mxu1  ;;  %v5472_v31 = vsel %vm1134_vm5, %v5372_v33, -inf }
 0xcde   :  { %5473 = vmax.xlane.f32.xlu1 %v5472_v31  ;;  %5470 = vmax.xlane.f32.xlu0 %v5469_v14 }
 0xce2   :  { %5476 = vmax.xlane.f32.xlu0 %v5475_v20 }
 0xce6   :  { %5506 = vadd.xlane.f32.xlu0 %v5505_v23 }
 0xcef   :  { %5850 = vrot.lane.b32.xlu1 %v21339_v37, %s21057_s15 }
 0xd2e   :  { %v5504_v24 = vpop.xlane.xlu1 %5503 }
 0xd2f   :  { %20580 = vrcp.f32 %v5504_v24 }
 0xd32   :  { %v5543_v25 = vpop.permute.xlu1 %5542 }
 0xd33   :  { %19640 = vmatpush3.msk.msra.mxu1 %vm1229_vm6, %v5543_v25 }
 0xd34   :  { %19649 = vmatprep.subr.mxu1 %v21046_v28 }
 0xd36   :  { %v5697_v32 = vpop.permute.xlu1 %5696 }
 0xd39   :  { %v20581_v29 = vpop.eup %20580 }
 0xd3a   :  { %v5534_v30 = vmul.f32 %v20581_v29, %v20577_v6 }
 0xd3c   :  { %19642 = vmatmul.mubr.msk.f32.vlgmr.msra.gmra.mrb[56].mxu1 %vm1225_vm7, %v5534_v30 }
 0xd3d   :  { %19650 = vmatpush3.msk.msra.mxu1 %vm1229_vm6, %v5697_v32  ;;  %19651 = vmatprep.mubr.msk.f32.mxu1 %vm21047_vm3, %v21046_v28 }
 0xd3e   :  { %19659 = vmatprep.subr.mxu1 %v21046_v28 }
 0xd63   :  { %v5462_v37 = vpop.xlane.xlu0 %5461 }
 0xd64   :  { %v5480_v34 = vsub.f32 %v5060_v12, %v5462_v37  ;;  %v507_v37 = vld [vmem:[%s21097_s29 + $0x18] sm:$0xff]  ;;  %s23770_s29 = sld [smem:[#allocation24_spill]] }
 0xd66   :  { %v5490_v45 = vmul.f32 1.442695, %v5480_v34 }
 0xd67   :  { %v5465_v48 = vpop.xlane.xlu0 %5464  ;;  %v5468_v50 = vpop.xlane.xlu1 %5467 }
 0xd68   :  { %20582 = vpow2.f32 %v5490_v45  ;;  %v5481_v52 = vsub.f32 %v5138_v1, %v5465_v48  ;;  %v5482_v56 = vsub.f32 %v5216_v15, %v5468_v50 }
 0xd6a   :  { %v5492_v44 = vmul.f32 1.442695, %v5481_v52  ;;  %v5494_v60 = vmul.f32 1.442695, %v5482_v56 }
 0xd6b   :  { %v5471_v54 = vpop.xlane.xlu0 %5470  ;;  %v5474_v58 = vpop.xlane.xlu1 %5473 }
 0xd6c   :  { %v5483_v57 = vsub.f32 %v5294_v63, %v5471_v54  ;;  %20584 = vpow2.f32 %v5492_v44  ;;  %v5484_v61 = vsub.f32 %v5372_v33, %v5474_v58 }
 0xd6e   :  { %v5496_v36 = vmul.f32 1.442695, %v5483_v57  ;;  %v5498_v1 = vmul.f32 1.442695, %v5484_v61  ;;  %v17887_v61 = vld [vmem:[#allocation6] ss:$0 sm:$0xff] }
 0xd6f   :  { %v5477_v0 = vpop.xlane.xlu0 %5476 }
 0xd70   :  { %20586 = vpow2.f32 %v5496_v36  ;;  %v5485_v59 = vsub.f32 %v21976_v47, %v5477_v0  ;;  %v5851_v47 = vpop.permute.xlu1 %5850 }
 0xd71   :  { %20588 = vpow2.f32 %v5494_v60 }
 0xd72   :  { %v20583_v42 = vpop.eup %20582  ;;  %20590 = vpow2.f32 %v5498_v1  ;;  %v5500_v63 = vmul.f32 1.442695, %v5485_v59 }
 0xd73   :  { %v5508_v51 = vsel %vm1134_vm5, %v20583_v42, 0.0  ;;  %v5507_v5 = vpop.xlane.xlu0 %5506 }
 0xd74   :  { %5509 = vadd.xlane.f32.xlu1 %v5508_v51  ;;  %20592 = vpow2.f32 %v5500_v63 }
 0xd75   :  { %20594 = vrcp.f32 %v5507_v5 }
 0xd76   :  { %v22004_v43 = vpop.eup %20584 }
 0xd77   :  { %v5511_v46 = vsel %vm1134_vm5, %v22004_v43, 0.0 }
 0xd78   :  { %5512 = vadd.xlane.f32.xlu0 %v5511_v46 }
 0xd7a   :  { %v22008_v49 = vpop.eup %20586 }
 0xd7b   :  { %v5517_v55 = vsel %vm1134_vm5, %v22008_v49, 0.0  ;;  %v20589_v2 = vpop.eup %20588 }
 0xd7c   :  { %5518 = vadd.xlane.f32.xlu0 %v5517_v55  ;;  %v5514_v3 = vsel %vm1134_vm5, %v20589_v2, 0.0 }
 0xd85   :  { %5927 = vrot.lane.b32.xlu1 %v21353_v40, %s21057_s15  ;;  %v20591_v40 = vpop.eup %20590 }
 0xd86   :  { %v5520_v4 = vsel %vm1134_vm5, %v20591_v40, 0.0 }
 0xd92   :  { %5619 = vrot.lane.b32.xlu0 %v21343_v38, %s21057_s15  ;;  %v20593_v38 = vpop.eup %20592 }
 0xd93   :  { %v5523_v62 = vsel %vm1134_vm5, %v20593_v38, 0.0  ;;  %v20595_v10 = vpop.eup %20594 }
 0xd94   :  { %v5535_v9 = vmul.f32 %v20595_v10, %v21990_v22 }
 0xda9   :  { %5515 = vadd.xlane.f32.xlu1 %v5514_v3 }
 0xdad   :  { %5521 = vadd.xlane.f32.xlu1 %v5520_v4 }
 0xdb1   :  { %5524 = vadd.xlane.f32.xlu0 %v5523_v62 }
 0xdbe   :  { %6081 = vrot.lane.b32.xlu1 %v21359_v41, %s21057_s15 }
 0xdc7   :  { %5773 = vrot.lane.b32.xlu0 %v21337_v35, %s21057_s15 }
 0xdcb   :  { %6004 = vrot.lane.b32.xlu0 %v21347_v39, %s21057_s15 }
 0xe01   :  { %v5510_v6 = vpop.xlane.xlu1 %5509 }
 0xe02   :  { %20596 = vrcp.f32 %v5510_v6 }
 0xe05   :  { %v5513_v8 = vpop.xlane.xlu0 %5512  ;;  %v5928_v39 = vpop.permute.xlu1 %5927 }
 0xe06   :  { %20598 = vrcp.f32 %v5513_v8 }
 0xe09   :  { %v5519_v53 = vpop.xlane.xlu0 %5518 }
 0xe0c   :  { %v20597_v11 = vpop.eup %20596 }
 0xe0d   :  { %v5536_v12 = vmul.f32 %v20597_v11, %v20583_v42  ;;  %v5620_v7 = vpop.permute.xlu0 %5619 }
 0xe0e   :  { %19645 = vmatpush3.msk.msra.mxu0 %vm1229_vm6, %v5620_v7 }
 0xe0f   :  { %v5615_v41 = vpop.f32.mrb[56].mxu1  ;;  %19652 = vmatmul.mubr.msk.f32.vlgmr.msra.gmra.mrb[58].mxu1 %vm1225_vm7, %v5536_v12  ;;  %19647 = vmatmul.mubr.msk.f32.vlgmr.msra.gmra.mrb[68].mxu0 %vm1225_vm7, %v5535_v9 }
 0xe10   :  { %v19643_v35 = vpop.f32.mrb[57].mxu1  ;;  %19660 = vmatpush3.msk.msra.mxu1 %vm1229_vm6, %v5851_v47  ;;  %19654 = vmatprep.subr.mxu0 %v21046_v28  ;;  %v20599_v13 = vpop.eup %20598 }
 0xe11   :  { %19656 = vmatprep.mubr.msk.f32.mxu0 %vm21047_vm3, %v21046_v28  ;;  %19661 = vmatprep.mubr.msk.f32.mxu1 %vm21047_vm3, %v21046_v28  ;;  %v5537_v14 = vmul.f32 %v20599_v13, %v22004_v43 }
 0xe12   :  { %19669 = vmatprep.subr.mxu1 %v21046_v28 }
 0xe36   :  { %v5516_v15 = vpop.xlane.xlu1 %5515 }
 0xe37   :  { %20600 = vrcp.f32 %v5516_v15 }
 0xe38   :  { %20602 = vrcp.f32 %v5519_v53 }
 0xe3a   :  { %v5522_v16 = vpop.xlane.xlu1 %5521 }
 0xe3b   :  { %20604 = vrcp.f32 %v5522_v16 }
 0xe3e   :  { %v5525_v17 = vpop.xlane.xlu0 %5524  ;;  %v6082_v29 = vpop.permute.xlu1 %6081 }
 0xe3f   :  { %20606 = vrcp.f32 %v5525_v17 }
 0xe41   :  { %v20601_v33 = vpop.eup %20600 }
 0xe42   :  { %v5538_v19 = vmul.f32 %v20601_v33, %v20589_v2  ;;  %v5774_v31 = vpop.permute.xlu0 %5773  ;;  %v20603_v20 = vpop.eup %20602 }
 0xe43   :  { %19655 = vmatpush3.msk.msra.mxu0 %vm1229_vm6, %v5774_v31  ;;  %v5539_v25 = vmul.f32 %v20603_v20, %v22008_v49 }
 0xe44   :  { %19662 = vmatmul.mubr.msk.f32.vlgmr.msra.gmra.mrb[60].mxu1 %vm1225_vm7, %v5538_v19  ;;  %19657 = vmatmul.mubr.msk.f32.vlgmr.msra.gmra.mrb[70].mxu0 %vm1225_vm7, %v5537_v14 }
 0xe45   :  { %v20605_v22 = vpop.eup %20604  ;;  %19664 = vmatprep.subr.mxu0 %v21046_v28  ;;  %19666 = vmatprep.mubr.msk.f32.mxu0 %vm21047_vm3, %v21046_v28 }
 0xe46   :  { %19665 = vmatpush3.msk.msra.mxu0 %vm1229_vm6, %v5928_v39  ;;  %v5540_v23 = vmul.f32 %v20605_v22, %v20591_v40  ;;  %v6005_v24 = vpop.permute.xlu0 %6004  ;;  %19671 = vmatprep.mubr.msk.f32.mxu1 %vm21047_vm3, %v21046_v28  ;;  %v6348_v22 = vld [vmem:[%s23770_s29] sm:$0xff] }
 0xe47   :  { %19674 = vmatprep.subr.mxu0 %v21046_v28  ;;  %19670 = vmatpush3.msk.msra.mxu1 %vm1229_vm6, %v6005_v24  ;;  %v6349_v24 = vld [vmem:[%s23770_s29 + $0x8] sm:$0xff] }
 0xe48   :  { %19667 = vmatmul.mubr.msk.f32.vlgmr.msra.gmra.mrb[72].mxu0 %vm1225_vm7, %v5539_v25  ;;  %19672 = vmatmul.mubr.msk.f32.vlgmr.msra.gmra.mrb[62].mxu1 %vm1225_vm7, %v5540_v23  ;;  %v6356_v23 = vld [vmem:[%s23770_s29 + $0x40] sm:$0xff] }
 0xe49   :  { %v20607_v30 = vpop.eup %20606  ;;  %19675 = vmatpush3.msk.msra.mxu0 %vm1229_vm6, %v6082_v29  ;;  %19676 = vmatprep.mubr.msk.f32.mxu0 %vm21047_vm3, %v21046_v28  ;;  %v17999_v25 = vcombine.high %v6348_v22, %v6356_v23  ;;  %v6357_v29 = vld [vmem:[%s23770_s29 + $0x48] sm:$0xff] }
 0xe4a   :  { %v5541_v32 = vmul.f32 %v20607_v30, %v20593_v38  ;;  %19679 = vmatprep.subr.mxu1 %v507_v37  ;;  %v17998_v30 = vcombine.low %v6348_v22, %v6356_v23 }
 0xe4b   :  { %19680 = vmatpush3.msra.mxu1 %v507_v37  ;;  %v18001_v37 = vcombine.high %v6349_v24, %v6357_v29  ;;  %6630 = vmatprep.subr.bf16.mxu0 %v17999_v25 }
 0xe4c   :  { %19677 = vmatmul.mubr.msk.f32.vlgmr.msra.gmra.mrb[74].mxu0 %vm1225_vm7, %v5541_v32  ;;  %v18000_v32 = vcombine.low %v6349_v24, %v6357_v29 }
 0xe4d   :  { %6683 = vmatprep.subr.bf16.mxu1 %v18001_v37  ;;  %6631 = vmatpush1.bf16.msra.mxu0 %v17998_v30 }
 0xee2   :  { %v5769_v34 = vpop.f32.mrb[58].mxu1  ;;  %v5692_v45 = vpop.f32.mrb[68].mxu0 }
 0xee3   :  { %v19653_v48 = vpop.f32.mrb[59].mxu1  ;;  %v6166_v52 = vcombine.low %v5615_v41, %v5692_v45  ;;  %v19648_v44 = vpop.f32.mrb[69].mxu0  ;;  %v6372_v45 = vld [vmem:[%s23770_s29 + $0xc0] sm:$0xff] }
 0xee4   :  { %v6365_v48 = vld [vmem:[%s23770_s29 + $0x88] sm:$0xff] }
 0xee5   :  { %19681 = vmatprep.mubr.msk.f32.mxu1 %vm519_vm4, %v6166_v52  ;;  %v6373_v44 = vld [vmem:[%s23770_s29 + $0xc8] sm:$0xff] }
 0xf17   :  { %v5923_v54 = vpop.f32.mrb[60].mxu1  ;;  %v5846_v57 = vpop.f32.mrb[70].mxu0 }
 0xf18   :  { %v19663_v36 = vpop.f32.mrb[61].mxu1  ;;  %v6167_v42 = vcombine.low %v5769_v34, %v5846_v57  ;;  %v19658_v51 = vpop.f32.mrb[71].mxu0  ;;  %v6364_v34 = vld [vmem:[%s23770_s29 + $0x80] sm:$0xff]  ;;  %v18016_v57 = vcombine.low %v6365_v48, %v6373_v44 }
 0xf19   :  { %v18015_v52 = vcombine.high %v6364_v34, %v6372_v45  ;;  %v18017_v36 = vcombine.high %v6365_v48, %v6373_v44  ;;  %v6350_v51 = vld [vmem:[%s23770_s29 + $0x10] sm:$0xff]  ;;  %v6369_v48 = vld [vmem:[%s23770_s29 + $0xa8] sm:$0xff] }
 0xf1a   :  { %19682 = vmatmul.mubr.msk.f32.vlgmr.msra.gmra.mrb[18].mxu1 %vm519_vm4, %v6167_v42  ;;  %v21058_v42 = vmov 0  }
 0xf1b   :  { %v6000_v43 = vpop.f32.mrb[72].mxu0  ;;  %v6077_v46 = vpop.f32.mrb[62].mxu1  ;;  %6684 = vmatpush1.bf16.msra.mxu1 %v18000_v32  ;;  %6632 = vmatprep.subr.bf16.mxu0 %v18015_v52  ;;  %v6377_v52 = vld [vmem:[%s23770_s29 + $0xe8] sm:$0xff] }
 0xf1c   :  { %v6168_v49 = vcombine.low %v5923_v54, %v6000_v43  ;;  %v19668_v55 = vpop.f32.mrb[73].mxu0  ;;  %v19673_v50 = vpop.f32.mrb[63].mxu1  ;;  %v18014_v54 = vcombine.low %v6364_v34, %v6372_v45  ;;  %6685 = vmatprep.subr.bf16.mxu1 %v18017_v36  ;;  %6662 = vmatprep.mubr.bf16.mxu0 %v21058_v42  ;;  %v6358_v43 = vld [vmem:[%s23770_s29 + $0x50] sm:$0xff]  ;;  %v6376_v45 = vld [vmem:[%s23770_s29 + $0xe0] sm:$0xff]  ;;  %v18025_v36 = vcombine.high %v6369_v48, %v6377_v52 }
 0xf1d   :  { %20222 = vset.pattern.permute.xlu1 %v21058_v42  ;;  %20223 = vset.pattern.permute.xlu0 %v21058_v42  ;;  %v6359_v55 = vld [vmem:[%s23770_s29 + $0x58] sm:$0xff]  ;;  %v18002_v50 = vcombine.low %v6350_v51, %v6358_v43 }
 0xf1e   :  { %19684 = vmatprep.mubr.msk.f32.mxu1 %vm519_vm4, %v6168_v49  ;;  %6633 = vmatpush1.bf16.msra.mxu0 %v18014_v54  ;;  %v18003_v49 = vcombine.high %v6350_v51, %v6358_v43  ;;  %v6354_v51 = vld [vmem:[%s23770_s29 + $0x30] sm:$0xff] }
 0xf1f   :  { %v6154_v56 = vpop.f32.mrb[74].mxu0  ;;  %6686 = vmatpush1.bf16.msra.mxu1 %v18016_v57  ;;  %v6362_v43 = vld [vmem:[%s23770_s29 + $0x70] sm:$0xff] }
 0xf20   :  { %v6169_v58 = vcombine.low %v6077_v46, %v6154_v56  ;;  %v19678_v60 = vpop.f32.mrb[75].mxu0  ;;  %v6351_v46 = vld [vmem:[%s23770_s29 + $0x18] sm:$0xff]  ;;  %6736 = vmatprep.subr.bf16.mxu0 %v18003_v49 }
 0xf21   :  { %v18004_v56 = vcombine.low %v6351_v46, %v6359_v55  ;;  %v6363_v49 = vld [vmem:[%s23770_s29 + $0x78] sm:$0xff] }
 0xf22   :  { %19685 = vmatmul.mubr.msk.f32.gmra.mrb[20].mxu1 %vm519_vm4, %v6169_v58  ;;  %v18005_v58 = vcombine.high %v6351_v46, %v6359_v55  ;;  %v6355_v46 = vld [vmem:[%s23770_s29 + $0x38] sm:$0xff] }
 0xf23   :  { %6715 = vmatprep.mubr.bf16.mxu1 %v21058_v42 }
 0xf24   :  { %6789 = vmatprep.subr.bf16.mxu1 %v18005_v58  ;;  %v18013_v58 = vcombine.high %v6355_v46, %v6363_v49 }
 0xfed   :  { %v19683_v0 = vpop.f32.mrb[18].mxu1 }
 0xfee   :  { %v20131_v1 = vadd.f32 %v19683_v0, %v17887_v61  ;;  %v6244_v59 = vpop.f32.mrb[19].mxu1 }
 0xfef   :  { %v20132_v63 = vadd.f32 %v17887_v61, %v6244_v59 }
 0xff0   :  { %v6268_v2 = vadd.f32 %v20131_v1, %v21306_v21 }
 0xff1   :  { %v6267_v3 = vadd.f32 %v20132_v63, %v21303_v18 }
 0xff2   :  { %v6276_v40 = vsel %vm394_vm2, %v6268_v2, 0.0 }
 0xff3   :  { %6277 = vadd.xlane.f32.xlu1 %v6276_v40  ;;  %v6273_v4 = vsel %vm394_vm2, %v6267_v3, 0.0 }
 0xff4   :  { %6274 = vadd.xlane.f32.xlu0 %v6273_v4 }
 0xff5   :  { %v19686_v38 = vpop.f32.mrb[20].mxu1 }
 0xff6   :  { %v6254_v62 = vpop.f32.mrb[21].mxu1  ;;  %v20133_v47 = vadd.f32 %v19686_v38, %v17887_v61 }
 0xff7   :  { %v20134_v5 = vadd.f32 %v17887_v61, %v6254_v62 }
 0xff8   :  { %v6270_v8 = vadd.f32 %v20133_v47, %v21311_v26  ;;  %v17996_v47 = vld [vmem:[%s23771_s16] ss:$0 sm:$0xff] }
 0xff9   :  { %v6269_v6 = vadd.f32 %v20134_v5, %v21315_v27 }
 0xffa   :  { %v6282_v21 = vsel %vm394_vm2, %v6270_v8, 0.0 }
 0xffb   :  { %v6279_v53 = vsel %vm394_vm2, %v6269_v6, 0.0 }
 0xffc   :  { %6280 = vadd.xlane.f32.xlu0 %v6279_v53  ;;  %v17997_v53 = vld [vmem:[%s23772_s18] ss:$0 sm:$0xff] }
0x1000   :  { %6283 = vadd.xlane.f32.xlu0 %v6282_v21 }
0x1080   :  { %v6278_v18 = vpop.xlane.xlu1 %6277 }
0x1081   :  { %v6287_v10 = vmul.f32 0.03125, %v6278_v18  ;;  %v6275_v11 = vpop.xlane.xlu0 %6274 }
0x1082   :  { %v6286_v12 = vmul.f32 0.03125, %v6275_v11 }
0x1083   :  { %v22069_v7 = vsub.f32 %v6268_v2, %v6287_v10 }
0x1084   :  { %v22071_v9 = vsub.f32 %v6267_v3, %v6286_v12  ;;  %v6366_v12 = vld [vmem:[%s23770_s29 + $0x90] sm:$0xff] }
0x1085   :  { %v6295_v41 = vmul.f32 %v22069_v7, %v22069_v7 }
0x1086   :  { %v6294_v26 = vmul.f32 %v22071_v9, %v22071_v9 }
0x1087   :  { %v6301_v27 = vsel %vm394_vm2, %v6295_v41, 0.0 }
0x1088   :  { %6302 = vadd.xlane.f32.xlu0 %v6301_v27  ;;  %v6298_v35 = vsel %vm394_vm2, %v6294_v26, 0.0  ;;  %v6374_v26 = vld [vmem:[%s23770_s29 + $0xd0] sm:$0xff]  ;;  %v6367_v27 = vld [vmem:[%s23770_s29 + $0x98] sm:$0xff] }
0x1089   :  { %6299 = vadd.xlane.f32.xlu1 %v6298_v35  ;;  %v6281_v39 = vpop.xlane.xlu0 %6280  ;;  %v6375_v35 = vld [vmem:[%s23770_s29 + $0xd8] sm:$0xff] }
0x108a   :  { %v6288_v15 = vmul.f32 0.03125, %v6281_v39  ;;  %v18020_v22 = vcombine.low %v6367_v27, %v6375_v35 }
0x108c   :  { %v22079_v16 = vsub.f32 %v6269_v6, %v6288_v15  ;;  %v18021_v15 = vcombine.high %v6367_v27, %v6375_v35  ;;  %v20236_v27 = vld [vmem:[%s23773_s24 + $0x58] sm:$0xff]  }
0x108d   :  { %v6284_v17 = vpop.xlane.xlu0 %6283  ;;  %v20237_v35 = vld [vmem:[%s23773_s24 + $0xd8] sm:$0xff]  }
0x108e   :  { %v6289_v13 = vmul.f32 0.03125, %v6284_v17  ;;  %v6296_v33 = vmul.f32 %v22079_v16, %v22079_v16  ;;  %v6352_v17 = vld [vmem:[%s23770_s29 + $0x20] sm:$0xff] }
0x1090   :  { %v22083_v19 = vsub.f32 %v6270_v8, %v6289_v13  ;;  %v6304_v31 = vsel %vm394_vm2, %v6296_v33, 0.0  ;;  %v6360_v33 = vld [vmem:[%s23770_s29 + $0x60] sm:$0xff] }
0x1091   :  { %6305 = vadd.xlane.f32.xlu1 %v6304_v31  ;;  %v6353_v31 = vld [vmem:[%s23770_s29 + $0x28] sm:$0xff]  ;;  %v18006_v44 = vcombine.low %v6352_v17, %v6360_v33 }
0x1092   :  { %v6297_v14 = vmul.f32 %v22083_v19, %v22083_v19 }
0x1094   :  { %v6307_v20 = vsel %vm394_vm2, %v6297_v14, 0.0  ;;  %v6361_v14 = vld [vmem:[%s23770_s29 + $0x68] sm:$0xff] }
0x1095   :  { %6308 = vadd.xlane.f32.xlu0 %v6307_v20  ;;  %v18018_v20 = vcombine.low %v6366_v12, %v6374_v26  ;;  %v18009_v24 = vcombine.high %v6353_v31, %v6361_v14  ;;  %v18008_v54 = vcombine.low %v6353_v31, %v6361_v14  ;;  %v20245_v31 = vld [vmem:[%s23773_s24 + $0xe8] sm:$0xff]  }
0x1096   :  { %v20246_v14 = vld [vmem:[%s23773_s24 + $0x28] sm:$0xff]  }
0x1115   :  { %v6303_v60 = vpop.xlane.xlu0 %6302 }
0x1116   :  { %v6311_v61 = vmul.f32 0.03125, %v6303_v60  ;;  %v6300_v0 = vpop.xlane.xlu1 %6299  ;;  %v6370_v60 = vld [vmem:[%s23770_s29 + $0xb0] sm:$0xff] }
0x1117   :  { %v6310_v1 = vmul.f32 0.03125, %v6300_v0  ;;  %v6371_v0 = vld [vmem:[%s23770_s29 + $0xb8] sm:$0xff] }
0x1118   :  { %v6315_v59 = vadd.f32 1e-05, %v6311_v61  ;;  %v6378_v61 = vld [vmem:[%s23770_s29 + $0xf0] sm:$0xff] }
0x1119   :  { %v6314_v63 = vadd.f32 1e-05, %v6310_v1  ;;  %v6379_v1 = vld [vmem:[%s23770_s29 + $0xf8] sm:$0xff] }
0x111a   :  { %20608 = vrsqrt.f32 %v6315_v59  ;;  %v18010_v59 = vcombine.low %v6354_v51, %v6362_v43 }
0x111b   :  { %20610 = vrsqrt.f32 %v6314_v63  ;;  %v18012_v63 = vcombine.low %v6355_v46, %v6363_v49 }
0x111e   :  { %v6306_v2 = vpop.xlane.xlu1 %6305 }
0x111f   :  { %v6312_v3 = vmul.f32 0.03125, %v6306_v2  ;;  %v18027_v2 = vcombine.high %v6370_v60, %v6378_v61 }
0x1121   :  { %v6316_v40 = vadd.f32 1e-05, %v6312_v3  ;;  %v18029_v3 = vcombine.high %v6371_v0, %v6379_v1 }
0x1122   :  { %v6309_v4 = vpop.xlane.xlu0 %6308 }
0x1123   :  { %20612 = vrsqrt.f32 %v6316_v40  ;;  %v6313_v38 = vmul.f32 0.03125, %v6309_v4  ;;  %v18026_v40 = vcombine.low %v6370_v60, %v6378_v61  ;;  %v18028_v4 = vcombine.low %v6371_v0, %v6379_v1 }
0x1124   :  { %v20609_v62 = vpop.eup %20608 }
0x1125   :  { %v20611_v5 = vpop.eup %20610  ;;  %v6323_v6 = vmul.f32 %v20609_v62, %v22069_v7  ;;  %v6317_v8 = vadd.f32 1e-05, %v6313_v38  ;;  %v20224_v38 = vld [vmem:[%s23773_s24 + $0x40] sm:$0xff]  }
0x1126   :  { %v6322_v21 = vmul.f32 %v20611_v5, %v22071_v9  ;;  %v18019_v9 = vcombine.high %v6366_v12, %v6374_v26  ;;  %v20225_v62 = vld [vmem:[%s23773_s24 + $0xc0] sm:$0xff]   ;;  %v20234_v12 = vld [vmem:[%s23773_s24 + $0x10] sm:$0xff]  }
0x1127   :  { %v6333_v18 = vmul.f32 %v17996_v47, %v6323_v6  ;;  %20614 = vrsqrt.f32 %v6317_v8  ;;  %v20227_v5 = vld [vmem:[%s23773_s24 + $0x80] sm:$0xff]   ;;  %v20228_v6 = vld [vmem:[%s23773_s24 + $0x48] sm:$0xff]   ;;  %v20235_v26 = vld [vmem:[%s23773_s24 + $0x90] sm:$0xff]  }
0x1128   :  { %v6332_v10 = vmul.f32 %v17996_v47, %v6322_v21  ;;  %v20229_v8 = vld [vmem:[%s23773_s24 + $0xc8] sm:$0xff]  }
0x1129   :  { %v22109_v11 = vadd.f32 %v17997_v53, %v6333_v18  ;;  %v20231_v21 = vld [vmem:[%s23773_s24 + $0x88] sm:$0xff]   ;;  %v20232_v18 = vld [vmem:[%s23773_s24 + $0x50] sm:$0xff]  }
0x112a   :  { %v22112_v41 = vadd.f32 %v17997_v53, %v6332_v10  ;;  %v20233_v10 = vld [vmem:[%s23773_s24 + $0xd0] sm:$0xff]  }
0x112c   :  { %v22119_v7 = vpack.c.bf16 %v22109_v11, %v22112_v41 }
0x112d   :  { %v20613_v39 = vpop.eup %20612 }
0x112e   :  { %v6324_v13 = vmul.f32 %v20613_v39, %v22079_v16  ;;  %18030 = vmatmul.mubr.msk.bf16.vlgmr.msra.gmra.mrb[76].mxu0 %vm394_vm2, %v22119_v7  ;;  %18032 = vmatmul.mubr.msk.bf16.vlgmr.msra.gmra.mrb[64].mxu1 %vm394_vm2, %v22119_v7  ;;  %v18007_v16 = vcombine.high %v6352_v17, %v6360_v33  ;;  %v20239_v39 = vld [vmem:[%s23773_s24 + $0x98] sm:$0xff]   ;;  %v20242_v17 = vld [vmem:[%s23773_s24 + $0x20] sm:$0xff]   ;;  %v20244_v33 = vld [vmem:[%s23773_s24 + $0x68] sm:$0xff]  }
0x112f   :  { %6672 = vmatprep.mubr.bf16.mxu0 %v21058_v42  ;;  %6725 = vmatprep.mubr.bf16.mxu1 %v21058_v42 }
0x1130   :  { %6737 = vmatpush1.bf16.msra.mxu0 %v18002_v50  ;;  %6790 = vmatpush1.bf16.msra.mxu1 %v18004_v56  ;;  %v6334_v25 = vmul.f32 %v17996_v47, %v6324_v13  ;;  %v18024_v50 = vcombine.low %v6369_v48, %v6377_v52  ;;  %v18011_v56 = vcombine.high %v6354_v51, %v6362_v43  ;;  %v20243_v13 = vld [vmem:[%s23773_s24 + $0xa0] sm:$0xff]   ;;  %v6384_v48 = vlaneseq }
0x1131   :  { %v20615_v23 = vpop.eup %20614  ;;  %6738 = vmatprep.subr.bf16.mxu0 %v18019_v9  ;;  %6791 = vmatprep.subr.bf16.mxu1 %v18021_v15  ;;  %v20240_v9 = vld [vmem:[%s23773_s24 + $0x60] sm:$0xff]  }
0x1132   :  { %v6325_v29 = vmul.f32 %v20615_v23, %v22083_v19  ;;  %v22133_v32 = vadd.f32 %v17997_v53, %v6334_v25  ;;  %v6368_v19 = vld [vmem:[%s23770_s29 + $0xa0] sm:$0xff]  ;;  %v20249_v23 = vld [vmem:[%s23773_s24 + $0xf0] sm:$0xff]   ;;  %v20252_v25 = vld [vmem:[%s23773_s24 + $0x78] sm:$0xff]   ;;  %v6385_v52 = vshrl.u32 %v6384_v48, 7 }
0x1133   :  { %v18023_v57 = vcombine.high %v6368_v19, %v6376_v45  ;;  %v18022_v55 = vcombine.low %v6368_v19, %v6376_v45  ;;  %v20241_v15 = vld [vmem:[%s23773_s24 + $0xe0] sm:$0xff]  }
0x1134   :  { %v6335_v30 = vmul.f32 %v17996_v47, %v6325_v29  ;;  %6739 = vmatpush1.bf16.msra.mxu0 %v18018_v20  ;;  %6792 = vmatpush1.bf16.msra.mxu1 %v18020_v22  ;;  %v20226_v47 = vld [vmem:[%s23773_s24] sm:$0xff]   ;;  %v20247_v20 = vld [vmem:[%s23773_s24 + $0xa8] sm:$0xff]   ;;  %v20248_v22 = vld [vmem:[%s23773_s24 + $0x70] sm:$0xff]   ;;  %v22236_v51 = vsub.s32 3, %v6385_v52 }
0x1135   :  { %6842 = vmatprep.subr.bf16.mxu0 %v18007_v16  ;;  %6895 = vmatprep.subr.bf16.mxu1 %v18009_v24  ;;  %v20250_v16 = vld [vmem:[%s23773_s24 + $0x30] sm:$0xff]   ;;  %v20253_v29 = vld [vmem:[%s23773_s24 + $0xf8] sm:$0xff]   ;;  %v20256_v19 = vld [vmem:[%s23773_s24 + $0x140] sm:$0xff]  }
0x1136   :  { %v22135_v37 = vadd.f32 %v17997_v53, %v6335_v30  ;;  %v20230_v53 = vld [vmem:[%s23773_s24 + $0x8] sm:$0xff]   ;;  %v20251_v24 = vld [vmem:[%s23773_s24 + $0xb0] sm:$0xff]   ;;  %v20254_v30 = vld [vmem:[%s23773_s24 + $0x38] sm:$0xff]  }
0x1137   :  { %v20257_v45 = vld [vmem:[%s23773_s24 + $0x1c0] sm:$0xff]  }
0x1138   :  { %v22139_v34 = vpack.c.bf16 %v22135_v37, %v22133_v32 }
0x113a   :  { %18031 = vmatmul.mubr.msk.bf16.gmra.mrb[80].mxu0 %vm394_vm2, %v22139_v34  ;;  %18033 = vmatmul.mubr.msk.bf16.gmra.mrb[68].mxu1 %vm394_vm2, %v22139_v34 }
0x113b   :  { %6768 = vmatprep.mubr.bf16.mxu0 %v21058_v42  ;;  %6821 = vmatprep.mubr.bf16.mxu1 %v21058_v42 }
0x1142   :  { %18034 = vmatmul.mubr.msk.bf16.vlgmr.msra.gmra.mrb[84].mxu0 %vm394_vm2, %v22119_v7  ;;  %18036 = vmatmul.mubr.msk.bf16.vlgmr.msra.gmra.mrb[72].mxu1 %vm394_vm2, %v22119_v7 }
0x1143   :  { %6778 = vmatprep.mubr.bf16.mxu0 %v21058_v42  ;;  %6831 = vmatprep.mubr.bf16.mxu1 %v21058_v42 }
0x1144   :  { %6843 = vmatpush1.bf16.msra.mxu0 %v18006_v44  ;;  %6896 = vmatpush1.bf16.msra.mxu1 %v18008_v54  ;;  %v22227_v44 = vsub.s32 0, %v6385_v52  ;;  %v22229_v54 = vsub.s32 2, %v6385_v52 }
0x1145   :  { %6844 = vmatprep.subr.bf16.mxu0 %v18023_v57  ;;  %6897 = vmatprep.subr.bf16.mxu1 %v18025_v36  ;;  %v22232_v57 = vld [vmem:[%s23774_s22] sm:$0xff]  ;;  %v22234_v36 = vsub.s32 1, %v6385_v52 }
0x1146   :  { %v22240_v43 = vrot.slane %v22232_v57, %v22227_v44  ;;  %v22244_v46 = vrot.slane %v22232_v57, %v22229_v54 }
0x1147   :  { %v22248_v49 = vrot.slane %v22232_v57, %v22234_v36 }
0x1148   :  { %6845 = vmatpush1.bf16.msra.mxu0 %v18022_v55  ;;  %6898 = vmatpush1.bf16.msra.mxu1 %v18024_v50  ;;  %v22252_v55 = vrot.slane %v22232_v57, %v22236_v51 }
0x1149   :  { %6948 = vmatprep.subr.bf16.mxu0 %v18011_v56  ;;  %7001 = vmatprep.subr.bf16.mxu1 %v18013_v58 }
0x114a   :  { %18035 = vmatmul.mubr.msk.bf16.gmra.mrb[88].mxu0 %vm394_vm2, %v22139_v34  ;;  %18037 = vmatmul.mubr.msk.bf16.gmra.mrb[76].mxu1 %vm394_vm2, %v22139_v34 }
0x114b   :  { %6874 = vmatprep.mubr.bf16.mxu0 %v21058_v42  ;;  %6927 = vmatprep.mubr.bf16.mxu1 %v21058_v42 }
0x1152   :  { %18038 = vmatmul.mubr.msk.bf16.vlgmr.msra.gmra.mrb[92].mxu0 %vm394_vm2, %v22119_v7  ;;  %18040 = vmatmul.mubr.msk.bf16.vlgmr.msra.gmra.mrb[80].mxu1 %vm394_vm2, %v22119_v7 }
0x1153   :  { %6884 = vmatprep.mubr.bf16.mxu0 %v21058_v42  ;;  %6937 = vmatprep.mubr.bf16.mxu1 %v21058_v42 }
0x1154   :  { %6949 = vmatpush1.bf16.msra.mxu0 %v18010_v59  ;;  %7002 = vmatpush1.bf16.msra.mxu1 %v18012_v63 }
0x1155   :  { %6950 = vmatprep.subr.bf16.mxu0 %v18027_v2  ;;  %7003 = vmatprep.subr.bf16.mxu1 %v18029_v3 }
0x1158   :  { %6951 = vmatpush1.bf16.msra.mxu0 %v18026_v40  ;;  %7004 = vmatpush1.bf16.msra.mxu1 %v18028_v4 }
0x1159   :  { %18685 = vmatprep.subr.bf16.mxu0 %v20224_v38  ;;  %18713 = vmatprep.subr.bf16.mxu1 %v20225_v62 }
0x115a   :  { %18039 = vmatmul.mubr.msk.bf16.gmra.mrb[96].mxu0 %vm394_vm2, %v22139_v34  ;;  %18041 = vmatmul.mubr.msk.bf16.gmra.mrb[84].mxu1 %vm394_vm2, %v22139_v34 }
0x115b   :  { %6980 = vmatprep.mubr.bf16.mxu0 %v21058_v42  ;;  %7033 = vmatprep.mubr.bf16.mxu1 %v21058_v42 }
0x1162   :  { %18042 = vmatmul.mubr.msk.bf16.vlgmr.msra.gmra.mrb[100].mxu0 %vm394_vm2, %v22119_v7  ;;  %18044 = vmatmul.mubr.msk.bf16.vlgmr.msra.gmra.mrb[88].mxu1 %vm394_vm2, %v22119_v7  ;;  %v20238_v7 = vld [vmem:[%s23773_s24 + $0x18] sm:$0xff]  }
0x1163   :  { %6990 = vmatprep.mubr.bf16.mxu0 %v21058_v42  ;;  %7043 = vmatprep.mubr.bf16.mxu1 %v21058_v42 }
0x1164   :  { %18686 = vmatpush3.bf16.msra.mxu0 %v20226_v47  ;;  %18714 = vmatpush3.bf16.msra.mxu1 %v20227_v5 }
0x1165   :  { %18687 = vmatprep.subr.bf16.mxu0 %v20228_v6  ;;  %18715 = vmatprep.subr.bf16.mxu1 %v20229_v8 }
0x1168   :  { %18688 = vmatpush3.bf16.msra.mxu0 %v20230_v53  ;;  %18716 = vmatpush3.bf16.msra.mxu1 %v20231_v21 }
0x1169   :  { %18689 = vmatprep.subr.bf16.mxu0 %v20232_v18  ;;  %18717 = vmatprep.subr.bf16.mxu1 %v20233_v10 }
0x116a   :  { %18043 = vmatmul.mubr.msk.bf16.gmra.mrb[104].mxu0 %vm394_vm2, %v22139_v34  ;;  %18045 = vmatmul.mubr.msk.bf16.gmra.mrb[92].mxu1 %vm394_vm2, %v22139_v34  ;;  %v20255_v34 = vld [vmem:[%s23773_s24 + $0xb8] sm:$0xff]  }
0x116c   :  { %18690 = vmatpush3.bf16.msra.mxu0 %v20234_v12  ;;  %18718 = vmatpush3.bf16.msra.mxu1 %v20235_v26 }
0x116d   :  { %18691 = vmatprep.subr.bf16.mxu0 %v20236_v27  ;;  %18719 = vmatprep.subr.bf16.mxu1 %v20237_v35 }
0x1170   :  { %18692 = vmatpush3.bf16.msra.mxu0 %v20238_v7  ;;  %18720 = vmatpush3.bf16.msra.mxu1 %v20239_v39  ;;  %v20258_v39 = vld [vmem:[%s23773_s24 + $0x100] sm:$0xff]  }
0x1171   :  { %18693 = vmatprep.subr.bf16.mxu0 %v20240_v9  ;;  %18721 = vmatprep.subr.bf16.mxu1 %v20241_v15  ;;  %v20259_v9 = vld [vmem:[%s23773_s24 + $0x180] sm:$0xff]   ;;  %v20260_v15 = vld [vmem:[%s23773_s24 + $0x148] sm:$0xff]  }
0x1174   :  { %18694 = vmatpush3.bf16.msra.mxu0 %v20242_v17  ;;  %18722 = vmatpush3.bf16.msra.mxu1 %v20243_v13  ;;  %v20261_v17 = vld [vmem:[%s23773_s24 + $0x1c8] sm:$0xff]   ;;  %v22266_v13 = vsub.s32 4, %v6385_v52 }
0x1175   :  { %18695 = vmatprep.subr.bf16.mxu0 %v20244_v33  ;;  %18723 = vmatprep.subr.bf16.mxu1 %v20245_v31  ;;  %v22268_v33 = vsub.s32 6, %v6385_v52  ;;  %v22270_v31 = vsub.s32 5, %v6385_v52 }
0x1178   :  { %18696 = vmatpush3.bf16.msra.mxu0 %v20246_v14  ;;  %18724 = vmatpush3.bf16.msra.mxu1 %v20247_v20 }
0x1179   :  { %18697 = vmatprep.subr.bf16.mxu0 %v20248_v22  ;;  %18725 = vmatprep.subr.bf16.mxu1 %v20249_v23  ;;  %v20262_v22 = vld [vmem:[%s23773_s24 + $0x108] sm:$0xff]  }
0x117a   :  { %v20263_v23 = vld [vmem:[%s23773_s24 + $0x188] sm:$0xff]  }
0x117c   :  { %18698 = vmatpush3.bf16.msra.mxu0 %v20250_v16  ;;  %18726 = vmatpush3.bf16.msra.mxu1 %v20251_v24  ;;  %v22274_v16 = vsub.s32 7, %v6385_v52  ;;  %v22284_v52 = vrot.slane %v22232_v57, %v22266_v13 }
0x117d   :  { %18699 = vmatprep.subr.bf16.mxu0 %v20252_v25  ;;  %18727 = vmatprep.subr.bf16.mxu1 %v20253_v29 }
0x1180   :  { %18700 = vmatpush3.bf16.msra.mxu0 %v20254_v30  ;;  %18728 = vmatpush3.bf16.msra.mxu1 %v20255_v34  ;;  %v20264_v34 = vld [vmem:[%s23773_s24 + $0x150] sm:$0xff]  }
0x1181   :  { %18741 = vmatprep.subr.bf16.mxu0 %v20256_v19  ;;  %18769 = vmatprep.subr.bf16.mxu1 %v20257_v45  ;;  %v20265_v19 = vld [vmem:[%s23773_s24 + $0x1d0] sm:$0xff]  }
0x1201   :  { %v6664_v50 = vpop.f32.mrb[76].mxu0  ;;  %v6717_v56 = vpop.f32.mrb[64].mxu1 }
0x1202   :  { %v6665_v58 = vadd.f32 %v6664_v50, %v22240_v43  ;;  %v6718_v60 = vadd.f32 %v6717_v56, %v22244_v46  ;;  %v6666_v61 = vpop.f32.mrb[77].mxu0  ;;  %v6719_v0 = vpop.f32.mrb[65].mxu1 }
0x1203   :  { %v6667_v1 = vadd.f32 %v6666_v61, %v22248_v49  ;;  %v6720_v59 = vadd.f32 %v6719_v0, %v22252_v55  ;;  %v6668_v63 = vpop.f32.mrb[78].mxu0  ;;  %v6721_v2 = vpop.f32.mrb[66].mxu1 }
0x1204   :  { %v6669_v3 = vadd.f32 %v6668_v63, %v22240_v43  ;;  %v6722_v40 = vadd.f32 %v6721_v2, %v22244_v46  ;;  %v6670_v4 = vpop.f32.mrb[79].mxu0  ;;  %v6723_v38 = vpop.f32.mrb[67].mxu1  ;;  %v7054_v5 = vmax.f32 %v6665_v58, 0.0  ;;  %v7056_v6 = vmax.f32 %v6718_v60, 0.0 }
0x1205   :  { %v6671_v62 = vadd.f32 %v6670_v4, %v22248_v49  ;;  %v6724_v47 = vadd.f32 %v6723_v38, %v22252_v55  ;;  %v7055_v21 = vmax.f32 %v6667_v1, 0.0  ;;  %v7057_v18 = vmax.f32 %v6720_v59, 0.0 }
0x1206   :  { %v7070_v8 = vmax.f32 %v6669_v3, 0.0  ;;  %v7072_v53 = vmax.f32 %v6722_v40, 0.0  ;;  %v22290_v1 = vrot.slane %v22232_v57, %v22268_v33  ;;  %v22294_v59 = vrot.slane %v22232_v57, %v22270_v31 }
0x1207   :  { %v7071_v10 = vmax.f32 %v6671_v62, 0.0  ;;  %v7073_v12 = vmax.f32 %v6724_v47, 0.0  ;;  %v22302_v3 = vrot.slane %v22232_v57, %v22274_v16  ;;  %v20268_v47 = vld [vmem:[%s23773_s24 + $0x158] sm:$0xff]  }
0x1208   :  { %v7118_v26 = vpack.c.bf16 %v7070_v8, %v7054_v5  ;;  %v7120_v27 = vpack.c.bf16 %v7072_v53, %v7056_v6 }
0x1209   :  { %v7119_v35 = vpack.c.bf16 %v7071_v10, %v7055_v21  ;;  %v7121_v7 = vpack.c.bf16 %v7073_v12, %v7057_v18 }
0x120b   :  { %8213 = vmatprep.mubr.bf16.mxu0 %v7119_v35  ;;  %8262 = vmatprep.mubr.bf16.mxu1 %v7121_v7 }
0x120c   :  { %8214 = vmatmul.mubr.bf16.vlgmr.msra.gmra.mrb[108].mxu0 %v7118_v26  ;;  %8263 = vmatmul.mubr.bf16.vlgmr.msra.gmra.mrb[96].mxu1 %v7120_v27  ;;  %v20270_v26 = vld [vmem:[%s23773_s24 + $0x118] sm:$0xff]  }
0x120d   :  { %18742 = vmatpush3.bf16.msra.mxu0 %v20258_v39  ;;  %18770 = vmatpush3.bf16.msra.mxu1 %v20259_v9  ;;  %v6674_v14 = vpop.f32.mrb[80].mxu0  ;;  %v6727_v20 = vpop.f32.mrb[68].mxu1  ;;  %v20271_v27 = vld [vmem:[%s23773_s24 + $0x198] sm:$0xff]  }
0x120e   :  { %v6675_v24 = vadd.f32 %v6674_v14, %v22240_v43  ;;  %v6728_v25 = vadd.f32 %v6727_v20, %v22244_v46  ;;  %v6676_v29 = vpop.f32.mrb[81].mxu0  ;;  %v6729_v30 = vpop.f32.mrb[69].mxu1  ;;  %18743 = vmatprep.subr.bf16.mxu0 %v20260_v15  ;;  %18771 = vmatprep.subr.bf16.mxu1 %v20261_v17  ;;  %v20272_v15 = vld [vmem:[%s23773_s24 + $0x160] sm:$0xff]  }
0x120f   :  { %v6677_v45 = vadd.f32 %v6676_v29, %v22248_v49  ;;  %v6730_v48 = vadd.f32 %v6729_v30, %v22252_v55  ;;  %v6678_v50 = vpop.f32.mrb[82].mxu0  ;;  %v6731_v56 = vpop.f32.mrb[70].mxu1  ;;  %v20273_v17 = vld [vmem:[%s23773_s24 + $0x1e0] sm:$0xff]  }
0x1210   :  { %v6679_v58 = vadd.f32 %v6678_v50, %v22240_v43  ;;  %v6732_v60 = vadd.f32 %v6731_v56, %v22244_v46  ;;  %v6680_v61 = vpop.f32.mrb[83].mxu0  ;;  %v6733_v0 = vpop.f32.mrb[71].mxu1  ;;  %v20266_v43 = vld [vmem:[%s23773_s24 + $0x110] sm:$0xff]   ;;  %v7086_v40 = vmax.f32 %v6675_v24, 0.0  ;;  %v7088_v4 = vmax.f32 %v6728_v25, 0.0 }
0x1211   :  { %v6681_v63 = vadd.f32 %v6680_v61, %v22248_v49  ;;  %v6734_v2 = vadd.f32 %v6733_v0, %v22252_v55  ;;  %18744 = vmatpush3.bf16.msra.mxu0 %v20262_v22  ;;  %18772 = vmatpush3.bf16.msra.mxu1 %v20263_v23  ;;  %v20267_v46 = vld [vmem:[%s23773_s24 + $0x190] sm:$0xff]   ;;  %v20269_v49 = vld [vmem:[%s23773_s24 + $0x1d8] sm:$0xff]   ;;  %v7087_v5 = vmax.f32 %v6677_v45, 0.0  ;;  %v7089_v55 = vmax.f32 %v6730_v48, 0.0  ;;  %v20274_v45 = vld [vmem:[%s23773_s24 + $0x120] sm:$0xff]  }
0x1212   :  { %v7102_v38 = vmax.f32 %v6679_v58, 0.0  ;;  %v7104_v62 = vmax.f32 %v6732_v60, 0.0  ;;  %18745 = vmatprep.subr.bf16.mxu0 %v20264_v34  ;;  %18773 = vmatprep.subr.bf16.mxu1 %v20265_v19  ;;  %v20275_v48 = vld [vmem:[%s23773_s24 + $0x1a0] sm:$0xff]   ;;  %v20276_v61 = vld [vmem:[%s23773_s24 + $0x168] sm:$0xff]  }
0x1213   :  { %v7103_v6 = vmax.f32 %v6681_v63, 0.0  ;;  %v7105_v8 = vmax.f32 %v6734_v2, 0.0  ;;  %v20277_v0 = vld [vmem:[%s23773_s24 + $0x1e8] sm:$0xff]  }
0x1214   :  { %v7134_v53 = vpack.c.bf16 %v7102_v38, %v7086_v40  ;;  %v7136_v21 = vpack.c.bf16 %v7104_v62, %v7088_v4  ;;  %v22327_v38 = vld [vmem:[%s23774_s22 + $0x8] sm:$0xff] }
0x1215   :  { %v7135_v57 = vpack.c.bf16 %v7103_v6, %v7087_v5  ;;  %v7137_v18 = vpack.c.bf16 %v7105_v8, %v7089_v55  ;;  %18746 = vmatpush3.bf16.msra.mxu0 %v20266_v43  ;;  %18774 = vmatpush3.bf16.msra.mxu1 %v20267_v46  ;;  %v6770_v10 = vpop.f32.mrb[84].mxu0  ;;  %v6823_v12 = vpop.f32.mrb[72].mxu1  ;;  %v20278_v55 = vld [vmem:[%s23773_s24 + $0x128] sm:$0xff]  }
0x1216   :  { %v6771_v35 = vadd.f32 %v6770_v10, %v22284_v52  ;;  %v6824_v7 = vadd.f32 %v6823_v12, %v22290_v1  ;;  %v6772_v39 = vpop.f32.mrb[85].mxu0  ;;  %v6825_v9 = vpop.f32.mrb[73].mxu1  ;;  %18747 = vmatprep.subr.bf16.mxu0 %v20268_v47  ;;  %18775 = vmatprep.subr.bf16.mxu1 %v20269_v49  ;;  %v20279_v6 = vld [vmem:[%s23773_s24 + $0x1a8] sm:$0xff]   ;;  %v20281_v10 = vld [vmem:[%s23773_s24 + $0x1f0] sm:$0xff]  }
0x1217   :  { %v6773_v14 = vadd.f32 %v6772_v39, %v22294_v59  ;;  %v6826_v20 = vadd.f32 %v6825_v9, %v22302_v3  ;;  %v6774_v22 = vpop.f32.mrb[86].mxu0  ;;  %v6827_v23 = vpop.f32.mrb[74].mxu1  ;;  %8221 = vmatprep.mubr.bf16.mxu0 %v7135_v57  ;;  %8270 = vmatprep.mubr.bf16.mxu1 %v7137_v18  ;;  %v20280_v18 = vld [vmem:[%s23773_s24 + $0x170] sm:$0xff]  }
0x1218   :  { %v6775_v24 = vadd.f32 %v6774_v22, %v22284_v52  ;;  %v6828_v25 = vadd.f32 %v6827_v23, %v22290_v1  ;;  %v6776_v29 = vpop.f32.mrb[87].mxu0  ;;  %v6829_v30 = vpop.f32.mrb[75].mxu1  ;;  %8222 = vmatmul.mubr.bf16.gmra.mrb[112].mxu0 %v7134_v53  ;;  %8271 = vmatmul.mubr.bf16.gmra.mrb[100].mxu1 %v7136_v21  ;;  %v7058_v50 = vmax.f32 %v6771_v35, 0.0  ;;  %v7060_v56 = vmax.f32 %v6824_v7, 0.0 }
0x1219   :  { %v6777_v34 = vadd.f32 %v6776_v29, %v22294_v59  ;;  %v6830_v19 = vadd.f32 %v6829_v30, %v22302_v3  ;;  %18748 = vmatpush3.bf16.msra.mxu0 %v20270_v26  ;;  %18776 = vmatpush3.bf16.msra.mxu1 %v20271_v27  ;;  %v7059_v63 = vmax.f32 %v6773_v14, 0.0  ;;  %v7061_v2 = vmax.f32 %v6826_v20, 0.0 }
0x121a   :  { %v7074_v58 = vmax.f32 %v6775_v24, 0.0  ;;  %v7076_v60 = vmax.f32 %v6828_v25, 0.0  ;;  %18749 = vmatprep.subr.bf16.mxu0 %v20272_v15  ;;  %18777 = vmatprep.subr.bf16.mxu1 %v20273_v17  ;;  %v22339_v7 = vrot.slane %v22327_v38, %v22227_v44  ;;  %v22345_v14 = vrot.slane %v22327_v38, %v22229_v54 }
0x121b   :  { %v7075_v43 = vmax.f32 %v6777_v34, 0.0  ;;  %v7077_v46 = vmax.f32 %v6830_v19, 0.0  ;;  %v22349_v20 = vrot.slane %v22327_v38, %v22234_v36  ;;  %v22357_v24 = vrot.slane %v22327_v38, %v22236_v51  ;;  %v20284_v19 = vld [vmem:[%s23773_s24 + $0x178] sm:$0xff]  }
0x121c   :  { %v22322_v40 = vpack.c.bf16 %v7074_v58, %v7058_v50  ;;  %v22324_v4 = vpack.c.bf16 %v7076_v60, %v7060_v56 }
0x121d   :  { %v7123_v62 = vpack.c.bf16 %v7075_v43, %v7059_v63  ;;  %v7125_v47 = vpack.c.bf16 %v7077_v46, %v7061_v2  ;;  %18750 = vmatpush3.bf16.msra.mxu0 %v20274_v45  ;;  %18778 = vmatpush3.bf16.msra.mxu1 %v20275_v48  ;;  %v6780_v49 = vpop.f32.mrb[88].mxu0  ;;  %v6833_v5 = vpop.f32.mrb[76].mxu1  ;;  %v20286_v2 = vld [vmem:[%s23773_s24 + $0x138] sm:$0xff]  }
0x121e   :  { %v6781_v8 = vadd.f32 %v6780_v49, %v22284_v52  ;;  %v6834_v53 = vadd.f32 %v6833_v5, %v22290_v1  ;;  %v6782_v21 = vpop.f32.mrb[89].mxu0  ;;  %v6835_v57 = vpop.f32.mrb[77].mxu1  ;;  %18751 = vmatprep.subr.bf16.mxu0 %v20276_v61  ;;  %18779 = vmatprep.subr.bf16.mxu1 %v20277_v0  ;;  %v20287_v43 = vld [vmem:[%s23773_s24 + $0x1b8] sm:$0xff]   ;;  %v20288_v5 = vld [vmem:[%s23773_s24 + $0x240] sm:$0xff]  }
0x121f   :  { %v6783_v12 = vadd.f32 %v6782_v21, %v22294_v59  ;;  %v6836_v26 = vadd.f32 %v6835_v57, %v22302_v3  ;;  %v6784_v27 = vpop.f32.mrb[90].mxu0  ;;  %v6837_v35 = vpop.f32.mrb[78].mxu1  ;;  %8311 = vmatprep.mubr.bf16.mxu0 %v7123_v62  ;;  %8360 = vmatprep.mubr.bf16.mxu1 %v7125_v47 }
0x1220   :  { %v6785_v39 = vadd.f32 %v6784_v27, %v22284_v52  ;;  %v6838_v9 = vadd.f32 %v6837_v35, %v22290_v1  ;;  %v6786_v15 = vpop.f32.mrb[91].mxu0  ;;  %v6839_v17 = vpop.f32.mrb[79].mxu1  ;;  %v20282_v52 = vld [vmem:[%s23773_s24 + $0x130] sm:$0xff]   ;;  %v7090_v25 = vmax.f32 %v6781_v8, 0.0  ;;  %v7092_v29 = vmax.f32 %v6834_v53, 0.0 }
0x1221   :  { %v6787_v22 = vadd.f32 %v6786_v15, %v22294_v59  ;;  %v6840_v23 = vadd.f32 %v6839_v17, %v22302_v3  ;;  %18752 = vmatpush3.bf16.msra.mxu0 %v20278_v55  ;;  %18780 = vmatpush3.bf16.msra.mxu1 %v20279_v6  ;;  %v20283_v1 = vld [vmem:[%s23773_s24 + $0x1b0] sm:$0xff]   ;;  %v20285_v59 = vld [vmem:[%s23773_s24 + $0x1f8] sm:$0xff]   ;;  %v7091_v45 = vmax.f32 %v6783_v12, 0.0  ;;  %v7093_v3 = vmax.f32 %v6836_v26, 0.0  ;;  %v20289_v55 = vld [vmem:[%s23773_s24 + $0x2c0] sm:$0xff]  }
0x1222   :  { %v7106_v30 = vmax.f32 %v6785_v39, 0.0  ;;  %v7108_v34 = vmax.f32 %v6838_v9, 0.0  ;;  %18753 = vmatprep.subr.bf16.mxu0 %v20280_v18  ;;  %18781 = vmatprep.subr.bf16.mxu1 %v20281_v10  ;;  %v20290_v17 = vld [vmem:[%s23773_s24 + $0x200] sm:$0xff]  }
0x1223   :  { %v7107_v48 = vmax.f32 %v6787_v22, 0.0  ;;  %v7109_v50 = vmax.f32 %v6840_v23, 0.0  ;;  %v20291_v22 = vld [vmem:[%s23773_s24 + $0x280] sm:$0xff]  }
0x1224   :  { %v22361_v56 = vpack.c.bf16 %v7106_v30, %v7090_v25  ;;  %v22363_v58 = vpack.c.bf16 %v7108_v34, %v7092_v29  ;;  %v20292_v29 = vld [vmem:[%s23773_s24 + $0x248] sm:$0xff]  }
0x1225   :  { %v7139_v60 = vpack.c.bf16 %v7107_v48, %v7091_v45  ;;  %v7141_v61 = vpack.c.bf16 %v7109_v50, %v7093_v3  ;;  %18754 = vmatpush3.bf16.msra.mxu0 %v20282_v52  ;;  %18782 = vmatpush3.bf16.msra.mxu1 %v20283_v1  ;;  %v6876_v0 = vpop.f32.mrb[92].mxu0  ;;  %v6929_v63 = vpop.f32.mrb[80].mxu1  ;;  %v20293_v30 = vld [vmem:[%s23773_s24 + $0x2c8] sm:$0xff]  }
0x1226   :  { %v6877_v46 = vadd.f32 %v6876_v0, %v22339_v7  ;;  %v6930_v62 = vadd.f32 %v6929_v63, %v22345_v14  ;;  %v6878_v47 = vpop.f32.mrb[93].mxu0  ;;  %v6931_v49 = vpop.f32.mrb[81].mxu1  ;;  %18755 = vmatprep.subr.bf16.mxu0 %v20284_v19  ;;  %18783 = vmatprep.subr.bf16.mxu1 %v20285_v59 }
0x1227   :  { %v6879_v6 = vadd.f32 %v6878_v47, %v22349_v20  ;;  %v6932_v8 = vadd.f32 %v6931_v49, %v22357_v24  ;;  %v6880_v53 = vpop.f32.mrb[94].mxu0  ;;  %v6933_v21 = vpop.f32.mrb[82].mxu1  ;;  %v20297_v47 = vld [vmem:[%s23773_s24 + $0x2d0] sm:$0xff]  }
0x1228   :  { %v6881_v57 = vadd.f32 %v6880_v53, %v22339_v7  ;;  %v6934_v18 = vadd.f32 %v6933_v21, %v22345_v14  ;;  %v6882_v10 = vpop.f32.mrb[95].mxu0  ;;  %v6935_v12 = vpop.f32.mrb[83].mxu1  ;;  %v7062_v35 = vmax.f32 %v6877_v46, 0.0  ;;  %v7064_v39 = vmax.f32 %v6930_v62, 0.0  ;;  %v20296_v62 = vld [vmem:[%s23773_s24 + $0x250] sm:$0xff]  }
0x1229   :  { %v6883_v26 = vadd.f32 %v6882_v10, %v22349_v20  ;;  %v6936_v27 = vadd.f32 %v6935_v12, %v22357_v24  ;;  %18756 = vmatpush3.bf16.msra.mxu0 %v20286_v2  ;;  %18784 = vmatpush3.bf16.msra.mxu1 %v20287_v43  ;;  %v7063_v23 = vmax.f32 %v6879_v6, 0.0  ;;  %v7065_v52 = vmax.f32 %v6932_v8, 0.0  ;;  %v20294_v43 = vld [vmem:[%s23773_s24 + $0x208] sm:$0xff]  }
0x122a   :  { %v7078_v9 = vmax.f32 %v6881_v57, 0.0  ;;  %v7080_v15 = vmax.f32 %v6934_v18, 0.0  ;;  %18797 = vmatprep.subr.bf16.mxu0 %v20288_v5  ;;  %18825 = vmatprep.subr.bf16.mxu1 %v20289_v55  ;;  %v22399_v8 = vrot.slane %v22327_v38, %v22266_v13  ;;  %v22403_v53 = vrot.slane %v22327_v38, %v22268_v33 }
0x122b   :  { %v7079_v1 = vmax.f32 %v6883_v26, 0.0  ;;  %v7081_v25 = vmax.f32 %v6936_v27, 0.0  ;;  %v20298_v27 = vld [vmem:[%s23773_s24 + $0x210] sm:$0xff]  }
0x122c   :  { %v22381_v34 = vpack.c.bf16 %v7078_v9, %v7062_v35  ;;  %v22383_v19 = vpack.c.bf16 %v7080_v15, %v7064_v39  ;;  %8312 = vmatmul.mubr.bf16.vlgmr.msra.gmra.mrb[116].mxu0 %v22322_v40  ;;  %8361 = vmatmul.mubr.bf16.vlgmr.msra.gmra.mrb[104].mxu1 %v22324_v4  ;;  %v20295_v40 = vld [vmem:[%s23773_s24 + $0x288] sm:$0xff]   ;;  %v20300_v15 = vld [vmem:[%s23773_s24 + $0x258] sm:$0xff]  }
0x122d   :  { %v7127_v59 = vpack.c.bf16 %v7079_v1, %v7063_v23  ;;  %v7129_v45 = vpack.c.bf16 %v7081_v25, %v7065_v52  ;;  %8319 = vmatprep.mubr.bf16.mxu0 %v7139_v60  ;;  %8368 = vmatprep.mubr.bf16.mxu1 %v7141_v61  ;;  %v6886_v3 = vpop.f32.mrb[96].mxu0  ;;  %v6939_v48 = vpop.f32.mrb[84].mxu1 }
0x122e   :  { %18798 = vmatpush3.bf16.msra.mxu0 %v20290_v17  ;;  %18826 = vmatpush3.bf16.msra.mxu1 %v20291_v22  ;;  %v6887_v50 = vadd.f32 %v6886_v3, %v22339_v7  ;;  %v6940_v0 = vadd.f32 %v6939_v48, %v22345_v14  ;;  %v6888_v63 = vpop.f32.mrb[97].mxu0  ;;  %v6941_v2 = vpop.f32.mrb[85].mxu1  ;;  %v20301_v17 = vld [vmem:[%s23773_s24 + $0x2d8] sm:$0xff]  }
0x122f   :  { %v6889_v4 = vadd.f32 %v6888_v63, %v22349_v20  ;;  %v6942_v46 = vadd.f32 %v6941_v2, %v22357_v24  ;;  %v6890_v60 = vpop.f32.mrb[98].mxu0  ;;  %v6943_v61 = vpop.f32.mrb[86].mxu1  ;;  %18799 = vmatprep.subr.bf16.mxu0 %v20292_v29  ;;  %18827 = vmatprep.subr.bf16.mxu1 %v20293_v30  ;;  %v20302_v48 = vld [vmem:[%s23773_s24 + $0x218] sm:$0xff]   ;;  %v20304_v63 = vld [vmem:[%s23773_s24 + $0x260] sm:$0xff]  }
0x1230   :  { %v6891_v49 = vadd.f32 %v6890_v60, %v22339_v7  ;;  %v6944_v5 = vadd.f32 %v6943_v61, %v22345_v14  ;;  %v6892_v55 = vpop.f32.mrb[99].mxu0  ;;  %v6945_v6 = vpop.f32.mrb[87].mxu1  ;;  %v22409_v7 = vrot.slane %v22327_v38, %v22270_v31  ;;  %v22413_v14 = vrot.slane %v22327_v38, %v22274_v16  ;;  %v20305_v2 = vld [vmem:[%s23773_s24 + $0x2e0] sm:$0xff]  }
0x1231   :  { %v6893_v21 = vadd.f32 %v6892_v55, %v22349_v20  ;;  %v6946_v57 = vadd.f32 %v6945_v6, %v22357_v24  ;;  %v7094_v18 = vmax.f32 %v6887_v50, 0.0  ;;  %v7096_v10 = vmax.f32 %v6940_v0, 0.0  ;;  %v20299_v20 = vld [vmem:[%s23773_s24 + $0x290] sm:$0xff]   ;;  %v20306_v55 = vld [vmem:[%s23773_s24 + $0x220] sm:$0xff]  }
0x1232   :  { %v7110_v12 = vmax.f32 %v6891_v49, 0.0  ;;  %v7112_v26 = vmax.f32 %v6944_v5, 0.0  ;;  %18800 = vmatpush3.bf16.msra.mxu0 %v20294_v43  ;;  %18828 = vmatpush3.bf16.msra.mxu1 %v20295_v40  ;;  %v7095_v35 = vmax.f32 %v6889_v4, 0.0  ;;  %v7097_v24 = vmax.f32 %v6942_v46, 0.0  ;;  %v20307_v6 = vld [vmem:[%s23773_s24 + $0x2a0] sm:$0xff]  }
0x1233   :  { %v7111_v39 = vmax.f32 %v6893_v21, 0.0  ;;  %v7113_v9 = vmax.f32 %v6946_v57, 0.0  ;;  %18801 = vmatprep.subr.bf16.mxu0 %v20296_v62  ;;  %18829 = vmatprep.subr.bf16.mxu1 %v20297_v47 }
0x1234   :  { %v22419_v22 = vpack.c.bf16 %v7110_v12, %v7094_v18  ;;  %v22421_v38 = vpack.c.bf16 %v7112_v26, %v7096_v10  ;;  %8320 = vmatmul.mubr.bf16.gmra.mrb[120].mxu0 %v22361_v56  ;;  %8369 = vmatmul.mubr.bf16.gmra.mrb[108].mxu1 %v22363_v58  ;;  %v20303_v58 = vld [vmem:[%s23773_s24 + $0x298] sm:$0xff]   ;;  %v20308_v12 = vld [vmem:[%s23773_s24 + $0x268] sm:$0xff]  }
0x1235   :  { %v22425_v23 = vpack.c.bf16 %v7111_v39, %v7095_v35  ;;  %v22427_v52 = vpack.c.bf16 %v7113_v9, %v7097_v24  ;;  %8409 = vmatprep.mubr.bf16.mxu0 %v7127_v59  ;;  %8458 = vmatprep.mubr.bf16.mxu1 %v7129_v45  ;;  %v6982_v1 = vpop.f32.mrb[100].mxu0  ;;  %v7035_v25 = vpop.f32.mrb[88].mxu1  ;;  %v20309_v26 = vld [vmem:[%s23773_s24 + $0x2e8] sm:$0xff]  }
0x1236   :  { %18802 = vmatpush3.bf16.msra.mxu0 %v20298_v27  ;;  %18830 = vmatpush3.bf16.msra.mxu1 %v20299_v20  ;;  %v6983_v29 = vadd.f32 %v6982_v1, %v22399_v8  ;;  %v7036_v30 = vadd.f32 %v7035_v25, %v22403_v53  ;;  %v6984_v3 = vpop.f32.mrb[101].mxu0  ;;  %v7037_v56 = vpop.f32.mrb[89].mxu1 }
0x1237   :  { %v6985_v50 = vadd.f32 %v6984_v3, %v22409_v7  ;;  %v7038_v0 = vadd.f32 %v7037_v56, %v22413_v14  ;;  %v6986_v59 = vpop.f32.mrb[102].mxu0  ;;  %v7039_v45 = vpop.f32.mrb[90].mxu1  ;;  %18803 = vmatprep.subr.bf16.mxu0 %v20300_v15  ;;  %18831 = vmatprep.subr.bf16.mxu1 %v20301_v17 }
0x1238   :  { %v6987_v43 = vadd.f32 %v6986_v59, %v22399_v8  ;;  %v7040_v40 = vadd.f32 %v7039_v45, %v22403_v53  ;;  %v6988_v4 = vpop.f32.mrb[103].mxu0  ;;  %v7041_v46 = vpop.f32.mrb[91].mxu1  ;;  %v7066_v62 = vmax.f32 %v6983_v29, 0.0  ;;  %v7068_v47 = vmax.f32 %v7036_v30, 0.0  ;;  %v20310_v29 = vld [vmem:[%s23773_s24 + $0x228] sm:$0xff]  }
0x1239   :  { %v6989_v60 = vadd.f32 %v6988_v4, %v22409_v7  ;;  %v7042_v61 = vadd.f32 %v7041_v46, %v22413_v14  ;;  %v7067_v21 = vmax.f32 %v6985_v50, 0.0  ;;  %v7069_v57 = vmax.f32 %v7038_v0, 0.0  ;;  %v20311_v30 = vld [vmem:[%s23773_s24 + $0x2a8] sm:$0xff]   ;;  %v20312_v50 = vld [vmem:[%s23773_s24 + $0x270] sm:$0xff]  }
0x123a   :  { %v7082_v49 = vmax.f32 %v6987_v43, 0.0  ;;  %v7084_v5 = vmax.f32 %v7040_v40, 0.0  ;;  %18804 = vmatpush3.bf16.msra.mxu0 %v20302_v48  ;;  %18832 = vmatpush3.bf16.msra.mxu1 %v20303_v58  ;;  %v20313_v0 = vld [vmem:[%s23773_s24 + $0x2f0] sm:$0xff]  }
0x123b   :  { %v7083_v18 = vmax.f32 %v6989_v60, 0.0  ;;  %v7085_v10 = vmax.f32 %v7042_v61, 0.0  ;;  %18805 = vmatprep.subr.bf16.mxu0 %v20304_v63  ;;  %18833 = vmatprep.subr.bf16.mxu1 %v20305_v2 }
0x123c   :  { %v22445_v27 = vpack.c.bf16 %v7082_v49, %v7066_v62  ;;  %v22447_v20 = vpack.c.bf16 %v7084_v5, %v7068_v47  ;;  %v20314_v62 = vld [vmem:[%s23773_s24 + $0x230] sm:$0xff]  }
0x123d   :  { %v22449_v35 = vpack.c.bf16 %v7083_v18, %v7067_v21  ;;  %v22451_v24 = vpack.c.bf16 %v7085_v10, %v7069_v57  ;;  %v6992_v39 = vpop.f32.mrb[104].mxu0  ;;  %v7045_v9 = vpop.f32.mrb[92].mxu1  ;;  %v20315_v47 = vld [vmem:[%s23773_s24 + $0x2b0] sm:$0xff]   ;;  %v20318_v18 = vld [vmem:[%s23773_s24 + $0x238] sm:$0xff]  }
0x123e   :  { %18806 = vmatpush3.bf16.msra.mxu0 %v20306_v55  ;;  %18834 = vmatpush3.bf16.msra.mxu1 %v20307_v6  ;;  %v6993_v15 = vadd.f32 %v6992_v39, %v22399_v8  ;;  %v7046_v17 = vadd.f32 %v7045_v9, %v22403_v53  ;;  %v6994_v1 = vpop.f32.mrb[105].mxu0  ;;  %v7047_v25 = vpop.f32.mrb[93].mxu1  ;;  %v20319_v10 = vld [vmem:[%s23773_s24 + $0x2b8] sm:$0xff]   ;;  %v20322_v39 = vld [vmem:[%s23773_s24 + $0x300] sm:$0xff]  }
0x123f   :  { %v6995_v3 = vadd.f32 %v6994_v1, %v22409_v7  ;;  %v7048_v56 = vadd.f32 %v7047_v25, %v22413_v14  ;;  %v6996_v48 = vpop.f32.mrb[106].mxu0  ;;  %v7049_v58 = vpop.f32.mrb[94].mxu1  ;;  %18807 = vmatprep.subr.bf16.mxu0 %v20308_v12  ;;  %18835 = vmatprep.subr.bf16.mxu1 %v20309_v26  ;;  %v20320_v12 = vld [vmem:[%s23773_s24 + $0x340] sm:$0xff]   ;;  %v20326_v1 = vld [vmem:[%s23773_s24 + $0x308] sm:$0xff]  }
0x1240   :  { %v6997_v59 = vadd.f32 %v6996_v48, %v22399_v8  ;;  %v7050_v45 = vadd.f32 %v7049_v58, %v22403_v53  ;;  %v6998_v63 = vpop.f32.mrb[107].mxu0  ;;  %v7051_v2 = vpop.f32.mrb[95].mxu1  ;;  %v7098_v4 = vmax.f32 %v6993_v15, 0.0  ;;  %v7100_v46 = vmax.f32 %v7046_v17, 0.0  ;;  %v20321_v26 = vld [vmem:[%s23773_s24 + $0x3c0] sm:$0xff]   ;;  %v20324_v15 = vld [vmem:[%s23773_s24 + $0x348] sm:$0xff]  }
0x1241   :  { %v6999_v43 = vadd.f32 %v6998_v63, %v22409_v7  ;;  %v7052_v40 = vadd.f32 %v7051_v2, %v22413_v14  ;;  %v7099_v8 = vmax.f32 %v6995_v3, 0.0  ;;  %v7101_v53 = vmax.f32 %v7048_v56, 0.0  ;;  %v20316_v7 = vld [vmem:[%s23773_s24 + $0x278] sm:$0xff]   ;;  %v20323_v9 = vld [vmem:[%s23773_s24 + $0x380] sm:$0xff]   ;;  %v20325_v17 = vld [vmem:[%s23773_s24 + $0x3c8] sm:$0xff]  }
0x1242   :  { %v7114_v60 = vmax.f32 %v6997_v59, 0.0  ;;  %v7116_v61 = vmax.f32 %v7050_v45, 0.0  ;;  %18808 = vmatpush3.bf16.msra.mxu0 %v20310_v29  ;;  %18836 = vmatpush3.bf16.msra.mxu1 %v20311_v30  ;;  %v20317_v14 = vld [vmem:[%s23773_s24 + $0x2f8] sm:$0xff]   ;;  %v20327_v25 = vld [vmem:[%s23773_s24 + $0x388] sm:$0xff]   ;;  %v20328_v29 = vld [vmem:[%s23773_s24 + $0x350] sm:$0xff]  }
0x1243   :  { %v7115_v49 = vmax.f32 %v6999_v43, 0.0  ;;  %v7117_v5 = vmax.f32 %v7052_v40, 0.0  ;;  %18809 = vmatprep.subr.bf16.mxu0 %v20312_v50  ;;  %18837 = vmatprep.subr.bf16.mxu1 %v20313_v0  ;;  %v20329_v30 = vld [vmem:[%s23773_s24 + $0x3d0] sm:$0xff]   ;;  %v20334_v3 = vld [vmem:[%s23773_s24 + $0x318] sm:$0xff]   ;;  %v20336_v48 = vld [vmem:[%s23773_s24 + $0x360] sm:$0xff]  }
0x1244   :  { %v22469_v55 = vpack.c.bf16 %v7114_v60, %v7098_v4  ;;  %v22471_v6 = vpack.c.bf16 %v7116_v61, %v7100_v46  ;;  %v20335_v56 = vld [vmem:[%s23773_s24 + $0x398] sm:$0xff]   ;;  %v20337_v58 = vld [vmem:[%s23773_s24 + $0x3e0] sm:$0xff]   ;;  %v20342_v50 = vld [vmem:[%s23773_s24 + $0x328] sm:$0xff]  }
0x1245   :  { %v22473_v21 = vpack.c.bf16 %v7115_v49, %v7099_v8  ;;  %v22475_v57 = vpack.c.bf16 %v7117_v5, %v7101_v53  ;;  %v20343_v0 = vld [vmem:[%s23773_s24 + $0x3a8] sm:$0xff]   ;;  %v20344_v59 = vld [vmem:[%s23773_s24 + $0x370] sm:$0xff]   ;;  %v20348_v43 = vld [vmem:[%s23773_s24 + $0x378] sm:$0xff]  }
0x1246   :  { %18810 = vmatpush3.bf16.msra.mxu0 %v20314_v62  ;;  %18838 = vmatpush3.bf16.msra.mxu1 %v20315_v47  ;;  %v20345_v45 = vld [vmem:[%s23773_s24 + $0x3f0] sm:$0xff]   ;;  %v20349_v40 = vld [vmem:[%s23773_s24 + $0x3f8] sm:$0xff]   ;;  %v18046_v62 = vld [vmem:[#allocation7] ss:$0 sm:$0xff] }
0x1247   :  { %18811 = vmatprep.subr.bf16.mxu0 %v20316_v7  ;;  %18839 = vmatprep.subr.bf16.mxu1 %v20317_v14  ;;  %v20346_v63 = vld [vmem:[%s23773_s24 + $0x330] sm:$0xff]   ;;  %v20350_v4 = vld [vmem:[%s23773_s24 + $0x338] sm:$0xff]  }
0x1248   :  { %v20347_v2 = vld [vmem:[%s23773_s24 + $0x3b0] sm:$0xff]   ;;  %v20351_v46 = vld [vmem:[%s23773_s24 + $0x3b8] sm:$0xff]  }
0x124a   :  { %18812 = vmatpush3.bf16.msra.mxu0 %v20318_v18  ;;  %18840 = vmatpush3.bf16.msra.mxu1 %v20319_v10 }
0x124b   :  { %18853 = vmatprep.subr.bf16.mxu0 %v20320_v12  ;;  %18881 = vmatprep.subr.bf16.mxu1 %v20321_v26 }
0x124d   :  { %8410 = vmatmul.mubr.bf16.vlgmr.msra.gmra.mrb[124].mxu0 %v22381_v34  ;;  %8459 = vmatmul.mubr.bf16.vlgmr.msra.gmra.mrb[112].mxu1 %v22383_v19  ;;  %v20330_v34 = vld [vmem:[%s23773_s24 + $0x310] sm:$0xff]  }
0x124e   :  { %8417 = vmatprep.mubr.bf16.mxu0 %v22425_v23  ;;  %8466 = vmatprep.mubr.bf16.mxu1 %v22427_v52  ;;  %v20331_v19 = vld [vmem:[%s23773_s24 + $0x390] sm:$0xff]   ;;  %v20332_v23 = vld [vmem:[%s23773_s24 + $0x358] sm:$0xff]  }
0x124f   :  { %18854 = vmatpush3.bf16.msra.mxu0 %v20322_v39  ;;  %18882 = vmatpush3.bf16.msra.mxu1 %v20323_v9  ;;  %v20333_v52 = vld [vmem:[%s23773_s24 + $0x3d8] sm:$0xff]  }
0x1250   :  { %18855 = vmatprep.subr.bf16.mxu0 %v20324_v15  ;;  %18883 = vmatprep.subr.bf16.mxu1 %v20325_v17 }
0x1253   :  { %18856 = vmatpush3.bf16.msra.mxu0 %v20326_v1  ;;  %18884 = vmatpush3.bf16.msra.mxu1 %v20327_v25 }
0x1254   :  { %18857 = vmatprep.subr.bf16.mxu0 %v20328_v29  ;;  %18885 = vmatprep.subr.bf16.mxu1 %v20329_v30 }
0x1255   :  { %8418 = vmatmul.mubr.bf16.gmra.mrb[128].mxu0 %v22419_v22  ;;  %8467 = vmatmul.mubr.bf16.gmra.mrb[116].mxu1 %v22421_v38  ;;  %v20338_v22 = vld [vmem:[%s23773_s24 + $0x320] sm:$0xff]  }
0x1256   :  { %8507 = vmatprep.mubr.bf16.mxu0 %v22449_v35  ;;  %8556 = vmatprep.mubr.bf16.mxu1 %v22451_v24  ;;  %v20339_v38 = vld [vmem:[%s23773_s24 + $0x3a0] sm:$0xff]   ;;  %v20340_v35 = vld [vmem:[%s23773_s24 + $0x368] sm:$0xff]  }
0x1257   :  { %18858 = vmatpush3.bf16.msra.mxu0 %v20330_v34  ;;  %18886 = vmatpush3.bf16.msra.mxu1 %v20331_v19  ;;  %v20341_v24 = vld [vmem:[%s23773_s24 + $0x3e8] sm:$0xff]  }
0x1258   :  { %18859 = vmatprep.subr.bf16.mxu0 %v20332_v23  ;;  %18887 = vmatprep.subr.bf16.mxu1 %v20333_v52 }
0x125b   :  { %18860 = vmatpush3.bf16.msra.mxu0 %v20334_v3  ;;  %18888 = vmatpush3.bf16.msra.mxu1 %v20335_v56 }
0x125c   :  { %18861 = vmatprep.subr.bf16.mxu0 %v20336_v48  ;;  %18889 = vmatprep.subr.bf16.mxu1 %v20337_v58 }
0x125f   :  { %18862 = vmatpush3.bf16.msra.mxu0 %v20338_v22  ;;  %18890 = vmatpush3.bf16.msra.mxu1 %v20339_v38 }
0x1260   :  { %18863 = vmatprep.subr.bf16.mxu0 %v20340_v35  ;;  %18891 = vmatprep.subr.bf16.mxu1 %v20341_v24 }
0x1263   :  { %18864 = vmatpush3.bf16.msra.mxu0 %v20342_v50  ;;  %18892 = vmatpush3.bf16.msra.mxu1 %v20343_v0 }
0x1264   :  { %18865 = vmatprep.subr.bf16.mxu0 %v20344_v59  ;;  %18893 = vmatprep.subr.bf16.mxu1 %v20345_v45 }
0x1267   :  { %18866 = vmatpush3.bf16.msra.mxu0 %v20346_v63  ;;  %18894 = vmatpush3.bf16.msra.mxu1 %v20347_v2 }
0x1268   :  { %18867 = vmatprep.subr.bf16.mxu0 %v20348_v43  ;;  %18895 = vmatprep.subr.bf16.mxu1 %v20349_v40 }
0x126b   :  { %18868 = vmatpush3.bf16.msra.mxu0 %v20350_v4  ;;  %18896 = vmatpush3.bf16.msra.mxu1 %v20351_v46 }
0x126c   :  { %19701 = vmatprep.subr.mxu1 %v21046_v28 }
0x126e   :  { %8508 = vmatmul.mubr.bf16.vlgmr.msra.gmra.mrb[132].mxu0 %v22445_v27  ;;  %8557 = vmatmul.mubr.bf16.vlgmr.msra.gmra.mrb[120].mxu1 %v22447_v20 }
0x126f   :  { %8515 = vmatprep.mubr.bf16.mxu0 %v22473_v21  ;;  %8564 = vmatprep.mubr.bf16.mxu1 %v22475_v57 }
0x1276   :  { %8516 = vmatmul.mubr.bf16.gmra.mrb[136].mxu0 %v22469_v55  ;;  %8565 = vmatmul.mubr.bf16.gmra.mrb[124].mxu1 %v22471_v6 }
0x1277   :  { %19703 = vmatprep.mubr.msk.f32.mxu1 %vm21047_vm3, %v21046_v28 }
0x12df   :  { %v18701_v60 = vpop.f32.mrb[108].mxu0  ;;  %v18729_v61 = vpop.f32.mrb[96].mxu1 }
0x12e0   :  { %v18702_v47 = vpop.f32.mrb[109].mxu0  ;;  %v18730_v8 = vpop.f32.mrb[97].mxu1 }
0x12e1   :  { %v18703_v53 = vadd.f32 %v18702_v47, %v18701_v60  ;;  %v18731_v27 = vadd.f32 %v18730_v8, %v18729_v61  ;;  %v18704_v49 = vpop.f32.mrb[110].mxu0  ;;  %v18732_v20 = vpop.f32.mrb[98].mxu1 }
0x12e2   :  { %v18705_v5 = vpop.f32.mrb[111].mxu0  ;;  %v18733_v7 = vpop.f32.mrb[99].mxu1 }
0x12e3   :  { %v8216_v14 = vadd.f32 %v18703_v53, %v18046_v62  ;;  %v18706_v21 = vadd.f32 %v18705_v5, %v18704_v49  ;;  %v18734_v57 = vadd.f32 %v18733_v7, %v18732_v20 }
0x12e5   :  { %v8265_v55 = vadd.f32 %v18731_v27, %v8216_v14  ;;  %v8219_v18 = vadd.f32 %v18706_v21, %v18046_v62 }
0x12e7   :  { %v8268_v6 = vadd.f32 %v18734_v57, %v8219_v18 }
0x12eb   :  { %v18707_v10 = vpop.f32.mrb[112].mxu0  ;;  %v18735_v12 = vpop.f32.mrb[100].mxu1 }
0x12ec   :  { %v18708_v26 = vpop.f32.mrb[113].mxu0  ;;  %v18736_v39 = vpop.f32.mrb[101].mxu1 }
0x12ed   :  { %v18709_v9 = vadd.f32 %v18708_v26, %v18707_v10  ;;  %v18737_v15 = vadd.f32 %v18736_v39, %v18735_v12  ;;  %v18710_v17 = vpop.f32.mrb[114].mxu0  ;;  %v18738_v1 = vpop.f32.mrb[102].mxu1 }
0x12ee   :  { %v18711_v25 = vpop.f32.mrb[115].mxu0  ;;  %v18739_v29 = vpop.f32.mrb[103].mxu1 }
0x12ef   :  { %v8224_v30 = vadd.f32 %v18709_v9, %v18046_v62  ;;  %v18712_v34 = vadd.f32 %v18711_v25, %v18710_v17  ;;  %v18740_v19 = vadd.f32 %v18739_v29, %v18738_v1 }
0x12f1   :  { %v8273_v23 = vadd.f32 %v18737_v15, %v8224_v30  ;;  %v8227_v52 = vadd.f32 %v18712_v34, %v18046_v62 }
0x12f3   :  { %v8276_v3 = vadd.f32 %v18740_v19, %v8227_v52 }
0x12ff   :  { %v18757_v56 = vpop.f32.mrb[116].mxu0  ;;  %v18785_v48 = vpop.f32.mrb[104].mxu1 }
0x1300   :  { %v18758_v58 = vpop.f32.mrb[117].mxu0  ;;  %v18786_v22 = vpop.f32.mrb[105].mxu1 }
0x1301   :  { %v18759_v38 = vadd.f32 %v18758_v58, %v18757_v56  ;;  %v18787_v35 = vadd.f32 %v18786_v22, %v18785_v48  ;;  %v18760_v24 = vpop.f32.mrb[118].mxu0  ;;  %v18788_v50 = vpop.f32.mrb[106].mxu1 }
0x1302   :  { %v18761_v0 = vpop.f32.mrb[119].mxu0  ;;  %v18789_v59 = vpop.f32.mrb[107].mxu1 }
0x1303   :  { %v8314_v45 = vadd.f32 %v18759_v38, %v8265_v55  ;;  %v18762_v63 = vadd.f32 %v18761_v0, %v18760_v24  ;;  %v18790_v2 = vadd.f32 %v18789_v59, %v18788_v50 }
0x1305   :  { %v8363_v43 = vadd.f32 %v18787_v35, %v8314_v45  ;;  %v8317_v40 = vadd.f32 %v18762_v63, %v8268_v6 }
0x1307   :  { %v8366_v4 = vadd.f32 %v18790_v2, %v8317_v40  ;;  %v18763_v46 = vpop.f32.mrb[120].mxu0  ;;  %v18791_v60 = vpop.f32.mrb[108].mxu1 }
0x1308   :  { %v18764_v61 = vpop.f32.mrb[121].mxu0  ;;  %v18792_v62 = vpop.f32.mrb[109].mxu1 }
0x1309   :  { %v18765_v47 = vadd.f32 %v18764_v61, %v18763_v46  ;;  %v18793_v8 = vadd.f32 %v18792_v62, %v18791_v60  ;;  %v18766_v53 = vpop.f32.mrb[122].mxu0  ;;  %v18794_v27 = vpop.f32.mrb[110].mxu1 }
0x130a   :  { %v18767_v49 = vpop.f32.mrb[123].mxu0  ;;  %v18795_v20 = vpop.f32.mrb[111].mxu1 }
0x130b   :  { %v8322_v5 = vadd.f32 %v18765_v47, %v8273_v23  ;;  %v18768_v7 = vadd.f32 %v18767_v49, %v18766_v53  ;;  %v18796_v14 = vadd.f32 %v18795_v20, %v18794_v27 }
0x130d   :  { %v8371_v21 = vadd.f32 %v18793_v8, %v8322_v5  ;;  %v8325_v57 = vadd.f32 %v18768_v7, %v8276_v3 }
0x130f   :  { %v8374_v55 = vadd.f32 %v18796_v14, %v8325_v57 }
0x1320   :  { %v18813_v18 = vpop.f32.mrb[124].mxu0  ;;  %v18841_v10 = vpop.f32.mrb[112].mxu1 }
0x1321   :  { %v18814_v6 = vpop.f32.mrb[125].mxu0  ;;  %v18842_v12 = vpop.f32.mrb[113].mxu1 }
0x1322   :  { %v18815_v26 = vadd.f32 %v18814_v6, %v18813_v18  ;;  %v18843_v39 = vadd.f32 %v18842_v12, %v18841_v10  ;;  %v18816_v9 = vpop.f32.mrb[126].mxu0  ;;  %v18844_v15 = vpop.f32.mrb[114].mxu1 }
0x1323   :  { %v18817_v17 = vpop.f32.mrb[127].mxu0  ;;  %v18845_v1 = vpop.f32.mrb[115].mxu1 }
0x1324   :  { %v8412_v25 = vadd.f32 %v18815_v26, %v8363_v43  ;;  %v18818_v29 = vadd.f32 %v18817_v17, %v18816_v9  ;;  %v18846_v30 = vadd.f32 %v18845_v1, %v18844_v15 }
0x1326   :  { %v8461_v34 = vadd.f32 %v18843_v39, %v8412_v25  ;;  %v8415_v19 = vadd.f32 %v18818_v29, %v8366_v4 }
0x1328   :  { %v8464_v23 = vadd.f32 %v18846_v30, %v8415_v19  ;;  %v18819_v52 = vpop.f32.mrb[128].mxu0  ;;  %v18847_v56 = vpop.f32.mrb[116].mxu1 }
0x1329   :  { %v18820_v3 = vpop.f32.mrb[129].mxu0  ;;  %v18848_v48 = vpop.f32.mrb[117].mxu1 }
0x132a   :  { %v18821_v58 = vadd.f32 %v18820_v3, %v18819_v52  ;;  %v18849_v22 = vadd.f32 %v18848_v48, %v18847_v56  ;;  %v18822_v38 = vpop.f32.mrb[130].mxu0  ;;  %v18850_v35 = vpop.f32.mrb[118].mxu1 }
0x132b   :  { %v18823_v24 = vpop.f32.mrb[131].mxu0  ;;  %v18851_v50 = vpop.f32.mrb[119].mxu1 }
0x132c   :  { %v8420_v0 = vadd.f32 %v18821_v58, %v8371_v21  ;;  %v18824_v59 = vadd.f32 %v18823_v24, %v18822_v38  ;;  %v18852_v45 = vadd.f32 %v18851_v50, %v18850_v35 }
0x132e   :  { %v8469_v63 = vadd.f32 %v18849_v22, %v8420_v0  ;;  %v8423_v2 = vadd.f32 %v18824_v59, %v8374_v55 }
0x1330   :  { %v8472_v43 = vadd.f32 %v18852_v45, %v8423_v2 }
0x1341   :  { %v18869_v40 = vpop.f32.mrb[132].mxu0  ;;  %v18897_v46 = vpop.f32.mrb[120].mxu1 }
0x1342   :  { %v18870_v4 = vpop.f32.mrb[133].mxu0  ;;  %v18898_v60 = vpop.f32.mrb[121].mxu1 }
0x1343   :  { %v18871_v61 = vadd.f32 %v18870_v4, %v18869_v40  ;;  %v18899_v62 = vadd.f32 %v18898_v60, %v18897_v46  ;;  %v18872_v47 = vpop.f32.mrb[134].mxu0  ;;  %v18900_v8 = vpop.f32.mrb[122].mxu1 }
0x1344   :  { %v18873_v53 = vpop.f32.mrb[135].mxu0  ;;  %v18901_v27 = vpop.f32.mrb[123].mxu1 }
0x1345   :  { %v8510_v49 = vadd.f32 %v18871_v61, %v8461_v34  ;;  %v18874_v20 = vadd.f32 %v18873_v53, %v18872_v47  ;;  %v18902_v5 = vadd.f32 %v18901_v27, %v18900_v8  ;;  %v8651_v47 = vld [vmem:[%s23775_s3] sm:$0xff]  ;;  %v8652_v8 = vld [vmem:[%s23775_s3 + $0x8] sm:$0xff]  ;;  %v8653_v27 = vld [vmem:[%s23775_s3 + $0x10] sm:$0xff] }
0x1346   :  { %v20115_v53 = vpack.c.bf16 %v8652_v8, %v8651_v47 }
0x1347   :  { %v8559_v7 = vadd.f32 %v18899_v62, %v8510_v49  ;;  %v8513_v14 = vadd.f32 %v18874_v20, %v8464_v23  ;;  %v8654_v49 = vld [vmem:[%s23775_s3 + $0x18] sm:$0xff] }
0x1348   :  { %20116 = vmatprep.subr.bf16.mxu0 %v20115_v53  ;;  %v20119_v20 = vpack.c.bf16 %v8654_v49, %v8653_v27 }
0x1349   :  { %v8562_v21 = vadd.f32 %v18902_v5, %v8513_v14  ;;  %v18875_v57 = vpop.f32.mrb[136].mxu0  ;;  %v18903_v18 = vpop.f32.mrb[124].mxu1  ;;  %v8573_v55 = vadd.f32 %v8559_v7, %v22112_v41  ;;  %20118 = vmatpush3.bf16.msra.mxu0 %v20115_v53 }
0x134a   :  { %v18876_v10 = vpop.f32.mrb[137].mxu0  ;;  %v18904_v6 = vpop.f32.mrb[125].mxu1  ;;  %20120 = vmatprep.subr.bf16.mxu0 %v20119_v20 }
0x134b   :  { %v18877_v12 = vadd.f32 %v18876_v10, %v18875_v57  ;;  %v18905_v26 = vadd.f32 %v18904_v6, %v18903_v18  ;;  %v18878_v39 = vpop.f32.mrb[138].mxu0  ;;  %v18906_v9 = vpop.f32.mrb[126].mxu1  ;;  %v8579_v15 = vsel %vm394_vm2, %v8573_v55, 0.0  ;;  %v8574_v17 = vadd.f32 %v8562_v21, %v22109_v11 }
0x134c   :  { %v18879_v1 = vpop.f32.mrb[139].mxu0  ;;  %v18907_v25 = vpop.f32.mrb[127].mxu1  ;;  %8580 = vadd.xlane.f32.xlu1 %v8579_v15  ;;  %v18175_v15 = vld [vmem:[%s23776_s23] ss:$0 sm:$0xff] }
0x134d   :  { %v8518_v29 = vadd.f32 %v18877_v12, %v8469_v63  ;;  %v18880_v30 = vadd.f32 %v18879_v1, %v18878_v39  ;;  %v18908_v34 = vadd.f32 %v18907_v25, %v18906_v9  ;;  %v8582_v19 = vsel %vm394_vm2, %v8574_v17, 0.0  ;;  %20122 = vmatpush3.bf16.msra.mxu0 %v20119_v20  ;;  %v18176_v25 = vld [vmem:[%s23777_s4] ss:$0 sm:$0xff] }
0x134e   :  { %8583 = vadd.xlane.f32.xlu0 %v8582_v19  ;;  %19711 = vmatprep.subr.mxu0 %v21046_v28 }
0x134f   :  { %v8567_v41 = vadd.f32 %v18905_v26, %v8518_v29  ;;  %v8521_v23 = vadd.f32 %v18880_v30, %v8472_v43 }
0x1351   :  { %v8570_v52 = vadd.f32 %v18908_v34, %v8521_v23  ;;  %v8575_v56 = vadd.f32 %v8567_v41, %v22133_v32 }
0x1353   :  { %v8585_v3 = vsel %vm394_vm2, %v8575_v56, 0.0  ;;  %v8576_v48 = vadd.f32 %v8570_v52, %v22135_v37 }
0x1354   :  { %8586 = vadd.xlane.f32.xlu1 %v8585_v3 }
0x1355   :  { %v8588_v11 = vsel %vm394_vm2, %v8576_v48, 0.0 }
0x1356   :  { %8589 = vadd.xlane.f32.xlu0 %v8588_v11 }
0x13d9   :  { %v8581_v58 = vpop.xlane.xlu1 %8580 }
0x13da   :  { %v8591_v22 = vmul.f32 0.03125, %v8581_v58 }
0x13db   :  { %v8584_v38 = vpop.xlane.xlu0 %8583 }
0x13dc   :  { %v8595_v35 = vsub.f32 %v8573_v55, %v8591_v22  ;;  %v8592_v24 = vmul.f32 0.03125, %v8584_v38  ;;  %v18177_v38 = vld [vmem:[#allocation9] ss:$0 sm:$0xff] }
0x13de   :  { %v8596_v50 = vsub.f32 %v8574_v17, %v8592_v24  ;;  %v8599_v0 = vmul.f32 %v8595_v35, %v8595_v35 }
0x13e0   :  { %v8603_v59 = vsel %vm394_vm2, %v8599_v0, 0.0  ;;  %v8600_v45 = vmul.f32 %v8596_v50, %v8596_v50 }
0x13e1   :  { %8604 = vadd.xlane.f32.xlu1 %v8603_v59  ;;  %v8587_v32 = vpop.xlane.xlu1 %8586 }
0x13e2   :  { %v8593_v63 = vmul.f32 0.03125, %v8587_v32  ;;  %v8606_v37 = vsel %vm394_vm2, %v8600_v45, 0.0 }
0x13e3   :  { %8607 = vadd.xlane.f32.xlu0 %v8606_v37  ;;  %v8590_v2 = vpop.xlane.xlu0 %8589 }
0x13e4   :  { %v8597_v43 = vsub.f32 %v8575_v56, %v8593_v63  ;;  %v8594_v40 = vmul.f32 0.03125, %v8590_v2 }
0x13e6   :  { %v8598_v46 = vsub.f32 %v8576_v48, %v8594_v40  ;;  %v8601_v4 = vmul.f32 %v8597_v43, %v8597_v43 }
0x13e8   :  { %v8609_v60 = vsel %vm394_vm2, %v8601_v4, 0.0  ;;  %v8602_v61 = vmul.f32 %v8598_v46, %v8598_v46 }
0x13e9   :  { %8610 = vadd.xlane.f32.xlu1 %v8609_v60 }
0x13ea   :  { %v8612_v62 = vsel %vm394_vm2, %v8602_v61, 0.0 }
0x13eb   :  { %8613 = vadd.xlane.f32.xlu0 %v8612_v62 }
0x146e   :  { %v8605_v5 = vpop.xlane.xlu1 %8604 }
0x146f   :  { %v8615_v7 = vmul.f32 0.03125, %v8605_v5 }
0x1470   :  { %v8608_v14 = vpop.xlane.xlu0 %8607 }
0x1471   :  { %v8619_v21 = vadd.f32 1e-05, %v8615_v7  ;;  %v8616_v57 = vmul.f32 0.03125, %v8608_v14 }
0x1473   :  { %20616 = vrsqrt.f32 %v8619_v21  ;;  %v8620_v18 = vadd.f32 1e-05, %v8616_v57 }
0x1475   :  { %20618 = vrsqrt.f32 %v8620_v18 }
0x1476   :  { %v8611_v55 = vpop.xlane.xlu1 %8610 }
0x1477   :  { %v8617_v10 = vmul.f32 0.03125, %v8611_v55 }
0x1478   :  { %v8614_v6 = vpop.xlane.xlu0 %8613 }
0x1479   :  { %v8621_v12 = vadd.f32 1e-05, %v8617_v10  ;;  %v8618_v26 = vmul.f32 0.03125, %v8614_v6 }
0x147b   :  { %20620 = vrsqrt.f32 %v8621_v12  ;;  %v8622_v39 = vadd.f32 1e-05, %v8618_v26 }
0x147d   :  { %v20617_v9 = vpop.eup %20616  ;;  %20622 = vrsqrt.f32 %v8622_v39 }
0x147e   :  { %v8627_v17 = vmul.f32 %v20617_v9, %v8595_v35 }
0x147f   :  { %v20619_v1 = vpop.eup %20618 }
0x1480   :  { %v8628_v29 = vmul.f32 %v20619_v1, %v8596_v50  ;;  %v8637_v30 = vmul.f32 %v18175_v15, %v8627_v17 }
0x1482   :  { %v8638_v34 = vmul.f32 %v18175_v15, %v8628_v29  ;;  %v22547_v19 = vadd.f32 %v18176_v25, %v8637_v30 }
0x1484   :  { %v22549_v41 = vadd.f32 %v18176_v25, %v8638_v34  ;;  %19695 = vmatprep.mubr.msk.f32.mxu0 %vm394_vm2, %v22547_v19 }
0x1485   :  { %v20621_v23 = vpop.eup %20620 }
0x1486   :  { %19696 = vmatmul.mubr.msk.f32.vlgmr.msra.gmra.mrb[140].mxu0 %vm394_vm2, %v22549_v41  ;;  %v8629_v52 = vmul.f32 %v20621_v23, %v8597_v43 }
0x1487   :  { %v20623_v56 = vpop.eup %20622 }
0x1488   :  { %v8639_v3 = vmul.f32 %v18175_v15, %v8629_v52  ;;  %v8630_v48 = vmul.f32 %v20623_v56, %v8598_v46 }
0x148a   :  { %v22555_v11 = vadd.f32 %v18176_v25, %v8639_v3  ;;  %v8640_v58 = vmul.f32 %v18175_v15, %v8630_v48 }
0x148c   :  { %19698 = vmatprep.mubr.msk.f32.mxu0 %vm394_vm2, %v22555_v11  ;;  %v22559_v22 = vadd.f32 %v18176_v25, %v8640_v58 }
0x148e   :  { %19699 = vmatmul.mubr.msk.f32.gmra.mrb[142].mxu0 %vm394_vm2, %v22559_v22 }
0x148f   :  { %19713 = vmatprep.mubr.msk.f32.mxu0 %vm21047_vm3, %v21046_v28 }
0x1559   :  { %v19697_v35 = vpop.f32.mrb[140].mxu0 }
0x155a   :  { %v8740_v24 = vpop.f32.mrb[141].mxu0  ;;  %v22573_v59 = vadd.f32 %v19697_v35, %v18177_v38 }
0x155b   :  { %v22565_v50 = vadd.f32 %v18177_v38, %v8740_v24 }
0x155c   :  { %v22583_v37 = vcombine.high %v22573_v59, %v22573_v59  ;;  %v22620_v47 = vmul.f32 0.35355338, %v22573_v59 }
0x155d   :  { %8784 = vrot.lane.b32.xlu1 %v22565_v50, %s21048_s5  ;;  %v22571_v0 = vcombine.high %v22565_v50, %v22565_v50  ;;  %v22607_v4 = vmul.f32 0.35355338, %v22565_v50 }
0x155e   :  { %v22635_v27 = vmul.f32 0.35355338, %v22583_v37 }
0x155f   :  { %8861 = vrot.lane.b32.xlu0 %v22571_v0, %s21048_s5  ;;  %v22617_v62 = vmul.f32 0.35355338, %v22571_v0 }
0x1561   :  { %8938 = vrot.lane.b32.xlu1 %v22573_v59, %s21048_s5  ;;  %v19700_v45 = vpop.f32.mrb[142].mxu0 }
0x1562   :  { %v8750_v32 = vpop.f32.mrb[143].mxu0  ;;  %v22589_v2 = vadd.f32 %v19700_v45, %v18177_v38 }
0x1563   :  { %v22579_v63 = vadd.f32 %v18177_v38, %v8750_v32 }
0x1564   :  { %v22601_v40 = vcombine.high %v22589_v2, %v22589_v2  ;;  %v22656_v14 = vmul.f32 0.35355338, %v22589_v2 }
0x1565   :  { %9015 = vrot.lane.b32.xlu1 %v22583_v37, %s21048_s5  ;;  %9092 = vrot.lane.b32.xlu0 %v22579_v63, %s21048_s5  ;;  %v22593_v43 = vcombine.high %v22579_v63, %v22579_v63  ;;  %v22638_v49 = vmul.f32 0.35355338, %v22579_v63 }
0x1566   :  { %v22668_v57 = vmul.f32 0.35355338, %v22601_v40 }
0x1567   :  { %v22653_v7 = vmul.f32 0.35355338, %v22593_v43 }
0x1569   :  { %9246 = vrot.lane.b32.xlu0 %v22589_v2, %s21048_s5  ;;  %9169 = vrot.lane.b32.xlu1 %v22593_v43, %s21048_s5 }
0x156d   :  { %9323 = vrot.lane.b32.xlu1 %v22601_v40, %s21048_s5 }
0x15cf   :  { %v8785_v46 = vpop.permute.xlu1 %8784 }
0x15d0   :  { %19702 = vmatpush3.xpose.msk.msra.mxu1 %vm519_vm4, %v8785_v46 }
0x15d1   :  { %19706 = vmatprep.subr.mxu1 %v21046_v28  ;;  %v8862_v60 = vpop.permute.xlu0 %8861 }
0x15d3   :  { %19704 = vmatmul.mubr.msk.f32.vlgmr.msra.gmra.mrb[128].mxu1 %vm519_vm4, %v22607_v4  ;;  %v8939_v61 = vpop.permute.xlu1 %8938 }
0x15d4   :  { %19707 = vmatpush3.xpose.msk.msra.mxu1 %vm519_vm4, %v8862_v60  ;;  %19712 = vmatpush3.xpose.msk.msra.mxu0 %vm519_vm4, %v8939_v61 }
0x15d5   :  { %19708 = vmatprep.mubr.msk.f32.mxu1 %vm21047_vm3, %v21046_v28  ;;  %19716 = vmatprep.subr.mxu1 %v21046_v28 }
0x15d6   :  { %19721 = vmatprep.subr.mxu0 %v21046_v28 }
0x15d7   :  { %v9093_v8 = vpop.permute.xlu0 %9092  ;;  %19709 = vmatmul.mubr.msk.f32.vlgmr.msra.gmra.mrb[130].mxu1 %vm519_vm4, %v22617_v62  ;;  %19714 = vmatmul.mubr.msk.f32.vlgmr.msra.gmra.mrb[144].mxu0 %vm519_vm4, %v22620_v47  ;;  %v9016_v53 = vpop.permute.xlu1 %9015 }
0x15d8   :  { %19717 = vmatpush3.xpose.msk.msra.mxu1 %vm519_vm4, %v9016_v53  ;;  %19722 = vmatpush3.xpose.msk.msra.mxu0 %vm519_vm4, %v9093_v8 }
0x15d9   :  { %19718 = vmatprep.mubr.msk.f32.mxu1 %vm21047_vm3, %v21046_v28  ;;  %19723 = vmatprep.mubr.msk.f32.mxu0 %vm21047_vm3, %v21046_v28 }
0x15da   :  { %19726 = vmatprep.subr.mxu1 %v21046_v28  ;;  %19731 = vmatprep.subr.mxu0 %v21046_v28 }
0x15db   :  { %v9247_v20 = vpop.permute.xlu0 %9246  ;;  %19719 = vmatmul.mubr.msk.f32.vlgmr.msra.gmra.mrb[132].mxu1 %vm519_vm4, %v22635_v27  ;;  %19724 = vmatmul.mubr.msk.f32.vlgmr.msra.gmra.mrb[146].mxu0 %vm519_vm4, %v22638_v49  ;;  %v9170_v5 = vpop.permute.xlu1 %9169 }
0x15dc   :  { %19727 = vmatpush3.xpose.msk.msra.mxu1 %vm519_vm4, %v9170_v5  ;;  %19732 = vmatpush3.xpose.msk.msra.mxu0 %vm519_vm4, %v9247_v20 }
0x15dd   :  { %19728 = vmatprep.mubr.msk.f32.mxu1 %vm21047_vm3, %v21046_v28  ;;  %19733 = vmatprep.mubr.msk.f32.mxu0 %vm21047_vm3, %v21046_v28 }
0x15de   :  { %19736 = vmatprep.subr.mxu1 %v21046_v28  ;;  %19741 = vmatprep.subr.mxu0 %v21046_v28 }
0x15df   :  { %19729 = vmatmul.mubr.msk.f32.vlgmr.msra.gmra.mrb[134].mxu1 %vm519_vm4, %v22653_v7  ;;  %19734 = vmatmul.mubr.msk.f32.vlgmr.msra.gmra.mrb[148].mxu0 %vm519_vm4, %v22656_v14  ;;  %v9324_v21 = vpop.permute.xlu1 %9323 }
0x15e0   :  { %19737 = vmatpush3.xpose.msk.msra.mxu1 %vm519_vm4, %v9324_v21  ;;  %19738 = vmatprep.mubr.msk.f32.mxu1 %vm21047_vm3, %v21046_v28 }
0x15e1   :  { %19746 = vmatprep.subr.mxu1 %v21046_v28  ;;  %19743 = vmatprep.mubr.msk.f32.mxu0 %vm21047_vm3, %v21046_v28 }
0x15e3   :  { %19739 = vmatmul.mubr.msk.f32.vlgmr.msra.gmra.mrb[136].mxu1 %vm519_vm4, %v22668_v57 }
0x15e4   :  { %19748 = vmatprep.mubr.msk.f32.mxu1 %vm21047_vm3, %v21046_v28 }
0x16a6   :  { %v8857_v18 = vpop.f32.mrb[128].mxu1 }
0x16a7   :  { %v19705_v55 = vpop.f32.mrb[129].mxu1  ;;  %v9400_v10 = vsel %vm1134_vm5, %v8857_v18, -inf }
0x16a8   :  { %9401 = vmax.xlane.f32.xlu0 %v9400_v10 }
0x16aa   :  { %v8934_v6 = vpop.f32.mrb[130].mxu1  ;;  %v9011_v12 = vpop.f32.mrb[144].mxu0 }
0x16ab   :  { %v19710_v26 = vpop.f32.mrb[131].mxu1  ;;  %v19715_v39 = vpop.f32.mrb[145].mxu0  ;;  %v9403_v9 = vsel %vm1134_vm5, %v8934_v6, -inf  ;;  %v9406_v15 = vsel %vm1134_vm5, %v9011_v12, -inf }
0x16ac   :  { %9404 = vmax.xlane.f32.xlu1 %v9403_v9  ;;  %9407 = vmax.xlane.f32.xlu0 %v9406_v15 }
0x16ae   :  { %v9088_v17 = vpop.f32.mrb[132].mxu1  ;;  %v9165_v1 = vpop.f32.mrb[146].mxu0 }
0x16af   :  { %v19720_v25 = vpop.f32.mrb[133].mxu1  ;;  %v19725_v29 = vpop.f32.mrb[147].mxu0  ;;  %v9412_v30 = vsel %vm1134_vm5, %v9165_v1, -inf  ;;  %v9409_v34 = vsel %vm1134_vm5, %v9088_v17, -inf }
0x16b0   :  { %9413 = vmax.xlane.f32.xlu1 %v9412_v30  ;;  %9410 = vmax.xlane.f32.xlu0 %v9409_v34 }
0x16b2   :  { %v9242_v23 = vpop.f32.mrb[134].mxu1  ;;  %v9319_v52 = vpop.f32.mrb[148].mxu0 }
0x16b3   :  { %v19730_v56 = vpop.f32.mrb[135].mxu1  ;;  %v19735_v3 = vpop.f32.mrb[149].mxu0  ;;  %v9418_v48 = vsel %vm1134_vm5, %v9319_v52, -inf  ;;  %v9415_v58 = vsel %vm1134_vm5, %v9242_v23, -inf }
0x16b4   :  { %9419 = vmax.xlane.f32.xlu1 %v9418_v48  ;;  %9416 = vmax.xlane.f32.xlu0 %v9415_v58 }
0x16b6   :  { %v9396_v38 = vpop.f32.mrb[136].mxu1 }
0x16b7   :  { %v19740_v35 = vpop.f32.mrb[137].mxu1  ;;  %v9421_v24 = vsel %vm1134_vm5, %v9396_v38, -inf }
0x16b8   :  { %9422 = vmax.xlane.f32.xlu0 %v9421_v24 }
0x16c5   :  { %9488 = vrot.lane.b32.xlu1 %v22565_v50, %s21042_s0 }
0x16c9   :  { %9642 = vrot.lane.b32.xlu1 %v22573_v59, %s21042_s0 }
0x16cd   :  { %9719 = vrot.lane.b32.xlu1 %v22583_v37, %s21042_s0 }
0x16ce   :  { %9565 = vrot.lane.b32.xlu0 %v22571_v0, %s21042_s0 }
0x16d1   :  { %9873 = vrot.lane.b32.xlu1 %v22593_v43, %s21042_s0 }
0x16d2   :  { %9796 = vrot.lane.b32.xlu0 %v22579_v63, %s21042_s0 }
0x1735   :  { %v9402_v45 = vpop.xlane.xlu0 %9401 }
0x1736   :  { %v9424_v32 = vsub.f32 %v8857_v18, %v9402_v45 }
0x1738   :  { %v9432_v53 = vmul.f32 1.442695, %v9424_v32 }
0x1739   :  { %v9408_v46 = vpop.xlane.xlu0 %9407  ;;  %v9405_v60 = vpop.xlane.xlu1 %9404 }
0x173a   :  { %v9426_v61 = vsub.f32 %v9011_v12, %v9408_v46  ;;  %v9425_v8 = vsub.f32 %v8934_v6, %v9405_v60 }
0x173c   :  { %v9436_v20 = vmul.f32 1.442695, %v9426_v61  ;;  %v9434_v5 = vmul.f32 1.442695, %v9425_v8 }
0x173d   :  { %v9411_v21 = vpop.xlane.xlu0 %9410  ;;  %v9414_v55 = vpop.xlane.xlu1 %9413 }
0x173e   :  { %20624 = vpow2.f32 %v9436_v20  ;;  %v9427_v10 = vsub.f32 %v9088_v17, %v9411_v21  ;;  %v9428_v26 = vsub.f32 %v9165_v1, %v9414_v55 }
0x173f   :  { %20626 = vpow2.f32 %v9434_v5 }
0x1740   :  { %20628 = vpow2.f32 %v9432_v53  ;;  %v9438_v39 = vmul.f32 1.442695, %v9427_v10  ;;  %v9440_v9 = vmul.f32 1.442695, %v9428_v26 }
0x1741   :  { %v9417_v15 = vpop.xlane.xlu0 %9416  ;;  %v9420_v25 = vpop.xlane.xlu1 %9419 }
0x1742   :  { %20630 = vpow2.f32 %v9438_v39  ;;  %v9429_v18 = vsub.f32 %v9242_v23, %v9417_v15  ;;  %v9430_v29 = vsub.f32 %v9319_v52, %v9420_v25 }
0x1743   :  { %20632 = vpow2.f32 %v9440_v9 }
0x1744   :  { %v9442_v12 = vmul.f32 1.442695, %v9429_v18  ;;  %v9444_v6 = vmul.f32 1.442695, %v9430_v29 }
0x1745   :  { %v9423_v30 = vpop.xlane.xlu0 %9422  ;;  %v9489_v34 = vpop.permute.xlu1 %9488 }
0x1746   :  { %20634 = vpow2.f32 %v9442_v12  ;;  %v9431_v56 = vsub.f32 %v9396_v38, %v9423_v30  ;;  %19742 = vmatpush3.msk.msra.mxu0 %vm1229_vm6, %v9489_v34 }
0x1747   :  { %19751 = vmatprep.subr.mxu0 %v21046_v28  ;;  %20636 = vpow2.f32 %v9444_v6 }
0x1748   :  { %v22699_v17 = vpop.eup %20624  ;;  %v9446_v1 = vmul.f32 1.442695, %v9431_v56 }
0x1749   :  { %v22701_v3 = vpop.eup %20626  ;;  %v9566_v48 = vpop.permute.xlu0 %9565  ;;  %v9454_v23 = vsel %vm1134_vm5, %v22699_v17, 0.0 }
0x174a   :  { %v22705_v52 = vpop.eup %20628  ;;  %20638 = vpow2.f32 %v9446_v1  ;;  %9455 = vadd.xlane.f32.xlu1 %v9454_v23  ;;  %19747 = vmatpush3.msk.msra.mxu1 %vm1229_vm6, %v9566_v48  ;;  %v9451_v58 = vsel %vm1134_vm5, %v22701_v3, 0.0  ;;  %v9643_v5 = vpop.permute.xlu1 %9642 }
0x174b   :  { %9452 = vadd.xlane.f32.xlu0 %v9451_v58  ;;  %19756 = vmatprep.subr.mxu1 %v21046_v28  ;;  %v9448_v35 = vsel %vm1134_vm5, %v22705_v52, 0.0 }
0x174c   :  { %v22711_v38 = vpop.eup %20630 }
0x174d   :  { %v9457_v24 = vsel %vm1134_vm5, %v22711_v38, 0.0  ;;  %v22717_v45 = vpop.eup %20632  ;;  %v9797_v10 = vpop.permute.xlu0 %9796 }
0x174e   :  { %9449 = vadd.xlane.f32.xlu1 %v9448_v35  ;;  %v9460_v60 = vsel %vm1134_vm5, %v22717_v45, 0.0  ;;  %v9720_v21 = vpop.permute.xlu1 %9719 }
0x174f   :  { %9458 = vadd.xlane.f32.xlu0 %v9457_v24 }
0x1750   :  { %v22719_v32 = vpop.eup %20634 }
0x1751   :  { %v9463_v46 = vsel %vm1134_vm5, %v22719_v32, 0.0  ;;  %v22725_v61 = vpop.eup %20636 }
0x1752   :  { %9461 = vadd.xlane.f32.xlu1 %v9460_v60  ;;  %v9466_v20 = vsel %vm1134_vm5, %v22725_v61, 0.0  ;;  %v9874_v55 = vpop.permute.xlu1 %9873 }
0x1753   :  { %9464 = vadd.xlane.f32.xlu0 %v9463_v46 }
0x1754   :  { %v22727_v8 = vpop.eup %20638 }
0x1755   :  { %v9469_v53 = vsel %vm1134_vm5, %v22727_v8, 0.0 }
0x1756   :  { %9467 = vadd.xlane.f32.xlu1 %v9466_v20 }
0x1757   :  { %9470 = vadd.xlane.f32.xlu0 %v9469_v53 }
0x1767   :  { %10027 = vrot.lane.b32.xlu1 %v22601_v40, %s21042_s0 }
0x176b   :  { %10219 = vrot.lane.b32.xlu1 %v22607_v4, %s21049_s9 }
0x176d   :  { %9950 = vrot.lane.b32.xlu0 %v22589_v2, %s21042_s0  ;;  %s23778_s0 = sld [smem:[#allocation32_spill]] }
0x176f   :  { %10297 = vrot.lane.b32.xlu1 %v22617_v62, %s21049_s9 }
0x1771   :  { %10221 = vrot.lane.b32.xlu0 %v22565_v50, %s21050_s13 }
0x1773   :  { %10455 = vrot.lane.b32.xlu1 %v22583_v37, %s21050_s13 }
0x1775   :  { %10299 = vrot.lane.b32.xlu0 %v22571_v0, %s21050_s13 }
0x1777   :  { %10453 = vrot.lane.b32.xlu1 %v22635_v27, %s21049_s9 }
0x1779   :  { %10377 = vrot.lane.b32.xlu0 %v22573_v59, %s21050_s13 }
0x177b   :  { %10611 = vrot.lane.b32.xlu1 %v22593_v43, %s21050_s13 }
0x177d   :  { %10375 = vrot.lane.b32.xlu0 %v22620_v47, %s21049_s9 }
0x177f   :  { %10609 = vrot.lane.b32.xlu1 %v22653_v7, %s21049_s9 }
0x1781   :  { %10533 = vrot.lane.b32.xlu0 %v22579_v63, %s21050_s13 }
0x1783   :  { %10767 = vrot.lane.b32.xlu1 %v22601_v40, %s21050_s13 }
0x1785   :  { %10531 = vrot.lane.b32.xlu0 %v22638_v49, %s21049_s9 }
0x1787   :  { %10765 = vrot.lane.b32.xlu1 %v22668_v57, %s21049_s9 }
0x1789   :  { %10689 = vrot.lane.b32.xlu0 %v22589_v2, %s21050_s13 }
0x178d   :  { %10687 = vrot.lane.b32.xlu0 %v22656_v14, %s21049_s9 }
0x17d7   :  { %v9456_v26 = vpop.xlane.xlu1 %9455 }
0x17d8   :  { %v9453_v39 = vpop.xlane.xlu0 %9452 }
0x17d9   :  { %20640 = vrcp.f32 %v9453_v39 }
0x17db   :  { %v9450_v9 = vpop.xlane.xlu1 %9449 }
0x17dc   :  { %v9459_v15 = vpop.xlane.xlu0 %9458  ;;  %20642 = vrcp.f32 %v9450_v9  ;;  %v8771_v9 = vld [vmem:[%s23778_s0] sm:$0xff] }
0x17dd   :  { %20644 = vrcp.f32 %v9459_v15 }
0x17de   :  { %20646 = vrcp.f32 %v9456_v26 }
0x17df   :  { %v9462_v25 = vpop.xlane.xlu1 %9461 }
0x17e0   :  { %v9465_v18 = vpop.xlane.xlu0 %9464 }
0x17e1   :  { %20648 = vrcp.f32 %v9465_v18 }
0x17e2   :  { %20650 = vrcp.f32 %v9462_v25 }
0x17e3   :  { %v20641_v29 = vpop.eup %20640  ;;  %v9468_v12 = vpop.xlane.xlu1 %9467 }
0x17e4   :  { %v9471_v6 = vpop.xlane.xlu0 %9470  ;;  %v9481_v30 = vmul.f32 %v20641_v29, %v22701_v3 }
0x17e5   :  { %20652 = vrcp.f32 %v9471_v6 }
0x17e6   :  { %v20643_v34 = vpop.eup %20642  ;;  %20654 = vrcp.f32 %v9468_v12  ;;  %19749 = vmatmul.mubr.msk.f32.vlgmr.msra.gmra.mrb[138].mxu1 %vm1225_vm7, %v9481_v30 }
0x17e7   :  { %v20645_v56 = vpop.eup %20644  ;;  %19757 = vmatpush3.msk.msra.mxu1 %vm1229_vm6, %v9720_v21  ;;  %v10028_v1 = vpop.permute.xlu1 %10027  ;;  %19758 = vmatprep.mubr.msk.f32.mxu1 %vm21047_vm3, %v21046_v28  ;;  %v9480_v48 = vmul.f32 %v20643_v34, %v22705_v52 }
0x17e8   :  { %v20647_v23 = vpop.eup %20646  ;;  %19766 = vmatprep.subr.mxu1 %v21046_v28  ;;  %v9483_v58 = vmul.f32 %v20645_v56, %v22711_v38  ;;  %v9951_v46 = vpop.permute.xlu0 %9950 }
0x17e9   :  { %19744 = vmatmul.mubr.msk.f32.vlgmr.msra.gmra.mrb[150].mxu0 %vm1225_vm7, %v9480_v48  ;;  %v9482_v52 = vmul.f32 %v20647_v23, %v22699_v17 }
0x17ea   :  { %19752 = vmatpush3.msk.msra.mxu0 %vm1229_vm6, %v9643_v5  ;;  %19759 = vmatmul.mubr.msk.f32.vlgmr.msra.gmra.mrb[140].mxu1 %vm1225_vm7, %v9483_v58 }
0x17eb   :  { %v20649_v3 = vpop.eup %20648  ;;  %19767 = vmatpush3.msk.msra.mxu1 %vm1229_vm6, %v9874_v55  ;;  %v10220_v35 = vpop.permute.xlu1 %10219  ;;  %19753 = vmatprep.mubr.msk.f32.mxu0 %vm21047_vm3, %v21046_v28 }
0x17ec   :  { %v20651_v24 = vpop.eup %20650  ;;  %19761 = vmatprep.subr.mxu0 %v21046_v28  ;;  %19768 = vmatprep.mubr.msk.f32.mxu1 %vm21047_vm3, %v21046_v28  ;;  %v9485_v38 = vmul.f32 %v20649_v3, %v22719_v32  ;;  %v10222_v5 = vpop.permute.xlu0 %10221 }
0x17ed   :  { %19776 = vmatprep.subr.mxu1 %v21046_v28  ;;  %19754 = vmatmul.mubr.msk.f32.vlgmr.msra.gmra.mrb[152].mxu0 %vm1225_vm7, %v9482_v52  ;;  %v9484_v53 = vmul.f32 %v20651_v24, %v22717_v45 }
0x17ee   :  { %19762 = vmatpush3.msk.msra.mxu0 %vm1229_vm6, %v9797_v10  ;;  %19769 = vmatmul.mubr.msk.f32.vlgmr.msra.gmra.mrb[142].mxu1 %vm1225_vm7, %v9485_v38 }
0x17ef   :  { %v20653_v60 = vpop.eup %20652  ;;  %19777 = vmatpush3.msk.msra.mxu1 %vm1229_vm6, %v10028_v1  ;;  %v10298_v17 = vpop.permute.xlu1 %10297  ;;  %19763 = vmatprep.mubr.msk.f32.mxu0 %vm21047_vm3, %v21046_v28 }
0x17f0   :  { %v20655_v20 = vpop.eup %20654  ;;  %19771 = vmatprep.subr.mxu0 %v21046_v28  ;;  %19778 = vmatprep.mubr.msk.f32.mxu1 %vm21047_vm3, %v21046_v28  ;;  %v9487_v32 = vmul.f32 %v20653_v60, %v22727_v8  ;;  %v10300_v55 = vpop.permute.xlu0 %10299 }
0x17f1   :  { %19764 = vmatmul.mubr.msk.f32.vlgmr.msra.gmra.mrb[154].mxu0 %vm1225_vm7, %v9484_v53  ;;  %19789 = vmatprep.subr.mxu1 %v21046_v28  ;;  %v9486_v45 = vmul.f32 %v20655_v20, %v22725_v61 }
0x17f2   :  { %19772 = vmatpush3.msk.msra.mxu0 %vm1229_vm6, %v9951_v46  ;;  %19779 = vmatmul.mubr.msk.f32.vlgmr.msra.gmra.mrb[144].mxu1 %vm1225_vm7, %v9487_v32 }
0x17f3   :  { %v10456_v21 = vpop.permute.xlu1 %10455  ;;  %19773 = vmatprep.mubr.msk.f32.mxu0 %vm21047_vm3, %v21046_v28  ;;  %19791 = vmatprep.mubr.msk.f32.mxu1 %vm21047_vm3, %v21046_v28 }
0x17f4   :  { %19781 = vmatprep.subr.mxu0 %v8771_v9  ;;  %v10378_v15 = vpop.permute.xlu0 %10377 }
0x17f5   :  { %19774 = vmatmul.mubr.msk.f32.vlgmr.msra.gmra.mrb[156].mxu0 %vm1225_vm7, %v9486_v45 }
0x17f6   :  { %19790 = vmatpush3.xpose.msk.msra.mxu1 %vm519_vm4, %v10222_v5  ;;  %19782 = vmatpush3.msra.mxu0 %v8771_v9 }
0x17f7   :  { %19794 = vmatprep.subr.mxu1 %v21046_v28  ;;  %v10454_v8 = vpop.permute.xlu1 %10453  ;;  %19799 = vmatprep.subr.mxu0 %v21046_v28 }
0x17f8   :  { %v10376_v34 = vpop.permute.xlu0 %10375 }
0x17f9   :  { %19792 = vmatmul.mubr.msk.f32.vlgmr.msra.gmra.mrb[146].mxu1 %vm519_vm4, %v10220_v35 }
0x17fa   :  { %19795 = vmatpush3.xpose.msk.msra.mxu1 %vm519_vm4, %v10300_v55  ;;  %19796 = vmatprep.mubr.msk.f32.mxu1 %vm21047_vm3, %v21046_v28 }
0x17fb   :  { %19804 = vmatprep.subr.mxu1 %v21046_v28  ;;  %v10612_v61 = vpop.permute.xlu1 %10611 }
0x17fc   :  { %v10534_v35 = vpop.permute.xlu0 %10533 }
0x17fd   :  { %19797 = vmatmul.mubr.msk.f32.vlgmr.msra.gmra.mrb[148].mxu1 %vm519_vm4, %v10298_v17 }
0x17fe   :  { %19805 = vmatpush3.xpose.msk.msra.mxu1 %vm519_vm4, %v10456_v21  ;;  %19806 = vmatprep.mubr.msk.f32.mxu1 %vm21047_vm3, %v21046_v28 }
0x17ff   :  { %19814 = vmatprep.subr.mxu1 %v21046_v28  ;;  %v10610_v10 = vpop.permute.xlu1 %10609 }
0x1800   :  { %v10532_v32 = vpop.permute.xlu0 %10531 }
0x1801   :  { %19807 = vmatmul.mubr.msk.f32.vlgmr.msra.gmra.mrb[150].mxu1 %vm519_vm4, %v10454_v8 }
0x1802   :  { %19815 = vmatpush3.xpose.msk.msra.mxu1 %vm519_vm4, %v10612_v61  ;;  %19816 = vmatprep.mubr.msk.f32.mxu1 %vm21047_vm3, %v21046_v28 }
0x1803   :  { %19824 = vmatprep.subr.mxu1 %v21046_v28  ;;  %v10768_v26 = vpop.permute.xlu1 %10767 }
0x1804   :  { %v10690_v8 = vpop.permute.xlu0 %10689 }
0x1805   :  { %19817 = vmatmul.mubr.msk.f32.vlgmr.msra.gmra.mrb[152].mxu1 %vm519_vm4, %v10610_v10 }
0x1806   :  { %19825 = vmatpush3.xpose.msk.msra.mxu1 %vm519_vm4, %v10768_v26  ;;  %19826 = vmatprep.mubr.msk.f32.mxu1 %vm21047_vm3, %v21046_v28 }
0x1807   :  { %v10766_v39 = vpop.permute.xlu1 %10765  ;;  %19834 = vmatprep.subr.mxu1 %v21046_v28 }
0x1809   :  { %19827 = vmatmul.mubr.msk.f32.vlgmr.msra.gmra.mrb[154].mxu1 %vm519_vm4, %v10766_v39 }
0x180a   :  { %19836 = vmatprep.mubr.msk.f32.mxu1 %vm21047_vm3, %v21046_v28 }
0x18b9   :  { %v9638_v25 = vpop.f32.mrb[138].mxu1 }
0x18ba   :  { %v19750_v18 = vpop.f32.mrb[139].mxu1 }
0x18bc   :  { %v9561_v29 = vpop.f32.mrb[150].mxu0 }
0x18bd   :  { %v10112_v12 = vcombine.low %v9561_v29, %v9638_v25  ;;  %v9792_v6 = vpop.f32.mrb[140].mxu1  ;;  %v19745_v30 = vpop.f32.mrb[151].mxu0 }
0x18be   :  { %v19760_v56 = vpop.f32.mrb[141].mxu1 }
0x18bf   :  { %19783 = vmatprep.mubr.msk.f32.mxu0 %vm519_vm4, %v10112_v12 }
0x18c0   :  { %v9715_v1 = vpop.f32.mrb[152].mxu0 }
0x18c1   :  { %v10113_v48 = vcombine.low %v9715_v1, %v9792_v6  ;;  %v9946_v23 = vpop.f32.mrb[142].mxu1  ;;  %v19755_v58 = vpop.f32.mrb[153].mxu0 }
0x18c2   :  { %v19770_v3 = vpop.f32.mrb[143].mxu1 }
0x18c3   :  { %19784 = vmatmul.mubr.msk.f32.vlgmr.msra.gmra.mrb[158].mxu0 %vm519_vm4, %v10113_v48 }
0x18c4   :  { %19800 = vmatpush3.xpose.msk.msra.mxu0 %vm519_vm4, %v10378_v15  ;;  %v9869_v52 = vpop.f32.mrb[154].mxu0  ;;  %v10688_v15 = vpop.permute.xlu0 %10687 }
0x18c5   :  { %v10114_v24 = vcombine.low %v9869_v52, %v9946_v23  ;;  %v10100_v38 = vpop.f32.mrb[144].mxu1  ;;  %v19765_v46 = vpop.f32.mrb[155].mxu0  ;;  %19809 = vmatprep.subr.mxu0 %v21046_v28 }
0x18c6   :  { %v19780_v60 = vpop.f32.mrb[145].mxu1 }
0x18c7   :  { %19786 = vmatprep.mubr.msk.f32.mxu0 %vm519_vm4, %v10114_v24 }
0x18c8   :  { %v10023_v17 = vpop.f32.mrb[156].mxu0 }
0x18c9   :  { %v10115_v53 = vcombine.low %v10023_v17, %v10100_v38  ;;  %v19775_v20 = vpop.f32.mrb[157].mxu0 }
0x18cb   :  { %19787 = vmatmul.mubr.msk.f32.gmra.mrb[160].mxu0 %vm519_vm4, %v10115_v53 }
0x18cc   :  { %v10293_v5 = vpop.f32.mrb[146].mxu1  ;;  %19801 = vmatprep.mubr.msk.f32.mxu0 %vm21047_vm3, %v21046_v28 }
0x18cd   :  { %v19793_v21 = vpop.f32.mrb[147].mxu1  ;;  %v10843_v45 = vsel %vm1134_vm5, %v10293_v5, -inf }
0x18ce   :  { %10844 = vmax.xlane.f32.xlu0 %v10843_v45 }
0x18cf   :  { %19802 = vmatmul.mubr.msk.f32.vlgmr.msra.gmra.mrb[162].mxu0 %vm519_vm4, %v10376_v34 }
0x18d0   :  { %v10371_v55 = vpop.f32.mrb[148].mxu1  ;;  %19810 = vmatpush3.xpose.msk.msra.mxu0 %vm519_vm4, %v10534_v35  ;;  %19811 = vmatprep.mubr.msk.f32.mxu0 %vm21047_vm3, %v21046_v28 }
0x18d1   :  { %v19798_v61 = vpop.f32.mrb[149].mxu1  ;;  %v10846_v10 = vsel %vm1134_vm5, %v10371_v55, -inf  ;;  %19819 = vmatprep.subr.mxu0 %v21046_v28 }
0x18d2   :  { %10847 = vmax.xlane.f32.xlu1 %v10846_v10 }
0x18d3   :  { %19812 = vmatmul.mubr.msk.f32.vlgmr.msra.gmra.mrb[164].mxu0 %vm519_vm4, %v10532_v32 }
0x18d4   :  { %v10527_v26 = vpop.f32.mrb[150].mxu1  ;;  %19820 = vmatpush3.xpose.msk.msra.mxu0 %vm519_vm4, %v10690_v8  ;;  %19821 = vmatprep.mubr.msk.f32.mxu0 %vm21047_vm3, %v21046_v28 }
0x18d5   :  { %v19808_v39 = vpop.f32.mrb[151].mxu1  ;;  %v10852_v9 = vsel %vm1134_vm5, %v10527_v26, -inf  ;;  %19829 = vmatprep.subr.mxu0 %v21046_v28 }
0x18d6   :  { %10853 = vmax.xlane.f32.xlu0 %v10852_v9 }
0x18d7   :  { %19822 = vmatmul.mubr.msk.f32.vlgmr.msra.gmra.mrb[166].mxu0 %vm519_vm4, %v10688_v15 }
0x18d8   :  { %v10683_v25 = vpop.f32.mrb[152].mxu1  ;;  %19831 = vmatprep.mubr.msk.f32.mxu0 %vm21047_vm3, %v21046_v28 }
0x18d9   :  { %v19818_v18 = vpop.f32.mrb[153].mxu1  ;;  %v10858_v17 = vsel %vm1134_vm5, %v10683_v25, -inf }
0x18dc   :  { %v10839_v29 = vpop.f32.mrb[154].mxu1 }
0x18dd   :  { %v19828_v12 = vpop.f32.mrb[155].mxu1  ;;  %v10864_v21 = vsel %vm1134_vm5, %v10839_v29, -inf }
0x195b   :  { %v10845_v6 = vpop.xlane.xlu0 %10844 }
0x195c   :  { %v10867_v34 = vsub.f32 %v10293_v5, %v10845_v6 }
0x195e   :  { %v10875_v48 = vmul.f32 1.442695, %v10867_v34 }
0x195f   :  { %v10848_v30 = vpop.xlane.xlu1 %10847 }
0x1960   :  { %v10868_v56 = vsub.f32 %v10371_v55, %v10848_v30  ;;  %20656 = vpow2.f32 %v10875_v48 }
0x1962   :  { %v10877_v23 = vmul.f32 1.442695, %v10868_v56 }
0x1963   :  { %v10854_v1 = vpop.xlane.xlu0 %10853 }
0x1964   :  { %v10870_v58 = vsub.f32 %v10527_v26, %v10854_v1  ;;  %20658 = vpow2.f32 %v10877_v23 }
0x1966   :  { %v10881_v3 = vmul.f32 1.442695, %v10870_v58 }
0x1968   :  { %20660 = vpow2.f32 %v10881_v3 }
0x196a   :  { %v20657_v20 = vpop.eup %20656 }
0x196b   :  { %v10891_v8 = vsel %vm1134_vm5, %v20657_v20, 0.0 }
0x196e   :  { %v22866_v45 = vpop.eup %20658 }
0x196f   :  { %v10894_v55 = vsel %vm1134_vm5, %v22866_v45, 0.0 }
0x1972   :  { %v22871_v61 = vpop.eup %20660 }
0x1973   :  { %v10900_v10 = vsel %vm1134_vm5, %v22871_v61, 0.0 }
0x19a2   :  { %v10449_v35 = vpop.f32.mrb[162].mxu0 }
0x19a3   :  { %v19803_v52 = vpop.f32.mrb[163].mxu0  ;;  %v10849_v24 = vsel %vm1134_vm5, %v10449_v35, -inf }
0x19a4   :  { %10850 = vmax.xlane.f32.xlu0 %v10849_v24 }
0x19a6   :  { %v10605_v38 = vpop.f32.mrb[164].mxu0 }
0x19a7   :  { %v19813_v46 = vpop.f32.mrb[165].mxu0  ;;  %v10855_v60 = vsel %vm1134_vm5, %v10605_v38, -inf }
0x19a8   :  { %10856 = vmax.xlane.f32.xlu1 %v10855_v60  ;;  %10859 = vmax.xlane.f32.xlu0 %v10858_v17 }
0x19aa   :  { %v10761_v53 = vpop.f32.mrb[166].mxu0 }
0x19ab   :  { %v19823_v32 = vpop.f32.mrb[167].mxu0  ;;  %v10861_v5 = vsel %vm1134_vm5, %v10761_v53, -inf }
0x19ac   :  { %10862 = vmax.xlane.f32.xlu1 %v10861_v5  ;;  %10865 = vmax.xlane.f32.xlu0 %v10864_v21 }
0x19b0   :  { %10892 = vadd.xlane.f32.xlu1 %v10891_v8  ;;  %10895 = vadd.xlane.f32.xlu0 %v10894_v55 }
0x19b4   :  { %10901 = vadd.xlane.f32.xlu0 %v10900_v10 }
0x19c1   :  { %10931 = vrot.lane.b32.xlu1 %v22565_v50, %s21051_s21 }
0x19c5   :  { %11085 = vrot.lane.b32.xlu1 %v22573_v59, %s21051_s21 }
0x19c9   :  { %11162 = vrot.lane.b32.xlu1 %v22583_v37, %s21051_s21 }
0x19cd   :  { %11316 = vrot.lane.b32.xlu1 %v22593_v43, %s21051_s21 }
0x1a31   :  { %v10851_v26 = vpop.xlane.xlu0 %10850 }
0x1a32   :  { %v10869_v39 = vsub.f32 %v10449_v35, %v10851_v26 }
0x1a34   :  { %v10879_v9 = vmul.f32 1.442695, %v10869_v39 }
0x1a35   :  { %v10860_v15 = vpop.xlane.xlu0 %10859  ;;  %v10857_v18 = vpop.xlane.xlu1 %10856 }
0x1a36   :  { %20662 = vpow2.f32 %v10879_v9  ;;  %v10872_v12 = vsub.f32 %v10683_v25, %v10860_v15  ;;  %v10871_v6 = vsub.f32 %v10605_v38, %v10857_v18 }
0x1a38   :  { %v10885_v30 = vmul.f32 1.442695, %v10872_v12  ;;  %v10883_v34 = vmul.f32 1.442695, %v10871_v6 }
0x1a39   :  { %v10866_v56 = vpop.xlane.xlu0 %10865  ;;  %v10863_v1 = vpop.xlane.xlu1 %10862 }
0x1a3a   :  { %20664 = vpow2.f32 %v10885_v30  ;;  %v10874_v48 = vsub.f32 %v10839_v29, %v10866_v56  ;;  %v10873_v23 = vsub.f32 %v10761_v53, %v10863_v1 }
0x1a3b   :  { %20666 = vpow2.f32 %v10883_v34 }
0x1a3c   :  { %v10889_v58 = vmul.f32 1.442695, %v10874_v48  ;;  %v10887_v3 = vmul.f32 1.442695, %v10873_v23 }
0x1a3d   :  { %v10893_v52 = vpop.xlane.xlu1 %10892  ;;  %v10896_v10 = vpop.xlane.xlu0 %10895 }
0x1a3e   :  { %20668 = vpow2.f32 %v10889_v58 }
0x1a3f   :  { %20670 = vpow2.f32 %v10887_v3 }
0x1a40   :  { %v22883_v35 = vpop.eup %20662  ;;  %20672 = vrcp.f32 %v10893_v52 }
0x1a41   :  { %v10932_v24 = vpop.permute.xlu1 %10931  ;;  %v10897_v25 = vsel %vm1134_vm5, %v22883_v35, 0.0  ;;  %20674 = vrcp.f32 %v10896_v10  ;;  %v10902_v39 = vpop.xlane.xlu0 %10901 }
0x1a42   :  { %10898 = vadd.xlane.f32.xlu1 %v10897_v25  ;;  %19830 = vmatpush3.msk.msra.mxu0 %vm1229_vm6, %v10932_v24 }
0x1a43   :  { %19839 = vmatprep.subr.mxu0 %v21046_v28 }
0x1a44   :  { %v22889_v29 = vpop.eup %20664 }
0x1a45   :  { %v22891_v38 = vpop.eup %20666  ;;  %v10906_v46 = vsel %vm1134_vm5, %v22889_v29, 0.0  ;;  %v11086_v55 = vpop.permute.xlu1 %11085 }
0x1a46   :  { %10907 = vadd.xlane.f32.xlu0 %v10906_v46  ;;  %v10903_v60 = vsel %vm1134_vm5, %v22891_v38, 0.0  ;;  %v8772_v46 = vld [vmem:[%s23778_s0 + $0x8] sm:$0xff] }
0x1a47   :  { %10904 = vadd.xlane.f32.xlu1 %v10903_v60 }
0x1a48   :  { %v22897_v17 = vpop.eup %20668 }
0x1a49   :  { %v22899_v53 = vpop.eup %20670  ;;  %v10912_v32 = vsel %vm1134_vm5, %v22897_v17, 0.0 }
0x1a4a   :  { %10913 = vadd.xlane.f32.xlu0 %v10912_v32  ;;  %v10909_v5 = vsel %vm1134_vm5, %v22899_v53, 0.0  ;;  %v20673_v21 = vpop.eup %20672 }
0x1a4b   :  { %10910 = vadd.xlane.f32.xlu1 %v10909_v5  ;;  %v10923_v8 = vmul.f32 %v20673_v21, %v20657_v20  ;;  %v11163_v20 = vpop.permute.xlu1 %11162  ;;  %v20675_v6 = vpop.eup %20674 }
0x1a4c   :  { %v10924_v1 = vmul.f32 %v20675_v6, %v22866_v45 }
0x1a4d   :  { %19832 = vmatmul.mubr.msk.f32.vlgmr.msra.gmra.mrb[168].mxu0 %vm1225_vm7, %v10923_v8 }
0x1a4e   :  { %19840 = vmatpush3.msk.msra.mxu0 %vm1229_vm6, %v11086_v55  ;;  %19841 = vmatprep.mubr.msk.f32.mxu0 %vm21047_vm3, %v21046_v28 }
0x1a4f   :  { %19849 = vmatprep.subr.mxu0 %v21046_v28  ;;  %v11317_v26 = vpop.permute.xlu1 %11316 }
0x1a5c   :  { %11470 = vrot.lane.b32.xlu1 %v22601_v40, %s21051_s21 }
0x1a60   :  { %11656 = vrot.lane.b32.xlu1 %v22607_v4, %s21052_s8  ;;  %11008 = vrot.lane.b32.xlu0 %v22571_v0, %s21051_s21 }
0x1a64   :  { %11734 = vrot.lane.b32.xlu1 %v22617_v62, %s21052_s8  ;;  %11239 = vrot.lane.b32.xlu0 %v22579_v63, %s21051_s21 }
0x1a68   :  { %11892 = vrot.lane.b32.xlu1 %v22583_v37, %s21053_s14  ;;  %11393 = vrot.lane.b32.xlu0 %v22589_v2, %s21051_s21 }
0x1a6c   :  { %11890 = vrot.lane.b32.xlu1 %v22635_v27, %s21052_s8  ;;  %11658 = vrot.lane.b32.xlu0 %v22565_v50, %s21053_s14 }
0x1a70   :  { %12048 = vrot.lane.b32.xlu1 %v22593_v43, %s21053_s14  ;;  %11736 = vrot.lane.b32.xlu0 %v22571_v0, %s21053_s14 }
0x1a74   :  { %12046 = vrot.lane.b32.xlu1 %v22653_v7, %s21052_s8  ;;  %11814 = vrot.lane.b32.xlu0 %v22573_v59, %s21053_s14 }
0x1a78   :  { %12204 = vrot.lane.b32.xlu1 %v22601_v40, %s21053_s14  ;;  %11812 = vrot.lane.b32.xlu0 %v22620_v47, %s21052_s8 }
0x1a7c   :  { %12202 = vrot.lane.b32.xlu1 %v22668_v57, %s21052_s8  ;;  %11970 = vrot.lane.b32.xlu0 %v22579_v63, %s21053_s14 }
0x1a80   :  { %11968 = vrot.lane.b32.xlu0 %v22638_v49, %s21052_s8 }
0x1a84   :  { %12126 = vrot.lane.b32.xlu0 %v22589_v2, %s21053_s14 }
0x1a88   :  { %12124 = vrot.lane.b32.xlu0 %v22656_v14, %s21052_s8 }
0x1acf   :  { %v10899_v9 = vpop.xlane.xlu1 %10898 }
0x1ad0   :  { %20676 = vrcp.f32 %v10899_v9 }
0x1ad1   :  { %20678 = vrcp.f32 %v10902_v39 }
0x1ad3   :  { %v10908_v15 = vpop.xlane.xlu0 %10907 }
0x1ad4   :  { %v10905_v18 = vpop.xlane.xlu1 %10904 }
0x1ad5   :  { %20680 = vrcp.f32 %v10905_v18 }
0x1ad6   :  { %20682 = vrcp.f32 %v10908_v15 }
0x1ad7   :  { %v10914_v12 = vpop.xlane.xlu0 %10913 }
0x1ad8   :  { %v10911_v30 = vpop.xlane.xlu1 %10910 }
0x1ad9   :  { %20684 = vrcp.f32 %v10911_v30 }
0x1ada   :  { %v20677_v34 = vpop.eup %20676  ;;  %20686 = vrcp.f32 %v10914_v12 }
0x1adb   :  { %v11009_v56 = vpop.permute.xlu0 %11008  ;;  %v10925_v48 = vmul.f32 %v20677_v34, %v22883_v35  ;;  %v20679_v23 = vpop.eup %20678 }
0x1adc   :  { %v11471_v58 = vpop.permute.xlu1 %11470  ;;  %19835 = vmatpush3.msk.msra.mxu1 %vm1229_vm6, %v11009_v56  ;;  %v10926_v52 = vmul.f32 %v20679_v23, %v22871_v61 }
0x1add   :  { %19837 = vmatmul.mubr.msk.f32.vlgmr.msra.gmra.mrb[156].mxu1 %vm1225_vm7, %v10924_v1  ;;  %19842 = vmatmul.mubr.msk.f32.vlgmr.msra.gmra.mrb[170].mxu0 %vm1225_vm7, %v10925_v48 }
0x1ade   :  { %19844 = vmatprep.subr.mxu1 %v21046_v28  ;;  %19846 = vmatprep.mubr.msk.f32.mxu1 %vm21047_vm3, %v21046_v28 }
0x1adf   :  { %v20681_v3 = vpop.eup %20680  ;;  %19845 = vmatpush3.msk.msra.mxu1 %vm1229_vm6, %v11163_v20  ;;  %v11240_v45 = vpop.permute.xlu0 %11239  ;;  %19851 = vmatprep.mubr.msk.f32.mxu0 %vm21047_vm3, %v21046_v28 }
0x1ae0   :  { %v20683_v35 = vpop.eup %20682  ;;  %v11657_v24 = vpop.permute.xlu1 %11656  ;;  %19850 = vmatpush3.msk.msra.mxu0 %vm1229_vm6, %v11240_v45  ;;  %19854 = vmatprep.subr.mxu1 %v21046_v28  ;;  %v10927_v25 = vmul.f32 %v20681_v3, %v22891_v38 }
0x1ae1   :  { %19847 = vmatmul.mubr.msk.f32.vlgmr.msra.gmra.mrb[158].mxu1 %vm1225_vm7, %v10926_v52  ;;  %19859 = vmatprep.subr.mxu0 %v21046_v28  ;;  %v10928_v61 = vmul.f32 %v20683_v35, %v22889_v29 }
0x1ae2   :  { %19852 = vmatmul.mubr.msk.f32.vlgmr.msra.gmra.mrb[172].mxu0 %vm1225_vm7, %v10927_v25  ;;  %19855 = vmatpush3.msk.msra.mxu1 %vm1229_vm6, %v11317_v26 }
0x1ae3   :  { %v20685_v60 = vpop.eup %20684  ;;  %v11394_v32 = vpop.permute.xlu0 %11393  ;;  %19856 = vmatprep.mubr.msk.f32.mxu1 %vm21047_vm3, %v21046_v28  ;;  %19861 = vmatprep.mubr.msk.f32.mxu0 %vm21047_vm3, %v21046_v28 }
0x1ae4   :  { %v20687_v38 = vpop.eup %20686  ;;  %v11735_v5 = vpop.permute.xlu1 %11734  ;;  %19860 = vmatpush3.msk.msra.mxu0 %vm1229_vm6, %v11394_v32  ;;  %19864 = vmatprep.subr.mxu1 %v21046_v28  ;;  %v10929_v21 = vmul.f32 %v20685_v60, %v22899_v53 }
0x1ae5   :  { %19857 = vmatmul.mubr.msk.f32.vlgmr.msra.gmra.mrb[160].mxu1 %vm1225_vm7, %v10928_v61  ;;  %19869 = vmatprep.subr.mxu0 %v8772_v46  ;;  %v10930_v29 = vmul.f32 %v20687_v38, %v22897_v17 }
0x1ae6   :  { %19862 = vmatmul.mubr.msk.f32.vlgmr.msra.gmra.mrb[174].mxu0 %vm1225_vm7, %v10929_v21  ;;  %19865 = vmatpush3.msk.msra.mxu1 %vm1229_vm6, %v11471_v58 }
0x1ae7   :  { %19866 = vmatprep.mubr.msk.f32.mxu1 %vm21047_vm3, %v21046_v28  ;;  %19877 = vmatprep.subr.mxu1 %v21046_v28  ;;  %v11659_v53 = vpop.permute.xlu0 %11658 }
0x1ae8   :  { %v11893_v8 = vpop.permute.xlu1 %11892  ;;  %19870 = vmatpush3.msra.mxu0 %v8772_v46 }
0x1ae9   :  { %19867 = vmatmul.mubr.msk.f32.vlgmr.msra.gmra.mrb[162].mxu1 %vm1225_vm7, %v10930_v29  ;;  %19887 = vmatprep.subr.mxu0 %v21046_v28 }
0x1aea   :  { %19879 = vmatprep.mubr.msk.f32.mxu1 %vm21047_vm3, %v21046_v28 }
0x1aeb   :  { %v11737_v20 = vpop.permute.xlu0 %11736 }
0x1aec   :  { %v11891_v55 = vpop.permute.xlu1 %11890 }
0x1aed   :  { %19878 = vmatpush3.xpose.msk.msra.mxu1 %vm519_vm4, %v11659_v53 }
0x1aee   :  { %19882 = vmatprep.subr.mxu1 %v21046_v28 }
0x1aef   :  { %v11815_v18 = vpop.permute.xlu0 %11814 }
0x1af0   :  { %19880 = vmatmul.mubr.msk.f32.vlgmr.msra.gmra.mrb[164].mxu1 %vm519_vm4, %v11657_v24  ;;  %v12049_v17 = vpop.permute.xlu1 %12048 }
0x1af1   :  { %19883 = vmatpush3.xpose.msk.msra.mxu1 %vm519_vm4, %v11737_v20  ;;  %19884 = vmatprep.mubr.msk.f32.mxu1 %vm21047_vm3, %v21046_v28 }
0x1af2   :  { %19892 = vmatprep.subr.mxu1 %v21046_v28 }
0x1af3   :  { %v11813_v1 = vpop.permute.xlu0 %11812 }
0x1af4   :  { %19885 = vmatmul.mubr.msk.f32.vlgmr.msra.gmra.mrb[166].mxu1 %vm519_vm4, %v11735_v5  ;;  %v12047_v10 = vpop.permute.xlu1 %12046 }
0x1af5   :  { %19893 = vmatpush3.xpose.msk.msra.mxu1 %vm519_vm4, %v11893_v8  ;;  %19894 = vmatprep.mubr.msk.f32.mxu1 %vm21047_vm3, %v21046_v28 }
0x1af6   :  { %19902 = vmatprep.subr.mxu1 %v21046_v28 }
0x1af7   :  { %v11971_v52 = vpop.permute.xlu0 %11970 }
0x1af8   :  { %19895 = vmatmul.mubr.msk.f32.vlgmr.msra.gmra.mrb[168].mxu1 %vm519_vm4, %v11891_v55  ;;  %v12205_v26 = vpop.permute.xlu1 %12204 }
0x1af9   :  { %19903 = vmatpush3.xpose.msk.msra.mxu1 %vm519_vm4, %v12049_v17  ;;  %19904 = vmatprep.mubr.msk.f32.mxu1 %vm21047_vm3, %v21046_v28 }
0x1afa   :  { %19912 = vmatprep.subr.mxu1 %v21046_v28 }
0x1afb   :  { %v11969_v5 = vpop.permute.xlu0 %11968 }
0x1afc   :  { %19905 = vmatmul.mubr.msk.f32.vlgmr.msra.gmra.mrb[170].mxu1 %vm519_vm4, %v12047_v10  ;;  %v12203_v39 = vpop.permute.xlu1 %12202 }
0x1afd   :  { %19913 = vmatpush3.xpose.msk.msra.mxu1 %vm519_vm4, %v12205_v26  ;;  %19914 = vmatprep.mubr.msk.f32.mxu1 %vm21047_vm3, %v21046_v28 }
0x1afe   :  { %19922 = vmatprep.subr.mxu1 %v21046_v28 }
0x1aff   :  { %v12127_v29 = vpop.permute.xlu0 %12126 }
0x1b00   :  { %19915 = vmatmul.mubr.msk.f32.vlgmr.msra.gmra.mrb[172].mxu1 %vm519_vm4, %v12203_v39 }
0x1b01   :  { %19924 = vmatprep.mubr.msk.f32.mxu1 %vm21047_vm3, %v21046_v28 }
0x1b03   :  { %v12125_v10 = vpop.permute.xlu0 %12124 }
0x1b20   :  { %v11004_v9 = vpop.f32.mrb[168].mxu0 }
0x1b21   :  { %v19833_v15 = vpop.f32.mrb[169].mxu0 }
0x1bb0   :  { %v11081_v12 = vpop.f32.mrb[156].mxu1  ;;  %v11158_v6 = vpop.f32.mrb[170].mxu0 }
0x1bb1   :  { %v11555_v30 = vcombine.low %v11004_v9, %v11081_v12  ;;  %v19838_v34 = vpop.f32.mrb[157].mxu1  ;;  %v19843_v56 = vpop.f32.mrb[171].mxu0 }
0x1bb3   :  { %19871 = vmatprep.mubr.msk.f32.mxu0 %vm519_vm4, %v11555_v30 }
0x1bb4   :  { %v11235_v48 = vpop.f32.mrb[158].mxu1 }
0x1bb5   :  { %v11556_v23 = vcombine.low %v11158_v6, %v11235_v48  ;;  %v11312_v58 = vpop.f32.mrb[172].mxu0  ;;  %v19848_v3 = vpop.f32.mrb[159].mxu1 }
0x1bb6   :  { %v19853_v45 = vpop.f32.mrb[173].mxu0 }
0x1bb7   :  { %19872 = vmatmul.mubr.msk.f32.vlgmr.msra.gmra.mrb[158].mxu0 %vm519_vm4, %v11556_v23 }
0x1bb8   :  { %19888 = vmatpush3.xpose.msk.msra.mxu0 %vm519_vm4, %v11815_v18  ;;  %v11389_v35 = vpop.f32.mrb[160].mxu1 }
0x1bb9   :  { %v11557_v24 = vcombine.low %v11312_v58, %v11389_v35  ;;  %v11466_v25 = vpop.f32.mrb[174].mxu0  ;;  %v19858_v46 = vpop.f32.mrb[161].mxu1  ;;  %19897 = vmatprep.subr.mxu0 %v21046_v28 }
0x1bba   :  { %v19863_v60 = vpop.f32.mrb[175].mxu0 }
0x1bbb   :  { %19874 = vmatprep.mubr.msk.f32.mxu0 %vm519_vm4, %v11557_v24 }
0x1bbc   :  { %v11543_v32 = vpop.f32.mrb[162].mxu1 }
0x1bbd   :  { %v11558_v61 = vcombine.low %v11466_v25, %v11543_v32  ;;  %v19868_v38 = vpop.f32.mrb[163].mxu1 }
0x1bbf   :  { %19875 = vmatmul.mubr.msk.f32.gmra.mrb[160].mxu0 %vm519_vm4, %v11558_v61 }
0x1bc0   :  { %19889 = vmatprep.mubr.msk.f32.mxu0 %vm21047_vm3, %v21046_v28 }
0x1bc3   :  { %v11730_v21 = vpop.f32.mrb[164].mxu1  ;;  %19890 = vmatmul.mubr.msk.f32.vlgmr.msra.gmra.mrb[176].mxu0 %vm519_vm4, %v11813_v1 }
0x1bc4   :  { %v19881_v8 = vpop.f32.mrb[165].mxu1  ;;  %19898 = vmatpush3.xpose.msk.msra.mxu0 %vm519_vm4, %v11971_v52  ;;  %v12280_v53 = vsel %vm1134_vm5, %v11730_v21, -inf  ;;  %19899 = vmatprep.mubr.msk.f32.mxu0 %vm21047_vm3, %v21046_v28 }
0x1bc5   :  { %12281 = vmax.xlane.f32.xlu0 %v12280_v53  ;;  %19907 = vmatprep.subr.mxu0 %v21046_v28 }
0x1bc7   :  { %v11808_v55 = vpop.f32.mrb[166].mxu1  ;;  %19900 = vmatmul.mubr.msk.f32.vlgmr.msra.gmra.mrb[178].mxu0 %vm519_vm4, %v11969_v5 }
0x1bc8   :  { %v19886_v20 = vpop.f32.mrb[167].mxu1  ;;  %19908 = vmatpush3.xpose.msk.msra.mxu0 %vm519_vm4, %v12127_v29  ;;  %v12283_v17 = vsel %vm1134_vm5, %v11808_v55, -inf  ;;  %19909 = vmatprep.mubr.msk.f32.mxu0 %vm21047_vm3, %v21046_v28 }
0x1bc9   :  { %12284 = vmax.xlane.f32.xlu1 %v12283_v17  ;;  %19917 = vmatprep.subr.mxu0 %v21046_v28 }
0x1bcb   :  { %v11964_v26 = vpop.f32.mrb[168].mxu1  ;;  %19910 = vmatmul.mubr.msk.f32.vlgmr.msra.gmra.mrb[180].mxu0 %vm519_vm4, %v12125_v10 }
0x1bcc   :  { %v19896_v39 = vpop.f32.mrb[169].mxu1  ;;  %v12289_v9 = vsel %vm1134_vm5, %v11964_v26, -inf  ;;  %19919 = vmatprep.mubr.msk.f32.mxu0 %vm21047_vm3, %v21046_v28 }
0x1bcd   :  { %12290 = vmax.xlane.f32.xlu0 %v12289_v9 }
0x1bcf   :  { %v12120_v15 = vpop.f32.mrb[170].mxu1 }
0x1bd0   :  { %v19906_v18 = vpop.f32.mrb[171].mxu1  ;;  %v12295_v32 = vsel %vm1134_vm5, %v12120_v15, -inf }
0x1bd3   :  { %v12276_v12 = vpop.f32.mrb[172].mxu1 }
0x1bd4   :  { %v19916_v6 = vpop.f32.mrb[173].mxu1  ;;  %v12301_v29 = vsel %vm1134_vm5, %v12276_v12, -inf }
0x1c52   :  { %v12282_v30 = vpop.xlane.xlu0 %12281 }
0x1c53   :  { %v12304_v56 = vsub.f32 %v11730_v21, %v12282_v30 }
0x1c55   :  { %v12312_v23 = vmul.f32 1.442695, %v12304_v56 }
0x1c56   :  { %v12285_v34 = vpop.xlane.xlu1 %12284 }
0x1c57   :  { %v12305_v1 = vsub.f32 %v11808_v55, %v12285_v34  ;;  %20688 = vpow2.f32 %v12312_v23 }
0x1c59   :  { %v12314_v58 = vmul.f32 1.442695, %v12305_v1 }
0x1c5a   :  { %v12291_v48 = vpop.xlane.xlu0 %12290 }
0x1c5b   :  { %v12307_v3 = vsub.f32 %v11964_v26, %v12291_v48  ;;  %20690 = vpow2.f32 %v12314_v58 }
0x1c5d   :  { %v12318_v45 = vmul.f32 1.442695, %v12307_v3 }
0x1c5f   :  { %20692 = vpow2.f32 %v12318_v45 }
0x1c61   :  { %v20689_v38 = vpop.eup %20688 }
0x1c62   :  { %v12328_v53 = vsel %vm1134_vm5, %v20689_v38, 0.0 }
0x1c65   :  { %v23043_v8 = vpop.eup %20690 }
0x1c66   :  { %v12331_v55 = vsel %vm1134_vm5, %v23043_v8, 0.0 }
0x1c69   :  { %v23048_v20 = vpop.eup %20692 }
0x1c6a   :  { %v12337_v17 = vsel %vm1134_vm5, %v23048_v20, 0.0 }
0x1c96   :  { %v11886_v52 = vpop.f32.mrb[176].mxu0 }
0x1c97   :  { %v19891_v35 = vpop.f32.mrb[177].mxu0  ;;  %v12286_v24 = vsel %vm1134_vm5, %v11886_v52, -inf }
0x1c98   :  { %12287 = vmax.xlane.f32.xlu0 %v12286_v24 }
0x1c9a   :  { %v12042_v25 = vpop.f32.mrb[178].mxu0 }
0x1c9b   :  { %v19901_v46 = vpop.f32.mrb[179].mxu0  ;;  %v12292_v60 = vsel %vm1134_vm5, %v12042_v25, -inf }
0x1c9c   :  { %12293 = vmax.xlane.f32.xlu1 %v12292_v60  ;;  %12296 = vmax.xlane.f32.xlu0 %v12295_v32 }
0x1c9e   :  { %v12198_v61 = vpop.f32.mrb[180].mxu0 }
0x1c9f   :  { %v19911_v5 = vpop.f32.mrb[181].mxu0  ;;  %v12298_v21 = vsel %vm1134_vm5, %v12198_v61, -inf }
0x1ca0   :  { %12299 = vmax.xlane.f32.xlu1 %v12298_v21  ;;  %12302 = vmax.xlane.f32.xlu0 %v12301_v29 }
0x1ca4   :  { %12329 = vadd.xlane.f32.xlu1 %v12328_v53  ;;  %12332 = vadd.xlane.f32.xlu0 %v12331_v55 }
0x1ca8   :  { %12338 = vadd.xlane.f32.xlu0 %v12337_v17 }
0x1cb5   :  { %12368 = vrot.lane.b32.xlu1 %v22565_v50, %s21054_s10 }
0x1cb9   :  { %12522 = vrot.lane.b32.xlu1 %v22573_v59, %s21054_s10 }
0x1cbd   :  { %12599 = vrot.lane.b32.xlu1 %v22583_v37, %s21054_s10 }
0x1cc1   :  { %12753 = vrot.lane.b32.xlu1 %v22593_v43, %s21054_s10 }
0x1d25   :  { %v12288_v10 = vpop.xlane.xlu0 %12287 }
0x1d26   :  { %v12306_v26 = vsub.f32 %v11886_v52, %v12288_v10 }
0x1d28   :  { %v12316_v39 = vmul.f32 1.442695, %v12306_v26 }
0x1d29   :  { %v12297_v9 = vpop.xlane.xlu0 %12296  ;;  %v12294_v18 = vpop.xlane.xlu1 %12293 }
0x1d2a   :  { %20694 = vpow2.f32 %v12316_v39  ;;  %v12309_v6 = vsub.f32 %v12120_v15, %v12297_v9  ;;  %v12308_v30 = vsub.f32 %v12042_v25, %v12294_v18 }
0x1d2c   :  { %v12322_v34 = vmul.f32 1.442695, %v12309_v6  ;;  %v12320_v56 = vmul.f32 1.442695, %v12308_v30 }
0x1d2d   :  { %v12303_v1 = vpop.xlane.xlu0 %12302  ;;  %v12300_v48 = vpop.xlane.xlu1 %12299 }
0x1d2e   :  { %20696 = vpow2.f32 %v12322_v34  ;;  %v12311_v23 = vsub.f32 %v12276_v12, %v12303_v1  ;;  %v12310_v58 = vsub.f32 %v12198_v61, %v12300_v48 }
0x1d2f   :  { %20698 = vpow2.f32 %v12320_v56 }
0x1d30   :  { %v12326_v3 = vmul.f32 1.442695, %v12311_v23  ;;  %v12324_v45 = vmul.f32 1.442695, %v12310_v58 }
0x1d31   :  { %v12330_v35 = vpop.xlane.xlu1 %12329 }
0x1d32   :  { %20700 = vpow2.f32 %v12326_v3 }
0x1d33   :  { %20702 = vpow2.f32 %v12324_v45 }
0x1d34   :  { %v23060_v52 = vpop.eup %20694  ;;  %20704 = vrcp.f32 %v12330_v35 }
0x1d35   :  { %v12369_v24 = vpop.permute.xlu1 %12368  ;;  %v12334_v15 = vsel %vm1134_vm5, %v23060_v52, 0.0 }
0x1d36   :  { %12335 = vadd.xlane.f32.xlu1 %v12334_v15  ;;  %19918 = vmatpush3.msk.msra.mxu0 %vm1229_vm6, %v12369_v24 }
0x1d37   :  { %19927 = vmatprep.subr.mxu0 %v21046_v28 }
0x1d38   :  { %v23066_v12 = vpop.eup %20696 }
0x1d39   :  { %v23068_v25 = vpop.eup %20698  ;;  %v12343_v46 = vsel %vm1134_vm5, %v23066_v12, 0.0  ;;  %v12523_v55 = vpop.permute.xlu1 %12522 }
0x1d3a   :  { %12344 = vadd.xlane.f32.xlu0 %v12343_v46  ;;  %v12340_v60 = vsel %vm1134_vm5, %v23068_v25, 0.0 }
0x1d3b   :  { %12341 = vadd.xlane.f32.xlu1 %v12340_v60 }
0x1d3c   :  { %v23074_v32 = vpop.eup %20700 }
0x1d3d   :  { %v23076_v61 = vpop.eup %20702  ;;  %v12349_v5 = vsel %vm1134_vm5, %v23074_v32, 0.0 }
0x1d3e   :  { %12350 = vadd.xlane.f32.xlu0 %v12349_v5  ;;  %v12346_v21 = vsel %vm1134_vm5, %v23076_v61, 0.0  ;;  %v20705_v29 = vpop.eup %20704 }
0x1d3f   :  { %12347 = vadd.xlane.f32.xlu1 %v12346_v21  ;;  %v12360_v53 = vmul.f32 %v20705_v29, %v20689_v38 }
0x1d41   :  { %19920 = vmatmul.mubr.msk.f32.vlgmr.msra.gmra.mrb[182].mxu0 %vm1225_vm7, %v12360_v53 }
0x1d42   :  { %19928 = vmatpush3.msk.msra.mxu0 %vm1229_vm6, %v12523_v55  ;;  %19929 = vmatprep.mubr.msk.f32.mxu0 %vm21047_vm3, %v21046_v28 }
0x1d43   :  { %19937 = vmatprep.subr.mxu0 %v21046_v28 }
0x1d50   :  { %12907 = vrot.lane.b32.xlu1 %v22601_v40, %s21054_s10 }
0x1d54   :  { %13093 = vrot.lane.b32.xlu1 %v22607_v4, %s21055_s11  ;;  %12445 = vrot.lane.b32.xlu0 %v22571_v0, %s21054_s10  ;;  %v12600_v4 = vpop.permute.xlu1 %12599 }
0x1d58   :  { %13171 = vrot.lane.b32.xlu1 %v22617_v62, %s21055_s11  ;;  %12676 = vrot.lane.b32.xlu0 %v22579_v63, %s21054_s10  ;;  %v12333_v62 = vpop.xlane.xlu0 %12332 }
0x1d59   :  { %20706 = vrcp.f32 %v12333_v62 }
0x1d5c   :  { %13329 = vrot.lane.b32.xlu1 %v22583_v37, %s21056_s17  ;;  %12830 = vrot.lane.b32.xlu0 %v22589_v2, %s21054_s10 }
0x1d60   :  { %13327 = vrot.lane.b32.xlu1 %v22635_v27, %s21055_s11  ;;  %13095 = vrot.lane.b32.xlu0 %v22565_v50, %s21056_s17  ;;  %v12754_v27 = vpop.permute.xlu1 %12753 }
0x1d64   :  { %13485 = vrot.lane.b32.xlu1 %v22593_v43, %s21056_s17  ;;  %13173 = vrot.lane.b32.xlu0 %v22571_v0, %s21056_s17 }
0x1d68   :  { %13483 = vrot.lane.b32.xlu1 %v22653_v7, %s21055_s11  ;;  %13251 = vrot.lane.b32.xlu0 %v22573_v59, %s21056_s17 }
0x1d6c   :  { %13641 = vrot.lane.b32.xlu1 %v22601_v40, %s21056_s17  ;;  %13249 = vrot.lane.b32.xlu0 %v22620_v47, %s21055_s11  ;;  %v12339_v47 = vpop.xlane.xlu0 %12338 }
0x1d70   :  { %13639 = vrot.lane.b32.xlu1 %v22668_v57, %s21055_s11  ;;  %13407 = vrot.lane.b32.xlu0 %v22579_v63, %s21056_s17 }
0x1d74   :  { %13405 = vrot.lane.b32.xlu0 %v22638_v49, %s21055_s11  ;;  %v20707_v49 = vpop.eup %20706 }
0x1d78   :  { %13563 = vrot.lane.b32.xlu0 %v22589_v2, %s21056_s17 }
0x1d7c   :  { %13561 = vrot.lane.b32.xlu0 %v22656_v14, %s21055_s11  ;;  %v12361_v14 = vmul.f32 %v20707_v49, %v23043_v8 }
0x1dc3   :  { %v12336_v7 = vpop.xlane.xlu1 %12335 }
0x1dc4   :  { %20708 = vrcp.f32 %v12336_v7 }
0x1dc5   :  { %20710 = vrcp.f32 %v12339_v47 }
0x1dc7   :  { %v12345_v57 = vpop.xlane.xlu0 %12344 }
0x1dc8   :  { %v12342_v38 = vpop.xlane.xlu1 %12341 }
0x1dc9   :  { %20712 = vrcp.f32 %v12342_v38 }
0x1dca   :  { %20714 = vrcp.f32 %v12345_v57 }
0x1dcb   :  { %v12351_v17 = vpop.xlane.xlu0 %12350 }
0x1dcc   :  { %v12348_v10 = vpop.xlane.xlu1 %12347 }
0x1dcd   :  { %20716 = vrcp.f32 %v12348_v10 }
0x1dce   :  { %v20709_v26 = vpop.eup %20708  ;;  %20718 = vrcp.f32 %v12351_v17 }
0x1dcf   :  { %v12362_v39 = vmul.f32 %v20709_v26, %v23060_v52  ;;  %v12446_v9 = vpop.permute.xlu0 %12445  ;;  %v20711_v18 = vpop.eup %20710 }
0x1dd0   :  { %v12908_v6 = vpop.permute.xlu1 %12907  ;;  %19923 = vmatpush3.msk.msra.mxu1 %vm1229_vm6, %v12446_v9  ;;  %v12363_v8 = vmul.f32 %v20711_v18, %v23048_v20  ;;  %v8773_v20 = vld [vmem:[%s23778_s0 + $0x10] sm:$0xff] }
0x1dd1   :  { %19925 = vmatmul.mubr.msk.f32.vlgmr.msra.gmra.mrb[174].mxu1 %vm1225_vm7, %v12361_v14  ;;  %19930 = vmatmul.mubr.msk.f32.vlgmr.msra.gmra.mrb[184].mxu0 %vm1225_vm7, %v12362_v39 }
0x1dd2   :  { %19932 = vmatprep.subr.mxu1 %v21046_v28  ;;  %19934 = vmatprep.mubr.msk.f32.mxu1 %vm21047_vm3, %v21046_v28 }
0x1dd3   :  { %v20713_v30 = vpop.eup %20712  ;;  %19933 = vmatpush3.msk.msra.mxu1 %vm1229_vm6, %v12600_v4  ;;  %v12677_v34 = vpop.permute.xlu0 %12676  ;;  %19939 = vmatprep.mubr.msk.f32.mxu0 %vm21047_vm3, %v21046_v28 }
0x1dd4   :  { %v20715_v56 = vpop.eup %20714  ;;  %v12364_v1 = vmul.f32 %v20713_v30, %v23068_v25  ;;  %v13094_v48 = vpop.permute.xlu1 %13093  ;;  %19938 = vmatpush3.msk.msra.mxu0 %vm1229_vm6, %v12677_v34  ;;  %19942 = vmatprep.subr.mxu1 %v21046_v28 }
0x1dd5   :  { %19935 = vmatmul.mubr.msk.f32.vlgmr.msra.gmra.mrb[176].mxu1 %vm1225_vm7, %v12363_v8  ;;  %19947 = vmatprep.subr.mxu0 %v21046_v28  ;;  %v12365_v58 = vmul.f32 %v20715_v56, %v23066_v12 }
0x1dd6   :  { %19940 = vmatmul.mubr.msk.f32.vlgmr.msra.gmra.mrb[186].mxu0 %vm1225_vm7, %v12364_v1  ;;  %19943 = vmatpush3.msk.msra.mxu1 %vm1229_vm6, %v12754_v27 }
0x1dd7   :  { %v20717_v23 = vpop.eup %20716  ;;  %v12831_v3 = vpop.permute.xlu0 %12830  ;;  %19944 = vmatprep.mubr.msk.f32.mxu1 %vm21047_vm3, %v21046_v28  ;;  %19949 = vmatprep.mubr.msk.f32.mxu0 %vm21047_vm3, %v21046_v28 }
0x1dd8   :  { %v20719_v45 = vpop.eup %20718  ;;  %v12366_v35 = vmul.f32 %v20717_v23, %v23076_v61  ;;  %v13172_v52 = vpop.permute.xlu1 %13171  ;;  %19948 = vmatpush3.msk.msra.mxu0 %vm1229_vm6, %v12831_v3  ;;  %19952 = vmatprep.subr.mxu1 %v21046_v28 }
0x1dd9   :  { %19945 = vmatmul.mubr.msk.f32.vlgmr.msra.gmra.mrb[178].mxu1 %vm1225_vm7, %v12365_v58  ;;  %19957 = vmatprep.subr.mxu0 %v8773_v20  ;;  %v12367_v24 = vmul.f32 %v20719_v45, %v23074_v32 }
0x1dda   :  { %19950 = vmatmul.mubr.msk.f32.vlgmr.msra.gmra.mrb[188].mxu0 %vm1225_vm7, %v12366_v35  ;;  %19953 = vmatpush3.msk.msra.mxu1 %vm1229_vm6, %v12908_v6 }
0x1ddb   :  { %19954 = vmatprep.mubr.msk.f32.mxu1 %vm21047_vm3, %v21046_v28  ;;  %19965 = vmatprep.subr.mxu1 %v21046_v28  ;;  %v13096_v12 = vpop.permute.xlu0 %13095 }
0x1ddc   :  { %v13330_v15 = vpop.permute.xlu1 %13329  ;;  %19958 = vmatpush3.msra.mxu0 %v8773_v20 }
0x1ddd   :  { %19955 = vmatmul.mubr.msk.f32.vlgmr.msra.gmra.mrb[180].mxu1 %vm1225_vm7, %v12367_v24  ;;  %19975 = vmatprep.subr.mxu0 %v21046_v28 }
0x1dde   :  { %19967 = vmatprep.mubr.msk.f32.mxu1 %vm21047_vm3, %v21046_v28 }
0x1ddf   :  { %v13174_v46 = vpop.permute.xlu0 %13173 }
0x1de0   :  { %v13328_v25 = vpop.permute.xlu1 %13327 }
0x1de1   :  { %19966 = vmatpush3.xpose.msk.msra.mxu1 %vm519_vm4, %v13096_v12 }
0x1de2   :  { %19970 = vmatprep.subr.mxu1 %v21046_v28 }
0x1de3   :  { %v13252_v53 = vpop.permute.xlu0 %13251 }
0x1de4   :  { %19968 = vmatmul.mubr.msk.f32.vlgmr.msra.gmra.mrb[182].mxu1 %vm519_vm4, %v13094_v48  ;;  %v13486_v60 = vpop.permute.xlu1 %13485 }
0x1de5   :  { %19971 = vmatpush3.xpose.msk.msra.mxu1 %vm519_vm4, %v13174_v46  ;;  %19972 = vmatprep.mubr.msk.f32.mxu1 %vm21047_vm3, %v21046_v28 }
0x1de6   :  { %19980 = vmatprep.subr.mxu1 %v21046_v28 }
0x1de7   :  { %v13250_v7 = vpop.permute.xlu0 %13249 }
0x1de8   :  { %19973 = vmatmul.mubr.msk.f32.vlgmr.msra.gmra.mrb[184].mxu1 %vm519_vm4, %v13172_v52  ;;  %v13484_v32 = vpop.permute.xlu1 %13483 }
0x1de9   :  { %19981 = vmatpush3.xpose.msk.msra.mxu1 %vm519_vm4, %v13330_v15  ;;  %19982 = vmatprep.mubr.msk.f32.mxu1 %vm21047_vm3, %v21046_v28 }
0x1dea   :  { %19990 = vmatprep.subr.mxu1 %v21046_v28 }
0x1deb   :  { %v13408_v26 = vpop.permute.xlu0 %13407 }
0x1dec   :  { %19983 = vmatmul.mubr.msk.f32.vlgmr.msra.gmra.mrb[186].mxu1 %vm519_vm4, %v13328_v25  ;;  %v13642_v61 = vpop.permute.xlu1 %13641 }
0x1ded   :  { %19991 = vmatpush3.xpose.msk.msra.mxu1 %vm519_vm4, %v13486_v60  ;;  %19992 = vmatprep.mubr.msk.f32.mxu1 %vm21047_vm3, %v21046_v28 }
0x1dee   :  { %20000 = vmatprep.subr.mxu1 %v21046_v28 }
0x1def   :  { %v13406_v56 = vpop.permute.xlu0 %13405 }
0x1df0   :  { %19993 = vmatmul.mubr.msk.f32.vlgmr.msra.gmra.mrb[188].mxu1 %vm519_vm4, %v13484_v32  ;;  %v13640_v5 = vpop.permute.xlu1 %13639 }
0x1df1   :  { %20001 = vmatpush3.xpose.msk.msra.mxu1 %vm519_vm4, %v13642_v61  ;;  %20002 = vmatprep.mubr.msk.f32.mxu1 %vm21047_vm3, %v21046_v28 }
0x1df2   :  { %20010 = vmatprep.subr.mxu1 %v21046_v28 }
0x1df3   :  { %v13564_v48 = vpop.permute.xlu0 %13563 }
0x1df4   :  { %20003 = vmatmul.mubr.msk.f32.vlgmr.msra.gmra.mrb[190].mxu1 %vm519_vm4, %v13640_v5 }
0x1df5   :  { %20012 = vmatprep.mubr.msk.f32.mxu1 %vm21047_vm3, %v21046_v28 }
0x1df7   :  { %v13562_v35 = vpop.permute.xlu0 %13561 }
0x1e14   :  { %v12441_v21 = vpop.f32.mrb[182].mxu0 }
0x1e15   :  { %v19921_v29 = vpop.f32.mrb[183].mxu0 }
0x1ea4   :  { %v12518_v55 = vpop.f32.mrb[174].mxu1  ;;  %v12595_v4 = vpop.f32.mrb[184].mxu0 }
0x1ea5   :  { %v12992_v62 = vcombine.low %v12441_v21, %v12518_v55  ;;  %v19926_v27 = vpop.f32.mrb[175].mxu1  ;;  %v19931_v47 = vpop.f32.mrb[185].mxu0 }
0x1ea7   :  { %19959 = vmatprep.mubr.msk.f32.mxu0 %vm519_vm4, %v12992_v62 }
0x1ea8   :  { %v12672_v57 = vpop.f32.mrb[176].mxu1 }
0x1ea9   :  { %v12993_v38 = vcombine.low %v12595_v4, %v12672_v57  ;;  %v12749_v17 = vpop.f32.mrb[186].mxu0  ;;  %v19936_v49 = vpop.f32.mrb[177].mxu1 }
0x1eaa   :  { %v19941_v10 = vpop.f32.mrb[187].mxu0 }
0x1eab   :  { %19960 = vmatmul.mubr.msk.f32.vlgmr.msra.gmra.mrb[158].mxu0 %vm519_vm4, %v12993_v38 }
0x1eac   :  { %19976 = vmatpush3.xpose.msk.msra.mxu0 %vm519_vm4, %v13252_v53  ;;  %v12826_v14 = vpop.f32.mrb[178].mxu1 }
0x1ead   :  { %v12994_v39 = vcombine.low %v12749_v17, %v12826_v14  ;;  %v12903_v9 = vpop.f32.mrb[188].mxu0  ;;  %v19946_v18 = vpop.f32.mrb[179].mxu1  ;;  %19985 = vmatprep.subr.mxu0 %v21046_v28 }
0x1eae   :  { %v19951_v6 = vpop.f32.mrb[189].mxu0 }
0x1eaf   :  { %19962 = vmatprep.mubr.msk.f32.mxu0 %vm519_vm4, %v12994_v39 }
0x1eb0   :  { %v12980_v30 = vpop.f32.mrb[180].mxu1 }
0x1eb1   :  { %v12995_v8 = vcombine.low %v12903_v9, %v12980_v30  ;;  %v19956_v34 = vpop.f32.mrb[181].mxu1 }
0x1eb3   :  { %19963 = vmatmul.mubr.msk.f32.gmra.mrb[160].mxu0 %vm519_vm4, %v12995_v8 }
0x1eb4   :  { %19977 = vmatprep.mubr.msk.f32.mxu0 %vm21047_vm3, %v21046_v28 }
0x1eb7   :  { %v13167_v1 = vpop.f32.mrb[182].mxu1  ;;  %19978 = vmatmul.mubr.msk.f32.vlgmr.msra.gmra.mrb[190].mxu0 %vm519_vm4, %v13250_v7 }
0x1eb8   :  { %v19969_v20 = vpop.f32.mrb[183].mxu1  ;;  %19986 = vmatpush3.xpose.msk.msra.mxu0 %vm519_vm4, %v13408_v26  ;;  %v13717_v23 = vsel %vm1134_vm5, %v13167_v1, -inf  ;;  %19987 = vmatprep.mubr.msk.f32.mxu0 %vm21047_vm3, %v21046_v28 }
0x1eb9   :  { %13718 = vmax.xlane.f32.xlu0 %v13717_v23  ;;  %19995 = vmatprep.subr.mxu0 %v21046_v28 }
0x1ebb   :  { %v13245_v58 = vpop.f32.mrb[184].mxu1  ;;  %19988 = vmatmul.mubr.msk.f32.vlgmr.msra.gmra.mrb[192].mxu0 %vm519_vm4, %v13406_v56 }
0x1ebc   :  { %v19974_v3 = vpop.f32.mrb[185].mxu1  ;;  %19996 = vmatpush3.xpose.msk.msra.mxu0 %vm519_vm4, %v13564_v48  ;;  %v13720_v45 = vsel %vm1134_vm5, %v13245_v58, -inf  ;;  %19997 = vmatprep.mubr.msk.f32.mxu0 %vm21047_vm3, %v21046_v28 }
0x1ebd   :  { %13721 = vmax.xlane.f32.xlu1 %v13720_v45  ;;  %20005 = vmatprep.subr.mxu0 %v21046_v28 }
0x1ebf   :  { %v13401_v52 = vpop.f32.mrb[186].mxu1  ;;  %19998 = vmatmul.mubr.msk.f32.vlgmr.msra.gmra.mrb[194].mxu0 %vm519_vm4, %v13562_v35 }
0x1ec0   :  { %v19984_v24 = vpop.f32.mrb[187].mxu1  ;;  %20007 = vmatprep.mubr.msk.f32.mxu0 %vm21047_vm3, %v21046_v28  ;;  %v13726_v38 = vsel %vm1134_vm5, %v13401_v52, -inf }
0x1ec3   :  { %v13557_v15 = vpop.f32.mrb[188].mxu1 }
0x1ec4   :  { %v19994_v12 = vpop.f32.mrb[189].mxu1  ;;  %v13732_v49 = vsel %vm1134_vm5, %v13557_v15, -inf }
0x1ec7   :  { %v23214_v25 = vpop.f32.mrb[190].mxu1 }
0x1ec8   :  { %v20004_v46 = vpop.f32.mrb[191].mxu1  ;;  %v13738_v10 = vsel %vm1134_vm5, %v23214_v25, -inf }
0x1f46   :  { %v13719_v60 = vpop.xlane.xlu0 %13718 }
0x1f47   :  { %v13741_v32 = vsub.f32 %v13167_v1, %v13719_v60 }
0x1f49   :  { %v13749_v61 = vmul.f32 1.442695, %v13741_v32 }
0x1f4a   :  { %v13722_v29 = vpop.xlane.xlu1 %13721 }
0x1f4b   :  { %20720 = vpow2.f32 %v13749_v61  ;;  %v13742_v53 = vsub.f32 %v13245_v58, %v13722_v29 }
0x1f4d   :  { %v13751_v55 = vmul.f32 1.442695, %v13742_v53 }
0x1f4f   :  { %20722 = vpow2.f32 %v13751_v55 }
0x1f55   :  { %v20721_v5 = vpop.eup %20720 }
0x1f56   :  { %v13765_v21 = vsel %vm1134_vm5, %v20721_v5, 0.0 }
0x1f57   :  { %13766 = vadd.xlane.f32.xlu1 %v13765_v21 }
0x1f59   :  { %v23228_v26 = vpop.eup %20722 }
0x1f5a   :  { %v13768_v14 = vsel %vm1134_vm5, %v23228_v26, 0.0 }
0x1f68   :  { %13805 = vrot.lane.b32.xlu1 %v22565_v50, %s21057_s15 }
0x1f6c   :  { %13959 = vrot.lane.b32.xlu1 %v22573_v59, %s21057_s15 }
0x1f8a   :  { %v13323_v4 = vpop.f32.mrb[190].mxu0 }
0x1f8b   :  { %v19979_v62 = vpop.f32.mrb[191].mxu0  ;;  %v13723_v27 = vsel %vm1134_vm5, %v13323_v4, -inf }
0x1f8c   :  { %13724 = vmax.xlane.f32.xlu0 %v13723_v27 }
0x1f8e   :  { %v13479_v47 = vpop.f32.mrb[192].mxu0 }
0x1f8f   :  { %v19989_v7 = vpop.f32.mrb[193].mxu0  ;;  %v13729_v57 = vsel %vm1134_vm5, %v13479_v47, -inf }
0x1f90   :  { %13730 = vmax.xlane.f32.xlu1 %v13729_v57  ;;  %13727 = vmax.xlane.f32.xlu0 %v13726_v38 }
0x1f92   :  { %v13635_v50 = vpop.f32.mrb[194].mxu0 }
0x1f93   :  { %v19999_v17 = vpop.f32.mrb[195].mxu0  ;;  %v13735_v59 = vsel %vm1134_vm5, %v13635_v50, -inf }
0x1f94   :  { %13736 = vmax.xlane.f32.xlu1 %v13735_v59  ;;  %13733 = vmax.xlane.f32.xlu0 %v13732_v49 }
0x1f98   :  { %13739 = vmax.xlane.f32.xlu0 %v13738_v10 }
0x1f9c   :  { %13769 = vadd.xlane.f32.xlu0 %v13768_v14 }
0x1fa5   :  { %14113 = vrot.lane.b32.xlu1 %v22579_v63, %s21057_s15 }
0x1fe4   :  { %v13767_v39 = vpop.xlane.xlu1 %13766 }
0x1fe5   :  { %20724 = vrcp.f32 %v13767_v39 }
0x1fe8   :  { %v13806_v9 = vpop.permute.xlu1 %13805 }
0x1fe9   :  { %20006 = vmatpush3.msk.msra.mxu0 %vm1229_vm6, %v13806_v9 }
0x1fea   :  { %20015 = vmatprep.subr.mxu0 %v21046_v28 }
0x1fec   :  { %v13960_v30 = vpop.permute.xlu1 %13959 }
0x1fef   :  { %v20725_v18 = vpop.eup %20724 }
0x1ff0   :  { %v13797_v6 = vmul.f32 %v20725_v18, %v20721_v5 }
0x1ff2   :  { %20008 = vmatmul.mubr.msk.f32.vlgmr.msra.gmra.mrb[196].mxu0 %vm1225_vm7, %v13797_v6 }
0x1ff3   :  { %20016 = vmatpush3.msk.msra.mxu0 %vm1229_vm6, %v13960_v30  ;;  %20017 = vmatprep.mubr.msk.f32.mxu0 %vm21047_vm3, %v21046_v28 }
0x1ff4   :  { %20025 = vmatprep.subr.mxu0 %v21046_v28 }
0x2019   :  { %v13725_v63 = vpop.xlane.xlu0 %13724 }
0x201a   :  { %v13743_v8 = vsub.f32 %v13323_v4, %v13725_v63 }
0x201c   :  { %v13753_v34 = vmul.f32 1.442695, %v13743_v8 }
0x201d   :  { %v13728_v56 = vpop.xlane.xlu0 %13727 }
0x201e   :  { %20726 = vpow2.f32 %v13753_v34  ;;  %v13744_v1 = vsub.f32 %v13401_v52, %v13728_v56 }
0x2020   :  { %v13755_v48 = vmul.f32 1.442695, %v13744_v1 }
0x2021   :  { %v13734_v20 = vpop.xlane.xlu0 %13733 }
0x2022   :  { %20728 = vpow2.f32 %v13755_v48  ;;  %v13746_v23 = vsub.f32 %v13557_v15, %v13734_v20  ;;  %v13731_v15 = vpop.xlane.xlu1 %13730 }
0x2023   :  { %v13745_v46 = vsub.f32 %v13479_v47, %v13731_v15 }
0x2024   :  { %v13759_v58 = vmul.f32 1.442695, %v13746_v23 }
0x2025   :  { %v13757_v32 = vmul.f32 1.442695, %v13745_v46  ;;  %v13740_v5 = vpop.xlane.xlu0 %13739 }
0x2026   :  { %20730 = vpow2.f32 %v13759_v58  ;;  %v13737_v60 = vpop.xlane.xlu1 %13736  ;;  %v13748_v29 = vsub.f32 %v23214_v25, %v13740_v5 }
0x2027   :  { %v13747_v61 = vsub.f32 %v13635_v50, %v13737_v60  ;;  %20732 = vpow2.f32 %v13757_v32 }
0x2028   :  { %v20727_v3 = vpop.eup %20726  ;;  %v13763_v53 = vmul.f32 1.442695, %v13748_v29 }
0x2029   :  { %v13771_v45 = vsel %vm1134_vm5, %v20727_v3, 0.0  ;;  %v13761_v21 = vmul.f32 1.442695, %v13747_v61  ;;  %v13770_v47 = vpop.xlane.xlu0 %13769 }
0x202a   :  { %13772 = vadd.xlane.f32.xlu1 %v13771_v45  ;;  %v14114_v25 = vpop.permute.xlu1 %14113 }
0x202b   :  { %20734 = vpow2.f32 %v13761_v21 }
0x202c   :  { %v23242_v35 = vpop.eup %20728  ;;  %20736 = vpow2.f32 %v13763_v53 }
0x202d   :  { %v13774_v24 = vsel %vm1134_vm5, %v23242_v35, 0.0  ;;  %20738 = vrcp.f32 %v13770_v47 }
0x202e   :  { %13775 = vadd.xlane.f32.xlu0 %v13774_v24 }
0x2030   :  { %v23246_v12 = vpop.eup %20730 }
0x2031   :  { %v13780_v52 = vsel %vm1134_vm5, %v23246_v12, 0.0  ;;  %v20733_v55 = vpop.eup %20732 }
0x2032   :  { %13781 = vadd.xlane.f32.xlu0 %v13780_v52  ;;  %v13777_v4 = vsel %vm1134_vm5, %v20733_v55, 0.0 }
0x203b   :  { %14190 = vrot.lane.b32.xlu1 %v22593_v43, %s21057_s15  ;;  %v20735_v43 = vpop.eup %20734 }
0x203c   :  { %v13783_v62 = vsel %vm1134_vm5, %v20735_v43, 0.0 }
0x2048   :  { %13882 = vrot.lane.b32.xlu0 %v22571_v0, %s21057_s15  ;;  %v23257_v0 = vpop.eup %20736 }
0x2049   :  { %v13786_v27 = vsel %vm1134_vm5, %v23257_v0, 0.0  ;;  %v20739_v50 = vpop.eup %20738  ;;  %vm17239_vm5 = vcmask 45056  }
0x204a   :  { %v13798_v59 = vmul.f32 %v20739_v50, %v23228_v26 }
0x205f   :  { %13778 = vadd.xlane.f32.xlu1 %v13777_v4 }
0x2063   :  { %13784 = vadd.xlane.f32.xlu1 %v13783_v62 }
0x2067   :  { %13787 = vadd.xlane.f32.xlu0 %v13786_v27 }
0x2074   :  { %14344 = vrot.lane.b32.xlu1 %v22601_v40, %s21057_s15 }
0x207d   :  { %14036 = vrot.lane.b32.xlu0 %v22583_v37, %s21057_s15 }
0x2081   :  { %14267 = vrot.lane.b32.xlu0 %v22589_v2, %s21057_s15 }
0x20b7   :  { %v13773_v7 = vpop.xlane.xlu1 %13772 }
0x20b8   :  { %20740 = vrcp.f32 %v13773_v7 }
0x20bb   :  { %v13776_v57 = vpop.xlane.xlu0 %13775  ;;  %v14191_v2 = vpop.permute.xlu1 %14190 }
0x20bc   :  { %20742 = vrcp.f32 %v13776_v57 }
0x20bf   :  { %v13782_v38 = vpop.xlane.xlu0 %13781 }
0x20c2   :  { %v20741_v17 = vpop.eup %20740 }
0x20c3   :  { %v13799_v49 = vmul.f32 %v20741_v17, %v20727_v3  ;;  %v13883_v10 = vpop.permute.xlu0 %13882  ;;  %v8774_v3 = vld [vmem:[%s23778_s0 + $0x18] sm:$0xff] }
0x20c4   :  { %20011 = vmatpush3.msk.msra.mxu1 %vm1229_vm6, %v13883_v10 }
0x20c5   :  { %v13878_v40 = vpop.f32.mrb[196].mxu0  ;;  %20013 = vmatmul.mubr.msk.f32.vlgmr.msra.gmra.mrb[192].mxu1 %vm1225_vm7, %v13798_v59  ;;  %20018 = vmatmul.mubr.msk.f32.vlgmr.msra.gmra.mrb[198].mxu0 %vm1225_vm7, %v13799_v49 }
0x20c6   :  { %v20009_v37 = vpop.f32.mrb[197].mxu0  ;;  %20026 = vmatpush3.msk.msra.mxu0 %vm1229_vm6, %v14114_v25  ;;  %20020 = vmatprep.subr.mxu1 %v21046_v28  ;;  %v20743_v9 = vpop.eup %20742 }
0x20c7   :  { %20022 = vmatprep.mubr.msk.f32.mxu1 %vm21047_vm3, %v21046_v28  ;;  %20027 = vmatprep.mubr.msk.f32.mxu0 %vm21047_vm3, %v21046_v28  ;;  %v13800_v6 = vmul.f32 %v20743_v9, %v23242_v35 }
0x20c8   :  { %20035 = vmatprep.subr.mxu0 %v21046_v28 }
0x20ec   :  { %v13779_v26 = vpop.xlane.xlu1 %13778 }
0x20ed   :  { %20744 = vrcp.f32 %v13779_v26 }
0x20ee   :  { %20746 = vrcp.f32 %v13782_v38 }
0x20f0   :  { %v13785_v14 = vpop.xlane.xlu1 %13784 }
0x20f1   :  { %20748 = vrcp.f32 %v13785_v14 }
0x20f4   :  { %v13788_v39 = vpop.xlane.xlu0 %13787  ;;  %v14345_v20 = vpop.permute.xlu1 %14344 }
0x20f5   :  { %20750 = vrcp.f32 %v13788_v39 }
0x20f7   :  { %v20745_v18 = vpop.eup %20744 }
0x20f8   :  { %v13801_v30 = vmul.f32 %v20745_v18, %v20733_v55  ;;  %v14037_v63 = vpop.permute.xlu0 %14036  ;;  %v20747_v8 = vpop.eup %20746 }
0x20f9   :  { %20021 = vmatpush3.msk.msra.mxu1 %vm1229_vm6, %v14037_v63  ;;  %v13802_v56 = vmul.f32 %v20747_v8, %v23246_v12 }
0x20fa   :  { %20023 = vmatmul.mubr.msk.f32.vlgmr.msra.gmra.mrb[194].mxu1 %vm1225_vm7, %v13800_v6  ;;  %20028 = vmatmul.mubr.msk.f32.vlgmr.msra.gmra.mrb[200].mxu0 %vm1225_vm7, %v13801_v30 }
0x20fb   :  { %v20749_v34 = vpop.eup %20748  ;;  %20030 = vmatprep.subr.mxu1 %v21046_v28  ;;  %20032 = vmatprep.mubr.msk.f32.mxu1 %vm21047_vm3, %v21046_v28 }
0x20fc   :  { %v13803_v1 = vmul.f32 %v20749_v34, %v20735_v43  ;;  %20031 = vmatpush3.msk.msra.mxu1 %vm1229_vm6, %v14191_v2  ;;  %v14268_v48 = vpop.permute.xlu0 %14267  ;;  %20037 = vmatprep.mubr.msk.f32.mxu0 %vm21047_vm3, %v21046_v28 }
0x20fd   :  { %20036 = vmatpush3.msk.msra.mxu0 %vm1229_vm6, %v14268_v48  ;;  %20040 = vmatprep.subr.mxu1 %v21046_v28 }
0x20fe   :  { %20033 = vmatmul.mubr.msk.f32.vlgmr.msra.gmra.mrb[196].mxu1 %vm1225_vm7, %v13802_v56  ;;  %20038 = vmatmul.mubr.msk.f32.vlgmr.msra.gmra.mrb[202].mxu0 %vm1225_vm7, %v13803_v1 }
0x20ff   :  { %v20751_v23 = vpop.eup %20750  ;;  %20041 = vmatpush3.msk.msra.mxu1 %vm1229_vm6, %v14345_v20  ;;  %20042 = vmatprep.mubr.msk.f32.mxu1 %vm21047_vm3, %v21046_v28 }
0x2100   :  { %v13804_v58 = vmul.f32 %v20751_v23, %v23257_v0  ;;  %20045 = vmatprep.subr.mxu0 %v8774_v3  ;;  %v18218_v0 = vld [vmem:[#allocation10] ss:$0 sm:$0xff] }
0x2101   :  { %20046 = vmatpush3.msra.mxu0 %v8774_v3 }
0x2102   :  { %20043 = vmatmul.mubr.msk.f32.vlgmr.msra.gmra.mrb[198].mxu1 %vm1225_vm7, %v13804_v58 }
0x2103   :  { %14924 = vmatprep.mubr.bf16.mxu1 %v21058_v42 }
0x2198   :  { %v13955_v45 = vpop.f32.mrb[192].mxu1  ;;  %v14032_v35 = vpop.f32.mrb[198].mxu0 }
0x2199   :  { %v14429_v24 = vcombine.low %v13878_v40, %v13955_v45  ;;  %v20014_v12 = vpop.f32.mrb[193].mxu1  ;;  %v20019_v52 = vpop.f32.mrb[199].mxu0 }
0x219a   :  { %v14611_v12 = vld [vmem:[%s23779_s20 + $0x8] sm:$0xff] }
0x219b   :  { %20047 = vmatprep.mubr.msk.f32.mxu0 %vm519_vm4, %v14429_v24  ;;  %v14618_v24 = vld [vmem:[%s23779_s20 + $0x40] sm:$0xff] }
0x21cd   :  { %v14109_v15 = vpop.f32.mrb[194].mxu1  ;;  %v14186_v46 = vpop.f32.mrb[200].mxu0 }
0x21ce   :  { %v14430_v60 = vcombine.low %v14032_v35, %v14109_v15  ;;  %v20024_v32 = vpop.f32.mrb[195].mxu1  ;;  %v20029_v61 = vpop.f32.mrb[201].mxu0  ;;  %v14610_v35 = vld [vmem:[%s23779_s20] sm:$0xff]  ;;  %v14619_v15 = vld [vmem:[%s23779_s20 + $0x48] sm:$0xff] }
0x21cf   :  { %v18330_v52 = vcombine.high %v14610_v35, %v14618_v24  ;;  %v18332_v32 = vcombine.high %v14611_v12, %v14619_v15  ;;  %v14626_v61 = vld [vmem:[%s23779_s20 + $0x80] sm:$0xff] }
0x21d0   :  { %20048 = vmatmul.mubr.msk.f32.vlgmr.msra.gmra.mrb[158].mxu0 %vm519_vm4, %v14430_v60  ;;  %v18331_v60 = vcombine.low %v14611_v12, %v14619_v15  ;;  %v14614_v12 = vld [vmem:[%s23779_s20 + $0x20] sm:$0xff] }
0x21d1   :  { %v14263_v5 = vpop.f32.mrb[196].mxu1  ;;  %v14340_v21 = vpop.f32.mrb[202].mxu0  ;;  %14892 = vmatprep.subr.bf16.mxu1 %v18330_v52  ;;  %14945 = vmatprep.subr.bf16.mxu0 %v18332_v32  ;;  %v14622_v15 = vld [vmem:[%s23779_s20 + $0x60] sm:$0xff] }
0x21d2   :  { %v14431_v29 = vcombine.low %v14186_v46, %v14263_v5  ;;  %v20034_v53 = vpop.f32.mrb[197].mxu1  ;;  %v20039_v55 = vpop.f32.mrb[203].mxu0  ;;  %v18329_v46 = vcombine.low %v14610_v35, %v14618_v24  ;;  %v14634_v5 = vld [vmem:[%s23779_s20 + $0xc0] sm:$0xff]  ;;  %14946 = vmatpush1.bf16.msra.mxu0 %v18331_v60  ;;  %v14623_v60 = vld [vmem:[%s23779_s20 + $0x68] sm:$0xff] }
0x21d3   :  { %v14635_v53 = vld [vmem:[%s23779_s20 + $0xc8] sm:$0xff]  ;;  %v18345_v55 = vcombine.low %v14626_v61, %v14634_v5 }
0x21d4   :  { %20050 = vmatprep.mubr.msk.f32.mxu0 %vm519_vm4, %v14431_v29  ;;  %14893 = vmatpush1.bf16.msra.mxu1 %v18329_v46  ;;  %v18346_v29 = vcombine.high %v14626_v61, %v14634_v5  ;;  %v14615_v46 = vld [vmem:[%s23779_s20 + $0x28] sm:$0xff] }
0x21d5   :  { %v14417_v4 = vpop.f32.mrb[198].mxu1 }
0x21d6   :  { %v14432_v43 = vcombine.low %v14340_v21, %v14417_v4  ;;  %v20044_v62 = vpop.f32.mrb[199].mxu1  ;;  %v14627_v21 = vld [vmem:[%s23779_s20 + $0x88] sm:$0xff]  ;;  %14894 = vmatprep.subr.bf16.mxu1 %v18346_v29 }
0x21d7   :  { %v18347_v4 = vcombine.low %v14627_v21, %v14635_v53  ;;  %v14612_v62 = vld [vmem:[%s23779_s20 + $0x10] sm:$0xff] }
0x21d8   :  { %20051 = vmatmul.mubr.msk.f32.gmra.mrb[160].mxu0 %vm519_vm4, %v14432_v43  ;;  %v18348_v43 = vcombine.high %v14627_v21, %v14635_v53  ;;  %14895 = vmatpush1.bf16.msra.mxu1 %v18345_v55  ;;  %v18340_v21 = vcombine.high %v14615_v46, %v14623_v60 }
0x21d9   :  { %14977 = vmatprep.mubr.bf16.mxu0 %v21058_v42 }
0x21da   :  { %14947 = vmatprep.subr.bf16.mxu0 %v18348_v43 }
0x21db   :  { %14948 = vmatpush1.bf16.msra.mxu0 %v18347_v4 }
0x22a3   :  { %v20049_v27 = vpop.f32.mrb[158].mxu0 }
0x22a4   :  { %v20135_v25 = vadd.f32 %v20049_v27, %v18218_v0  ;;  %v14507_v47 = vpop.f32.mrb[159].mxu0  ;;  %v14613_v27 = vld [vmem:[%s23779_s20 + $0x18] sm:$0xff] }
0x22a5   :  { %v20136_v7 = vadd.f32 %v18218_v0, %v14507_v47 }
0x22a6   :  { %v14531_v57 = vadd.f32 %v20135_v25, %v22549_v41 }
0x22a7   :  { %v14530_v38 = vadd.f32 %v20136_v7, %v22547_v19  ;;  %v14621_v7 = vld [vmem:[%s23779_s20 + $0x58] sm:$0xff] }
0x22a8   :  { %v14539_v50 = vsel %vm394_vm2, %v14531_v57, 0.0 }
0x22a9   :  { %14540 = vadd.xlane.f32.xlu1 %v14539_v50  ;;  %v14536_v17 = vsel %vm394_vm2, %v14530_v38, 0.0 }
0x22aa   :  { %14537 = vadd.xlane.f32.xlu0 %v14536_v17 }
0x22ab   :  { %v20052_v59 = vpop.f32.mrb[160].mxu0 }
0x22ac   :  { %v14517_v49 = vpop.f32.mrb[161].mxu0  ;;  %v20137_v10 = vadd.f32 %v20052_v59, %v18218_v0 }
0x22ad   :  { %v20138_v40 = vadd.f32 %v18218_v0, %v14517_v49  ;;  %v14620_v0 = vld [vmem:[%s23779_s20 + $0x50] sm:$0xff] }
0x22ae   :  { %v14533_v2 = vadd.f32 %v20137_v10, %v22559_v22  ;;  %v18333_v25 = vcombine.low %v14612_v62, %v14620_v0  ;;  %v18334_v47 = vcombine.high %v14612_v62, %v14620_v0  ;;  %v14638_v0 = vld [vmem:[%s23779_s20 + $0xe0] sm:$0xff] }
0x22af   :  { %v14532_v37 = vadd.f32 %v20138_v40, %v22555_v11 }
0x22b0   :  { %v14545_v41 = vsel %vm394_vm2, %v14533_v2, 0.0  ;;  %14998 = vmatprep.subr.bf16.mxu1 %v18334_v47  ;;  %v18337_v47 = vcombine.low %v14614_v12, %v14622_v15 }
0x22b1   :  { %v14542_v26 = vsel %vm394_vm2, %v14532_v37, 0.0 }
0x22b2   :  { %14543 = vadd.xlane.f32.xlu0 %v14542_v26 }
0x22b6   :  { %14546 = vadd.xlane.f32.xlu0 %v14545_v41 }
0x2336   :  { %v14541_v19 = vpop.xlane.xlu1 %14540 }
0x2337   :  { %v14549_v14 = vmul.f32 0.03125, %v14541_v19  ;;  %v14538_v39 = vpop.xlane.xlu0 %14537 }
0x2338   :  { %v14548_v9 = vmul.f32 0.03125, %v14538_v39  ;;  %v18327_v39 = vld [vmem:[%s23780_s26] ss:$0 sm:$0xff] }
0x2339   :  { %v23313_v18 = vsub.f32 %v14531_v57, %v14549_v14  ;;  %v18335_v57 = vcombine.low %v14613_v27, %v14621_v7 }
0x233a   :  { %v23315_v6 = vsub.f32 %v14530_v38, %v14548_v9  ;;  %v18336_v38 = vcombine.high %v14613_v27, %v14621_v7  ;;  %v14631_v27 = vld [vmem:[%s23779_s20 + $0xa8] sm:$0xff]  ;;  %v18339_v7 = vcombine.low %v14615_v46, %v14623_v60 }
0x233b   :  { %v14557_v30 = vmul.f32 %v23313_v18, %v23313_v18  ;;  %v20364_v46 = vld [vmem:[#allocation12 + $0x58] sm:$0xff]  }
0x233c   :  { %v14556_v11 = vmul.f32 %v23315_v6, %v23315_v6  ;;  %15051 = vmatprep.subr.bf16.mxu0 %v18336_v38  ;;  %v20367_v60 = vld [vmem:[#allocation12 + $0x98] sm:$0xff]  }
0x233d   :  { %v14563_v22 = vsel %vm394_vm2, %v14557_v30, 0.0 }
0x233e   :  { %14564 = vadd.xlane.f32.xlu0 %v14563_v22  ;;  %v14560_v63 = vsel %vm394_vm2, %v14556_v11, 0.0  ;;  %v18328_v22 = vld [vmem:[%s23781_s28] ss:$0 sm:$0xff] }
0x233f   :  { %14561 = vadd.xlane.f32.xlu1 %v14560_v63  ;;  %v14544_v8 = vpop.xlane.xlu0 %14543 }
0x2340   :  { %v14550_v34 = vmul.f32 0.03125, %v14544_v8 }
0x2342   :  { %v23323_v56 = vsub.f32 %v14532_v37, %v14550_v34 }
0x2343   :  { %v14547_v1 = vpop.xlane.xlu0 %14546 }
0x2344   :  { %v14551_v48 = vmul.f32 0.03125, %v14547_v1  ;;  %v14558_v20 = vmul.f32 %v23323_v56, %v23323_v56 }
0x2346   :  { %v23327_v23 = vsub.f32 %v14533_v2, %v14551_v48  ;;  %v14566_v58 = vsel %vm394_vm2, %v14558_v20, 0.0  ;;  %v14628_v48 = vld [vmem:[%s23779_s20 + $0x90] sm:$0xff] }
0x2347   :  { %14567 = vadd.xlane.f32.xlu1 %v14566_v58  ;;  %v14636_v58 = vld [vmem:[%s23779_s20 + $0xd0] sm:$0xff] }
0x2348   :  { %v14559_v3 = vmul.f32 %v23327_v23, %v23327_v23  ;;  %v18349_v32 = vcombine.low %v14628_v48, %v14636_v58 }
0x234a   :  { %v14569_v45 = vsel %vm394_vm2, %v14559_v3, 0.0  ;;  %v14629_v3 = vld [vmem:[%s23779_s20 + $0x98] sm:$0xff] }
0x234b   :  { %14570 = vadd.xlane.f32.xlu0 %v14569_v45  ;;  %v14637_v45 = vld [vmem:[%s23779_s20 + $0xd8] sm:$0xff] }
0x234c   :  { %v18352_v24 = vcombine.high %v14629_v3, %v14637_v45  ;;  %v18351_v61 = vcombine.low %v14629_v3, %v14637_v45  ;;  %v20356_v3 = vld [vmem:[#allocation12 + $0x48] sm:$0xff]  }
0x234d   :  { %v20357_v45 = vld [vmem:[#allocation12 + $0xc8] sm:$0xff]  }
0x23cb   :  { %v14565_v50 = vpop.xlane.xlu0 %14564 }
0x23cc   :  { %v14573_v17 = vmul.f32 0.03125, %v14565_v50  ;;  %v14562_v59 = vpop.xlane.xlu1 %14561  ;;  %v14616_v50 = vld [vmem:[%s23779_s20 + $0x30] sm:$0xff] }
0x23cd   :  { %v14572_v49 = vmul.f32 0.03125, %v14562_v59  ;;  %v14617_v59 = vld [vmem:[%s23779_s20 + $0x38] sm:$0xff] }
0x23ce   :  { %v14577_v10 = vadd.f32 1e-05, %v14573_v17  ;;  %v14624_v17 = vld [vmem:[%s23779_s20 + $0x70] sm:$0xff] }
0x23cf   :  { %v14576_v40 = vadd.f32 1e-05, %v14572_v49  ;;  %v14625_v49 = vld [vmem:[%s23779_s20 + $0x78] sm:$0xff] }
0x23d0   :  { %20752 = vrsqrt.f32 %v14577_v10 }
0x23d1   :  { %20754 = vrsqrt.f32 %v14576_v40 }
0x23d4   :  { %v14568_v37 = vpop.xlane.xlu1 %14567 }
0x23d5   :  { %v14574_v2 = vmul.f32 0.03125, %v14568_v37  ;;  %v18342_v37 = vcombine.high %v14616_v50, %v14624_v17 }
0x23d7   :  { %v14578_v26 = vadd.f32 1e-05, %v14574_v2  ;;  %v18344_v2 = vcombine.high %v14617_v59, %v14625_v49 }
0x23d8   :  { %v14571_v41 = vpop.xlane.xlu0 %14570 }
0x23d9   :  { %20756 = vrsqrt.f32 %v14578_v26  ;;  %v14575_v19 = vmul.f32 0.03125, %v14571_v41  ;;  %v14632_v26 = vld [vmem:[%s23779_s20 + $0xb0] sm:$0xff] }
0x23da   :  { %v20753_v14 = vpop.eup %20752  ;;  %v14640_v41 = vld [vmem:[%s23779_s20 + $0xf0] sm:$0xff] }
0x23db   :  { %v20755_v9 = vpop.eup %20754  ;;  %v14585_v30 = vmul.f32 %v20753_v14, %v23313_v18  ;;  %v14579_v11 = vadd.f32 1e-05, %v14575_v19  ;;  %v14633_v19 = vld [vmem:[%s23779_s20 + $0xb8] sm:$0xff] }
0x23dc   :  { %v14584_v63 = vmul.f32 %v20755_v9, %v23315_v6  ;;  %v18350_v6 = vcombine.high %v14628_v48, %v14636_v58  ;;  %v14641_v14 = vld [vmem:[%s23779_s20 + $0xf8] sm:$0xff]  ;;  %v18343_v9 = vcombine.low %v14617_v59, %v14625_v49  ;;  %v20354_v48 = vld [vmem:[#allocation12] sm:$0xff]  }
0x23dd   :  { %v14595_v8 = vmul.f32 %v18327_v39, %v14585_v30  ;;  %20758 = vrsqrt.f32 %v14579_v11  ;;  %v18358_v30 = vcombine.high %v14632_v26, %v14640_v41  ;;  %v18360_v11 = vcombine.high %v14633_v19, %v14641_v14  ;;  %v20355_v58 = vld [vmem:[#allocation12 + $0x80] sm:$0xff]  }
0x23de   :  { %v14594_v34 = vmul.f32 %v18327_v39, %v14584_v63  ;;  %v18359_v63 = vcombine.low %v14633_v19, %v14641_v14 }
0x23df   :  { %v23349_v1 = vadd.f32 %v18328_v22, %v14595_v8  ;;  %v20352_v8 = vld [vmem:[#allocation12 + $0x40] sm:$0xff]  }
0x23e0   :  { %v23352_v20 = vadd.f32 %v18328_v22, %v14594_v34  ;;  %v20353_v34 = vld [vmem:[#allocation12 + $0xc0] sm:$0xff]  }
0x23e2   :  { %v23359_v18 = vpack.c.bf16 %v23349_v1, %v23352_v20 }
0x23e3   :  { %v20757_v35 = vpop.eup %20756 }
0x23e4   :  { %v14586_v52 = vmul.f32 %v20757_v35, %v23323_v56  ;;  %18361 = vmatmul.mubr.msk.bf16.vlgmr.msra.gmra.mrb[200].mxu1 %vm394_vm2, %v23359_v18  ;;  %18363 = vmatmul.mubr.msk.bf16.vlgmr.msra.gmra.mrb[204].mxu0 %vm394_vm2, %v23359_v18  ;;  %v18338_v56 = vcombine.high %v14614_v12, %v14622_v15  ;;  %v20358_v35 = vld [vmem:[#allocation12 + $0x8] sm:$0xff]   ;;  %v20361_v12 = vld [vmem:[#allocation12 + $0xd0] sm:$0xff]  }
0x23e5   :  { %14934 = vmatprep.mubr.bf16.mxu1 %v21058_v42  ;;  %14987 = vmatprep.mubr.bf16.mxu0 %v21058_v42  ;;  %v20363_v15 = vld [vmem:[#allocation12 + $0x90] sm:$0xff]  }
0x23e6   :  { %14999 = vmatpush1.bf16.msra.mxu1 %v18333_v25  ;;  %15052 = vmatpush1.bf16.msra.mxu0 %v18335_v57  ;;  %v14596_v29 = vmul.f32 %v18327_v39, %v14586_v52  ;;  %v14639_v25 = vld [vmem:[%s23779_s20 + $0xe8] sm:$0xff]  ;;  %v20362_v52 = vld [vmem:[#allocation12 + $0x10] sm:$0xff]  }
0x23e7   :  { %v20759_v5 = vpop.eup %20758  ;;  %15000 = vmatprep.subr.bf16.mxu1 %v18350_v6  ;;  %15053 = vmatprep.subr.bf16.mxu0 %v18352_v24  ;;  %v18356_v38 = vcombine.high %v14631_v27, %v14639_v25  ;;  %v18355_v40 = vcombine.low %v14631_v27, %v14639_v25  ;;  %v20359_v6 = vld [vmem:[#allocation12 + $0x88] sm:$0xff]   ;;  %v20360_v24 = vld [vmem:[#allocation12 + $0x50] sm:$0xff]   ;;  %v20380_v25 = vld [vmem:[#allocation12 + $0x78] sm:$0xff]  }
0x23e8   :  { %v14587_v53 = vmul.f32 %v20759_v5, %v23327_v23  ;;  %v23373_v4 = vadd.f32 %v18328_v22, %v14596_v29  ;;  %v14630_v23 = vld [vmem:[%s23779_s20 + $0xa0] sm:$0xff]  ;;  %v20370_v5 = vld [vmem:[#allocation12 + $0x20] sm:$0xff]   ;;  %v20373_v29 = vld [vmem:[#allocation12 + $0xe8] sm:$0xff]  }
0x23e9   :  { %v18354_v57 = vcombine.high %v14630_v23, %v14638_v0  ;;  %v18353_v10 = vcombine.low %v14630_v23, %v14638_v0  ;;  %v20377_v23 = vld [vmem:[#allocation12 + $0xf0] sm:$0xff]  }
0x23ea   :  { %v14597_v55 = vmul.f32 %v18327_v39, %v14587_v53  ;;  %15001 = vmatpush1.bf16.msra.mxu1 %v18349_v32  ;;  %15054 = vmatpush1.bf16.msra.mxu0 %v18351_v61  ;;  %v18341_v39 = vcombine.low %v14616_v50, %v14624_v17  ;;  %v20368_v32 = vld [vmem:[#allocation12 + $0x60] sm:$0xff]   ;;  %v20374_v53 = vld [vmem:[#allocation12 + $0x28] sm:$0xff]   ;;  %v20378_v0 = vld [vmem:[#allocation12 + $0x30] sm:$0xff]  }
0x23eb   :  { %15104 = vmatprep.subr.bf16.mxu1 %v18338_v56  ;;  %15157 = vmatprep.subr.bf16.mxu0 %v18340_v21  ;;  %v20369_v61 = vld [vmem:[#allocation12 + $0xe0] sm:$0xff]   ;;  %v20372_v21 = vld [vmem:[#allocation12 + $0x68] sm:$0xff]   ;;  %v20379_v27 = vld [vmem:[#allocation12 + $0xb0] sm:$0xff]  }
0x23ec   :  { %v23375_v43 = vadd.f32 %v18328_v22, %v14597_v55  ;;  %v18357_v22 = vcombine.low %v14632_v26, %v14640_v41  ;;  %v20371_v56 = vld [vmem:[#allocation12 + $0xa0] sm:$0xff]   ;;  %v20375_v55 = vld [vmem:[#allocation12 + $0xa8] sm:$0xff]   ;;  %v23434_v17 = vld [vmem:[%s23782_s1] sm:$0xff] }
0x23ed   :  { %v20385_v50 = vld [vmem:[#allocation12 + $0x1c0] sm:$0xff]   ;;  %v14649_v59 = vrot.slane %v23434_v17, %v22227_v44  ;;  %v14657_v49 = vrot.slane %v23434_v17, %v22229_v54 }
0x23ee   :  { %v23379_v62 = vpack.c.bf16 %v23375_v43, %v23373_v4 }
0x23f0   :  { %18362 = vmatmul.mubr.msk.bf16.gmra.mrb[204].mxu1 %vm394_vm2, %v23379_v62  ;;  %18364 = vmatmul.mubr.msk.bf16.gmra.mrb[208].mxu0 %vm394_vm2, %v23379_v62 }
0x23f1   :  { %15030 = vmatprep.mubr.bf16.mxu1 %v21058_v42  ;;  %15083 = vmatprep.mubr.bf16.mxu0 %v21058_v42 }
0x23f8   :  { %18365 = vmatmul.mubr.msk.bf16.vlgmr.msra.gmra.mrb[208].mxu1 %vm394_vm2, %v23359_v18  ;;  %18367 = vmatmul.mubr.msk.bf16.vlgmr.msra.gmra.mrb[212].mxu0 %vm394_vm2, %v23359_v18 }
0x23f9   :  { %15040 = vmatprep.mubr.bf16.mxu1 %v21058_v42  ;;  %15093 = vmatprep.mubr.bf16.mxu0 %v21058_v42 }
0x23fa   :  { %15105 = vmatpush1.bf16.msra.mxu1 %v18337_v47  ;;  %15158 = vmatpush1.bf16.msra.mxu0 %v18339_v7  ;;  %v20381_v47 = vld [vmem:[#allocation12 + $0xf8] sm:$0xff]  }
0x23fb   :  { %15106 = vmatprep.subr.bf16.mxu1 %v18354_v57  ;;  %15159 = vmatprep.subr.bf16.mxu0 %v18356_v38  ;;  %v20382_v7 = vld [vmem:[#allocation12 + $0x38] sm:$0xff]   ;;  %v20384_v38 = vld [vmem:[#allocation12 + $0x140] sm:$0xff]  }
0x23fc   :  { %v20383_v57 = vld [vmem:[#allocation12 + $0xb8] sm:$0xff]  }
0x23fe   :  { %15107 = vmatpush1.bf16.msra.mxu1 %v18353_v10  ;;  %15160 = vmatpush1.bf16.msra.mxu0 %v18355_v40  ;;  %v23442_v10 = vrot.slane %v23434_v17, %v22234_v36  ;;  %v23446_v40 = vrot.slane %v23434_v17, %v22236_v51 }
0x23ff   :  { %15210 = vmatprep.subr.bf16.mxu1 %v18342_v37  ;;  %15263 = vmatprep.subr.bf16.mxu0 %v18344_v2 }
0x2400   :  { %18366 = vmatmul.mubr.msk.bf16.gmra.mrb[212].mxu1 %vm394_vm2, %v23379_v62  ;;  %18368 = vmatmul.mubr.msk.bf16.gmra.mrb[216].mxu0 %vm394_vm2, %v23379_v62 }
0x2401   :  { %15136 = vmatprep.mubr.bf16.mxu1 %v21058_v42  ;;  %15189 = vmatprep.mubr.bf16.mxu0 %v21058_v42 }
0x2408   :  { %18369 = vmatmul.mubr.msk.bf16.vlgmr.msra.gmra.mrb[216].mxu1 %vm394_vm2, %v23359_v18  ;;  %18371 = vmatmul.mubr.msk.bf16.vlgmr.msra.gmra.mrb[220].mxu0 %vm394_vm2, %v23359_v18 }
0x2409   :  { %15146 = vmatprep.mubr.bf16.mxu1 %v21058_v42  ;;  %15199 = vmatprep.mubr.bf16.mxu0 %v21058_v42 }
0x240a   :  { %15211 = vmatpush1.bf16.msra.mxu1 %v18341_v39  ;;  %15264 = vmatpush1.bf16.msra.mxu0 %v18343_v9 }
0x240b   :  { %15212 = vmatprep.subr.bf16.mxu1 %v18358_v30  ;;  %15265 = vmatprep.subr.bf16.mxu0 %v18360_v11 }
0x240e   :  { %15213 = vmatpush1.bf16.msra.mxu1 %v18357_v22  ;;  %15266 = vmatpush1.bf16.msra.mxu0 %v18359_v63 }
0x240f   :  { %19065 = vmatprep.subr.bf16.mxu1 %v20352_v8  ;;  %19093 = vmatprep.subr.bf16.mxu0 %v20353_v34 }
0x2410   :  { %18370 = vmatmul.mubr.msk.bf16.gmra.mrb[220].mxu1 %vm394_vm2, %v23379_v62  ;;  %18372 = vmatmul.mubr.msk.bf16.gmra.mrb[224].mxu0 %vm394_vm2, %v23379_v62 }
0x2411   :  { %15242 = vmatprep.mubr.bf16.mxu1 %v21058_v42  ;;  %15295 = vmatprep.mubr.bf16.mxu0 %v21058_v42 }
0x2418   :  { %18373 = vmatmul.mubr.msk.bf16.vlgmr.msra.gmra.mrb[224].mxu1 %vm394_vm2, %v23359_v18  ;;  %18375 = vmatmul.mubr.msk.bf16.vlgmr.msra.gmra.mrb[228].mxu0 %vm394_vm2, %v23359_v18  ;;  %v20365_v18 = vld [vmem:[#allocation12 + $0xd8] sm:$0xff]  }
0x2419   :  { %15252 = vmatprep.mubr.bf16.mxu1 %v21058_v42  ;;  %15305 = vmatprep.mubr.bf16.mxu0 %v21058_v42  ;;  %v20366_v42 = vld [vmem:[#allocation12 + $0x18] sm:$0xff]  }
0x241a   :  { %19066 = vmatpush3.bf16.msra.mxu1 %v20354_v48  ;;  %19094 = vmatpush3.bf16.msra.mxu0 %v20355_v58 }
0x241b   :  { %19067 = vmatprep.subr.bf16.mxu1 %v20356_v3  ;;  %19095 = vmatprep.subr.bf16.mxu0 %v20357_v45 }
0x241e   :  { %19068 = vmatpush3.bf16.msra.mxu1 %v20358_v35  ;;  %19096 = vmatpush3.bf16.msra.mxu0 %v20359_v6 }
0x241f   :  { %19069 = vmatprep.subr.bf16.mxu1 %v20360_v24  ;;  %19097 = vmatprep.subr.bf16.mxu0 %v20361_v12 }
0x2420   :  { %18374 = vmatmul.mubr.msk.bf16.gmra.mrb[228].mxu1 %vm394_vm2, %v23379_v62  ;;  %18376 = vmatmul.mubr.msk.bf16.gmra.mrb[232].mxu0 %vm394_vm2, %v23379_v62  ;;  %v20376_v62 = vld [vmem:[#allocation12 + $0x70] sm:$0xff]  }
0x2422   :  { %19070 = vmatpush3.bf16.msra.mxu1 %v20362_v52  ;;  %19098 = vmatpush3.bf16.msra.mxu0 %v20363_v15 }
0x2423   :  { %19071 = vmatprep.subr.bf16.mxu1 %v20364_v46  ;;  %19099 = vmatprep.subr.bf16.mxu0 %v20365_v18 }
0x2426   :  { %19072 = vmatpush3.bf16.msra.mxu1 %v20366_v42  ;;  %19100 = vmatpush3.bf16.msra.mxu0 %v20367_v60 }
0x2427   :  { %19073 = vmatprep.subr.bf16.mxu1 %v20368_v32  ;;  %19101 = vmatprep.subr.bf16.mxu0 %v20369_v61  ;;  %v20386_v32 = vld [vmem:[#allocation12 + $0x100] sm:$0xff]  }
0x2428   :  { %v20387_v61 = vld [vmem:[#allocation12 + $0x180] sm:$0xff]  }
0x242a   :  { %19074 = vmatpush3.bf16.msra.mxu1 %v20370_v5  ;;  %19102 = vmatpush3.bf16.msra.mxu0 %v20371_v56  ;;  %v20388_v5 = vld [vmem:[#allocation12 + $0x148] sm:$0xff]  }
0x242b   :  { %19075 = vmatprep.subr.bf16.mxu1 %v20372_v21  ;;  %19103 = vmatprep.subr.bf16.mxu0 %v20373_v29  ;;  %v20389_v56 = vld [vmem:[#allocation12 + $0x1c8] sm:$0xff]  }
0x242e   :  { %19076 = vmatpush3.bf16.msra.mxu1 %v20374_v53  ;;  %19104 = vmatpush3.bf16.msra.mxu0 %v20375_v55  ;;  %v20390_v53 = vld [vmem:[#allocation12 + $0x108] sm:$0xff]  }
0x242f   :  { %19077 = vmatprep.subr.bf16.mxu1 %v20376_v62  ;;  %19105 = vmatprep.subr.bf16.mxu0 %v20377_v23  ;;  %v20391_v55 = vld [vmem:[#allocation12 + $0x188] sm:$0xff]  }
0x2432   :  { %19078 = vmatpush3.bf16.msra.mxu1 %v20378_v0  ;;  %19106 = vmatpush3.bf16.msra.mxu0 %v20379_v27 }
0x2433   :  { %19079 = vmatprep.subr.bf16.mxu1 %v20380_v25  ;;  %19107 = vmatprep.subr.bf16.mxu0 %v20381_v47  ;;  %v20392_v25 = vld [vmem:[#allocation12 + $0x150] sm:$0xff]  }
0x2434   :  { %v20393_v47 = vld [vmem:[#allocation12 + $0x1d0] sm:$0xff]  }
0x2436   :  { %19080 = vmatpush3.bf16.msra.mxu1 %v20382_v7  ;;  %19108 = vmatpush3.bf16.msra.mxu0 %v20383_v57 }
0x2437   :  { %19121 = vmatprep.subr.bf16.mxu1 %v20384_v38  ;;  %19149 = vmatprep.subr.bf16.mxu0 %v20385_v50 }
0x24b7   :  { %v14926_v37 = vpop.f32.mrb[200].mxu1  ;;  %v14979_v2 = vpop.f32.mrb[204].mxu0 }
0x24b8   :  { %v14927_v26 = vadd.f32 %v14926_v37, %v14649_v59  ;;  %v14980_v41 = vadd.f32 %v14979_v2, %v14657_v49  ;;  %v14928_v19 = vpop.f32.mrb[201].mxu1  ;;  %v14981_v14 = vpop.f32.mrb[205].mxu0  ;;  %v23456_v37 = vrot.slane %v23434_v17, %v22266_v13 }
0x24b9   :  { %v14929_v39 = vadd.f32 %v14928_v19, %v23442_v10  ;;  %v14982_v9 = vadd.f32 %v14981_v14, %v23446_v40  ;;  %v14930_v30 = vpop.f32.mrb[202].mxu1  ;;  %v14983_v11 = vpop.f32.mrb[206].mxu0  ;;  %v23460_v14 = vrot.slane %v23434_v17, %v22268_v33 }
0x24ba   :  { %v14931_v22 = vadd.f32 %v14930_v30, %v14649_v59  ;;  %v14984_v63 = vadd.f32 %v14983_v11, %v14657_v49  ;;  %v14932_v8 = vpop.f32.mrb[203].mxu1  ;;  %v14985_v34 = vpop.f32.mrb[207].mxu0  ;;  %v15316_v3 = vmax.f32 %v14927_v26, 0.0  ;;  %v15318_v45 = vmax.f32 %v14980_v41, 0.0  ;;  %v20394_v11 = vld [vmem:[#allocation12 + $0x110] sm:$0xff]  }
0x24bb   :  { %v14933_v48 = vadd.f32 %v14932_v8, %v23442_v10  ;;  %v14986_v58 = vadd.f32 %v14985_v34, %v23446_v40  ;;  %v15317_v24 = vmax.f32 %v14929_v39, 0.0  ;;  %v15319_v12 = vmax.f32 %v14982_v9, 0.0 }
0x24bc   :  { %v15332_v35 = vmax.f32 %v14931_v22, 0.0  ;;  %v15334_v6 = vmax.f32 %v14984_v63, 0.0  ;;  %v23464_v39 = vrot.slane %v23434_v17, %v22270_v31  ;;  %v20395_v22 = vld [vmem:[#allocation12 + $0x190] sm:$0xff]  }
0x24bd   :  { %v15333_v52 = vmax.f32 %v14933_v48, 0.0  ;;  %v15335_v15 = vmax.f32 %v14986_v58, 0.0  ;;  %v20396_v48 = vld [vmem:[#allocation12 + $0x158] sm:$0xff]  }
0x24be   :  { %v15380_v46 = vpack.c.bf16 %v15332_v35, %v15316_v3  ;;  %v15382_v18 = vpack.c.bf16 %v15334_v6, %v15318_v45  ;;  %v20397_v58 = vld [vmem:[#allocation12 + $0x1d8] sm:$0xff]  }
0x24bf   :  { %v15381_v42 = vpack.c.bf16 %v15333_v52, %v15317_v24  ;;  %v15383_v60 = vpack.c.bf16 %v15335_v15, %v15319_v12  ;;  %v20398_v15 = vld [vmem:[#allocation12 + $0x118] sm:$0xff]  }
0x24c1   :  { %16475 = vmatprep.mubr.bf16.mxu1 %v15381_v42  ;;  %16524 = vmatprep.mubr.bf16.mxu0 %v15383_v60 }
0x24c2   :  { %16476 = vmatmul.mubr.bf16.vlgmr.msra.gmra.mrb[232].mxu1 %v15380_v46  ;;  %16525 = vmatmul.mubr.bf16.vlgmr.msra.gmra.mrb[236].mxu0 %v15382_v18  ;;  %v20399_v46 = vld [vmem:[#allocation12 + $0x198] sm:$0xff]  }
0x24c3   :  { %19122 = vmatpush3.bf16.msra.mxu1 %v20386_v32  ;;  %19150 = vmatpush3.bf16.msra.mxu0 %v20387_v61  ;;  %v14936_v21 = vpop.f32.mrb[204].mxu1  ;;  %v14989_v29 = vpop.f32.mrb[208].mxu0  ;;  %v20400_v61 = vld [vmem:[#allocation12 + $0x160] sm:$0xff]  }
0x24c4   :  { %v14937_v62 = vadd.f32 %v14936_v21, %v14649_v59  ;;  %v14990_v23 = vadd.f32 %v14989_v29, %v14657_v49  ;;  %v14938_v0 = vpop.f32.mrb[205].mxu1  ;;  %v14991_v27 = vpop.f32.mrb[209].mxu0  ;;  %19123 = vmatprep.subr.bf16.mxu1 %v20388_v5  ;;  %19151 = vmatprep.subr.bf16.mxu0 %v20389_v56  ;;  %v20401_v5 = vld [vmem:[#allocation12 + $0x1e0] sm:$0xff]  }
0x24c5   :  { %v14939_v7 = vadd.f32 %v14938_v0, %v23442_v10  ;;  %v14992_v57 = vadd.f32 %v14991_v27, %v23446_v40  ;;  %v14940_v38 = vpop.f32.mrb[206].mxu1  ;;  %v14993_v50 = vpop.f32.mrb[210].mxu0 }
0x24c6   :  { %v14941_v2 = vadd.f32 %v14940_v38, %v14649_v59  ;;  %v14994_v26 = vadd.f32 %v14993_v50, %v14657_v49  ;;  %v14942_v41 = vpop.f32.mrb[207].mxu1  ;;  %v14995_v19 = vpop.f32.mrb[211].mxu0  ;;  %v23470_v59 = vrot.slane %v23434_v17, %v22274_v16  ;;  %v15348_v49 = vmax.f32 %v14937_v62, 0.0 }
0x24c7   :  { %v14943_v9 = vadd.f32 %v14942_v41, %v23442_v10  ;;  %v14996_v30 = vadd.f32 %v14995_v19, %v23446_v40  ;;  %19124 = vmatpush3.bf16.msra.mxu1 %v20390_v53  ;;  %19152 = vmatpush3.bf16.msra.mxu0 %v20391_v55  ;;  %v15350_v63 = vmax.f32 %v14990_v23, 0.0  ;;  %v15349_v3 = vmax.f32 %v14939_v7, 0.0  ;;  %v20403_v7 = vld [vmem:[#allocation12 + $0x1a0] sm:$0xff]   ;;  %v20405_v41 = vld [vmem:[#allocation12 + $0x1e8] sm:$0xff]  }
0x24c8   :  { %v15364_v8 = vmax.f32 %v14941_v2, 0.0  ;;  %v15366_v34 = vmax.f32 %v14994_v26, 0.0  ;;  %19125 = vmatprep.subr.bf16.mxu1 %v20392_v25  ;;  %19153 = vmatprep.subr.bf16.mxu0 %v20393_v47  ;;  %v15351_v10 = vmax.f32 %v14992_v57, 0.0  ;;  %v20402_v47 = vld [vmem:[#allocation12 + $0x120] sm:$0xff]   ;;  %v20404_v26 = vld [vmem:[#allocation12 + $0x168] sm:$0xff]  }
0x24c9   :  { %v15365_v45 = vmax.f32 %v14943_v9, 0.0  ;;  %v15367_v40 = vmax.f32 %v14996_v30, 0.0 }
0x24ca   :  { %v15396_v35 = vpack.c.bf16 %v15364_v8, %v15348_v49  ;;  %v15398_v6 = vpack.c.bf16 %v15366_v34, %v15350_v63  ;;  %v23485_v63 = vld [vmem:[%s23782_s1 + $0x8] sm:$0xff] }
0x24cb   :  { %v15397_v24 = vpack.c.bf16 %v15365_v45, %v15349_v3  ;;  %v15399_v12 = vpack.c.bf16 %v15367_v40, %v15351_v10  ;;  %19126 = vmatpush3.bf16.msra.mxu1 %v20394_v11  ;;  %19154 = vmatpush3.bf16.msra.mxu0 %v20395_v22  ;;  %v15032_v17 = vpop.f32.mrb[208].mxu1  ;;  %v15085_v52 = vpop.f32.mrb[212].mxu0  ;;  %v20406_v3 = vld [vmem:[#allocation12 + $0x128] sm:$0xff]  }
0x24cc   :  { %v15033_v18 = vadd.f32 %v15032_v17, %v23456_v37  ;;  %v15086_v42 = vadd.f32 %v15085_v52, %v23460_v14  ;;  %v15034_v60 = vpop.f32.mrb[209].mxu1  ;;  %v15087_v32 = vpop.f32.mrb[213].mxu0  ;;  %19127 = vmatprep.subr.bf16.mxu1 %v20396_v48  ;;  %19155 = vmatprep.subr.bf16.mxu0 %v20397_v58  ;;  %v20407_v10 = vld [vmem:[#allocation12 + $0x1a8] sm:$0xff]  }
0x24cd   :  { %v15035_v56 = vadd.f32 %v15034_v60, %v23464_v39  ;;  %v15088_v21 = vadd.f32 %v15087_v32, %v23470_v59  ;;  %v15036_v29 = vpop.f32.mrb[210].mxu1  ;;  %v15089_v53 = vpop.f32.mrb[214].mxu0  ;;  %16483 = vmatprep.mubr.bf16.mxu1 %v15397_v24  ;;  %16532 = vmatprep.mubr.bf16.mxu0 %v15399_v12  ;;  %v20408_v24 = vld [vmem:[#allocation12 + $0x170] sm:$0xff]  }
0x24ce   :  { %v15037_v55 = vadd.f32 %v15036_v29, %v23456_v37  ;;  %v15090_v62 = vadd.f32 %v15089_v53, %v23460_v14  ;;  %v15038_v23 = vpop.f32.mrb[211].mxu1  ;;  %v15091_v0 = vpop.f32.mrb[215].mxu0  ;;  %16484 = vmatmul.mubr.bf16.gmra.mrb[236].mxu1 %v15396_v35  ;;  %16533 = vmatmul.mubr.bf16.gmra.mrb[240].mxu0 %v15398_v6  ;;  %v15320_v57 = vmax.f32 %v15033_v18, 0.0  ;;  %v15322_v38 = vmax.f32 %v15086_v42, 0.0  ;;  %v20409_v12 = vld [vmem:[#allocation12 + $0x1f0] sm:$0xff]  }
0x24cf   :  { %v15039_v27 = vadd.f32 %v15038_v23, %v23464_v39  ;;  %v15092_v25 = vadd.f32 %v15091_v0, %v23470_v59  ;;  %19128 = vmatpush3.bf16.msra.mxu1 %v20398_v15  ;;  %19156 = vmatpush3.bf16.msra.mxu0 %v20399_v46  ;;  %v15321_v19 = vmax.f32 %v15035_v56, 0.0  ;;  %v15323_v9 = vmax.f32 %v15088_v21, 0.0  ;;  %v20410_v53 = vld [vmem:[#allocation12 + $0x130] sm:$0xff]  }
0x24d0   :  { %v15336_v50 = vmax.f32 %v15037_v55, 0.0  ;;  %v15338_v2 = vmax.f32 %v15090_v62, 0.0  ;;  %19129 = vmatprep.subr.bf16.mxu1 %v20400_v61  ;;  %19157 = vmatprep.subr.bf16.mxu0 %v20401_v5  ;;  %v23493_v18 = vrot.slane %v23485_v63, %v22227_v44  ;;  %v23499_v5 = vrot.slane %v23485_v63, %v22229_v54 }
0x24d1   :  { %v15337_v30 = vmax.f32 %v15039_v27, 0.0  ;;  %v15339_v11 = vmax.f32 %v15092_v25, 0.0  ;;  %v23503_v56 = vrot.slane %v23485_v63, %v22234_v36  ;;  %v20412_v27 = vld [vmem:[#allocation12 + $0x178] sm:$0xff]  }
0x24d2   :  { %v23480_v22 = vpack.c.bf16 %v15336_v50, %v15320_v57  ;;  %v23482_v49 = vpack.c.bf16 %v15338_v2, %v15322_v38  ;;  %v20413_v25 = vld [vmem:[#allocation12 + $0x1f8] sm:$0xff]  }
0x24d3   :  { %v15385_v8 = vpack.c.bf16 %v15337_v30, %v15321_v19  ;;  %v15387_v34 = vpack.c.bf16 %v15339_v11, %v15323_v9  ;;  %19130 = vmatpush3.bf16.msra.mxu1 %v20402_v47  ;;  %19158 = vmatpush3.bf16.msra.mxu0 %v20403_v7  ;;  %v15042_v48 = vpop.f32.mrb[212].mxu1  ;;  %v15095_v58 = vpop.f32.mrb[216].mxu0  ;;  %v20414_v19 = vld [vmem:[#allocation12 + $0x138] sm:$0xff]  }
0x24d4   :  { %v15043_v45 = vadd.f32 %v15042_v48, %v23456_v37  ;;  %v15096_v40 = vadd.f32 %v15095_v58, %v23460_v14  ;;  %v15044_v35 = vpop.f32.mrb[213].mxu1  ;;  %v15097_v6 = vpop.f32.mrb[217].mxu0  ;;  %19131 = vmatprep.subr.bf16.mxu1 %v20404_v26  ;;  %19159 = vmatprep.subr.bf16.mxu0 %v20405_v41  ;;  %v20415_v9 = vld [vmem:[#allocation12 + $0x1b8] sm:$0xff]   ;;  %v20416_v48 = vld [vmem:[#allocation12 + $0x240] sm:$0xff]  }
0x24d5   :  { %v15045_v17 = vadd.f32 %v15044_v35, %v23464_v39  ;;  %v15098_v52 = vadd.f32 %v15097_v6, %v23470_v59  ;;  %v15046_v15 = vpop.f32.mrb[214].mxu1  ;;  %v15099_v46 = vpop.f32.mrb[218].mxu0  ;;  %16573 = vmatprep.mubr.bf16.mxu1 %v15385_v8  ;;  %16622 = vmatprep.mubr.bf16.mxu0 %v15387_v34  ;;  %v20417_v58 = vld [vmem:[#allocation12 + $0x2c0] sm:$0xff]  }
0x24d6   :  { %v15047_v42 = vadd.f32 %v15046_v15, %v23456_v37  ;;  %v15100_v60 = vadd.f32 %v15099_v46, %v23460_v14  ;;  %v15048_v32 = vpop.f32.mrb[215].mxu1  ;;  %v15101_v61 = vpop.f32.mrb[219].mxu0  ;;  %v20411_v37 = vld [vmem:[#allocation12 + $0x1b0] sm:$0xff]   ;;  %v23509_v14 = vrot.slane %v23485_v63, %v22236_v51  ;;  %v15352_v55 = vmax.f32 %v15043_v45, 0.0 }
0x24d7   :  { %v15049_v21 = vadd.f32 %v15048_v32, %v23464_v39  ;;  %v15102_v29 = vadd.f32 %v15101_v61, %v23470_v59  ;;  %19132 = vmatpush3.bf16.msra.mxu1 %v20406_v3  ;;  %19160 = vmatpush3.bf16.msra.mxu0 %v20407_v10  ;;  %v15354_v62 = vmax.f32 %v15096_v40, 0.0  ;;  %v15353_v47 = vmax.f32 %v15045_v17, 0.0  ;;  %v20418_v32 = vld [vmem:[#allocation12 + $0x200] sm:$0xff]  }
0x24d8   :  { %v15368_v23 = vmax.f32 %v15047_v42, 0.0  ;;  %v15370_v0 = vmax.f32 %v15100_v60, 0.0  ;;  %19133 = vmatprep.subr.bf16.mxu1 %v20408_v24  ;;  %19161 = vmatprep.subr.bf16.mxu0 %v20409_v12  ;;  %v15355_v39 = vmax.f32 %v15098_v52, 0.0  ;;  %v20419_v61 = vld [vmem:[#allocation12 + $0x280] sm:$0xff]  }
0x24d9   :  { %v15369_v7 = vmax.f32 %v15049_v21, 0.0  ;;  %v15371_v59 = vmax.f32 %v15102_v29, 0.0 }
0x24da   :  { %v23511_v57 = vpack.c.bf16 %v15368_v23, %v15352_v55  ;;  %v23513_v38 = vpack.c.bf16 %v15370_v0, %v15354_v62  ;;  %v20420_v55 = vld [vmem:[#allocation12 + $0x248] sm:$0xff]  }
0x24db   :  { %v15401_v50 = vpack.c.bf16 %v15369_v7, %v15353_v47  ;;  %v15403_v2 = vpack.c.bf16 %v15371_v59, %v15355_v39  ;;  %19134 = vmatpush3.bf16.msra.mxu1 %v20410_v53  ;;  %19162 = vmatpush3.bf16.msra.mxu0 %v20411_v37  ;;  %v15138_v26 = vpop.f32.mrb[216].mxu1  ;;  %v15191_v41 = vpop.f32.mrb[220].mxu0  ;;  %v20421_v62 = vld [vmem:[#allocation12 + $0x2c8] sm:$0xff]  }
0x24dc   :  { %v15139_v30 = vadd.f32 %v15138_v26, %v23493_v18  ;;  %v15192_v11 = vadd.f32 %v15191_v41, %v23499_v5  ;;  %v15140_v8 = vpop.f32.mrb[217].mxu1  ;;  %v15193_v34 = vpop.f32.mrb[221].mxu0  ;;  %19135 = vmatprep.subr.bf16.mxu1 %v20412_v27  ;;  %19163 = vmatprep.subr.bf16.mxu0 %v20413_v25 }
0x24dd   :  { %v15141_v3 = vadd.f32 %v15140_v8, %v23503_v56  ;;  %v15194_v10 = vadd.f32 %v15193_v34, %v23509_v14  ;;  %v15142_v45 = vpop.f32.mrb[218].mxu1  ;;  %v15195_v40 = vpop.f32.mrb[222].mxu0 }
0x24de   :  { %v15143_v35 = vadd.f32 %v15142_v45, %v23493_v18  ;;  %v15196_v6 = vadd.f32 %v15195_v40, %v23499_v5  ;;  %v15144_v24 = vpop.f32.mrb[219].mxu1  ;;  %v15197_v12 = vpop.f32.mrb[223].mxu0  ;;  %v15324_v15 = vmax.f32 %v15139_v30, 0.0  ;;  %v15326_v46 = vmax.f32 %v15192_v11, 0.0 }
0x24df   :  { %v15145_v17 = vadd.f32 %v15144_v24, %v23503_v56  ;;  %v15198_v52 = vadd.f32 %v15197_v12, %v23509_v14  ;;  %19136 = vmatpush3.bf16.msra.mxu1 %v20414_v19  ;;  %19164 = vmatpush3.bf16.msra.mxu0 %v20415_v9  ;;  %v15325_v21 = vmax.f32 %v15141_v3, 0.0  ;;  %v15327_v29 = vmax.f32 %v15194_v10, 0.0  ;;  %v20422_v19 = vld [vmem:[#allocation12 + $0x208] sm:$0xff]   ;;  %v20427_v12 = vld [vmem:[#allocation12 + $0x290] sm:$0xff]  }
0x24e0   :  { %v15340_v42 = vmax.f32 %v15143_v35, 0.0  ;;  %v15342_v60 = vmax.f32 %v15196_v6, 0.0  ;;  %19177 = vmatprep.subr.bf16.mxu1 %v20416_v48  ;;  %19205 = vmatprep.subr.bf16.mxu0 %v20417_v58  ;;  %v20423_v9 = vld [vmem:[#allocation12 + $0x288] sm:$0xff]   ;;  %v23537_v3 = vrot.slane %v23485_v63, %v22266_v13  ;;  %v23541_v10 = vrot.slane %v23485_v63, %v22268_v33  ;;  %v20426_v33 = vld [vmem:[#allocation12 + $0x210] sm:$0xff]  }
0x24e1   :  { %v15341_v53 = vmax.f32 %v15145_v17, 0.0  ;;  %v15343_v37 = vmax.f32 %v15198_v52, 0.0  ;;  %v23547_v35 = vrot.slane %v23485_v63, %v22270_v31  ;;  %v20428_v31 = vld [vmem:[#allocation12 + $0x258] sm:$0xff]  }
0x24e2   :  { %v23523_v23 = vpack.c.bf16 %v15340_v42, %v15324_v15  ;;  %v23525_v0 = vpack.c.bf16 %v15342_v60, %v15326_v46  ;;  %16574 = vmatmul.mubr.bf16.vlgmr.msra.gmra.mrb[240].mxu1 %v23480_v22  ;;  %16623 = vmatmul.mubr.bf16.vlgmr.msra.gmra.mrb[244].mxu0 %v23482_v49  ;;  %v20429_v15 = vld [vmem:[#allocation12 + $0x2d8] sm:$0xff]  }
0x24e3   :  { %v15389_v27 = vpack.c.bf16 %v15341_v53, %v15325_v21  ;;  %v15391_v25 = vpack.c.bf16 %v15343_v37, %v15327_v29  ;;  %16581 = vmatprep.mubr.bf16.mxu1 %v15401_v50  ;;  %16630 = vmatprep.mubr.bf16.mxu0 %v15403_v2  ;;  %v15148_v47 = vpop.f32.mrb[220].mxu1  ;;  %v15201_v39 = vpop.f32.mrb[224].mxu0  ;;  %v20424_v50 = vld [vmem:[#allocation12 + $0x250] sm:$0xff]   ;;  %v20430_v37 = vld [vmem:[#allocation12 + $0x218] sm:$0xff]  }
0x24e4   :  { %19178 = vmatpush3.bf16.msra.mxu1 %v20418_v32  ;;  %19206 = vmatpush3.bf16.msra.mxu0 %v20419_v61  ;;  %v15149_v7 = vadd.f32 %v15148_v47, %v23493_v18  ;;  %v15202_v59 = vadd.f32 %v15201_v39, %v23499_v5  ;;  %v15150_v26 = vpop.f32.mrb[221].mxu1  ;;  %v15203_v41 = vpop.f32.mrb[225].mxu0  ;;  %v20425_v2 = vld [vmem:[#allocation12 + $0x2d0] sm:$0xff]  }
0x24e5   :  { %v15151_v22 = vadd.f32 %v15150_v26, %v23503_v56  ;;  %v15204_v49 = vadd.f32 %v15203_v41, %v23509_v14  ;;  %v15152_v30 = vpop.f32.mrb[222].mxu1  ;;  %v15205_v11 = vpop.f32.mrb[226].mxu0  ;;  %19179 = vmatprep.subr.bf16.mxu1 %v20420_v55  ;;  %19207 = vmatprep.subr.bf16.mxu0 %v20421_v62 }
0x24e6   :  { %v15153_v8 = vadd.f32 %v15152_v30, %v23493_v18  ;;  %v15206_v34 = vadd.f32 %v15205_v11, %v23499_v5  ;;  %v15154_v48 = vpop.f32.mrb[223].mxu1  ;;  %v15207_v58 = vpop.f32.mrb[227].mxu0  ;;  %v23551_v18 = vrot.slane %v23485_v63, %v22274_v16  ;;  %v15356_v5 = vmax.f32 %v15149_v7, 0.0  ;;  %v20434_v11 = vld [vmem:[#allocation12 + $0x220] sm:$0xff]  }
0x24e7   :  { %v15155_v45 = vadd.f32 %v15154_v48, %v23503_v56  ;;  %v15208_v40 = vadd.f32 %v15207_v58, %v23509_v14  ;;  %v15358_v6 = vmax.f32 %v15202_v59, 0.0  ;;  %v15357_v17 = vmax.f32 %v15151_v22, 0.0  ;;  %v20436_v58 = vld [vmem:[#allocation12 + $0x268] sm:$0xff]  }
0x24e8   :  { %v15372_v13 = vmax.f32 %v15153_v8, 0.0  ;;  %v15374_v24 = vmax.f32 %v15206_v34, 0.0  ;;  %19180 = vmatpush3.bf16.msra.mxu1 %v20422_v19  ;;  %19208 = vmatpush3.bf16.msra.mxu0 %v20423_v9  ;;  %v15359_v56 = vmax.f32 %v15204_v49, 0.0 }
0x24e9   :  { %v15373_v52 = vmax.f32 %v15155_v45, 0.0  ;;  %v15375_v14 = vmax.f32 %v15208_v40, 0.0  ;;  %19181 = vmatprep.subr.bf16.mxu1 %v20424_v50  ;;  %19209 = vmatprep.subr.bf16.mxu0 %v20425_v2  ;;  %v20435_v50 = vld [vmem:[#allocation12 + $0x2a0] sm:$0xff]   ;;  %v20437_v45 = vld [vmem:[#allocation12 + $0x2e8] sm:$0xff]  }
0x24ea   :  { %v23553_v46 = vpack.c.bf16 %v15372_v13, %v15356_v5  ;;  %v23555_v16 = vpack.c.bf16 %v15374_v24, %v15358_v6  ;;  %16582 = vmatmul.mubr.bf16.gmra.mrb[244].mxu1 %v23511_v57  ;;  %16631 = vmatmul.mubr.bf16.gmra.mrb[248].mxu0 %v23513_v38  ;;  %v20431_v57 = vld [vmem:[#allocation12 + $0x298] sm:$0xff]  }
0x24eb   :  { %v23559_v63 = vpack.c.bf16 %v15373_v52, %v15357_v17  ;;  %v23561_v42 = vpack.c.bf16 %v15375_v14, %v15359_v56  ;;  %16671 = vmatprep.mubr.bf16.mxu1 %v15389_v27  ;;  %16720 = vmatprep.mubr.bf16.mxu0 %v15391_v25  ;;  %v15244_v60 = vpop.f32.mrb[224].mxu1  ;;  %v15297_v32 = vpop.f32.mrb[228].mxu0  ;;  %v20432_v27 = vld [vmem:[#allocation12 + $0x260] sm:$0xff]   ;;  %v20438_v14 = vld [vmem:[#allocation12 + $0x228] sm:$0xff]  }
0x24ec   :  { %19182 = vmatpush3.bf16.msra.mxu1 %v20426_v33  ;;  %19210 = vmatpush3.bf16.msra.mxu0 %v20427_v12  ;;  %v15245_v61 = vadd.f32 %v15244_v60, %v23537_v3  ;;  %v15298_v21 = vadd.f32 %v15297_v32, %v23541_v10  ;;  %v15246_v29 = vpop.f32.mrb[225].mxu1  ;;  %v15299_v53 = vpop.f32.mrb[229].mxu0  ;;  %v20433_v25 = vld [vmem:[#allocation12 + $0x2e0] sm:$0xff]  }
0x24ed   :  { %v15247_v38 = vadd.f32 %v15246_v29, %v23547_v35  ;;  %v15300_v55 = vadd.f32 %v15299_v53, %v23551_v18  ;;  %v15248_v62 = vpop.f32.mrb[226].mxu1  ;;  %v15301_v47 = vpop.f32.mrb[230].mxu0  ;;  %19183 = vmatprep.subr.bf16.mxu1 %v20428_v31  ;;  %19211 = vmatprep.subr.bf16.mxu0 %v20429_v15  ;;  %v20439_v31 = vld [vmem:[#allocation12 + $0x2a8] sm:$0xff]   ;;  %v20441_v29 = vld [vmem:[#allocation12 + $0x2f0] sm:$0xff]  }
0x24ee   :  { %v15249_v39 = vadd.f32 %v15248_v62, %v23537_v3  ;;  %v15302_v7 = vadd.f32 %v15301_v47, %v23541_v10  ;;  %v15250_v59 = vpop.f32.mrb[227].mxu1  ;;  %v15303_v26 = vpop.f32.mrb[231].mxu0  ;;  %v15328_v9 = vmax.f32 %v15245_v61, 0.0  ;;  %v15330_v22 = vmax.f32 %v15298_v21, 0.0  ;;  %v20440_v21 = vld [vmem:[#allocation12 + $0x270] sm:$0xff]  }
0x24ef   :  { %v15251_v41 = vadd.f32 %v15250_v59, %v23547_v35  ;;  %v15304_v19 = vadd.f32 %v15303_v26, %v23551_v18  ;;  %v15329_v2 = vmax.f32 %v15247_v38, 0.0  ;;  %v15331_v8 = vmax.f32 %v15300_v55, 0.0  ;;  %v20443_v59 = vld [vmem:[#allocation12 + $0x2b0] sm:$0xff]  }
0x24f0   :  { %v15344_v49 = vmax.f32 %v15249_v39, 0.0  ;;  %v15346_v30 = vmax.f32 %v15302_v7, 0.0  ;;  %19184 = vmatpush3.bf16.msra.mxu1 %v20430_v37  ;;  %19212 = vmatpush3.bf16.msra.mxu0 %v20431_v57  ;;  %v20442_v7 = vld [vmem:[#allocation12 + $0x230] sm:$0xff]  }
0x24f1   :  { %v15345_v34 = vmax.f32 %v15251_v41, 0.0  ;;  %v15347_v48 = vmax.f32 %v15304_v19, 0.0  ;;  %19185 = vmatprep.subr.bf16.mxu1 %v20432_v27  ;;  %19213 = vmatprep.subr.bf16.mxu0 %v20433_v25 }
0x24f2   :  { %v23571_v40 = vpack.c.bf16 %v15344_v49, %v15328_v9  ;;  %v23573_v5 = vpack.c.bf16 %v15346_v30, %v15330_v22  ;;  %v20445_v9 = vld [vmem:[#allocation12 + $0x2f8] sm:$0xff]  }
0x24f3   :  { %v23575_v6 = vpack.c.bf16 %v15345_v34, %v15329_v2  ;;  %v23577_v13 = vpack.c.bf16 %v15347_v48, %v15331_v8  ;;  %v15254_v24 = vpop.f32.mrb[228].mxu1  ;;  %v15307_v33 = vpop.f32.mrb[232].mxu0  ;;  %v20446_v30 = vld [vmem:[#allocation12 + $0x238] sm:$0xff]   ;;  %v20449_v2 = vld [vmem:[#allocation12 + $0x3c0] sm:$0xff]   ;;  %v20452_v48 = vld [vmem:[#allocation12 + $0x348] sm:$0xff]  }
0x24f4   :  { %19186 = vmatpush3.bf16.msra.mxu1 %v20434_v11  ;;  %19214 = vmatpush3.bf16.msra.mxu0 %v20435_v50  ;;  %v15255_v12 = vadd.f32 %v15254_v24, %v23537_v3  ;;  %v15308_v17 = vadd.f32 %v15307_v33, %v23541_v10  ;;  %v15256_v56 = vpop.f32.mrb[229].mxu1  ;;  %v15309_v52 = vpop.f32.mrb[233].mxu0  ;;  %v20447_v11 = vld [vmem:[#allocation12 + $0x2b8] sm:$0xff]   ;;  %v20448_v50 = vld [vmem:[#allocation12 + $0x340] sm:$0xff]   ;;  %v20455_v24 = vld [vmem:[#allocation12 + $0x388] sm:$0xff]  }
0x24f5   :  { %v15257_v15 = vadd.f32 %v15256_v56, %v23547_v35  ;;  %v15310_v60 = vadd.f32 %v15309_v52, %v23551_v18  ;;  %v15258_v32 = vpop.f32.mrb[230].mxu1  ;;  %v15311_v61 = vpop.f32.mrb[234].mxu0  ;;  %19187 = vmatprep.subr.bf16.mxu1 %v20436_v58  ;;  %19215 = vmatprep.subr.bf16.mxu0 %v20437_v45  ;;  %v20450_v8 = vld [vmem:[#allocation12 + $0x300] sm:$0xff]   ;;  %v20453_v58 = vld [vmem:[#allocation12 + $0x3c8] sm:$0xff]   ;;  %v20456_v33 = vld [vmem:[#allocation12 + $0x350] sm:$0xff]  }
0x24f6   :  { %v15259_v53 = vadd.f32 %v15258_v32, %v23537_v3  ;;  %v15312_v37 = vadd.f32 %v15311_v61, %v23541_v10  ;;  %v15260_v57 = vpop.f32.mrb[231].mxu1  ;;  %v15313_v38 = vpop.f32.mrb[235].mxu0  ;;  %v15360_v47 = vmax.f32 %v15255_v12, 0.0  ;;  %v15362_v27 = vmax.f32 %v15308_v17, 0.0  ;;  %v20444_v10 = vld [vmem:[#allocation12 + $0x278] sm:$0xff]   ;;  %v20451_v34 = vld [vmem:[#allocation12 + $0x380] sm:$0xff]  }
0x24f7   :  { %v15261_v55 = vadd.f32 %v15260_v57, %v23547_v35  ;;  %v15314_v62 = vadd.f32 %v15313_v38, %v23551_v18  ;;  %v15361_v26 = vmax.f32 %v15257_v15, 0.0  ;;  %v15363_v41 = vmax.f32 %v15310_v60, 0.0  ;;  %v20454_v45 = vld [vmem:[#allocation12 + $0x308] sm:$0xff]   ;;  %v20457_v12 = vld [vmem:[#allocation12 + $0x3d0] sm:$0xff]   ;;  %v20464_v52 = vld [vmem:[#allocation12 + $0x360] sm:$0xff]  }
0x24f8   :  { %v15376_v25 = vmax.f32 %v15259_v53, 0.0  ;;  %v15378_v39 = vmax.f32 %v15312_v37, 0.0  ;;  %19188 = vmatpush3.bf16.msra.mxu1 %v20438_v14  ;;  %19216 = vmatpush3.bf16.msra.mxu0 %v20439_v31  ;;  %v20458_v17 = vld [vmem:[#allocation12 + $0x310] sm:$0xff]   ;;  %v20465_v14 = vld [vmem:[#allocation12 + $0x3e0] sm:$0xff]   ;;  %v20477_v53 = vld [vmem:[#allocation12 + $0x3f8] sm:$0xff]  }
0x24f9   :  { %v15377_v19 = vmax.f32 %v15261_v55, 0.0  ;;  %v15379_v3 = vmax.f32 %v15314_v62, 0.0  ;;  %19189 = vmatprep.subr.bf16.mxu1 %v20440_v21  ;;  %19217 = vmatprep.subr.bf16.mxu0 %v20441_v29  ;;  %v20459_v56 = vld [vmem:[#allocation12 + $0x390] sm:$0xff]   ;;  %v20466_v31 = vld [vmem:[#allocation12 + $0x320] sm:$0xff]   ;;  %v20476_v29 = vld [vmem:[#allocation12 + $0x378] sm:$0xff]  }
0x24fa   :  { %v23587_v22 = vpack.c.bf16 %v15376_v25, %v15360_v47  ;;  %v23589_v35 = vpack.c.bf16 %v15378_v39, %v15362_v27  ;;  %v20467_v15 = vld [vmem:[#allocation12 + $0x3a0] sm:$0xff]   ;;  %v20472_v60 = vld [vmem:[#allocation12 + $0x370] sm:$0xff]   ;;  %v20478_v37 = vld [vmem:[#allocation12 + $0x338] sm:$0xff]  }
0x24fb   :  { %v23591_v18 = vpack.c.bf16 %v15377_v19, %v15361_v26  ;;  %v23593_v49 = vpack.c.bf16 %v15379_v3, %v15363_v41  ;;  %v20473_v32 = vld [vmem:[#allocation12 + $0x3f0] sm:$0xff]   ;;  %v20479_v57 = vld [vmem:[#allocation12 + $0x3b8] sm:$0xff]   ;;  %v18377_v62 = vld [vmem:[#allocation13] ss:$0 sm:$0xff] }
0x24fc   :  { %19190 = vmatpush3.bf16.msra.mxu1 %v20442_v7  ;;  %19218 = vmatpush3.bf16.msra.mxu0 %v20443_v59  ;;  %v20474_v61 = vld [vmem:[#allocation12 + $0x330] sm:$0xff]  }
0x24fd   :  { %19191 = vmatprep.subr.bf16.mxu1 %v20444_v10  ;;  %19219 = vmatprep.subr.bf16.mxu0 %v20445_v9  ;;  %v20475_v21 = vld [vmem:[#allocation12 + $0x3b0] sm:$0xff]  }
0x2500   :  { %19192 = vmatpush3.bf16.msra.mxu1 %v20446_v30  ;;  %19220 = vmatpush3.bf16.msra.mxu0 %v20447_v11 }
0x2501   :  { %19233 = vmatprep.subr.bf16.mxu1 %v20448_v50  ;;  %19261 = vmatprep.subr.bf16.mxu0 %v20449_v2 }
0x2503   :  { %16672 = vmatmul.mubr.bf16.vlgmr.msra.gmra.mrb[248].mxu1 %v23523_v23  ;;  %16721 = vmatmul.mubr.bf16.vlgmr.msra.gmra.mrb[252].mxu0 %v23525_v0  ;;  %v20460_v23 = vld [vmem:[#allocation12 + $0x358] sm:$0xff]  }
0x2504   :  { %16679 = vmatprep.mubr.bf16.mxu1 %v23559_v63  ;;  %16728 = vmatprep.mubr.bf16.mxu0 %v23561_v42  ;;  %v20461_v0 = vld [vmem:[#allocation12 + $0x3d8] sm:$0xff]  }
0x2505   :  { %19234 = vmatpush3.bf16.msra.mxu1 %v20450_v8  ;;  %19262 = vmatpush3.bf16.msra.mxu0 %v20451_v34  ;;  %v20462_v63 = vld [vmem:[#allocation12 + $0x318] sm:$0xff]  }
0x2506   :  { %19235 = vmatprep.subr.bf16.mxu1 %v20452_v48  ;;  %19263 = vmatprep.subr.bf16.mxu0 %v20453_v58  ;;  %v20463_v42 = vld [vmem:[#allocation12 + $0x398] sm:$0xff]  }
0x2509   :  { %19236 = vmatpush3.bf16.msra.mxu1 %v20454_v45  ;;  %19264 = vmatpush3.bf16.msra.mxu0 %v20455_v24 }
0x250a   :  { %19237 = vmatprep.subr.bf16.mxu1 %v20456_v33  ;;  %19265 = vmatprep.subr.bf16.mxu0 %v20457_v12 }
0x250b   :  { %16680 = vmatmul.mubr.bf16.gmra.mrb[252].mxu1 %v23553_v46  ;;  %16729 = vmatmul.mubr.bf16.gmra.mrb[0].mxu0 %v23555_v16  ;;  %v20468_v46 = vld [vmem:[#allocation12 + $0x368] sm:$0xff]  }
0x250c   :  { %16769 = vmatprep.mubr.bf16.mxu1 %v23575_v6  ;;  %16818 = vmatprep.mubr.bf16.mxu0 %v23577_v13  ;;  %v20469_v16 = vld [vmem:[#allocation12 + $0x3e8] sm:$0xff]  }
0x250d   :  { %19238 = vmatpush3.bf16.msra.mxu1 %v20458_v17  ;;  %19266 = vmatpush3.bf16.msra.mxu0 %v20459_v56  ;;  %v20470_v6 = vld [vmem:[#allocation12 + $0x328] sm:$0xff]  }
0x250e   :  { %19239 = vmatprep.subr.bf16.mxu1 %v20460_v23  ;;  %19267 = vmatprep.subr.bf16.mxu0 %v20461_v0  ;;  %v20471_v13 = vld [vmem:[#allocation12 + $0x3a8] sm:$0xff]  }
0x2511   :  { %19240 = vmatpush3.bf16.msra.mxu1 %v20462_v63  ;;  %19268 = vmatpush3.bf16.msra.mxu0 %v20463_v42 }
0x2512   :  { %19241 = vmatprep.subr.bf16.mxu1 %v20464_v52  ;;  %19269 = vmatprep.subr.bf16.mxu0 %v20465_v14 }
0x2515   :  { %19242 = vmatpush3.bf16.msra.mxu1 %v20466_v31  ;;  %19270 = vmatpush3.bf16.msra.mxu0 %v20467_v15 }
0x2516   :  { %19243 = vmatprep.subr.bf16.mxu1 %v20468_v46  ;;  %19271 = vmatprep.subr.bf16.mxu0 %v20469_v16 }
0x2519   :  { %19244 = vmatpush3.bf16.msra.mxu1 %v20470_v6  ;;  %19272 = vmatpush3.bf16.msra.mxu0 %v20471_v13 }
0x251a   :  { %19245 = vmatprep.subr.bf16.mxu1 %v20472_v60  ;;  %19273 = vmatprep.subr.bf16.mxu0 %v20473_v32 }
0x251d   :  { %19246 = vmatpush3.bf16.msra.mxu1 %v20474_v61  ;;  %19274 = vmatpush3.bf16.msra.mxu0 %v20475_v21 }
0x251e   :  { %19247 = vmatprep.subr.bf16.mxu1 %v20476_v29  ;;  %19275 = vmatprep.subr.bf16.mxu0 %v20477_v53 }
0x2521   :  { %19248 = vmatpush3.bf16.msra.mxu1 %v20478_v37  ;;  %19276 = vmatpush3.bf16.msra.mxu0 %v20479_v57 }
0x2522   :  { %20067 = vmatprep.subr.mxu0 %v21046_v28 }
0x2524   :  { %16770 = vmatmul.mubr.bf16.vlgmr.msra.gmra.mrb[0].mxu1 %v23571_v40  ;;  %16819 = vmatmul.mubr.bf16.vlgmr.msra.gmra.mrb[4].mxu0 %v23573_v5 }
0x2525   :  { %16777 = vmatprep.mubr.bf16.mxu1 %v23591_v18  ;;  %16826 = vmatprep.mubr.bf16.mxu0 %v23593_v49 }
0x252c   :  { %16778 = vmatmul.mubr.bf16.gmra.mrb[4].mxu1 %v23587_v22  ;;  %16827 = vmatmul.mubr.bf16.gmra.mrb[8].mxu0 %v23589_v35 }
0x252d   :  { %20069 = vmatprep.mubr.msk.f32.mxu0 %vm21047_vm3, %v21046_v28 }
0x2595   :  { %v19081_v38 = vpop.f32.mrb[232].mxu1  ;;  %v19109_v55 = vpop.f32.mrb[236].mxu0 }
0x2596   :  { %v19082_v47 = vpop.f32.mrb[233].mxu1  ;;  %v19110_v27 = vpop.f32.mrb[237].mxu0 }
0x2597   :  { %v19083_v25 = vadd.f32 %v19082_v47, %v19081_v38  ;;  %v19111_v40 = vadd.f32 %v19110_v27, %v19109_v55  ;;  %v19084_v39 = vpop.f32.mrb[234].mxu1  ;;  %v19112_v5 = vpop.f32.mrb[238].mxu0 }
0x2598   :  { %v19085_v7 = vpop.f32.mrb[235].mxu1  ;;  %v19113_v59 = vpop.f32.mrb[239].mxu0 }
0x2599   :  { %v16478_v26 = vadd.f32 %v19083_v25, %v18377_v62  ;;  %v19086_v41 = vadd.f32 %v19085_v7, %v19084_v39  ;;  %v19114_v19 = vadd.f32 %v19113_v59, %v19112_v5 }
0x259b   :  { %v16527_v3 = vadd.f32 %v19111_v40, %v16478_v26  ;;  %v16481_v10 = vadd.f32 %v19086_v41, %v18377_v62 }
0x259d   :  { %v16530_v9 = vadd.f32 %v19114_v19, %v16481_v10 }
0x25a1   :  { %v19087_v22 = vpop.f32.mrb[236].mxu1  ;;  %v19115_v35 = vpop.f32.mrb[240].mxu0 }
0x25a2   :  { %v19088_v18 = vpop.f32.mrb[237].mxu1  ;;  %v19116_v49 = vpop.f32.mrb[241].mxu0 }
0x25a3   :  { %v19089_v30 = vadd.f32 %v19088_v18, %v19087_v22  ;;  %v19117_v11 = vadd.f32 %v19116_v49, %v19115_v35  ;;  %v19090_v50 = vpop.f32.mrb[238].mxu1  ;;  %v19118_v2 = vpop.f32.mrb[242].mxu0 }
0x25a4   :  { %v19091_v8 = vpop.f32.mrb[239].mxu1  ;;  %v19119_v34 = vpop.f32.mrb[243].mxu0 }
0x25a5   :  { %v16486_v48 = vadd.f32 %v19089_v30, %v18377_v62  ;;  %v19092_v58 = vadd.f32 %v19091_v8, %v19090_v50  ;;  %v19120_v45 = vadd.f32 %v19119_v34, %v19118_v2 }
0x25a7   :  { %v16535_v24 = vadd.f32 %v19117_v11, %v16486_v48  ;;  %v16489_v33 = vadd.f32 %v19092_v58, %v18377_v62 }
0x25a9   :  { %v16538_v12 = vadd.f32 %v19120_v45, %v16489_v33 }
0x25b5   :  { %v19137_v17 = vpop.f32.mrb[240].mxu1  ;;  %v19165_v56 = vpop.f32.mrb[244].mxu0 }
0x25b6   :  { %v19138_v23 = vpop.f32.mrb[241].mxu1  ;;  %v19166_v0 = vpop.f32.mrb[245].mxu0 }
0x25b7   :  { %v19139_v63 = vadd.f32 %v19138_v23, %v19137_v17  ;;  %v19167_v42 = vadd.f32 %v19166_v0, %v19165_v56  ;;  %v19140_v52 = vpop.f32.mrb[242].mxu1  ;;  %v19168_v14 = vpop.f32.mrb[246].mxu0 }
0x25b8   :  { %v19141_v31 = vpop.f32.mrb[243].mxu1  ;;  %v19169_v15 = vpop.f32.mrb[247].mxu0 }
0x25b9   :  { %v16576_v46 = vadd.f32 %v19139_v63, %v16527_v3  ;;  %v19142_v16 = vadd.f32 %v19141_v31, %v19140_v52  ;;  %v19170_v6 = vadd.f32 %v19169_v15, %v19168_v14 }
0x25bb   :  { %v16625_v13 = vadd.f32 %v19167_v42, %v16576_v46  ;;  %v16579_v60 = vadd.f32 %v19142_v16, %v16530_v9 }
0x25bd   :  { %v16628_v32 = vadd.f32 %v19170_v6, %v16579_v60  ;;  %v19143_v61 = vpop.f32.mrb[244].mxu1  ;;  %v19171_v21 = vpop.f32.mrb[248].mxu0 }
0x25be   :  { %v19144_v29 = vpop.f32.mrb[245].mxu1  ;;  %v19172_v53 = vpop.f32.mrb[249].mxu0 }
0x25bf   :  { %v19145_v37 = vadd.f32 %v19144_v29, %v19143_v61  ;;  %v19173_v57 = vadd.f32 %v19172_v53, %v19171_v21  ;;  %v19146_v38 = vpop.f32.mrb[246].mxu1  ;;  %v19174_v55 = vpop.f32.mrb[250].mxu0 }
0x25c0   :  { %v19147_v62 = vpop.f32.mrb[247].mxu1  ;;  %v19175_v47 = vpop.f32.mrb[251].mxu0 }
0x25c1   :  { %v16584_v27 = vadd.f32 %v19145_v37, %v16535_v24  ;;  %v19148_v25 = vadd.f32 %v19147_v62, %v19146_v38  ;;  %v19176_v40 = vadd.f32 %v19175_v47, %v19174_v55 }
0x25c3   :  { %v16633_v39 = vadd.f32 %v19173_v57, %v16584_v27  ;;  %v16587_v5 = vadd.f32 %v19148_v25, %v16538_v12 }
0x25c5   :  { %v16636_v7 = vadd.f32 %v19176_v40, %v16587_v5 }
0x25d6   :  { %v19193_v59 = vpop.f32.mrb[248].mxu1  ;;  %v19221_v26 = vpop.f32.mrb[252].mxu0 }
0x25d7   :  { %v19194_v41 = vpop.f32.mrb[249].mxu1  ;;  %v19222_v19 = vpop.f32.mrb[253].mxu0 }
0x25d8   :  { %v19195_v3 = vadd.f32 %v19194_v41, %v19193_v59  ;;  %v19223_v10 = vadd.f32 %v19222_v19, %v19221_v26  ;;  %v19196_v9 = vpop.f32.mrb[250].mxu1  ;;  %v19224_v22 = vpop.f32.mrb[254].mxu0 }
0x25d9   :  { %v19197_v35 = vpop.f32.mrb[251].mxu1  ;;  %v19225_v18 = vpop.f32.mrb[255].mxu0 }
0x25da   :  { %v16674_v49 = vadd.f32 %v19195_v3, %v16625_v13  ;;  %v19198_v30 = vadd.f32 %v19197_v35, %v19196_v9  ;;  %v19226_v11 = vadd.f32 %v19225_v18, %v19224_v22 }
0x25dc   :  { %v16723_v50 = vadd.f32 %v19223_v10, %v16674_v49  ;;  %v16677_v2 = vadd.f32 %v19198_v30, %v16628_v32 }
0x25de   :  { %v16726_v8 = vadd.f32 %v19226_v11, %v16677_v2  ;;  %v19199_v34 = vpop.f32.mrb[252].mxu1  ;;  %v19227_v48 = vpop.f32.mrb[0].mxu0 }
0x25df   :  { %v19200_v58 = vpop.f32.mrb[253].mxu1  ;;  %v19228_v45 = vpop.f32.mrb[1].mxu0 }
0x25e0   :  { %v19201_v24 = vadd.f32 %v19200_v58, %v19199_v34  ;;  %v19229_v33 = vadd.f32 %v19228_v45, %v19227_v48  ;;  %v19202_v12 = vpop.f32.mrb[254].mxu1  ;;  %v19230_v17 = vpop.f32.mrb[2].mxu0 }
0x25e1   :  { %v19203_v56 = vpop.f32.mrb[255].mxu1  ;;  %v19231_v23 = vpop.f32.mrb[3].mxu0 }
0x25e2   :  { %v16682_v0 = vadd.f32 %v19201_v24, %v16633_v39  ;;  %v19204_v63 = vadd.f32 %v19203_v56, %v19202_v12  ;;  %v19232_v42 = vadd.f32 %v19231_v23, %v19230_v17 }
0x25e4   :  { %v16731_v52 = vadd.f32 %v19229_v33, %v16682_v0  ;;  %v16685_v14 = vadd.f32 %v19204_v63, %v16636_v7 }
0x25e6   :  { %v16734_v31 = vadd.f32 %v19232_v42, %v16685_v14 }
0x25f7   :  { %v19249_v15 = vpop.f32.mrb[0].mxu1  ;;  %v19277_v46 = vpop.f32.mrb[4].mxu0 }
0x25f8   :  { %v19250_v16 = vpop.f32.mrb[1].mxu1  ;;  %v19278_v6 = vpop.f32.mrb[5].mxu0 }
0x25f9   :  { %v19251_v13 = vadd.f32 %v19250_v16, %v19249_v15  ;;  %v19279_v60 = vadd.f32 %v19278_v6, %v19277_v46  ;;  %v19252_v32 = vpop.f32.mrb[2].mxu1  ;;  %v19280_v61 = vpop.f32.mrb[6].mxu0  ;;  %v16913_v46 = vld [vmem:[%s23783_s2] sm:$0xff]  ;;  %v16914_v16 = vld [vmem:[%s23783_s2 + $0x8] sm:$0xff] }
0x25fa   :  { %v19253_v21 = vpop.f32.mrb[3].mxu1  ;;  %v19281_v29 = vpop.f32.mrb[7].mxu0  ;;  %v20123_v6 = vpack.c.bf16 %v16914_v16, %v16913_v46 }
0x25fb   :  { %v16772_v53 = vadd.f32 %v19251_v13, %v16723_v50  ;;  %v19254_v37 = vadd.f32 %v19253_v21, %v19252_v32  ;;  %v19282_v57 = vadd.f32 %v19281_v29, %v19280_v61  ;;  %v16915_v13 = vld [vmem:[%s23783_s2 + $0x10] sm:$0xff] }
0x25fc   :  { %20124 = vmatprep.subr.bf16.mxu1 %v20123_v6 }
0x25fd   :  { %v16821_v38 = vadd.f32 %v19279_v60, %v16772_v53  ;;  %v16775_v55 = vadd.f32 %v19254_v37, %v16726_v8  ;;  %20126 = vmatpush3.bf16.msra.mxu1 %v20123_v6  ;;  %v16916_v60 = vld [vmem:[%s23783_s2 + $0x18] sm:$0xff] }
0x25fe   :  { %v20127_v32 = vpack.c.bf16 %v16916_v60, %v16915_v13 }
0x25ff   :  { %v16824_v62 = vadd.f32 %v19282_v57, %v16775_v55  ;;  %v19255_v47 = vpop.f32.mrb[4].mxu1  ;;  %v19283_v27 = vpop.f32.mrb[8].mxu0  ;;  %v16835_v25 = vadd.f32 %v16821_v38, %v23352_v20 }
0x2600   :  { %v19256_v40 = vpop.f32.mrb[5].mxu1  ;;  %v19284_v39 = vpop.f32.mrb[9].mxu0  ;;  %20128 = vmatprep.subr.bf16.mxu1 %v20127_v32 }
0x2601   :  { %v19257_v5 = vadd.f32 %v19256_v40, %v19255_v47  ;;  %v19285_v7 = vadd.f32 %v19284_v39, %v19283_v27  ;;  %v19258_v59 = vpop.f32.mrb[6].mxu1  ;;  %v19286_v26 = vpop.f32.mrb[10].mxu0  ;;  %v16841_v41 = vsel %vm394_vm2, %v16835_v25, 0.0  ;;  %v16836_v19 = vadd.f32 %v16824_v62, %v23349_v1  ;;  %20130 = vmatpush3.bf16.msra.mxu1 %v20127_v32  ;;  %v18506_v39 = vld [vmem:[%s23784_s7] ss:$0 sm:$0xff] }
0x2602   :  { %v19259_v3 = vpop.f32.mrb[7].mxu1  ;;  %v19287_v10 = vpop.f32.mrb[11].mxu0  ;;  %16842 = vadd.xlane.f32.xlu1 %v16841_v41  ;;  %20077 = vmatprep.subr.mxu1 %v21046_v28 }
0x2603   :  { %v16780_v9 = vadd.f32 %v19257_v5, %v16731_v52  ;;  %v19260_v22 = vadd.f32 %v19259_v3, %v19258_v59  ;;  %v19288_v35 = vadd.f32 %v19287_v10, %v19286_v26  ;;  %v16844_v18 = vsel %vm394_vm2, %v16836_v19, 0.0  ;;  %v18507_v59 = vld [vmem:[%s23785_s19] ss:$0 sm:$0xff] }
0x2604   :  { %16845 = vadd.xlane.f32.xlu0 %v16844_v18 }
0x2605   :  { %v16829_v20 = vadd.f32 %v19285_v7, %v16780_v9  ;;  %v16783_v49 = vadd.f32 %v19260_v22, %v16734_v31 }
0x2607   :  { %v16832_v30 = vadd.f32 %v19288_v35, %v16783_v49  ;;  %v16837_v11 = vadd.f32 %v16829_v20, %v23373_v4 }
0x2609   :  { %v16847_v50 = vsel %vm394_vm2, %v16837_v11, 0.0  ;;  %v16838_v2 = vadd.f32 %v16832_v30, %v23375_v43 }
0x260a   :  { %16848 = vadd.xlane.f32.xlu1 %v16847_v50  ;;  %v17030_v50 = vld [vmem:[%s21222_s30] sm:$0xff]  ;;  %s23786_s30 = sld [smem:[#allocation40_spill]] }
0x260b   :  { %v16850_v1 = vsel %vm394_vm2, %v16838_v2, 0.0 }
0x260c   :  { %16851 = vadd.xlane.f32.xlu0 %v16850_v1 }
0x268f   :  { %v16843_v8 = vpop.xlane.xlu1 %16842 }
0x2690   :  { %v16853_v34 = vmul.f32 0.03125, %v16843_v8 }
0x2691   :  { %v16846_v48 = vpop.xlane.xlu0 %16845 }
0x2692   :  { %v16857_v58 = vsub.f32 %v16835_v25, %v16853_v34  ;;  %v16854_v45 = vmul.f32 0.03125, %v16846_v48 }
0x2694   :  { %v16858_v24 = vsub.f32 %v16836_v19, %v16854_v45  ;;  %v16861_v33 = vmul.f32 %v16857_v58, %v16857_v58 }
0x2696   :  { %v16865_v12 = vsel %vm394_vm2, %v16861_v33, 0.0  ;;  %v16862_v17 = vmul.f32 %v16858_v24, %v16858_v24 }
0x2697   :  { %16866 = vadd.xlane.f32.xlu1 %v16865_v12  ;;  %v16849_v4 = vpop.xlane.xlu1 %16848 }
0x2698   :  { %v16855_v56 = vmul.f32 0.03125, %v16849_v4  ;;  %v16868_v43 = vsel %vm394_vm2, %v16862_v17, 0.0 }
0x2699   :  { %16869 = vadd.xlane.f32.xlu0 %v16868_v43  ;;  %v16852_v23 = vpop.xlane.xlu0 %16851 }
0x269a   :  { %v16859_v0 = vsub.f32 %v16837_v11, %v16855_v56  ;;  %v16856_v63 = vmul.f32 0.03125, %v16852_v23 }
0x269c   :  { %v16860_v42 = vsub.f32 %v16838_v2, %v16856_v63  ;;  %v16863_v52 = vmul.f32 %v16859_v0, %v16859_v0  ;;  %v18508_v2 = vld [vmem:[#allocation15] ss:$0 sm:$0xff] }
0x269e   :  { %v16871_v14 = vsel %vm394_vm2, %v16863_v52, 0.0  ;;  %v16864_v31 = vmul.f32 %v16860_v42, %v16860_v42 }
0x269f   :  { %16872 = vadd.xlane.f32.xlu1 %v16871_v14 }
0x26a0   :  { %v16874_v15 = vsel %vm394_vm2, %v16864_v31, 0.0 }
0x26a1   :  { %16875 = vadd.xlane.f32.xlu0 %v16874_v15 }
0x26b0   :  { %17035 = vperm.xlu1 %20222, %v17030_v50  }
0x2724   :  { %v16867_v61 = vpop.xlane.xlu1 %16866 }
0x2725   :  { %v16877_v21 = vmul.f32 0.03125, %v16867_v61 }
0x2726   :  { %v16870_v29 = vpop.xlane.xlu0 %16869 }
0x2727   :  { %v16881_v53 = vadd.f32 1e-05, %v16877_v21  ;;  %v16878_v37 = vmul.f32 0.03125, %v16870_v29 }
0x2729   :  { %20760 = vrsqrt.f32 %v16881_v53  ;;  %v16882_v57 = vadd.f32 1e-05, %v16878_v37 }
0x272b   :  { %20762 = vrsqrt.f32 %v16882_v57 }
0x272c   :  { %v16873_v38 = vpop.xlane.xlu1 %16872 }
0x272d   :  { %v16879_v55 = vmul.f32 0.03125, %v16873_v38 }
0x272e   :  { %v16876_v62 = vpop.xlane.xlu0 %16875 }
0x272f   :  { %v16883_v47 = vadd.f32 1e-05, %v16879_v55  ;;  %v16880_v27 = vmul.f32 0.03125, %v16876_v62 }
0x2731   :  { %20764 = vrsqrt.f32 %v16883_v47  ;;  %v16884_v25 = vadd.f32 1e-05, %v16880_v27 }
0x2733   :  { %v20761_v40 = vpop.eup %20760  ;;  %20766 = vrsqrt.f32 %v16884_v25 }
0x2734   :  { %v16889_v5 = vmul.f32 %v20761_v40, %v16857_v58 }
0x2735   :  { %v20763_v7 = vpop.eup %20762 }
0x2736   :  { %v16890_v26 = vmul.f32 %v20763_v7, %v16858_v24  ;;  %v16899_v41 = vmul.f32 %v18506_v39, %v16889_v5 }
0x2738   :  { %v16900_v19 = vmul.f32 %v18506_v39, %v16890_v26  ;;  %v16909_v3 = vadd.f32 %v18507_v59, %v16899_v41 }
0x273a   :  { %v16910_v10 = vadd.f32 %v18507_v59, %v16900_v19  ;;  %20061 = vmatprep.mubr.msk.f32.mxu1 %vm394_vm2, %v16909_v3 }
0x273b   :  { %v20765_v9 = vpop.eup %20764 }
0x273c   :  { %20062 = vmatmul.mubr.msk.f32.vlgmr.msra.gmra.mrb[8].mxu1 %vm394_vm2, %v16910_v10  ;;  %v16891_v22 = vmul.f32 %v20765_v9, %v16859_v0 }
0x273d   :  { %v20767_v35 = vpop.eup %20766 }
0x273e   :  { %v16892_v18 = vmul.f32 %v20767_v35, %v16860_v42  ;;  %v16901_v20 = vmul.f32 %v18506_v39, %v16891_v22 }
0x2740   :  { %v16902_v49 = vmul.f32 %v18506_v39, %v16892_v18  ;;  %v16911_v30 = vadd.f32 %v18507_v59, %v16901_v20 }
0x2742   :  { %v16912_v11 = vadd.f32 %v18507_v59, %v16902_v49  ;;  %20064 = vmatprep.mubr.msk.f32.mxu1 %vm394_vm2, %v16911_v30 }
0x2744   :  { %20065 = vmatmul.mubr.msk.f32.gmra.mrb[10].mxu1 %vm394_vm2, %v16912_v11 }
0x2745   :  { %20079 = vmatprep.mubr.msk.f32.mxu1 %vm21047_vm3, %v21046_v28 }
0x280f   :  { %v20063_v1 = vpop.f32.mrb[8].mxu1 }
0x2810   :  { %v23638_v8 = vadd.f32 %v20063_v1, %v18508_v2  ;;  %v17002_v34 = vpop.f32.mrb[9].mxu1  ;;  %v17029_v1 = vld [vmem:[%s23786_s30] sm:$0xff] }
0x2811   :  { %v17003_v48 = vadd.f32 %v18508_v2, %v17002_v34 }
0x2812   :  { %v23642_v58 = vcombine.high %v23638_v8, %v23638_v8  ;;  %v17049_v45 = vrot.slane %v23638_v8, %v22227_v44  ;;  %v17252_v24 = vrot.slane %v23638_v8, %v22234_v36  ;;  %v17437_v33 = vrot.slane %v23638_v8, %v22229_v54 }
0x2813   :  { %v17025_v12 = vcombine.high %v17003_v48, %v17003_v48  ;;  %v17622_v17 = vrot.slane %v23638_v8, %v22236_v51  ;;  %v17041_v4 = vrot.slane %v17003_v48, %v22227_v44  ;;  %v17244_v56 = vrot.slane %v17003_v48, %v22234_v36 }
0x2814   :  { %v17429_v43 = vrot.slane %v17003_v48, %v22229_v54  ;;  %v17614_v42 = vrot.slane %v17003_v48, %v22236_v51  ;;  %v17053_v14 = vrot.slane %v23642_v58, %v22227_v44  ;;  %v17256_v31 = vrot.slane %v23642_v58, %v22234_v36 }
0x2815   :  { %v17045_v23 = vrot.slane %v17025_v12, %v22227_v44  ;;  %v17248_v0 = vrot.slane %v17025_v12, %v22234_v36  ;;  %v17433_v63 = vrot.slane %v17025_v12, %v22229_v54  ;;  %v17618_v52 = vrot.slane %v17025_v12, %v22236_v51 }
0x2816   :  { %v17441_v15 = vrot.slane %v23642_v58, %v22229_v54  ;;  %v17626_v60 = vrot.slane %v23642_v58, %v22236_v51 }
0x2817   :  { %v20066_v46 = vpop.f32.mrb[10].mxu1  ;;  %v17071_v16 = vsel %vm17070_vm8, %v17045_v23, %v17041_v4  ;;  %v17273_v6 = vsel %vm17070_vm8, %v17248_v0, %v17244_v56  ;;  %v17458_v13 = vsel %vm17070_vm8, %v17433_v63, %v17429_v43  ;;  %v17643_v25 = vsel %vm17070_vm8, %v17618_v52, %v17614_v42  ;;  %v17036_v56 = vpop.permute.xlu1 %17035 }
0x2818   :  { %v17018_v32 = vadd.f32 %v20066_v46, %v18508_v2  ;;  %v17012_v61 = vpop.f32.mrb[11].mxu1  ;;  %v17073_v21 = vsel %vm17072_vm9, %v17049_v45, %v17071_v16  ;;  %v17274_v29 = vsel %vm17072_vm9, %v17252_v24, %v17273_v6  ;;  %v17459_v53 = vsel %vm17072_vm9, %v17437_v33, %v17458_v13  ;;  %v17031_v46 = vld [vmem:[%s21227_s27] sm:$0x1f] }
0x2819   :  { %v17013_v37 = vadd.f32 %v18508_v2, %v17012_v61  ;;  %v17075_v57 = vsel %vm17074_vm10, %v17053_v14, %v17073_v21  ;;  %v17275_v38 = vsel %vm17074_vm10, %v17256_v31, %v17274_v29  ;;  %v17460_v55 = vsel %vm17074_vm10, %v17441_v15, %v17459_v53 }
0x281a   :  { %v17028_v62 = vcombine.high %v17018_v32, %v17018_v32  ;;  %v17065_v47 = vrot.slane %v17018_v32, %v22227_v44  ;;  %v17268_v27 = vrot.slane %v17018_v32, %v22234_v36  ;;  %v17453_v19 = vrot.slane %v17018_v32, %v22229_v54 }
0x281b   :  { %v17027_v40 = vcombine.high %v17013_v37, %v17013_v37  ;;  %v17057_v39 = vrot.slane %v17013_v37, %v22227_v44  ;;  %v17260_v5 = vrot.slane %v17013_v37, %v22234_v36  ;;  %v17445_v7 = vrot.slane %v17013_v37, %v22229_v54 }
0x281c   :  { %v17630_v59 = vrot.slane %v17013_v37, %v22236_v51  ;;  %v17069_v26 = vrot.slane %v17028_v62, %v22227_v44  ;;  %v17272_v41 = vrot.slane %v17028_v62, %v22234_v36  ;;  %v17457_v18 = vrot.slane %v17028_v62, %v22229_v54 }
0x281d   :  { %v17061_v3 = vrot.slane %v17027_v40, %v22227_v44  ;;  %v17077_v10 = vsel %vm17076_vm11, %v17057_v39, %v17075_v57  ;;  %v17264_v9 = vrot.slane %v17027_v40, %v22234_v36  ;;  %v17276_v22 = vsel %vm17076_vm11, %v17260_v5, %v17275_v38 }
0x281e   :  { %v17449_v35 = vrot.slane %v17027_v40, %v22229_v54  ;;  %v17461_v20 = vsel %vm17076_vm11, %v17445_v7, %v17460_v55  ;;  %v17634_v49 = vrot.slane %v17027_v40, %v22236_v51  ;;  %v17638_v44 = vrot.slane %v17018_v32, %v22236_v51 }
0x281f   :  { %v17079_v30 = vsel %vm17078_vm12, %v17061_v3, %v17077_v10  ;;  %v17277_v11 = vsel %vm17078_vm12, %v17264_v9, %v17276_v22  ;;  %v17644_v50 = vsel %vm17072_vm9, %v17622_v17, %v17643_v25  ;;  %v17642_v33 = vrot.slane %v17028_v62, %v22236_v51  ;;  %v17032_v51 = vld [vmem:[#allocation16] sm:$0x1f] }
0x2820   :  { %v17081_v36 = vsel %vm17080_vm13, %v17065_v47, %v17079_v30  ;;  %v17278_v2 = vsel %vm17080_vm13, %v17268_v27, %v17277_v11  ;;  %v17462_v8 = vsel %vm17078_vm12, %v17449_v35, %v17461_v20  ;;  %v17645_v54 = vsel %vm17074_vm10, %v17626_v60, %v17644_v50  ;;  %17163 = vperm.xlu0 %20223, %v17032_v51  }
0x2821   :  { %v17083_v34 = vsel %vm17082_vm14, %v17069_v26, %v17081_v36  ;;  %v17279_v48 = vsel %vm17082_vm14, %v17272_v41, %v17278_v2  ;;  %v17463_v58 = vsel %vm17080_vm13, %v17453_v19, %v17462_v8  ;;  %v17646_v45 = vsel %vm17076_vm11, %v17630_v59, %v17645_v54 }
0x2822   :  { %20068 = vmatpush3.msra.mxu0 %v17083_v34  ;;  %20078 = vmatpush3.msra.mxu1 %v17279_v48  ;;  %v17464_v24 = vsel %vm17082_vm14, %v17457_v18, %v17463_v58  ;;  %v17647_v12 = vsel %vm17078_vm12, %v17634_v49, %v17646_v45 }
0x2823   :  { %20080 = vmatmul.mubr.msk.f32.vlgmr.msra.gmra.mrb[12].mxu1 %vm519_vm4, %v17029_v1  ;;  %20087 = vmatprep.subr.mxu1 %v21046_v28  ;;  %v17648_v17 = vsel %vm17080_vm13, %v17638_v44, %v17647_v12 }
0x2824   :  { %20070 = vmatmul.mubr.msk.f32.vlgmr.msra.gmra.mrb[12].mxu0 %vm519_vm4, %v17029_v1  ;;  %20088 = vmatpush3.msra.mxu1 %v17464_v24  ;;  %v17649_v4 = vsel %vm17082_vm14, %v17642_v33, %v17648_v17 }
0x2825   :  { %20089 = vmatprep.mubr.msk.f32.mxu1 %vm21047_vm3, %v21046_v28  ;;  %20097 = vmatprep.subr.mxu1 %v21046_v28 }
0x2826   :  { %20072 = vmatprep.subr.mxu0 %v21046_v28  ;;  %20074 = vmatprep.mubr.msk.f32.mxu0 %vm21047_vm3, %v21046_v28 }
0x2827   :  { %20090 = vmatmul.mubr.msk.f32.vlgmr.msra.gmra.mrb[14].mxu1 %vm519_vm4, %v17029_v1 }
0x2828   :  { %20098 = vmatpush3.msra.mxu1 %v17649_v4  ;;  %20099 = vmatprep.mubr.msk.f32.mxu1 %vm21047_vm3, %v21046_v28 }
0x282b   :  { %20100 = vmatmul.mubr.msk.f32.vlgmr.msra.gmra.mrb[16].mxu1 %vm519_vm4, %v17029_v1 }
0x289f   :  { %v17164_v38 = vpop.permute.xlu0 %17163 }
0x28f6   :  { %v17347_v43 = vpop.f32.mrb[12].mxu1 }
0x28f7   :  { %v17154_v23 = vpop.f32.mrb[12].mxu0  ;;  %v17348_v0 = vadd.f32 %v17347_v43, %v17036_v56  ;;  %v20081_v63 = vpop.f32.mrb[13].mxu1 }
0x28f8   :  { %v17155_v42 = vadd.f32 %v17154_v23, %v17036_v56  ;;  %v20071_v52 = vpop.f32.mrb[13].mxu0 }
0x28f9   :  { %v17352_v14 = vmul.f32 0.01, %v17348_v0  ;;  %vm17351_vm0 = vcmp.gt.f32.partialorder %v17348_v0, 0.0 }
0x28fa   :  { %vm17158_vm15 = vcmp.gt.f32.partialorder %v17155_v42, 0.0  ;;  %v17159_v31 = vmul.f32 0.01, %v17155_v42  ;;  %v17532_v15 = vpop.f32.mrb[14].mxu1 }
0x28fb   :  { %v17533_v16 = vadd.f32 %v17532_v15, %v17036_v56  ;;  %v20091_v6 = vpop.f32.mrb[15].mxu1  ;;  %v17353_v61 = vsel %vm17351_vm0, %v17348_v0, %v17352_v14 }
0x28fc   :  { %v17160_v13 = vsel %vm17158_vm15, %v17155_v42, %v17159_v31 }
0x28fd   :  { %20073 = vmatpush3.msra.mxu0 %v17160_v13  ;;  %vm17536_vm1 = vcmp.gt.f32.partialorder %v17533_v16, 0.0  ;;  %v17537_v60 = vmul.f32 0.01, %v17533_v16 }
0x28fe   :  { %20075 = vmatmul.mubr.msk.f32.vlgmr.msra.gmra.mrb[14].mxu0 %vm519_vm4, %v17031_v46  ;;  %20082 = vmatprep.subr.mxu0 %v21046_v28  ;;  %v17717_v32 = vpop.f32.mrb[16].mxu1 }
0x28ff   :  { %v17718_v21 = vadd.f32 %v17717_v32, %v17036_v56  ;;  %20083 = vmatpush3.msra.mxu0 %v17353_v61  ;;  %20084 = vmatprep.mubr.msk.f32.mxu0 %vm21047_vm3, %v21046_v28  ;;  %v20101_v29 = vpop.f32.mrb[17].mxu1  ;;  %v17538_v53 = vsel %vm17536_vm1, %v17533_v16, %v17537_v60 }
0x2900   :  { %20092 = vmatprep.subr.mxu0 %v21046_v28 }
0x2901   :  { %vm17721_vm2 = vcmp.gt.f32.partialorder %v17718_v21, 0.0  ;;  %v17722_v37 = vmul.f32 0.01, %v17718_v21 }
0x2902   :  { %20085 = vmatmul.mubr.msk.f32.vlgmr.msra.gmra.mrb[16].mxu0 %vm519_vm4, %v17031_v46 }
0x2903   :  { %20093 = vmatpush3.msra.mxu0 %v17538_v53  ;;  %20094 = vmatprep.mubr.msk.f32.mxu0 %vm21047_vm3, %v21046_v28  ;;  %v17723_v57 = vsel %vm17721_vm2, %v17718_v21, %v17722_v37 }
0x2904   :  { %20102 = vmatprep.subr.mxu0 %v21046_v28 }
0x2906   :  { %20095 = vmatmul.mubr.msk.f32.vlgmr.msra.gmra.mrb[18].mxu0 %vm519_vm4, %v17031_v46 }
0x2907   :  { %20103 = vmatpush3.msra.mxu0 %v17723_v57  ;;  %20104 = vmatprep.mubr.msk.f32.mxu0 %vm21047_vm3, %v21046_v28 }
0x290a   :  { %20105 = vmatmul.mubr.msk.f32.vlgmr.msra.gmra.mrb[20].mxu0 %vm519_vm4, %v17031_v46 }
0x29d1   :  { %v17235_v55 = vpop.f32.mrb[14].mxu0 }
0x29d2   :  { %v17236_v62 = vadd.f32 %v17235_v55, %v17164_v38  ;;  %v20076_v47 = vpop.f32.mrb[15].mxu0 }
0x29d4   :  { %17240 = vst.msk [vmem:[%s21237_s6] sm:$0x1f] %vm17239_vm5, %v17236_v62 }
0x29d5   :  { %v17420_v27 = vpop.f32.mrb[16].mxu0 }
0x29d6   :  { %v17421_v25 = vadd.f32 %v17420_v27, %v17164_v38  ;;  %v20086_v40 = vpop.f32.mrb[17].mxu0 }
0x29d8   :  { %18517 = vst.msk [vmem:[%s21237_s6 + $0x8] sm:$0x1f] %vm17239_vm5, %v17421_v25 }
0x29d9   :  { %v17605_v39 = vpop.f32.mrb[18].mxu0 }
0x29da   :  { %v17606_v5 = vadd.f32 %v17605_v39, %v17164_v38  ;;  %v20096_v7 = vpop.f32.mrb[19].mxu0 }
0x29dc   :  { %18520 = vst.msk [vmem:[%s21237_s6 + $0x10] sm:$0x1f] %vm17239_vm5, %v17606_v5 }
0x29dd   :  { %v17790_v59 = vpop.f32.mrb[20].mxu0 }
0x29de   :  { %v17791_v26 = vadd.f32 %v17790_v59, %v17164_v38  ;;  %v20106_v28 = vpop.f32.mrb[21].mxu0 }
0x29e0   :  { %18523 = vst.msk [vmem:[%s21237_s6 + $0x18] sm:$0x1f] %vm17239_vm5, %v17791_v26 }
0x29e1   :  { %17800 = vsyncpa [#allocation3], 1 }
0x29e2   :  { %17801 = vsyncpa [#allocation5], 1 }
0x29e3   :  { %17802 = vsyncpa [#allocation8], 1 }
0x29e4   :  { %17803 = vsyncpa [#allocation11], 1 }
0x29e5   :  { %17804 = vsyncpa [#allocation14], 1 }
0x29e6   :  { %17805 = vsyncpa [#allocation17], 1 }

</bundles_post_ra>
